<compile_context>
chip_gen: v7x
topology: tpu7x:2x2x1
jax: 0.10.0
libtpu: 0.0.40
codegen_flags: <defaults>
</compile_context>

<pallas_src>
import functools

import jax
import jax.numpy as jnp
from jax.experimental import pallas as pl
from jax.experimental.pallas import tpu as pltpu

BN_EPS = 1e-3                  # BatchNorm2d(eps=0.001)
_MAX_SINGLE_STEP_M = 2048      # fused single-call path up to this many rows
_TM_FALLBACK = 1024            # M tile for the two-pass fallback
_VMEM_LIMIT = 32 * 1024 * 1024


def _round_up(x, m):
    return ((x + m - 1) // m) * m


# ---------------------------------------------------------------------------
# Pallas kernels
# ---------------------------------------------------------------------------
def _conv_bn_relu_kernel(x_ref, w_ref, g_ref, b_ref, o_ref, *, inv_m):
    """Whole BasicConv2d in ONE kernel (single-M-tile path).

    x_ref : (M, K_pad)  bf16 im2col patch matrix (zero-padded K columns)
    w_ref : (K_pad, C)  bf16 conv weight
    g_ref, b_ref : (1, C) f32 BN gamma / beta
    o_ref : (M, C)      conv + BN(batch stats) + ReLU output
    """
    y = jnp.dot(x_ref[...], w_ref[...], preferred_element_type=jnp.float32)
    mean = jnp.sum(y, axis=0, keepdims=True) * inv_m
    ex2 = jnp.sum(y * y, axis=0, keepdims=True) * inv_m
    var = jnp.maximum(ex2 - mean * mean, 0.0)
    scale = g_ref[...] * jax.lax.rsqrt(var + BN_EPS)     # rsqrt -> EUP slot
    shift = b_ref[...] - mean * scale
    o_ref[...] = jnp.maximum(y * scale + shift, 0.0).astype(o_ref.dtype)


def _conv_bn_relu_pool_concat_kernel(x_ref, w_ref, g_ref, b_ref, o_ref, *,
                                     inv_m, cin, ntaps, pool_first):
    """BasicConv2d(3x3, s2, valid) + MaxPool2d(3x3, s2) + channel concat.

    The max-pool windows coincide with the conv windows, so the pool is just a
    tap-axis max over the SAME im2col patch matrix -- no second HBM read, no
    separate pallas_call and no XLA concatenate (mixed_3a / mixed_5a blocks).
    """
    cout = w_ref.shape[1]
    x = x_ref[...]

    # conv + BN(batch stats) + ReLU
    y = jnp.dot(x, w_ref[...], preferred_element_type=jnp.float32)
    mean = jnp.sum(y, axis=0, keepdims=True) * inv_m
    ex2 = jnp.sum(y * y, axis=0, keepdims=True) * inv_m
    var = jnp.maximum(ex2 - mean * mean, 0.0)
    scale = g_ref[...] * jax.lax.rsqrt(var + BN_EPS)
    shift = b_ref[...] - mean * scale
    conv = jnp.maximum(y * scale + shift, 0.0).astype(o_ref.dtype)

    # max-pool: reduce the KH*KW tap axis of the shared patch matrix
    pool = x[:, 0:cin].astype(jnp.float32)
    for t in range(1, ntaps):
        pool = jnp.maximum(pool, x[:, t * cin:(t + 1) * cin].astype(jnp.float32))
    pool = pool.astype(o_ref.dtype)

    if pool_first:                      # mixed_3a: cat([pool, conv])
        o_ref[:, :cin] = pool
        o_ref[:, cin:] = conv
    else:                               # mixed_5a: cat([conv, pool])
        o_ref[:, :cout] = conv
        o_ref[:, cout:] = pool


def _matmul_stats_kernel(x_ref, w_ref, y_ref, stats_ref):
    """Fallback pass 1 (large M): matmul tile + PER-TILE BN partial stats.

    Per-tile stats (no resident accumulator) keep the grid axis 'parallel',
    so v7x can shard it across both TensorCores.
    stats block: (1, 8, C) -- row 0 = sum, row 1 = sum of squares.
    """
    y = jnp.dot(x_ref[...], w_ref[...], preferred_element_type=jnp.float32)
    y_ref[...] = y.astype(y_ref.dtype)
    sums = jnp.sum(y, axis=0, keepdims=True)
    sq = jnp.sum(y * y, axis=0, keepdims=True)
    row = jax.lax.broadcasted_iota(jnp.int32, stats_ref.shape[1:], 0)
    stats_ref[0] = jnp.where(row == 0, sums, jnp.where(row == 1, sq, 0.0))


def _bn_relu_kernel(y_ref, stats_ref, g_ref, b_ref, o_ref, *, inv_m):
    """Fallback pass 2: reduce per-tile stats, fold BN in-kernel, apply + ReLU."""
    tot = jnp.sum(stats_ref[...], axis=0)                 # (8, C)
    mean = tot[0:1, :] * inv_m
    ex2 = tot[1:2, :] * inv_m
    var = jnp.maximum(ex2 - mean * mean, 0.0)
    scale = g_ref[...] * jax.lax.rsqrt(var + BN_EPS)
    shift = b_ref[...] - mean * scale
    y = y_ref[...].astype(jnp.float32)
    o_ref[...] = jnp.maximum(y * scale + shift, 0.0).astype(o_ref.dtype)


def _maxpool_kernel(x_ref, o_ref):
    """Standalone MaxPool2d(3x3, s2) on one NHWC batch element (fallback only).

    Column taps are sublane-strided reads (no XLA parity transpose); row taps
    use a pairwise max + layout-trivial leading-dim reshape.
    """
    _, oh, ow, c = o_ref.shape
    cm = x_ref[0, :, pl.ds(0, ow, stride=2), :]
    cm = jnp.maximum(cm, x_ref[0, :, pl.ds(1, ow, stride=2), :])
    cm = jnp.maximum(cm, x_ref[0, :, pl.ds(2, ow, stride=2), :])
    p = jnp.maximum(cm[0:2 * oh], cm[1:2 * oh + 1])        # (2*oh, ow, c)
    o_ref[0] = jnp.max(p.reshape(oh, 2, ow, c), axis=1)


# ---------------------------------------------------------------------------
# Wrappers (glue: padding, patch extraction, reshapes)
# ---------------------------------------------------------------------------
def _im2col(x, kh, kw, sh, sw, ph, pw):
    """x: (N, H, W, C) -> (N*OH*OW, KH*KW*C) bf16 patch matrix, OH, OW."""
    n, h, w, c = x.shape
    xp = jnp.pad(x.astype(jnp.bfloat16), ((0, 0), (ph, ph), (pw, pw), (0, 0)))
    oh = (h + 2 * ph - kh) // sh + 1
    ow = (w + 2 * pw - kw) // sw + 1
    patches = []
    for i in range(kh):
        for j in range(kw):
            patches.append(
                xp[:, i:i + sh * (oh - 1) + 1:sh, j:j + sw * (ow - 1) + 1:sw, :])
    cols = jnp.stack(patches, axis=3)            # (N, OH, OW, KH*KW, C)
    return cols.reshape(n * oh * ow, kh * kw * c), oh, ow


def conv_bn_relu(x, p, *, pool_concat=None, out_dtype=jnp.bfloat16):
    """BasicConv2d forward on NHWC input.

    pool_concat: None | "pool_first" | "pool_last".  When set, the layer is a
    3x3/s2/valid conv and the matching MaxPool2d(3x3, s2) of the SAME input is
    computed inside the kernel from the shared patch matrix and concatenated
    with the conv output (mixed_3a / mixed_5a blocks).
    """
    n = x.shape[0]
    cin = x.shape[-1]
    kh, kw = p["ksize"]
    sh, sw = p["stride"]
    ph, pw = p["pad"]
    cout = p["gamma"].shape[1]
    if pool_concat is not None:
        assert (kh, kw) == (3, 3) and (sh, sw) == (2, 2) and (ph, pw) == (0, 0)

    cols, oh, ow = _im2col(x, kh, kw, sh, sw, ph, pw)
    m, k = cols.shape
    k_pad = p["w"].shape[0]
    cols = jnp.pad(cols, ((0, 0), (0, k_pad - k)))
    osz = jnp.dtype(out_dtype).itemsize

    if m <= _MAX_SINGLE_STEP_M:
        # ---- single fused pallas_call (always taken at the demo shapes) -----
        if pool_concat is None:
            c_tot = cout
            kern = functools.partial(_conv_bn_relu_kernel, inv_m=1.0 / m)
        else:
            c_tot = cout + cin
            kern = functools.partial(
                _conv_bn_relu_pool_concat_kernel, inv_m=1.0 / m, cin=cin,
                ntaps=kh * kw, pool_first=(pool_concat == "pool_first"))
        out2d = pl.pallas_call(
            kern,
            out_shape=jax.ShapeDtypeStruct((m, c_tot), out_dtype),
            grid=(1,),
            in_specs=[
                pl.BlockSpec((m, k_pad), lambda i: (0, 0)),
                pl.BlockSpec((k_pad, cout), lambda i: (0, 0)),
                pl.BlockSpec((1, cout), lambda i: (0, 0)),
                pl.BlockSpec((1, cout), lambda i: (0, 0)),
            ],
            out_specs=pl.BlockSpec((m, c_tot), lambda i: (0, 0)),
            compiler_params=pltpu.CompilerParams(
                dimension_semantics=("arbitrary",),
                vmem_limit_bytes=_VMEM_LIMIT),
            cost_estimate=pl.CostEstimate(
                flops=2 * m * k_pad * cout,
                transcendentals=cout,
                bytes_accessed=m * k_pad * 2 + k_pad * cout * 2
                + 2 * cout * 4 + m * c_tot * osz),
        )(cols, p["w"], p["gamma"], p["beta"])
        return out2d.reshape(n, oh, ow, c_tot)

    # ---- two-pass fallback for very large M (not hit at the demo shapes) ----
    tm = _TM_FALLBACK
    m_pad = _round_up(m, tm)
    n_m = m_pad // tm
    cols = jnp.pad(cols, ((0, m_pad - m), (0, 0)))
    y, stats = pl.pallas_call(
        _matmul_stats_kernel,
        out_shape=(jax.ShapeDtypeStruct((m_pad, cout), jnp.bfloat16),
                   jax.ShapeDtypeStruct((n_m, 8, cout), jnp.float32)),
        grid=(n_m,),
        in_specs=[pl.BlockSpec((tm, k_pad), lambda i: (i, 0)),
                  pl.BlockSpec((k_pad, cout), lambda i: (0, 0))],
        out_specs=(pl.BlockSpec((tm, cout), lambda i: (i, 0)),
                   pl.BlockSpec((1, 8, cout), lambda i: (i, 0, 0))),
        compiler_params=pltpu.CompilerParams(
            dimension_semantics=("parallel",),    # per-tile stats -> megacore OK
            vmem_limit_bytes=_VMEM_LIMIT),
    )(cols, p["w"])
    out2d = pl.pallas_call(
        functools.partial(_bn_relu_kernel, inv_m=1.0 / m),
        out_shape=jax.ShapeDtypeStruct((m_pad, cout), out_dtype),
        grid=(n_m,),
        in_specs=[pl.BlockSpec((tm, cout), lambda i: (i, 0)),
                  pl.BlockSpec((n_m, 8, cout), lambda i: (0, 0, 0)),
                  pl.BlockSpec((1, cout), lambda i: (0, 0)),
                  pl.BlockSpec((1, cout), lambda i: (0, 0))],
        out_specs=pl.BlockSpec((tm, cout), lambda i: (i, 0)),
        compiler_params=pltpu.CompilerParams(
            dimension_semantics=("parallel",),
            vmem_limit_bytes=_VMEM_LIMIT),
    )(y, stats, p["gamma"], p["beta"])
    out = out2d[:m].reshape(n, oh, ow, cout)
    if pool_concat is not None:
        pool = maxpool_3x3_s2(x).astype(out_dtype)
        parts = [pool, out] if pool_concat == "pool_first" else [out, pool]
        out = jnp.concatenate(parts, axis=-1)
    return out


def maxpool_3x3_s2(x):
    """nn.MaxPool2d((3,3),(2,2)) in NHWC (fallback path only; the mixed_3a /
    mixed_5a pools are fused into the neighbouring stride-2 conv kernel)."""
    n, h, w, c = x.shape
    oh = (h - 3) // 2 + 1
    ow = (w - 3) // 2 + 1
    return pl.pallas_call(
        _maxpool_kernel,
        out_shape=jax.ShapeDtypeStruct((n, oh, ow, c), x.dtype),
        grid=(n,),
        in_specs=[pl.BlockSpec((1, h, w, c), lambda i: (i, 0, 0, 0))],
        out_specs=pl.BlockSpec((1, oh, ow, c), lambda i: (i, 0, 0, 0)),
        compiler_params=pltpu.CompilerParams(
            dimension_semantics=("parallel",),
            vmem_limit_bytes=_VMEM_LIMIT),
    )(x)


# ---------------------------------------------------------------------------
# Parameters (deterministic synthetic init) + branch fusion
# ---------------------------------------------------------------------------
def make_basic_conv_params(key, cin, cout, ksize, stride=(1, 1), pad=(0, 0)):
    kh, kw = ksize
    wk, gk, bk = jax.random.split(key, 3)
    # PyTorch conv weight layout (Cout, Cin, KH, KW) -> HWIO
    w_oihw = jax.random.normal(wk, (cout, cin, kh, kw), jnp.float32) * 0.1
    return {
        "w_hwio": jnp.transpose(w_oihw, (2, 3, 1, 0)),      # (KH,KW,Cin,Cout)
        "gamma": 1.0 + 0.1 * jax.random.normal(gk, (cout,), jnp.float32),
        "beta": 0.1 * jax.random.normal(bk, (cout,), jnp.float32),
        "ksize": ksize,
        "stride": stride,
        "pad": pad,
    }


def _fuse_concat_outputs(pa, pb):
    """Two convs with the SAME input and geometry -> one conv, channel concat."""
    assert pa["ksize"] == pb["ksize"] and pa["stride"] == pb["stride"] \
        and pa["pad"] == pb["pad"]
    return {
        "w_hwio": jnp.concatenate([pa["w_hwio"], pb["w_hwio"]], axis=3),
        "gamma": jnp.concatenate([pa["gamma"], pb["gamma"]]),
        "beta": jnp.concatenate([pa["beta"], pb["beta"]]),
        "ksize": pa["ksize"], "stride": pa["stride"], "pad": pa["pad"],
    }


def _fuse_block_diag(pa, pb):
    """Two convs on channel-concatenated inputs -> one block-diagonal conv
    whose output is the channel-concatenation of the two branch outputs."""
    assert pa["ksize"] == pb["ksize"] and pa["stride"] == pb["stride"] \
        and pa["pad"] == pb["pad"]
    kh, kw, ca_in, ca_out = pa["w_hwio"].shape
    _, _, cb_in, cb_out = pb["w_hwio"].shape
    w = jnp.zeros((kh, kw, ca_in + cb_in, ca_out + cb_out), jnp.float32)
    w = w.at[:, :, :ca_in, :ca_out].set(pa["w_hwio"])
    w = w.at[:, :, ca_in:, ca_out:].set(pb["w_hwio"])
    return {
        "w_hwio": w,
        "gamma": jnp.concatenate([pa["gamma"], pb["gamma"]]),
        "beta": jnp.concatenate([pa["beta"], pb["beta"]]),
        "ksize": pa["ksize"], "stride": pa["stride"], "pad": pa["pad"],
    }


def _finalize_conv(p):
    """(KH,KW,Cin,Cout) f32 -> (K_pad, Cout) bf16 matmul weight (K-padded)."""
    kh, kw, cin, cout = p["w_hwio"].shape
    k = kh * kw * cin
    k_pad = _round_up(k, 128)
    w = p["w_hwio"].reshape(k, cout).astype(jnp.bfloat16)
    w = jnp.pad(w, ((0, k_pad - k), (0, 0)))
    return {
        "w": w,
        "gamma": p["gamma"].reshape(1, cout),
        "beta": p["beta"].reshape(1, cout),
        "ksize": p["ksize"],
        "stride": p["stride"],
        "pad": p["pad"],
    }


def init_stem_params(key, in_channels):
    ks = jax.random.split(key, 11)
    raw = {
        "conv2d_1a_3x3": make_basic_conv_params(ks[0], in_channels, 16, (3, 3), (2, 2), (0, 0)),
        "conv2d_2a_3x3": make_basic_conv_params(ks[1], 16, 16, (3, 3), (1, 1), (0, 0)),
        "conv2d_2b_3x3": make_basic_conv_params(ks[2], 16, 32, (3, 3), (1, 1), (1, 1)),
        "mixed_3a_branch_1": make_basic_conv_params(ks[3], 32, 48, (3, 3), (2, 2), (0, 0)),
        "mixed_4a_branch_0_0": make_basic_conv_params(ks[4], 80, 32, (1, 1), (1, 1), (0, 0)),
        "mixed_4a_branch_0_1": make_basic_conv_params(ks[5], 32, 48, (3, 3), (1, 1), (0, 0)),
        "mixed_4a_branch_1_0": make_basic_conv_params(ks[6], 80, 32, (1, 1), (1, 1), (0, 0)),
        "mixed_4a_branch_1_1": make_basic_conv_params(ks[7], 32, 32, (1, 7), (1, 1), (0, 3)),
        "mixed_4a_branch_1_2": make_basic_conv_params(ks[8], 32, 32, (7, 1), (1, 1), (3, 0)),
        "mixed_4a_branch_1_3": make_basic_conv_params(ks[9], 32, 48, (3, 3), (1, 1), (0, 0)),
        "mixed_5a_branch_0": make_basic_conv_params(ks[10], 96, 96, (3, 3), (2, 2), (0, 0)),
    }
    fused = {
        "conv2d_1a_3x3": raw["conv2d_1a_3x3"],
        "conv2d_2a_3x3": raw["conv2d_2a_3x3"],
        "conv2d_2b_3x3": raw["conv2d_2b_3x3"],
        "mixed_3a_branch_1": raw["mixed_3a_branch_1"],
        # both 1x1 convs read mixed_3a -> one lane-denser Cout=64 matmul
        "mixed_4a_1x1_fused": _fuse_concat_outputs(
            raw["mixed_4a_branch_0_0"], raw["mixed_4a_branch_1_0"]),
        "mixed_4a_branch_1_1": raw["mixed_4a_branch_1_1"],
        "mixed_4a_branch_1_2": raw["mixed_4a_branch_1_2"],
        # both trailing 3x3 convs -> block-diagonal Cout=96 matmul == mixed_4a_out
        "mixed_4a_3x3_fused": _fuse_block_diag(
            raw["mixed_4a_branch_0_1"], raw["mixed_4a_branch_1_3"]),
        "mixed_5a_branch_0": raw["mixed_5a_branch_0"],
    }
    return {name: _finalize_conv(p) for name, p in fused.items()}


# ---------------------------------------------------------------------------
# InceptionV4Stem forward
# ---------------------------------------------------------------------------
def inception_v4_stem_forward(params, x_nchw):
    x = jnp.transpose(x_nchw, (0, 2, 3, 1))  # NCHW -> NHWC
    out = conv_bn_relu(x, params["conv2d_1a_3x3"])
    out = conv_bn_relu(out, params["conv2d_2a_3x3"])
    out = conv_bn_relu(out, params["conv2d_2b_3x3"])

    # mixed_3a: cat([maxpool3x3s2(out), conv3x3s2(out)]) -- ONE fused kernel
    m3a = conv_bn_relu(out, params["mixed_3a_branch_1"],
                       pool_concat="pool_first")                # 80 channels

    # mixed_4a: fused 1x1 (channels 0:32 -> branch_0, 32:64 -> branch_1)
    t = conv_bn_relu(m3a, params["mixed_4a_1x1_fused"])
    b0 = t[..., :32]
    b1 = t[..., 32:]
    b1 = conv_bn_relu(b1, params["mixed_4a_branch_1_1"])        # 1x7
    b1 = conv_bn_relu(b1, params["mixed_4a_branch_1_2"])        # 7x1
    # fused block-diagonal 3x3: output channels 0:48 = branch_0, 48:96 = branch_1
    m4a = conv_bn_relu(jnp.concatenate([b0, b1], axis=-1),
                       params["mixed_4a_3x3_fused"])            # == mixed_4a_out

    # mixed_5a: cat([conv3x3s2(m4a), maxpool3x3s2(m4a)]) -- ONE fused kernel
    m5a = conv_bn_relu(m4a, params["mixed_5a_branch_0"],
                       pool_concat="pool_last",
                       out_dtype=jnp.float32)                   # 192 channels

    return jnp.transpose(m5a, (0, 3, 1, 2))  # NHWC -> NCHW


if __name__ == "__main__":
    key = jax.random.PRNGKey(0)
    pkey, xkey = jax.random.split(key)
    in_channels = 4
    params = init_stem_params(pkey, in_channels)

    # Small input consistent with the stem's spatial reductions: (N, C, H, W)
    x = jax.random.normal(xkey, (2, in_channels, 35, 35), jnp.float32)

    fwd = jax.jit(functools.partial(inception_v4_stem_forward, params))
    out = fwd(x)
    jax.block_until_ready(out)

    assert out.shape == (2, 192, 2, 2), out.shape
    assert out.dtype == jnp.float32
    print("KERNEL_OK")
</pallas_src>

<mosaic_0001>
module attributes {stable_mosaic.version = 11 : i64} {
  func.func @_conv_bn_relu_kernel(%arg0: i32, %arg1: memref<578x128xbf16, #tpu.memory_space<vmem>>, %arg2: memref<128x16xbf16, #tpu.memory_space<vmem>>, %arg3: memref<1x16xf32, #tpu.memory_space<vmem>>, %arg4: memref<1x16xf32, #tpu.memory_space<vmem>>, %arg5: memref<578x16xbf16, #tpu.memory_space<vmem>>) attributes {dimension_semantics = [#tpu.dimension_semantics<arbitrary>], iteration_bounds = array<i64: 1>, scalar_prefetch = 0 : i64, scratch_operands = 0 : i64, tpu.core_type = #tpu.core_type<tc>, window_params = [{pipeline_mode = #tpu.pipeline_mode<synchronous>, transform_indices = @transform_0, window_bounds = array<i64: 578, 128>}, {pipeline_mode = #tpu.pipeline_mode<synchronous>, transform_indices = @transform_1, window_bounds = array<i64: 128, 16>}, {pipeline_mode = #tpu.pipeline_mode<synchronous>, transform_indices = @transform_2, window_bounds = array<i64: 1, 16>}, {pipeline_mode = #tpu.pipeline_mode<synchronous>, transform_indices = @transform_3, window_bounds = array<i64: 1, 16>}, {pipeline_mode = #tpu.pipeline_mode<synchronous>, transform_indices = @transform_4, window_bounds = array<i64: 578, 16>}]} {
    %c0 = arith.constant 0 : index
    %c0_0 = arith.constant 0 : index
    %0 = vector.load %arg1[%c0, %c0_0] : memref<578x128xbf16, #tpu.memory_space<vmem>>, vector<578x128xbf16>
    %c0_1 = arith.constant 0 : index
    %c0_2 = arith.constant 0 : index
    %1 = vector.load %arg2[%c0_1, %c0_2] : memref<128x16xbf16, #tpu.memory_space<vmem>>, vector<128x16xbf16>
    %cst = arith.constant dense<0.000000e+00> : vector<578x16xf32>
    %2 = tpu.matmul %0, %1, %cst {dimension_numbers = #tpu.dot_dimension_numbers<[1], [0], [0], [1], [0, 0, 1, 1], [], []>} : vector<578x128xbf16>, vector<128x16xbf16>, vector<578x16xf32> -> vector<578x16xf32>
    %cst_3 = arith.constant dense<0.000000e+00> : vector<16xf32>
    %3 = vector.multi_reduction <add>, %2, %cst_3 [0] : vector<578x16xf32> to vector<16xf32>
    %4 = vector.shape_cast %3 : vector<16xf32> to vector<1x16xf32>
    %cst_4 = arith.constant 0.00173010386 : f32
    %5 = vector.broadcast %cst_4 : f32 to vector<1x16xf32>
    %6 = arith.mulf %4, %5 : vector<1x16xf32>
    %7 = arith.mulf %2, %2 : vector<578x16xf32>
    %cst_5 = arith.constant dense<0.000000e+00> : vector<16xf32>
    %8 = vector.multi_reduction <add>, %7, %cst_5 [0] : vector<578x16xf32> to vector<16xf32>
    %9 = vector.shape_cast %8 : vector<16xf32> to vector<1x16xf32>
    %cst_6 = arith.constant 0.00173010386 : f32
    %10 = vector.broadcast %cst_6 : f32 to vector<1x16xf32>
    %11 = arith.mulf %9, %10 : vector<1x16xf32>
    %12 = arith.mulf %6, %6 : vector<1x16xf32>
    %13 = arith.subf %11, %12 : vector<1x16xf32>
    %cst_7 = arith.constant 0.000000e+00 : f32
    %14 = vector.broadcast %cst_7 : f32 to vector<1x16xf32>
    %15 = arith.maximumf %13, %14 : vector<1x16xf32>
    %c0_8 = arith.constant 0 : index
    %c0_9 = arith.constant 0 : index
    %16 = vector.load %arg3[%c0_8, %c0_9] : memref<1x16xf32, #tpu.memory_space<vmem>>, vector<1x16xf32>
    %cst_10 = arith.constant 1.000000e-03 : f32
    %17 = vector.broadcast %cst_10 : f32 to vector<1x16xf32>
    %18 = arith.addf %15, %17 : vector<1x16xf32>
    %19 = math.rsqrt %18 : vector<1x16xf32>
    %20 = arith.mulf %16, %19 : vector<1x16xf32>
    %c0_11 = arith.constant 0 : index
    %c0_12 = arith.constant 0 : index
    %21 = vector.load %arg4[%c0_11, %c0_12] : memref<1x16xf32, #tpu.memory_space<vmem>>, vector<1x16xf32>
    %22 = arith.mulf %6, %20 : vector<1x16xf32>
    %23 = arith.subf %21, %22 : vector<1x16xf32>
    %24 = vector.broadcast %20 : vector<1x16xf32> to vector<578x16xf32>
    %25 = arith.mulf %2, %24 : vector<578x16xf32>
    %26 = vector.broadcast %23 : vector<1x16xf32> to vector<578x16xf32>
    %27 = arith.addf %25, %26 : vector<578x16xf32>
    %cst_13 = arith.constant 0.000000e+00 : f32
    %28 = vector.broadcast %cst_13 : f32 to vector<578x16xf32>
    %29 = arith.maximumf %27, %28 : vector<578x16xf32>
    %30 = arith.truncf %29 : vector<578x16xf32> to vector<578x16xbf16>
    %c0_14 = arith.constant 0 : index
    %c0_15 = arith.constant 0 : index
    %31 = vector.load %arg5[%c0_14, %c0_15] : memref<578x16xbf16, #tpu.memory_space<vmem>>, vector<578x16xbf16>
    tpu.vector_store %arg5[%c0_14, %c0_15], %30 {strides = array<i32>} : memref<578x16xbf16, #tpu.memory_space<vmem>>, vector<578x16xbf16>,
    return
  }
  func.func @transform_0(%arg0: i32) -> (i32, i32) {
    %c0_i32 = arith.constant 0 : i32
    %c0_i32_0 = arith.constant 0 : i32
    %c0_i32_1 = arith.constant 0 : i32
    return %c0_i32, %c0_i32_0 : i32, i32
  }
  func.func @transform_1(%arg0: i32) -> (i32, i32) {
    %c0_i32 = arith.constant 0 : i32
    %c0_i32_0 = arith.constant 0 : i32
    %c0_i32_1 = arith.constant 0 : i32
    return %c0_i32, %c0_i32_0 : i32, i32
  }
  func.func @transform_2(%arg0: i32) -> (i32, i32) {
    %c0_i32 = arith.constant 0 : i32
    %c0_i32_0 = arith.constant 0 : i32
    %c0_i32_1 = arith.constant 0 : i32
    return %c0_i32, %c0_i32_0 : i32, i32
  }
  func.func @transform_3(%arg0: i32) -> (i32, i32) {
    %c0_i32 = arith.constant 0 : i32
    %c0_i32_0 = arith.constant 0 : i32
    %c0_i32_1 = arith.constant 0 : i32
    return %c0_i32, %c0_i32_0 : i32, i32
  }
  func.func @transform_4(%arg0: i32) -> (i32, i32) {
    %c0_i32 = arith.constant 0 : i32
    %c0_i32_0 = arith.constant 0 : i32
    %c0_i32_1 = arith.constant 0 : i32
    return %c0_i32, %c0_i32_0 : i32, i32
  }
}

module attributes {stable_mosaic.version = 11 : i64} {
  func.func @_conv_bn_relu_kernel(%arg0: i32, %arg1: memref<450x256xbf16, #tpu.memory_space<vmem>>, %arg2: memref<256x16xbf16, #tpu.memory_space<vmem>>, %arg3: memref<1x16xf32, #tpu.memory_space<vmem>>, %arg4: memref<1x16xf32, #tpu.memory_space<vmem>>, %arg5: memref<450x16xbf16, #tpu.memory_space<vmem>>) attributes {dimension_semantics = [#tpu.dimension_semantics<arbitrary>], iteration_bounds = array<i64: 1>, scalar_prefetch = 0 : i64, scratch_operands = 0 : i64, tpu.core_type = #tpu.core_type<tc>, window_params = [{pipeline_mode = #tpu.pipeline_mode<synchronous>, transform_indices = @transform_0, window_bounds = array<i64: 450, 256>}, {pipeline_mode = #tpu.pipeline_mode<synchronous>, transform_indices = @transform_1, window_bounds = array<i64: 256, 16>}, {pipeline_mode = #tpu.pipeline_mode<synchronous>, transform_indices = @transform_2, window_bounds = array<i64: 1, 16>}, {pipeline_mode = #tpu.pipeline_mode<synchronous>, transform_indices = @transform_3, window_bounds = array<i64: 1, 16>}, {pipeline_mode = #tpu.pipeline_mode<synchronous>, transform_indices = @transform_4, window_bounds = array<i64: 450, 16>}]} {
    %c0 = arith.constant 0 : index
    %c0_0 = arith.constant 0 : index
    %0 = vector.load %arg1[%c0, %c0_0] : memref<450x256xbf16, #tpu.memory_space<vmem>>, vector<450x256xbf16>
    %c0_1 = arith.constant 0 : index
    %c0_2 = arith.constant 0 : index
    %1 = vector.load %arg2[%c0_1, %c0_2] : memref<256x16xbf16, #tpu.memory_space<vmem>>, vector<256x16xbf16>
    %cst = arith.constant dense<0.000000e+00> : vector<450x16xf32>
    %2 = tpu.matmul %0, %1, %cst {dimension_numbers = #tpu.dot_dimension_numbers<[1], [0], [0], [1], [0, 0, 1, 1], [], []>} : vector<450x256xbf16>, vector<256x16xbf16>, vector<450x16xf32> -> vector<450x16xf32>
    %cst_3 = arith.constant dense<0.000000e+00> : vector<16xf32>
    %3 = vector.multi_reduction <add>, %2, %cst_3 [0] : vector<450x16xf32> to vector<16xf32>
    %4 = vector.shape_cast %3 : vector<16xf32> to vector<1x16xf32>
    %cst_4 = arith.constant 0.00222222228 : f32
    %5 = vector.broadcast %cst_4 : f32 to vector<1x16xf32>
    %6 = arith.mulf %4, %5 : vector<1x16xf32>
    %7 = arith.mulf %2, %2 : vector<450x16xf32>
    %cst_5 = arith.constant dense<0.000000e+00> : vector<16xf32>
    %8 = vector.multi_reduction <add>, %7, %cst_5 [0] : vector<450x16xf32> to vector<16xf32>
    %9 = vector.shape_cast %8 : vector<16xf32> to vector<1x16xf32>
    %cst_6 = arith.constant 0.00222222228 : f32
    %10 = vector.broadcast %cst_6 : f32 to vector<1x16xf32>
    %11 = arith.mulf %9, %10 : vector<1x16xf32>
    %12 = arith.mulf %6, %6 : vector<1x16xf32>
    %13 = arith.subf %11, %12 : vector<1x16xf32>
    %cst_7 = arith.constant 0.000000e+00 : f32
    %14 = vector.broadcast %cst_7 : f32 to vector<1x16xf32>
    %15 = arith.maximumf %13, %14 : vector<1x16xf32>
    %c0_8 = arith.constant 0 : index
    %c0_9 = arith.constant 0 : index
    %16 = vector.load %arg3[%c0_8, %c0_9] : memref<1x16xf32, #tpu.memory_space<vmem>>, vector<1x16xf32>
    %cst_10 = arith.constant 1.000000e-03 : f32
    %17 = vector.broadcast %cst_10 : f32 to vector<1x16xf32>
    %18 = arith.addf %15, %17 : vector<1x16xf32>
    %19 = math.rsqrt %18 : vector<1x16xf32>
    %20 = arith.mulf %16, %19 : vector<1x16xf32>
    %c0_11 = arith.constant 0 : index
    %c0_12 = arith.constant 0 : index
    %21 = vector.load %arg4[%c0_11, %c0_12] : memref<1x16xf32, #tpu.memory_space<vmem>>, vector<1x16xf32>
    %22 = arith.mulf %6, %20 : vector<1x16xf32>
    %23 = arith.subf %21, %22 : vector<1x16xf32>
    %24 = vector.broadcast %20 : vector<1x16xf32> to vector<450x16xf32>
    %25 = arith.mulf %2, %24 : vector<450x16xf32>
    %26 = vector.broadcast %23 : vector<1x16xf32> to vector<450x16xf32>
    %27 = arith.addf %25, %26 : vector<450x16xf32>
    %cst_13 = arith.constant 0.000000e+00 : f32
    %28 = vector.broadcast %cst_13 : f32 to vector<450x16xf32>
    %29 = arith.maximumf %27, %28 : vector<450x16xf32>
    %30 = arith.truncf %29 : vector<450x16xf32> to vector<450x16xbf16>
    %c0_14 = arith.constant 0 : index
    %c0_15 = arith.constant 0 : index
    %31 = vector.load %arg5[%c0_14, %c0_15] : memref<450x16xbf16, #tpu.memory_space<vmem>>, vector<450x16xbf16>
    tpu.vector_store %arg5[%c0_14, %c0_15], %30 {strides = array<i32>} : memref<450x16xbf16, #tpu.memory_space<vmem>>, vector<450x16xbf16>,
    return
  }
  func.func @transform_0(%arg0: i32) -> (i32, i32) {
    %c0_i32 = arith.constant 0 : i32
    %c0_i32_0 = arith.constant 0 : i32
    %c0_i32_1 = arith.constant 0 : i32
    return %c0_i32, %c0_i32_0 : i32, i32
  }
  func.func @transform_1(%arg0: i32) -> (i32, i32) {
    %c0_i32 = arith.constant 0 : i32
    %c0_i32_0 = arith.constant 0 : i32
    %c0_i32_1 = arith.constant 0 : i32
    return %c0_i32, %c0_i32_0 : i32, i32
  }
  func.func @transform_2(%arg0: i32) -> (i32, i32) {
    %c0_i32 = arith.constant 0 : i32
    %c0_i32_0 = arith.constant 0 : i32
    %c0_i32_1 = arith.constant 0 : i32
    return %c0_i32, %c0_i32_0 : i32, i32
  }
  func.func @transform_3(%arg0: i32) -> (i32, i32) {
    %c0_i32 = arith.constant 0 : i32
    %c0_i32_0 = arith.constant 0 : i32
    %c0_i32_1 = arith.constant 0 : i32
    return %c0_i32, %c0_i32_0 : i32, i32
  }
  func.func @transform_4(%arg0: i32) -> (i32, i32) {
    %c0_i32 = arith.constant 0 : i32
    %c0_i32_0 = arith.constant 0 : i32
    %c0_i32_1 = arith.constant 0 : i32
    return %c0_i32, %c0_i32_0 : i32, i32
  }
}

module attributes {stable_mosaic.version = 11 : i64} {
  func.func @_conv_bn_relu_kernel(%arg0: i32, %arg1: memref<450x256xbf16, #tpu.memory_space<vmem>>, %arg2: memref<256x32xbf16, #tpu.memory_space<vmem>>, %arg3: memref<1x32xf32, #tpu.memory_space<vmem>>, %arg4: memref<1x32xf32, #tpu.memory_space<vmem>>, %arg5: memref<450x32xbf16, #tpu.memory_space<vmem>>) attributes {dimension_semantics = [#tpu.dimension_semantics<arbitrary>], iteration_bounds = array<i64: 1>, scalar_prefetch = 0 : i64, scratch_operands = 0 : i64, tpu.core_type = #tpu.core_type<tc>, window_params = [{pipeline_mode = #tpu.pipeline_mode<synchronous>, transform_indices = @transform_0, window_bounds = array<i64: 450, 256>}, {pipeline_mode = #tpu.pipeline_mode<synchronous>, transform_indices = @transform_1, window_bounds = array<i64: 256, 32>}, {pipeline_mode = #tpu.pipeline_mode<synchronous>, transform_indices = @transform_2, window_bounds = array<i64: 1, 32>}, {pipeline_mode = #tpu.pipeline_mode<synchronous>, transform_indices = @transform_3, window_bounds = array<i64: 1, 32>}, {pipeline_mode = #tpu.pipeline_mode<synchronous>, transform_indices = @transform_4, window_bounds = array<i64: 450, 32>}]} {
    %c0 = arith.constant 0 : index
    %c0_0 = arith.constant 0 : index
    %0 = vector.load %arg1[%c0, %c0_0] : memref<450x256xbf16, #tpu.memory_space<vmem>>, vector<450x256xbf16>
    %c0_1 = arith.constant 0 : index
    %c0_2 = arith.constant 0 : index
    %1 = vector.load %arg2[%c0_1, %c0_2] : memref<256x32xbf16, #tpu.memory_space<vmem>>, vector<256x32xbf16>
    %cst = arith.constant dense<0.000000e+00> : vector<450x32xf32>
    %2 = tpu.matmul %0, %1, %cst {dimension_numbers = #tpu.dot_dimension_numbers<[1], [0], [0], [1], [0, 0, 1, 1], [], []>} : vector<450x256xbf16>, vector<256x32xbf16>, vector<450x32xf32> -> vector<450x32xf32>
    %cst_3 = arith.constant dense<0.000000e+00> : vector<32xf32>
    %3 = vector.multi_reduction <add>, %2, %cst_3 [0] : vector<450x32xf32> to vector<32xf32>
    %4 = vector.shape_cast %3 : vector<32xf32> to vector<1x32xf32>
    %cst_4 = arith.constant 0.00222222228 : f32
    %5 = vector.broadcast %cst_4 : f32 to vector<1x32xf32>
    %6 = arith.mulf %4, %5 : vector<1x32xf32>
    %7 = arith.mulf %2, %2 : vector<450x32xf32>
    %cst_5 = arith.constant dense<0.000000e+00> : vector<32xf32>
    %8 = vector.multi_reduction <add>, %7, %cst_5 [0] : vector<450x32xf32> to vector<32xf32>
    %9 = vector.shape_cast %8 : vector<32xf32> to vector<1x32xf32>
    %cst_6 = arith.constant 0.00222222228 : f32
    %10 = vector.broadcast %cst_6 : f32 to vector<1x32xf32>
    %11 = arith.mulf %9, %10 : vector<1x32xf32>
    %12 = arith.mulf %6, %6 : vector<1x32xf32>
    %13 = arith.subf %11, %12 : vector<1x32xf32>
    %cst_7 = arith.constant 0.000000e+00 : f32
    %14 = vector.broadcast %cst_7 : f32 to vector<1x32xf32>
    %15 = arith.maximumf %13, %14 : vector<1x32xf32>
    %c0_8 = arith.constant 0 : index
    %c0_9 = arith.constant 0 : index
    %16 = vector.load %arg3[%c0_8, %c0_9] : memref<1x32xf32, #tpu.memory_space<vmem>>, vector<1x32xf32>
    %cst_10 = arith.constant 1.000000e-03 : f32
    %17 = vector.broadcast %cst_10 : f32 to vector<1x32xf32>
    %18 = arith.addf %15, %17 : vector<1x32xf32>
    %19 = math.rsqrt %18 : vector<1x32xf32>
    %20 = arith.mulf %16, %19 : vector<1x32xf32>
    %c0_11 = arith.constant 0 : index
    %c0_12 = arith.constant 0 : index
    %21 = vector.load %arg4[%c0_11, %c0_12] : memref<1x32xf32, #tpu.memory_space<vmem>>, vector<1x32xf32>
    %22 = arith.mulf %6, %20 : vector<1x32xf32>
    %23 = arith.subf %21, %22 : vector<1x32xf32>
    %24 = vector.broadcast %20 : vector<1x32xf32> to vector<450x32xf32>
    %25 = arith.mulf %2, %24 : vector<450x32xf32>
    %26 = vector.broadcast %23 : vector<1x32xf32> to vector<450x32xf32>
    %27 = arith.addf %25, %26 : vector<450x32xf32>
    %cst_13 = arith.constant 0.000000e+00 : f32
    %28 = vector.broadcast %cst_13 : f32 to vector<450x32xf32>
    %29 = arith.maximumf %27, %28 : vector<450x32xf32>
    %30 = arith.truncf %29 : vector<450x32xf32> to vector<450x32xbf16>
    %c0_14 = arith.constant 0 : index
    %c0_15 = arith.constant 0 : index
    %31 = vector.load %arg5[%c0_14, %c0_15] : memref<450x32xbf16, #tpu.memory_space<vmem>>, vector<450x32xbf16>
    tpu.vector_store %arg5[%c0_14, %c0_15], %30 {strides = array<i32>} : memref<450x32xbf16, #tpu.memory_space<vmem>>, vector<450x32xbf16>,
    return
  }
  func.func @transform_0(%arg0: i32) -> (i32, i32) {
    %c0_i32 = arith.constant 0 : i32
    %c0_i32_0 = arith.constant 0 : i32
    %c0_i32_1 = arith.constant 0 : i32
    return %c0_i32, %c0_i32_0 : i32, i32
  }
  func.func @transform_1(%arg0: i32) -> (i32, i32) {
    %c0_i32 = arith.constant 0 : i32
    %c0_i32_0 = arith.constant 0 : i32
    %c0_i32_1 = arith.constant 0 : i32
    return %c0_i32, %c0_i32_0 : i32, i32
  }
  func.func @transform_2(%arg0: i32) -> (i32, i32) {
    %c0_i32 = arith.constant 0 : i32
    %c0_i32_0 = arith.constant 0 : i32
    %c0_i32_1 = arith.constant 0 : i32
    return %c0_i32, %c0_i32_0 : i32, i32
  }
  func.func @transform_3(%arg0: i32) -> (i32, i32) {
    %c0_i32 = arith.constant 0 : i32
    %c0_i32_0 = arith.constant 0 : i32
    %c0_i32_1 = arith.constant 0 : i32
    return %c0_i32, %c0_i32_0 : i32, i32
  }
  func.func @transform_4(%arg0: i32) -> (i32, i32) {
    %c0_i32 = arith.constant 0 : i32
    %c0_i32_0 = arith.constant 0 : i32
    %c0_i32_1 = arith.constant 0 : i32
    return %c0_i32, %c0_i32_0 : i32, i32
  }
}

module attributes {stable_mosaic.version = 11 : i64} {
  func.func @_conv_bn_relu_pool_concat_kernel(%arg0: i32, %arg1: memref<98x384xbf16, #tpu.memory_space<vmem>>, %arg2: memref<384x48xbf16, #tpu.memory_space<vmem>>, %arg3: memref<1x48xf32, #tpu.memory_space<vmem>>, %arg4: memref<1x48xf32, #tpu.memory_space<vmem>>, %arg5: memref<98x80xbf16, #tpu.memory_space<vmem>>) attributes {dimension_semantics = [#tpu.dimension_semantics<arbitrary>], iteration_bounds = array<i64: 1>, scalar_prefetch = 0 : i64, scratch_operands = 0 : i64, tpu.core_type = #tpu.core_type<tc>, window_params = [{pipeline_mode = #tpu.pipeline_mode<synchronous>, transform_indices = @transform_0, window_bounds = array<i64: 98, 384>}, {pipeline_mode = #tpu.pipeline_mode<synchronous>, transform_indices = @transform_1, window_bounds = array<i64: 384, 48>}, {pipeline_mode = #tpu.pipeline_mode<synchronous>, transform_indices = @transform_2, window_bounds = array<i64: 1, 48>}, {pipeline_mode = #tpu.pipeline_mode<synchronous>, transform_indices = @transform_3, window_bounds = array<i64: 1, 48>}, {pipeline_mode = #tpu.pipeline_mode<synchronous>, transform_indices = @transform_4, window_bounds = array<i64: 98, 80>}]} {
    %c0 = arith.constant 0 : index
    %c0_0 = arith.constant 0 : index
    %0 = vector.load %arg1[%c0, %c0_0] : memref<98x384xbf16, #tpu.memory_space<vmem>>, vector<98x384xbf16>
    %c0_1 = arith.constant 0 : index
    %c0_2 = arith.constant 0 : index
    %1 = vector.load %arg2[%c0_1, %c0_2] : memref<384x48xbf16, #tpu.memory_space<vmem>>, vector<384x48xbf16>
    %cst = arith.constant dense<0.000000e+00> : vector<98x48xf32>
    %2 = tpu.matmul %0, %1, %cst {dimension_numbers = #tpu.dot_dimension_numbers<[1], [0], [0], [1], [0, 0, 1, 1], [], []>} : vector<98x384xbf16>, vector<384x48xbf16>, vector<98x48xf32> -> vector<98x48xf32>
    %cst_3 = arith.constant dense<0.000000e+00> : vector<48xf32>
    %3 = vector.multi_reduction <add>, %2, %cst_3 [0] : vector<98x48xf32> to vector<48xf32>
    %4 = vector.shape_cast %3 : vector<48xf32> to vector<1x48xf32>
    %cst_4 = arith.constant 0.0102040814 : f32
    %5 = vector.broadcast %cst_4 : f32 to vector<1x48xf32>
    %6 = arith.mulf %4, %5 : vector<1x48xf32>
    %7 = arith.mulf %2, %2 : vector<98x48xf32>
    %cst_5 = arith.constant dense<0.000000e+00> : vector<48xf32>
    %8 = vector.multi_reduction <add>, %7, %cst_5 [0] : vector<98x48xf32> to vector<48xf32>
    %9 = vector.shape_cast %8 : vector<48xf32> to vector<1x48xf32>
    %cst_6 = arith.constant 0.0102040814 : f32
    %10 = vector.broadcast %cst_6 : f32 to vector<1x48xf32>
    %11 = arith.mulf %9, %10 : vector<1x48xf32>
    %12 = arith.mulf %6, %6 : vector<1x48xf32>
    %13 = arith.subf %11, %12 : vector<1x48xf32>
    %cst_7 = arith.constant 0.000000e+00 : f32
    %14 = vector.broadcast %cst_7 : f32 to vector<1x48xf32>
    %15 = arith.maximumf %13, %14 : vector<1x48xf32>
    %c0_8 = arith.constant 0 : index
    %c0_9 = arith.constant 0 : index
    %16 = vector.load %arg3[%c0_8, %c0_9] : memref<1x48xf32, #tpu.memory_space<vmem>>, vector<1x48xf32>
    %cst_10 = arith.constant 1.000000e-03 : f32
    %17 = vector.broadcast %cst_10 : f32 to vector<1x48xf32>
    %18 = arith.addf %15, %17 : vector<1x48xf32>
    %19 = math.rsqrt %18 : vector<1x48xf32>
    %20 = arith.mulf %16, %19 : vector<1x48xf32>
    %c0_11 = arith.constant 0 : index
    %c0_12 = arith.constant 0 : index
    %21 = vector.load %arg4[%c0_11, %c0_12] : memref<1x48xf32, #tpu.memory_space<vmem>>, vector<1x48xf32>
    %22 = arith.mulf %6, %20 : vector<1x48xf32>
    %23 = arith.subf %21, %22 : vector<1x48xf32>
    %24 = vector.broadcast %20 : vector<1x48xf32> to vector<98x48xf32>
    %25 = arith.mulf %2, %24 : vector<98x48xf32>
    %26 = vector.broadcast %23 : vector<1x48xf32> to vector<98x48xf32>
    %27 = arith.addf %25, %26 : vector<98x48xf32>
    %cst_13 = arith.constant 0.000000e+00 : f32
    %28 = vector.broadcast %cst_13 : f32 to vector<98x48xf32>
    %29 = arith.maximumf %27, %28 : vector<98x48xf32>
    %30 = arith.truncf %29 : vector<98x48xf32> to vector<98x48xbf16>
    %31 = vector.extract_strided_slice %0 {offsets = [0, 0], sizes = [98, 32], strides = [1, 1]} : vector<98x384xbf16> to vector<98x32xbf16>
    %32 = arith.extf %31 : vector<98x32xbf16> to vector<98x32xf32>
    %33 = vector.extract_strided_slice %0 {offsets = [0, 32], sizes = [98, 32], strides = [1, 1]} : vector<98x384xbf16> to vector<98x32xbf16>
    %34 = arith.extf %33 : vector<98x32xbf16> to vector<98x32xf32>
    %35 = arith.maximumf %32, %34 : vector<98x32xf32>
    %36 = vector.extract_strided_slice %0 {offsets = [0, 64], sizes = [98, 32], strides = [1, 1]} : vector<98x384xbf16> to vector<98x32xbf16>
    %37 = arith.extf %36 : vector<98x32xbf16> to vector<98x32xf32>
    %38 = arith.maximumf %35, %37 : vector<98x32xf32>
    %39 = vector.extract_strided_slice %0 {offsets = [0, 96], sizes = [98, 32], strides = [1, 1]} : vector<98x384xbf16> to vector<98x32xbf16>
    %40 = arith.extf %39 : vector<98x32xbf16> to vector<98x32xf32>
    %41 = arith.maximumf %38, %40 : vector<98x32xf32>
    %42 = vector.extract_strided_slice %0 {offsets = [0, 128], sizes = [98, 32], strides = [1, 1]} : vector<98x384xbf16> to vector<98x32xbf16>
    %43 = arith.extf %42 : vector<98x32xbf16> to vector<98x32xf32>
    %44 = arith.maximumf %41, %43 : vector<98x32xf32>
    %45 = vector.extract_strided_slice %0 {offsets = [0, 160], sizes = [98, 32], strides = [1, 1]} : vector<98x384xbf16> to vector<98x32xbf16>
    %46 = arith.extf %45 : vector<98x32xbf16> to vector<98x32xf32>
    %47 = arith.maximumf %44, %46 : vector<98x32xf32>
    %48 = vector.extract_strided_slice %0 {offsets = [0, 192], sizes = [98, 32], strides = [1, 1]} : vector<98x384xbf16> to vector<98x32xbf16>
    %49 = arith.extf %48 : vector<98x32xbf16> to vector<98x32xf32>
    %50 = arith.maximumf %47, %49 : vector<98x32xf32>
    %51 = vector.extract_strided_slice %0 {offsets = [0, 224], sizes = [98, 32], strides = [1, 1]} : vector<98x384xbf16> to vector<98x32xbf16>
    %52 = arith.extf %51 : vector<98x32xbf16> to vector<98x32xf32>
    %53 = arith.maximumf %50, %52 : vector<98x32xf32>
    %54 = vector.extract_strided_slice %0 {offsets = [0, 256], sizes = [98, 32], strides = [1, 1]} : vector<98x384xbf16> to vector<98x32xbf16>
    %55 = arith.extf %54 : vector<98x32xbf16> to vector<98x32xf32>
    %56 = arith.maximumf %53, %55 : vector<98x32xf32>
    %57 = arith.truncf %56 : vector<98x32xf32> to vector<98x32xbf16>
    %c0_14 = arith.constant 0 : index
    %c0_15 = arith.constant 0 : index
    %58 = vector.load %arg5[%c0_14, %c0_15] : memref<98x80xbf16, #tpu.memory_space<vmem>>, vector<98x32xbf16>
    tpu.vector_store %arg5[%c0_14, %c0_15], %57 {strides = array<i32>} : memref<98x80xbf16, #tpu.memory_space<vmem>>, vector<98x32xbf16>,
    %c0_16 = arith.constant 0 : index
    %c32 = arith.constant 32 : index
    %59 = vector.load %arg5[%c0_16, %c32] : memref<98x80xbf16, #tpu.memory_space<vmem>>, vector<98x48xbf16>
    tpu.vector_store %arg5[%c0_16, %c32], %30 {strides = array<i32>} : memref<98x80xbf16, #tpu.memory_space<vmem>>, vector<98x48xbf16>,
    return
  }
  func.func @transform_0(%arg0: i32) -> (i32, i32) {
    %c0_i32 = arith.constant 0 : i32
    %c0_i32_0 = arith.constant 0 : i32
    %c0_i32_1 = arith.constant 0 : i32
    return %c0_i32, %c0_i32_0 : i32, i32
  }
  func.func @transform_1(%arg0: i32) -> (i32, i32) {
    %c0_i32 = arith.constant 0 : i32
    %c0_i32_0 = arith.constant 0 : i32
    %c0_i32_1 = arith.constant 0 : i32
    return %c0_i32, %c0_i32_0 : i32, i32
  }
  func.func @transform_2(%arg0: i32) -> (i32, i32) {
    %c0_i32 = arith.constant 0 : i32
    %c0_i32_0 = arith.constant 0 : i32
    %c0_i32_1 = arith.constant 0 : i32
    return %c0_i32, %c0_i32_0 : i32, i32
  }
  func.func @transform_3(%arg0: i32) -> (i32, i32) {
    %c0_i32 = arith.constant 0 : i32
    %c0_i32_0 = arith.constant 0 : i32
    %c0_i32_1 = arith.constant 0 : i32
    return %c0_i32, %c0_i32_0 : i32, i32
  }
  func.func @transform_4(%arg0: i32) -> (i32, i32) {
    %c0_i32 = arith.constant 0 : i32
    %c0_i32_0 = arith.constant 0 : i32
    %c0_i32_1 = arith.constant 0 : i32
    return %c0_i32, %c0_i32_0 : i32, i32
  }
}

module attributes {stable_mosaic.version = 11 : i64} {
  func.func @_conv_bn_relu_kernel(%arg0: i32, %arg1: memref<98x128xbf16, #tpu.memory_space<vmem>>, %arg2: memref<128x64xbf16, #tpu.memory_space<vmem>>, %arg3: memref<1x64xf32, #tpu.memory_space<vmem>>, %arg4: memref<1x64xf32, #tpu.memory_space<vmem>>, %arg5: memref<98x64xbf16, #tpu.memory_space<vmem>>) attributes {dimension_semantics = [#tpu.dimension_semantics<arbitrary>], iteration_bounds = array<i64: 1>, scalar_prefetch = 0 : i64, scratch_operands = 0 : i64, tpu.core_type = #tpu.core_type<tc>, window_params = [{pipeline_mode = #tpu.pipeline_mode<synchronous>, transform_indices = @transform_0, window_bounds = array<i64: 98, 128>}, {pipeline_mode = #tpu.pipeline_mode<synchronous>, transform_indices = @transform_1, window_bounds = array<i64: 128, 64>}, {pipeline_mode = #tpu.pipeline_mode<synchronous>, transform_indices = @transform_2, window_bounds = array<i64: 1, 64>}, {pipeline_mode = #tpu.pipeline_mode<synchronous>, transform_indices = @transform_3, window_bounds = array<i64: 1, 64>}, {pipeline_mode = #tpu.pipeline_mode<synchronous>, transform_indices = @transform_4, window_bounds = array<i64: 98, 64>}]} {
    %c0 = arith.constant 0 : index
    %c0_0 = arith.constant 0 : index
    %0 = vector.load %arg1[%c0, %c0_0] : memref<98x128xbf16, #tpu.memory_space<vmem>>, vector<98x128xbf16>
    %c0_1 = arith.constant 0 : index
    %c0_2 = arith.constant 0 : index
    %1 = vector.load %arg2[%c0_1, %c0_2] : memref<128x64xbf16, #tpu.memory_space<vmem>>, vector<128x64xbf16>
    %cst = arith.constant dense<0.000000e+00> : vector<98x64xf32>
    %2 = tpu.matmul %0, %1, %cst {dimension_numbers = #tpu.dot_dimension_numbers<[1], [0], [0], [1], [0, 0, 1, 1], [], []>} : vector<98x128xbf16>, vector<128x64xbf16>, vector<98x64xf32> -> vector<98x64xf32>
    %cst_3 = arith.constant dense<0.000000e+00> : vector<64xf32>
    %3 = vector.multi_reduction <add>, %2, %cst_3 [0] : vector<98x64xf32> to vector<64xf32>
    %4 = vector.shape_cast %3 : vector<64xf32> to vector<1x64xf32>
    %cst_4 = arith.constant 0.0102040814 : f32
    %5 = vector.broadcast %cst_4 : f32 to vector<1x64xf32>
    %6 = arith.mulf %4, %5 : vector<1x64xf32>
    %7 = arith.mulf %2, %2 : vector<98x64xf32>
    %cst_5 = arith.constant dense<0.000000e+00> : vector<64xf32>
    %8 = vector.multi_reduction <add>, %7, %cst_5 [0] : vector<98x64xf32> to vector<64xf32>
    %9 = vector.shape_cast %8 : vector<64xf32> to vector<1x64xf32>
    %cst_6 = arith.constant 0.0102040814 : f32
    %10 = vector.broadcast %cst_6 : f32 to vector<1x64xf32>
    %11 = arith.mulf %9, %10 : vector<1x64xf32>
    %12 = arith.mulf %6, %6 : vector<1x64xf32>
    %13 = arith.subf %11, %12 : vector<1x64xf32>
    %cst_7 = arith.constant 0.000000e+00 : f32
    %14 = vector.broadcast %cst_7 : f32 to vector<1x64xf32>
    %15 = arith.maximumf %13, %14 : vector<1x64xf32>
    %c0_8 = arith.constant 0 : index
    %c0_9 = arith.constant 0 : index
    %16 = vector.load %arg3[%c0_8, %c0_9] : memref<1x64xf32, #tpu.memory_space<vmem>>, vector<1x64xf32>
    %cst_10 = arith.constant 1.000000e-03 : f32
    %17 = vector.broadcast %cst_10 : f32 to vector<1x64xf32>
    %18 = arith.addf %15, %17 : vector<1x64xf32>
    %19 = math.rsqrt %18 : vector<1x64xf32>
    %20 = arith.mulf %16, %19 : vector<1x64xf32>
    %c0_11 = arith.constant 0 : index
    %c0_12 = arith.constant 0 : index
    %21 = vector.load %arg4[%c0_11, %c0_12] : memref<1x64xf32, #tpu.memory_space<vmem>>, vector<1x64xf32>
    %22 = arith.mulf %6, %20 : vector<1x64xf32>
    %23 = arith.subf %21, %22 : vector<1x64xf32>
    %24 = vector.broadcast %20 : vector<1x64xf32> to vector<98x64xf32>
    %25 = arith.mulf %2, %24 : vector<98x64xf32>
    %26 = vector.broadcast %23 : vector<1x64xf32> to vector<98x64xf32>
    %27 = arith.addf %25, %26 : vector<98x64xf32>
    %cst_13 = arith.constant 0.000000e+00 : f32
    %28 = vector.broadcast %cst_13 : f32 to vector<98x64xf32>
    %29 = arith.maximumf %27, %28 : vector<98x64xf32>
    %30 = arith.truncf %29 : vector<98x64xf32> to vector<98x64xbf16>
    %c0_14 = arith.constant 0 : index
    %c0_15 = arith.constant 0 : index
    %31 = vector.load %arg5[%c0_14, %c0_15] : memref<98x64xbf16, #tpu.memory_space<vmem>>, vector<98x64xbf16>
    tpu.vector_store %arg5[%c0_14, %c0_15], %30 {strides = array<i32>} : memref<98x64xbf16, #tpu.memory_space<vmem>>, vector<98x64xbf16>,
    return
  }
  func.func @transform_0(%arg0: i32) -> (i32, i32) {
    %c0_i32 = arith.constant 0 : i32
    %c0_i32_0 = arith.constant 0 : i32
    %c0_i32_1 = arith.constant 0 : i32
    return %c0_i32, %c0_i32_0 : i32, i32
  }
  func.func @transform_1(%arg0: i32) -> (i32, i32) {
    %c0_i32 = arith.constant 0 : i32
    %c0_i32_0 = arith.constant 0 : i32
    %c0_i32_1 = arith.constant 0 : i32
    return %c0_i32, %c0_i32_0 : i32, i32
  }
  func.func @transform_2(%arg0: i32) -> (i32, i32) {
    %c0_i32 = arith.constant 0 : i32
    %c0_i32_0 = arith.constant 0 : i32
    %c0_i32_1 = arith.constant 0 : i32
    return %c0_i32, %c0_i32_0 : i32, i32
  }
  func.func @transform_3(%arg0: i32) -> (i32, i32) {
    %c0_i32 = arith.constant 0 : i32
    %c0_i32_0 = arith.constant 0 : i32
    %c0_i32_1 = arith.constant 0 : i32
    return %c0_i32, %c0_i32_0 : i32, i32
  }
  func.func @transform_4(%arg0: i32) -> (i32, i32) {
    %c0_i32 = arith.constant 0 : i32
    %c0_i32_0 = arith.constant 0 : i32
    %c0_i32_1 = arith.constant 0 : i32
    return %c0_i32, %c0_i32_0 : i32, i32
  }
}

module attributes {stable_mosaic.version = 11 : i64} {
  func.func @_conv_bn_relu_kernel(%arg0: i32, %arg1: memref<98x256xbf16, #tpu.memory_space<vmem>>, %arg2: memref<256x32xbf16, #tpu.memory_space<vmem>>, %arg3: memref<1x32xf32, #tpu.memory_space<vmem>>, %arg4: memref<1x32xf32, #tpu.memory_space<vmem>>, %arg5: memref<98x32xbf16, #tpu.memory_space<vmem>>) attributes {dimension_semantics = [#tpu.dimension_semantics<arbitrary>], iteration_bounds = array<i64: 1>, scalar_prefetch = 0 : i64, scratch_operands = 0 : i64, tpu.core_type = #tpu.core_type<tc>, window_params = [{pipeline_mode = #tpu.pipeline_mode<synchronous>, transform_indices = @transform_0, window_bounds = array<i64: 98, 256>}, {pipeline_mode = #tpu.pipeline_mode<synchronous>, transform_indices = @transform_1, window_bounds = array<i64: 256, 32>}, {pipeline_mode = #tpu.pipeline_mode<synchronous>, transform_indices = @transform_2, window_bounds = array<i64: 1, 32>}, {pipeline_mode = #tpu.pipeline_mode<synchronous>, transform_indices = @transform_3, window_bounds = array<i64: 1, 32>}, {pipeline_mode = #tpu.pipeline_mode<synchronous>, transform_indices = @transform_4, window_bounds = array<i64: 98, 32>}]} {
    %c0 = arith.constant 0 : index
    %c0_0 = arith.constant 0 : index
    %0 = vector.load %arg1[%c0, %c0_0] : memref<98x256xbf16, #tpu.memory_space<vmem>>, vector<98x256xbf16>
    %c0_1 = arith.constant 0 : index
    %c0_2 = arith.constant 0 : index
    %1 = vector.load %arg2[%c0_1, %c0_2] : memref<256x32xbf16, #tpu.memory_space<vmem>>, vector<256x32xbf16>
    %cst = arith.constant dense<0.000000e+00> : vector<98x32xf32>
    %2 = tpu.matmul %0, %1, %cst {dimension_numbers = #tpu.dot_dimension_numbers<[1], [0], [0], [1], [0, 0, 1, 1], [], []>} : vector<98x256xbf16>, vector<256x32xbf16>, vector<98x32xf32> -> vector<98x32xf32>
    %cst_3 = arith.constant dense<0.000000e+00> : vector<32xf32>
    %3 = vector.multi_reduction <add>, %2, %cst_3 [0] : vector<98x32xf32> to vector<32xf32>
    %4 = vector.shape_cast %3 : vector<32xf32> to vector<1x32xf32>
    %cst_4 = arith.constant 0.0102040814 : f32
    %5 = vector.broadcast %cst_4 : f32 to vector<1x32xf32>
    %6 = arith.mulf %4, %5 : vector<1x32xf32>
    %7 = arith.mulf %2, %2 : vector<98x32xf32>
    %cst_5 = arith.constant dense<0.000000e+00> : vector<32xf32>
    %8 = vector.multi_reduction <add>, %7, %cst_5 [0] : vector<98x32xf32> to vector<32xf32>
    %9 = vector.shape_cast %8 : vector<32xf32> to vector<1x32xf32>
    %cst_6 = arith.constant 0.0102040814 : f32
    %10 = vector.broadcast %cst_6 : f32 to vector<1x32xf32>
    %11 = arith.mulf %9, %10 : vector<1x32xf32>
    %12 = arith.mulf %6, %6 : vector<1x32xf32>
    %13 = arith.subf %11, %12 : vector<1x32xf32>
    %cst_7 = arith.constant 0.000000e+00 : f32
    %14 = vector.broadcast %cst_7 : f32 to vector<1x32xf32>
    %15 = arith.maximumf %13, %14 : vector<1x32xf32>
    %c0_8 = arith.constant 0 : index
    %c0_9 = arith.constant 0 : index
    %16 = vector.load %arg3[%c0_8, %c0_9] : memref<1x32xf32, #tpu.memory_space<vmem>>, vector<1x32xf32>
    %cst_10 = arith.constant 1.000000e-03 : f32
    %17 = vector.broadcast %cst_10 : f32 to vector<1x32xf32>
    %18 = arith.addf %15, %17 : vector<1x32xf32>
    %19 = math.rsqrt %18 : vector<1x32xf32>
    %20 = arith.mulf %16, %19 : vector<1x32xf32>
    %c0_11 = arith.constant 0 : index
    %c0_12 = arith.constant 0 : index
    %21 = vector.load %arg4[%c0_11, %c0_12] : memref<1x32xf32, #tpu.memory_space<vmem>>, vector<1x32xf32>
    %22 = arith.mulf %6, %20 : vector<1x32xf32>
    %23 = arith.subf %21, %22 : vector<1x32xf32>
    %24 = vector.broadcast %20 : vector<1x32xf32> to vector<98x32xf32>
    %25 = arith.mulf %2, %24 : vector<98x32xf32>
    %26 = vector.broadcast %23 : vector<1x32xf32> to vector<98x32xf32>
    %27 = arith.addf %25, %26 : vector<98x32xf32>
    %cst_13 = arith.constant 0.000000e+00 : f32
    %28 = vector.broadcast %cst_13 : f32 to vector<98x32xf32>
    %29 = arith.maximumf %27, %28 : vector<98x32xf32>
    %30 = arith.truncf %29 : vector<98x32xf32> to vector<98x32xbf16>
    %c0_14 = arith.constant 0 : index
    %c0_15 = arith.constant 0 : index
    %31 = vector.load %arg5[%c0_14, %c0_15] : memref<98x32xbf16, #tpu.memory_space<vmem>>, vector<98x32xbf16>
    tpu.vector_store %arg5[%c0_14, %c0_15], %30 {strides = array<i32>} : memref<98x32xbf16, #tpu.memory_space<vmem>>, vector<98x32xbf16>,
    return
  }
  func.func @transform_0(%arg0: i32) -> (i32, i32) {
    %c0_i32 = arith.constant 0 : i32
    %c0_i32_0 = arith.constant 0 : i32
    %c0_i32_1 = arith.constant 0 : i32
    return %c0_i32, %c0_i32_0 : i32, i32
  }
  func.func @transform_1(%arg0: i32) -> (i32, i32) {
    %c0_i32 = arith.constant 0 : i32
    %c0_i32_0 = arith.constant 0 : i32
    %c0_i32_1 = arith.constant 0 : i32
    return %c0_i32, %c0_i32_0 : i32, i32
  }
  func.func @transform_2(%arg0: i32) -> (i32, i32) {
    %c0_i32 = arith.constant 0 : i32
    %c0_i32_0 = arith.constant 0 : i32
    %c0_i32_1 = arith.constant 0 : i32
    return %c0_i32, %c0_i32_0 : i32, i32
  }
  func.func @transform_3(%arg0: i32) -> (i32, i32) {
    %c0_i32 = arith.constant 0 : i32
    %c0_i32_0 = arith.constant 0 : i32
    %c0_i32_1 = arith.constant 0 : i32
    return %c0_i32, %c0_i32_0 : i32, i32
  }
  func.func @transform_4(%arg0: i32) -> (i32, i32) {
    %c0_i32 = arith.constant 0 : i32
    %c0_i32_0 = arith.constant 0 : i32
    %c0_i32_1 = arith.constant 0 : i32
    return %c0_i32, %c0_i32_0 : i32, i32
  }
}

module attributes {stable_mosaic.version = 11 : i64} {
  func.func @_conv_bn_relu_kernel(%arg0: i32, %arg1: memref<50x640xbf16, #tpu.memory_space<vmem>>, %arg2: memref<640x96xbf16, #tpu.memory_space<vmem>>, %arg3: memref<1x96xf32, #tpu.memory_space<vmem>>, %arg4: memref<1x96xf32, #tpu.memory_space<vmem>>, %arg5: memref<50x96xbf16, #tpu.memory_space<vmem>>) attributes {dimension_semantics = [#tpu.dimension_semantics<arbitrary>], iteration_bounds = array<i64: 1>, scalar_prefetch = 0 : i64, scratch_operands = 0 : i64, tpu.core_type = #tpu.core_type<tc>, window_params = [{pipeline_mode = #tpu.pipeline_mode<synchronous>, transform_indices = @transform_0, window_bounds = array<i64: 50, 640>}, {pipeline_mode = #tpu.pipeline_mode<synchronous>, transform_indices = @transform_1, window_bounds = array<i64: 640, 96>}, {pipeline_mode = #tpu.pipeline_mode<synchronous>, transform_indices = @transform_2, window_bounds = array<i64: 1, 96>}, {pipeline_mode = #tpu.pipeline_mode<synchronous>, transform_indices = @transform_3, window_bounds = array<i64: 1, 96>}, {pipeline_mode = #tpu.pipeline_mode<synchronous>, transform_indices = @transform_4, window_bounds = array<i64: 50, 96>}]} {
    %c0 = arith.constant 0 : index
    %c0_0 = arith.constant 0 : index
    %0 = vector.load %arg1[%c0, %c0_0] : memref<50x640xbf16, #tpu.memory_space<vmem>>, vector<50x640xbf16>
    %c0_1 = arith.constant 0 : index
    %c0_2 = arith.constant 0 : index
    %1 = vector.load %arg2[%c0_1, %c0_2] : memref<640x96xbf16, #tpu.memory_space<vmem>>, vector<640x96xbf16>
    %cst = arith.constant dense<0.000000e+00> : vector<50x96xf32>
    %2 = tpu.matmul %0, %1, %cst {dimension_numbers = #tpu.dot_dimension_numbers<[1], [0], [0], [1], [0, 0, 1, 1], [], []>} : vector<50x640xbf16>, vector<640x96xbf16>, vector<50x96xf32> -> vector<50x96xf32>
    %cst_3 = arith.constant dense<0.000000e+00> : vector<96xf32>
    %3 = vector.multi_reduction <add>, %2, %cst_3 [0] : vector<50x96xf32> to vector<96xf32>
    %4 = vector.shape_cast %3 : vector<96xf32> to vector<1x96xf32>
    %cst_4 = arith.constant 2.000000e-02 : f32
    %5 = vector.broadcast %cst_4 : f32 to vector<1x96xf32>
    %6 = arith.mulf %4, %5 : vector<1x96xf32>
    %7 = arith.mulf %2, %2 : vector<50x96xf32>
    %cst_5 = arith.constant dense<0.000000e+00> : vector<96xf32>
    %8 = vector.multi_reduction <add>, %7, %cst_5 [0] : vector<50x96xf32> to vector<96xf32>
    %9 = vector.shape_cast %8 : vector<96xf32> to vector<1x96xf32>
    %cst_6 = arith.constant 2.000000e-02 : f32
    %10 = vector.broadcast %cst_6 : f32 to vector<1x96xf32>
    %11 = arith.mulf %9, %10 : vector<1x96xf32>
    %12 = arith.mulf %6, %6 : vector<1x96xf32>
    %13 = arith.subf %11, %12 : vector<1x96xf32>
    %cst_7 = arith.constant 0.000000e+00 : f32
    %14 = vector.broadcast %cst_7 : f32 to vector<1x96xf32>
    %15 = arith.maximumf %13, %14 : vector<1x96xf32>
    %c0_8 = arith.constant 0 : index
    %c0_9 = arith.constant 0 : index
    %16 = vector.load %arg3[%c0_8, %c0_9] : memref<1x96xf32, #tpu.memory_space<vmem>>, vector<1x96xf32>
    %cst_10 = arith.constant 1.000000e-03 : f32
    %17 = vector.broadcast %cst_10 : f32 to vector<1x96xf32>
    %18 = arith.addf %15, %17 : vector<1x96xf32>
    %19 = math.rsqrt %18 : vector<1x96xf32>
    %20 = arith.mulf %16, %19 : vector<1x96xf32>
    %c0_11 = arith.constant 0 : index
    %c0_12 = arith.constant 0 : index
    %21 = vector.load %arg4[%c0_11, %c0_12] : memref<1x96xf32, #tpu.memory_space<vmem>>, vector<1x96xf32>
    %22 = arith.mulf %6, %20 : vector<1x96xf32>
    %23 = arith.subf %21, %22 : vector<1x96xf32>
    %24 = vector.broadcast %20 : vector<1x96xf32> to vector<50x96xf32>
    %25 = arith.mulf %2, %24 : vector<50x96xf32>
    %26 = vector.broadcast %23 : vector<1x96xf32> to vector<50x96xf32>
    %27 = arith.addf %25, %26 : vector<50x96xf32>
    %cst_13 = arith.constant 0.000000e+00 : f32
    %28 = vector.broadcast %cst_13 : f32 to vector<50x96xf32>
    %29 = arith.maximumf %27, %28 : vector<50x96xf32>
    %30 = arith.truncf %29 : vector<50x96xf32> to vector<50x96xbf16>
    %c0_14 = arith.constant 0 : index
    %c0_15 = arith.constant 0 : index
    %31 = vector.load %arg5[%c0_14, %c0_15] : memref<50x96xbf16, #tpu.memory_space<vmem>>, vector<50x96xbf16>
    tpu.vector_store %arg5[%c0_14, %c0_15], %30 {strides = array<i32>} : memref<50x96xbf16, #tpu.memory_space<vmem>>, vector<50x96xbf16>,
    return
  }
  func.func @transform_0(%arg0: i32) -> (i32, i32) {
    %c0_i32 = arith.constant 0 : i32
    %c0_i32_0 = arith.constant 0 : i32
    %c0_i32_1 = arith.constant 0 : i32
    return %c0_i32, %c0_i32_0 : i32, i32
  }
  func.func @transform_1(%arg0: i32) -> (i32, i32) {
    %c0_i32 = arith.constant 0 : i32
    %c0_i32_0 = arith.constant 0 : i32
    %c0_i32_1 = arith.constant 0 : i32
    return %c0_i32, %c0_i32_0 : i32, i32
  }
  func.func @transform_2(%arg0: i32) -> (i32, i32) {
    %c0_i32 = arith.constant 0 : i32
    %c0_i32_0 = arith.constant 0 : i32
    %c0_i32_1 = arith.constant 0 : i32
    return %c0_i32, %c0_i32_0 : i32, i32
  }
  func.func @transform_3(%arg0: i32) -> (i32, i32) {
    %c0_i32 = arith.constant 0 : i32
    %c0_i32_0 = arith.constant 0 : i32
    %c0_i32_1 = arith.constant 0 : i32
    return %c0_i32, %c0_i32_0 : i32, i32
  }
  func.func @transform_4(%arg0: i32) -> (i32, i32) {
    %c0_i32 = arith.constant 0 : i32
    %c0_i32_0 = arith.constant 0 : i32
    %c0_i32_1 = arith.constant 0 : i32
    return %c0_i32, %c0_i32_0 : i32, i32
  }
}

module attributes {stable_mosaic.version = 11 : i64} {
  func.func @_conv_bn_relu_pool_concat_kernel(%arg0: i32, %arg1: memref<8x896xbf16, #tpu.memory_space<vmem>>, %arg2: memref<896x96xbf16, #tpu.memory_space<vmem>>, %arg3: memref<1x96xf32, #tpu.memory_space<vmem>>, %arg4: memref<1x96xf32, #tpu.memory_space<vmem>>, %arg5: memref<8x192xf32, #tpu.memory_space<vmem>>) attributes {dimension_semantics = [#tpu.dimension_semantics<arbitrary>], iteration_bounds = array<i64: 1>, scalar_prefetch = 0 : i64, scratch_operands = 0 : i64, tpu.core_type = #tpu.core_type<tc>, window_params = [{pipeline_mode = #tpu.pipeline_mode<synchronous>, transform_indices = @transform_0, window_bounds = array<i64: 8, 896>}, {pipeline_mode = #tpu.pipeline_mode<synchronous>, transform_indices = @transform_1, window_bounds = array<i64: 896, 96>}, {pipeline_mode = #tpu.pipeline_mode<synchronous>, transform_indices = @transform_2, window_bounds = array<i64: 1, 96>}, {pipeline_mode = #tpu.pipeline_mode<synchronous>, transform_indices = @transform_3, window_bounds = array<i64: 1, 96>}, {pipeline_mode = #tpu.pipeline_mode<synchronous>, transform_indices = @transform_4, window_bounds = array<i64: 8, 192>}]} {
    %c0 = arith.constant 0 : index
    %c0_0 = arith.constant 0 : index
    %0 = vector.load %arg1[%c0, %c0_0] : memref<8x896xbf16, #tpu.memory_space<vmem>>, vector<8x896xbf16>
    %c0_1 = arith.constant 0 : index
    %c0_2 = arith.constant 0 : index
    %1 = vector.load %arg2[%c0_1, %c0_2] : memref<896x96xbf16, #tpu.memory_space<vmem>>, vector<896x96xbf16>
    %cst = arith.constant dense<0.000000e+00> : vector<8x96xf32>
    %2 = tpu.matmul %0, %1, %cst {dimension_numbers = #tpu.dot_dimension_numbers<[1], [0], [0], [1], [0, 0, 1, 1], [], []>} : vector<8x896xbf16>, vector<896x96xbf16>, vector<8x96xf32> -> vector<8x96xf32>
    %cst_3 = arith.constant dense<0.000000e+00> : vector<96xf32>
    %3 = vector.multi_reduction <add>, %2, %cst_3 [0] : vector<8x96xf32> to vector<96xf32>
    %4 = vector.shape_cast %3 : vector<96xf32> to vector<1x96xf32>
    %cst_4 = arith.constant 1.250000e-01 : f32
    %5 = vector.broadcast %cst_4 : f32 to vector<1x96xf32>
    %6 = arith.mulf %4, %5 : vector<1x96xf32>
    %7 = arith.mulf %2, %2 : vector<8x96xf32>
    %cst_5 = arith.constant dense<0.000000e+00> : vector<96xf32>
    %8 = vector.multi_reduction <add>, %7, %cst_5 [0] : vector<8x96xf32> to vector<96xf32>
    %9 = vector.shape_cast %8 : vector<96xf32> to vector<1x96xf32>
    %cst_6 = arith.constant 1.250000e-01 : f32
    %10 = vector.broadcast %cst_6 : f32 to vector<1x96xf32>
    %11 = arith.mulf %9, %10 : vector<1x96xf32>
    %12 = arith.mulf %6, %6 : vector<1x96xf32>
    %13 = arith.subf %11, %12 : vector<1x96xf32>
    %cst_7 = arith.constant 0.000000e+00 : f32
    %14 = vector.broadcast %cst_7 : f32 to vector<1x96xf32>
    %15 = arith.maximumf %13, %14 : vector<1x96xf32>
    %c0_8 = arith.constant 0 : index
    %c0_9 = arith.constant 0 : index
    %16 = vector.load %arg3[%c0_8, %c0_9] : memref<1x96xf32, #tpu.memory_space<vmem>>, vector<1x96xf32>
    %cst_10 = arith.constant 1.000000e-03 : f32
    %17 = vector.broadcast %cst_10 : f32 to vector<1x96xf32>
    %18 = arith.addf %15, %17 : vector<1x96xf32>
    %19 = math.rsqrt %18 : vector<1x96xf32>
    %20 = arith.mulf %16, %19 : vector<1x96xf32>
    %c0_11 = arith.constant 0 : index
    %c0_12 = arith.constant 0 : index
    %21 = vector.load %arg4[%c0_11, %c0_12] : memref<1x96xf32, #tpu.memory_space<vmem>>, vector<1x96xf32>
    %22 = arith.mulf %6, %20 : vector<1x96xf32>
    %23 = arith.subf %21, %22 : vector<1x96xf32>
    %24 = vector.broadcast %20 : vector<1x96xf32> to vector<8x96xf32>
    %25 = arith.mulf %2, %24 : vector<8x96xf32>
    %26 = vector.broadcast %23 : vector<1x96xf32> to vector<8x96xf32>
    %27 = arith.addf %25, %26 : vector<8x96xf32>
    %cst_13 = arith.constant 0.000000e+00 : f32
    %28 = vector.broadcast %cst_13 : f32 to vector<8x96xf32>
    %29 = arith.maximumf %27, %28 : vector<8x96xf32>
    %30 = vector.extract_strided_slice %0 {offsets = [0, 0], sizes = [8, 96], strides = [1, 1]} : vector<8x896xbf16> to vector<8x96xbf16>
    %31 = arith.extf %30 : vector<8x96xbf16> to vector<8x96xf32>
    %32 = vector.extract_strided_slice %0 {offsets = [0, 96], sizes = [8, 96], strides = [1, 1]} : vector<8x896xbf16> to vector<8x96xbf16>
    %33 = arith.extf %32 : vector<8x96xbf16> to vector<8x96xf32>
    %34 = arith.maximumf %31, %33 : vector<8x96xf32>
    %35 = vector.extract_strided_slice %0 {offsets = [0, 192], sizes = [8, 96], strides = [1, 1]} : vector<8x896xbf16> to vector<8x96xbf16>
    %36 = arith.extf %35 : vector<8x96xbf16> to vector<8x96xf32>
    %37 = arith.maximumf %34, %36 : vector<8x96xf32>
    %38 = vector.extract_strided_slice %0 {offsets = [0, 288], sizes = [8, 96], strides = [1, 1]} : vector<8x896xbf16> to vector<8x96xbf16>
    %39 = arith.extf %38 : vector<8x96xbf16> to vector<8x96xf32>
    %40 = arith.maximumf %37, %39 : vector<8x96xf32>
    %41 = vector.extract_strided_slice %0 {offsets = [0, 384], sizes = [8, 96], strides = [1, 1]} : vector<8x896xbf16> to vector<8x96xbf16>
    %42 = arith.extf %41 : vector<8x96xbf16> to vector<8x96xf32>
    %43 = arith.maximumf %40, %42 : vector<8x96xf32>
    %44 = vector.extract_strided_slice %0 {offsets = [0, 480], sizes = [8, 96], strides = [1, 1]} : vector<8x896xbf16> to vector<8x96xbf16>
    %45 = arith.extf %44 : vector<8x96xbf16> to vector<8x96xf32>
    %46 = arith.maximumf %43, %45 : vector<8x96xf32>
    %47 = vector.extract_strided_slice %0 {offsets = [0, 576], sizes = [8, 96], strides = [1, 1]} : vector<8x896xbf16> to vector<8x96xbf16>
    %48 = arith.extf %47 : vector<8x96xbf16> to vector<8x96xf32>
    %49 = arith.maximumf %46, %48 : vector<8x96xf32>
    %50 = vector.extract_strided_slice %0 {offsets = [0, 672], sizes = [8, 96], strides = [1, 1]} : vector<8x896xbf16> to vector<8x96xbf16>
    %51 = arith.extf %50 : vector<8x96xbf16> to vector<8x96xf32>
    %52 = arith.maximumf %49, %51 : vector<8x96xf32>
    %53 = vector.extract_strided_slice %0 {offsets = [0, 768], sizes = [8, 96], strides = [1, 1]} : vector<8x896xbf16> to vector<8x96xbf16>
    %54 = arith.extf %53 : vector<8x96xbf16> to vector<8x96xf32>
    %55 = arith.maximumf %52, %54 : vector<8x96xf32>
    %c0_14 = arith.constant 0 : index
    %c0_15 = arith.constant 0 : index
    %56 = vector.load %arg5[%c0_14, %c0_15] : memref<8x192xf32, #tpu.memory_space<vmem>>, vector<8x96xf32>
    tpu.vector_store %arg5[%c0_14, %c0_15], %29 {strides = array<i32>} : memref<8x192xf32, #tpu.memory_space<vmem>>, vector<8x96xf32>,
    %c0_16 = arith.constant 0 : index
    %c96 = arith.constant 96 : index
    %57 = vector.load %arg5[%c0_16, %c96] : memref<8x192xf32, #tpu.memory_space<vmem>>, vector<8x96xf32>
    tpu.vector_store %arg5[%c0_16, %c96], %55 {strides = array<i32>} : memref<8x192xf32, #tpu.memory_space<vmem>>, vector<8x96xf32>,
    return
  }
  func.func @transform_0(%arg0: i32) -> (i32, i32) {
    %c0_i32 = arith.constant 0 : i32
    %c0_i32_0 = arith.constant 0 : i32
    %c0_i32_1 = arith.constant 0 : i32
    return %c0_i32, %c0_i32_0 : i32, i32
  }
  func.func @transform_1(%arg0: i32) -> (i32, i32) {
    %c0_i32 = arith.constant 0 : i32
    %c0_i32_0 = arith.constant 0 : i32
    %c0_i32_1 = arith.constant 0 : i32
    return %c0_i32, %c0_i32_0 : i32, i32
  }
  func.func @transform_2(%arg0: i32) -> (i32, i32) {
    %c0_i32 = arith.constant 0 : i32
    %c0_i32_0 = arith.constant 0 : i32
    %c0_i32_1 = arith.constant 0 : i32
    return %c0_i32, %c0_i32_0 : i32, i32
  }
  func.func @transform_3(%arg0: i32) -> (i32, i32) {
    %c0_i32 = arith.constant 0 : i32
    %c0_i32_0 = arith.constant 0 : i32
    %c0_i32_1 = arith.constant 0 : i32
    return %c0_i32, %c0_i32_0 : i32, i32
  }
  func.func @transform_4(%arg0: i32) -> (i32, i32) {
    %c0_i32 = arith.constant 0 : i32
    %c0_i32_0 = arith.constant 0 : i32
    %c0_i32_1 = arith.constant 0 : i32
    return %c0_i32, %c0_i32_0 : i32, i32
  }
}

</mosaic_0001>

<bundles_post_ra>
// kernel: inception_v4_stem_forward.9
= control target key start
LH: loop header
LB: loop body
LE: loop exit
PB: predicated region body
PF: predicated region fallthrough
CT: control target
= control target key end

     0   :  { %v2160_v0 = vmov 0.0   ;;  %vm2161_vm0 = vmmov 0   ;;  %vm703_vm1 = vcmask 130048   ;;  %vm847_vm2 = vcmask 123904   ;;  %s4115_s1 = inlined_call_operand.vmem [shape: bf16[128,16], index: 1, kind: input, shape index: {}]   ;;  %s4116_s0 = inlined_call_operand.vmem [shape: bf16[578,128], index: 0, kind: input, shape index: {}]   ;;  %s4117_s2 = inlined_call_operand.vmem [shape: f32[1,16], index: 2, kind: input, shape index: {}]   ;;  %s4118_s3 = inlined_call_operand.vmem [shape: f32[1,16], index: 3, kind: input, shape index: {}]   ;;  %s4119_s4 = inlined_call_operand.vmem [shape: bf16[578,16], index: 4, kind: output, shape index: {}]  }
   0x1   :  { %1931 = vmatprep.subr.bf16.mxu0 %v2160_v0  ;;  %v2113_v1 = vld [vmem:[%s4115_s1] sm:$0xff]   ;;  %1947 = vmatprep.mubr.msk.bf16.mxu0 %vm2161_vm0, %v2160_v0  ;;  %v2114_v2 = vld [vmem:[%s4115_s1 + $0x8] sm:$0xff]   ;;  %v2115_v3 = vld [vmem:[%s4115_s1 + $0x10] sm:$0xff]   ;;  %vm1616_vm3 = vcmask 125952   ;;  %vm1689_vm4 = vcmask 122880  }
   0x2   :  { %2095 = vmatprep.subr.bf16.mxu1 %v2160_v0  ;;  %2023 = vmatprep.mubr.msk.bf16.mxu1 %vm2161_vm0, %v2160_v0  ;;  %v2116_v4 = vld [vmem:[%s4115_s1 + $0x18] sm:$0xff]   ;;  %v2117_v5 = vld [vmem:[%s4115_s1 + $0x20] sm:$0xff]   ;;  %v2118_v6 = vld [vmem:[%s4115_s1 + $0x28] sm:$0xff]  }
   0x3   :  { %1932 = vmatpush3.bf16.msra.mxu0 %v2113_v1  ;;  %2103 = vmatpush3.bf16.msra.mxu1 %v2113_v1  ;;  %v2119_v7 = vld [vmem:[%s4115_s1 + $0x30] sm:$0xff]   ;;  %v2120_v8 = vld [vmem:[%s4115_s1 + $0x38] sm:$0xff]   ;;  %v2121_v9 = vld [vmem:[%s4116_s0] sm:$0xff]  }
   0x4   :  { %1933 = vmatprep.subr.bf16.mxu0 %v2160_v0  ;;  %2096 = vmatprep.subr.bf16.mxu1 %v2160_v0  ;;  %v2131_v10 = vld [vmem:[%s4116_s0 + $0x98] sm:$0xff]   ;;  %v2122_v11 = vld [vmem:[%s4116_s0 + $0x8] sm:$0xff]   ;;  %v2133_v12 = vld [vmem:[%s4116_s0 + $0xa0] sm:$0xff]  }
   0x5   :  { %v2123_v13 = vld [vmem:[%s4116_s0 + $0x10] sm:$0xff]   ;;  %v2135_v14 = vld [vmem:[%s4116_s0 + $0xa8] sm:$0xff]   ;;  %v2124_v15 = vld [vmem:[%s4116_s0 + $0x18] sm:$0xff]  }
   0x6   :  { %v2137_v16 = vld [vmem:[%s4116_s0 + $0xb0] sm:$0xff]   ;;  %v2125_v17 = vld [vmem:[%s4116_s0 + $0x20] sm:$0xff]   ;;  %v2139_v18 = vld [vmem:[%s4116_s0 + $0xb8] sm:$0xff]  }
   0x7   :  { %1934 = vmatpush3.bf16.msra.mxu0 %v2114_v2  ;;  %2104 = vmatpush3.bf16.msra.mxu1 %v2114_v2  ;;  %v2126_v19 = vld [vmem:[%s4116_s0 + $0x28] sm:$0xff]   ;;  %v2141_v20 = vld [vmem:[%s4116_s0 + $0xc0] sm:$0xff]   ;;  %v2127_v21 = vld [vmem:[%s4116_s0 + $0x30] sm:$0xff]  }
   0x8   :  { %1935 = vmatprep.subr.bf16.mxu0 %v2160_v0  ;;  %2097 = vmatprep.subr.bf16.mxu1 %v2160_v0  ;;  %v2143_v22 = vld [vmem:[%s4116_s0 + $0xc8] sm:$0xff]   ;;  %v2128_v23 = vld [vmem:[%s4116_s0 + $0x38] sm:$0xff]   ;;  %v2145_v24 = vld [vmem:[%s4116_s0 + $0xd0] sm:$0xff]  }
   0x9   :  { %v2129_v25 = vld [vmem:[%s4116_s0 + $0x40] sm:$0xff]   ;;  %v2147_v26 = vld [vmem:[%s4116_s0 + $0xd8] sm:$0xff]   ;;  %v2130_v27 = vld [vmem:[%s4116_s0 + $0x48] sm:$0xff]  }
   0xa   :  { %v2149_v28 = vld [vmem:[%s4116_s0 + $0xe0] sm:$0xff]   ;;  %v2132_v29 = vld [vmem:[%s4116_s0 + $0x50] sm:$0xff]   ;;  %v2150_v30 = vld [vmem:[%s4116_s0 + $0xe8] sm:$0xff]  }
   0xb   :  { %1936 = vmatpush3.bf16.msra.mxu0 %v2115_v3  ;;  %2105 = vmatpush3.bf16.msra.mxu1 %v2115_v3  ;;  %v2134_v31 = vld [vmem:[%s4116_s0 + $0x58] sm:$0xff]   ;;  %v2151_v32 = vld [vmem:[%s4116_s0 + $0xf0] sm:$0xff]   ;;  %v2136_v33 = vld [vmem:[%s4116_s0 + $0x60] sm:$0xff]  }
   0xc   :  { %1937 = vmatprep.subr.bf16.mxu0 %v2160_v0  ;;  %2098 = vmatprep.subr.bf16.mxu1 %v2160_v0  ;;  %v2152_v34 = vld [vmem:[%s4116_s0 + $0xf8] sm:$0xff]   ;;  %v2138_v35 = vld [vmem:[%s4116_s0 + $0x68] sm:$0xff]   ;;  %v2153_v36 = vld [vmem:[%s4116_s0 + $0x100] sm:$0xff]  }
   0xd   :  { %v2140_v37 = vld [vmem:[%s4116_s0 + $0x70] sm:$0xff]   ;;  %v2154_v38 = vld [vmem:[%s4116_s0 + $0x108] sm:$0xff]   ;;  %v2142_v39 = vld [vmem:[%s4116_s0 + $0x78] sm:$0xff]  }
   0xe   :  { %v2155_v40 = vld [vmem:[%s4116_s0 + $0x110] sm:$0xff]   ;;  %v2144_v41 = vld [vmem:[%s4116_s0 + $0x80] sm:$0xff]   ;;  %v2156_v42 = vld [vmem:[%s4116_s0 + $0x118] sm:$0xff]  }
   0xf   :  { %1938 = vmatpush3.bf16.msra.mxu0 %v2116_v4  ;;  %2106 = vmatpush3.bf16.msra.mxu1 %v2116_v4  ;;  %v2146_v43 = vld [vmem:[%s4116_s0 + $0x88] sm:$0xff]   ;;  %v2157_v44 = vld [vmem:[%s4116_s0 + $0x120] ss:$0 sps:$4 sm:$0x11]   ;;  %v2148_v45 = vld [vmem:[%s4116_s0 + $0x90] sm:$0xff]  }
  0x10   :  { %1939 = vmatprep.subr.bf16.mxu0 %v2160_v0  ;;  %2099 = vmatprep.subr.bf16.mxu1 %v2160_v0 }
  0x13   :  { %1940 = vmatpush3.bf16.msra.mxu0 %v2117_v5  ;;  %2107 = vmatpush3.bf16.msra.mxu1 %v2117_v5 }
  0x14   :  { %1941 = vmatprep.subr.bf16.mxu0 %v2160_v0  ;;  %2100 = vmatprep.subr.bf16.mxu1 %v2160_v0 }
  0x17   :  { %1942 = vmatpush3.bf16.msra.mxu0 %v2118_v6  ;;  %2108 = vmatpush3.bf16.msra.mxu1 %v2118_v6 }
  0x18   :  { %1943 = vmatprep.subr.bf16.mxu0 %v2160_v0  ;;  %2101 = vmatprep.subr.bf16.mxu1 %v2160_v0 }
  0x1b   :  { %1944 = vmatpush3.bf16.msra.mxu0 %v2119_v7  ;;  %2109 = vmatpush3.bf16.msra.mxu1 %v2119_v7 }
  0x1c   :  { %1945 = vmatprep.subr.bf16.mxu0 %v2160_v0  ;;  %2102 = vmatprep.subr.bf16.mxu1 %v2160_v0 }
  0x1f   :  { %1946 = vmatpush3.bf16.msra.mxu0 %v2120_v8  ;;  %2110 = vmatpush3.bf16.msra.mxu1 %v2120_v8 }
  0x22   :  { %1948 = vmatmul.mubr.bf16.vlgmr.msra.gmra.mrb[0].mxu0 %v2121_v9  ;;  %2024 = vmatmul.mubr.bf16.vlgmr.msra.gmra.mrb[0].mxu1 %v2131_v10 }
  0x23   :  { %1951 = vmatprep.mubr.msk.bf16.mxu0 %vm2161_vm0, %v2160_v0  ;;  %2027 = vmatprep.mubr.msk.bf16.mxu1 %vm2161_vm0, %v2160_v0 }
  0x2a   :  { %1952 = vmatmul.mubr.bf16.gmra.mrb[4].mxu0 %v2122_v11  ;;  %2028 = vmatmul.mubr.bf16.gmra.mrb[4].mxu1 %v2133_v12 }
  0x2b   :  { %1955 = vmatprep.mubr.msk.bf16.mxu0 %vm2161_vm0, %v2160_v0  ;;  %2031 = vmatprep.mubr.msk.bf16.mxu1 %vm2161_vm0, %v2160_v0 }
  0x32   :  { %1956 = vmatmul.mubr.bf16.gmra.mrb[8].mxu0 %v2123_v13  ;;  %2032 = vmatmul.mubr.bf16.gmra.mrb[8].mxu1 %v2135_v14 }
  0x33   :  { %1959 = vmatprep.mubr.msk.bf16.mxu0 %vm2161_vm0, %v2160_v0  ;;  %2035 = vmatprep.mubr.msk.bf16.mxu1 %vm2161_vm0, %v2160_v0 }
  0x3a   :  { %1960 = vmatmul.mubr.bf16.gmra.mrb[12].mxu0 %v2124_v15  ;;  %2036 = vmatmul.mubr.bf16.gmra.mrb[12].mxu1 %v2137_v16 }
  0x3b   :  { %1963 = vmatprep.mubr.msk.bf16.mxu0 %vm2161_vm0, %v2160_v0  ;;  %2039 = vmatprep.mubr.msk.bf16.mxu1 %vm2161_vm0, %v2160_v0 }
  0x42   :  { %1964 = vmatmul.mubr.bf16.gmra.mrb[16].mxu0 %v2125_v17  ;;  %2040 = vmatmul.mubr.bf16.gmra.mrb[16].mxu1 %v2139_v18 }
  0x43   :  { %1967 = vmatprep.mubr.msk.bf16.mxu0 %vm2161_vm0, %v2160_v0  ;;  %2043 = vmatprep.mubr.msk.bf16.mxu1 %vm2161_vm0, %v2160_v0 }
  0x4a   :  { %1968 = vmatmul.mubr.bf16.gmra.mrb[20].mxu0 %v2126_v19  ;;  %2044 = vmatmul.mubr.bf16.gmra.mrb[20].mxu1 %v2141_v20 }
  0x4b   :  { %1971 = vmatprep.mubr.msk.bf16.mxu0 %vm2161_vm0, %v2160_v0  ;;  %2047 = vmatprep.mubr.msk.bf16.mxu1 %vm2161_vm0, %v2160_v0 }
  0x52   :  { %1972 = vmatmul.mubr.bf16.gmra.mrb[24].mxu0 %v2127_v21  ;;  %2048 = vmatmul.mubr.bf16.gmra.mrb[24].mxu1 %v2143_v22 }
  0x53   :  { %1975 = vmatprep.mubr.msk.bf16.mxu0 %vm2161_vm0, %v2160_v0  ;;  %2051 = vmatprep.mubr.msk.bf16.mxu1 %vm2161_vm0, %v2160_v0 }
  0x5a   :  { %1976 = vmatmul.mubr.bf16.gmra.mrb[28].mxu0 %v2128_v23  ;;  %2052 = vmatmul.mubr.bf16.gmra.mrb[28].mxu1 %v2145_v24 }
  0x5b   :  { %1979 = vmatprep.mubr.msk.bf16.mxu0 %vm2161_vm0, %v2160_v0  ;;  %2055 = vmatprep.mubr.msk.bf16.mxu1 %vm2161_vm0, %v2160_v0 }
  0x62   :  { %1980 = vmatmul.mubr.bf16.gmra.mrb[32].mxu0 %v2129_v25  ;;  %2056 = vmatmul.mubr.bf16.gmra.mrb[32].mxu1 %v2147_v26 }
  0x63   :  { %1983 = vmatprep.mubr.msk.bf16.mxu0 %vm2161_vm0, %v2160_v0  ;;  %2059 = vmatprep.mubr.msk.bf16.mxu1 %vm2161_vm0, %v2160_v0 }
  0x6a   :  { %1984 = vmatmul.mubr.bf16.gmra.mrb[36].mxu0 %v2130_v27  ;;  %2060 = vmatmul.mubr.bf16.gmra.mrb[36].mxu1 %v2149_v28 }
  0x6b   :  { %1987 = vmatprep.mubr.msk.bf16.mxu0 %vm2161_vm0, %v2160_v0  ;;  %2063 = vmatprep.mubr.msk.bf16.mxu1 %vm2161_vm0, %v2160_v0 }
  0x72   :  { %1988 = vmatmul.mubr.bf16.gmra.mrb[40].mxu0 %v2132_v29  ;;  %2064 = vmatmul.mubr.bf16.gmra.mrb[40].mxu1 %v2150_v30 }
  0x73   :  { %1991 = vmatprep.mubr.msk.bf16.mxu0 %vm2161_vm0, %v2160_v0  ;;  %2067 = vmatprep.mubr.msk.bf16.mxu1 %vm2161_vm0, %v2160_v0 }
  0x7a   :  { %1992 = vmatmul.mubr.bf16.gmra.mrb[44].mxu0 %v2134_v31  ;;  %2068 = vmatmul.mubr.bf16.gmra.mrb[44].mxu1 %v2151_v32 }
  0x7b   :  { %1995 = vmatprep.mubr.msk.bf16.mxu0 %vm2161_vm0, %v2160_v0  ;;  %2071 = vmatprep.mubr.msk.bf16.mxu1 %vm2161_vm0, %v2160_v0 }
  0x82   :  { %1996 = vmatmul.mubr.bf16.gmra.mrb[48].mxu0 %v2136_v33  ;;  %2072 = vmatmul.mubr.bf16.gmra.mrb[48].mxu1 %v2152_v34 }
  0x83   :  { %1999 = vmatprep.mubr.msk.bf16.mxu0 %vm2161_vm0, %v2160_v0  ;;  %2075 = vmatprep.mubr.msk.bf16.mxu1 %vm2161_vm0, %v2160_v0 }
  0x8a   :  { %2000 = vmatmul.mubr.bf16.gmra.mrb[52].mxu0 %v2138_v35  ;;  %2076 = vmatmul.mubr.bf16.gmra.mrb[52].mxu1 %v2153_v36 }
  0x8b   :  { %2003 = vmatprep.mubr.msk.bf16.mxu0 %vm2161_vm0, %v2160_v0  ;;  %2079 = vmatprep.mubr.msk.bf16.mxu1 %vm2161_vm0, %v2160_v0 }
  0x92   :  { %2004 = vmatmul.mubr.bf16.gmra.mrb[56].mxu0 %v2140_v37  ;;  %2080 = vmatmul.mubr.bf16.gmra.mrb[56].mxu1 %v2154_v38 }
  0x93   :  { %2007 = vmatprep.mubr.msk.bf16.mxu0 %vm2161_vm0, %v2160_v0  ;;  %2083 = vmatprep.mubr.msk.bf16.mxu1 %vm2161_vm0, %v2160_v0 }
  0x9a   :  { %2008 = vmatmul.mubr.bf16.gmra.mrb[60].mxu0 %v2142_v39  ;;  %2084 = vmatmul.mubr.bf16.gmra.mrb[60].mxu1 %v2155_v40 }
  0x9b   :  { %2011 = vmatprep.mubr.msk.bf16.mxu0 %vm2161_vm0, %v2160_v0  ;;  %2087 = vmatprep.mubr.msk.bf16.mxu1 %vm2161_vm0, %v2160_v0 }
  0xa2   :  { %2012 = vmatmul.mubr.bf16.gmra.mrb[64].mxu0 %v2144_v41  ;;  %2088 = vmatmul.mubr.bf16.gmra.mrb[64].mxu1 %v2156_v42 }
  0xa3   :  { %2015 = vmatprep.mubr.msk.bf16.mxu0 %vm2161_vm0, %v2160_v0  ;;  %2091 = vmatprep.mubr.msk.bf16.mxu1 %vm2161_vm0, %v2160_v0 }
  0xaa   :  { %2016 = vmatmul.mubr.bf16.gmra.mrb[68].mxu0 %v2146_v43  ;;  %2092 = vmatmul.mubr.bf16.gmra.mrb[68].mxu1 %v2157_v44 }
  0xab   :  { %2019 = vmatprep.mubr.msk.bf16.mxu0 %vm2161_vm0, %v2160_v0 }
  0xb2   :  { %2020 = vmatmul.mubr.bf16.gmra.mrb[72].mxu0 %v2148_v45 }
  0xf5   :  { %v2412_v46 = vpop.f32.mrb[0].mxu0  ;;  %v2414_v47 = vpop.f32.mrb[0].mxu1 }
  0xf6   :  { %v857_v48 = vmul.f32 %v2412_v46, %v2412_v46  ;;  %v1949_v49 = vpop.f32.mrb[1].mxu0  ;;  %v2025_v50 = vpop.f32.mrb[1].mxu1  ;;  %v704_v53 = vsel %vm703_vm1, %v2412_v46, 0.0 }
  0xf7   :  { %v2418_v51 = vpop.f32.mrb[2].mxu0  ;;  %v2420_v52 = vpop.f32.mrb[2].mxu1 }
  0xf8   :  { %v705_v54 = vsel %vm703_vm1, %v2418_v51, 0.0  ;;  %v858_v55 = vmul.f32 %v2418_v51, %v2418_v51  ;;  %v1950_v56 = vpop.f32.mrb[3].mxu0  ;;  %v2026_v57 = vpop.f32.mrb[3].mxu1  ;;  %v930_v59 = vsel %vm703_vm1, %v857_v48, 0.0 }
  0xf9   :  { %v706_v58 = vadd.f32 %v705_v54, %v704_v53 }
  0xfa   :  { %v931_v60 = vsel %vm703_vm1, %v858_v55, 0.0 }
  0xfb   :  { %v932_v61 = vadd.f32 %v931_v60, %v930_v59 }
  0xfd   :  { %v2430_v62 = vpop.f32.mrb[4].mxu0  ;;  %v2432_v63 = vpop.f32.mrb[4].mxu1 }
  0xfe   :  { %v707_v0 = vsel %vm703_vm1, %v2430_v62, 0.0  ;;  %v859_v1 = vmul.f32 %v2430_v62, %v2430_v62  ;;  %v1953_v2 = vpop.f32.mrb[5].mxu0  ;;  %v2029_v3 = vpop.f32.mrb[5].mxu1 }
  0xff   :  { %v708_v4 = vadd.f32 %v707_v0, %v706_v58  ;;  %v2438_v5 = vpop.f32.mrb[6].mxu0  ;;  %v2440_v6 = vpop.f32.mrb[6].mxu1 }
 0x100   :  { %v933_v7 = vsel %vm703_vm1, %v859_v1, 0.0  ;;  %v709_v8 = vsel %vm703_vm1, %v2438_v5, 0.0  ;;  %v860_v9 = vmul.f32 %v2438_v5, %v2438_v5  ;;  %v1954_v10 = vpop.f32.mrb[7].mxu0  ;;  %v2030_v11 = vpop.f32.mrb[7].mxu1 }
 0x101   :  { %v934_v12 = vadd.f32 %v933_v7, %v932_v61  ;;  %v710_v13 = vadd.f32 %v709_v8, %v708_v4 }
 0x102   :  { %v935_v14 = vsel %vm703_vm1, %v860_v9, 0.0 }
 0x103   :  { %v936_v15 = vadd.f32 %v935_v14, %v934_v12 }
 0x105   :  { %v2448_v16 = vpop.f32.mrb[8].mxu0  ;;  %v2450_v17 = vpop.f32.mrb[8].mxu1 }
 0x106   :  { %v711_v18 = vsel %vm703_vm1, %v2448_v16, 0.0  ;;  %v861_v19 = vmul.f32 %v2448_v16, %v2448_v16  ;;  %v1957_v20 = vpop.f32.mrb[9].mxu0  ;;  %v2033_v21 = vpop.f32.mrb[9].mxu1 }
 0x107   :  { %v712_v22 = vadd.f32 %v711_v18, %v710_v13  ;;  %v2456_v23 = vpop.f32.mrb[10].mxu0  ;;  %v2458_v24 = vpop.f32.mrb[10].mxu1 }
 0x108   :  { %v937_v25 = vsel %vm703_vm1, %v861_v19, 0.0  ;;  %v713_v26 = vsel %vm703_vm1, %v2456_v23, 0.0  ;;  %v862_v27 = vmul.f32 %v2456_v23, %v2456_v23  ;;  %v1958_v28 = vpop.f32.mrb[11].mxu0  ;;  %v2034_v29 = vpop.f32.mrb[11].mxu1 }
 0x109   :  { %v938_v30 = vadd.f32 %v937_v25, %v936_v15  ;;  %v714_v31 = vadd.f32 %v713_v26, %v712_v22 }
 0x10a   :  { %v939_v32 = vsel %vm703_vm1, %v862_v27, 0.0 }
 0x10b   :  { %v940_v33 = vadd.f32 %v939_v32, %v938_v30 }
 0x10d   :  { %v2466_v34 = vpop.f32.mrb[12].mxu0  ;;  %v2468_v35 = vpop.f32.mrb[12].mxu1 }
 0x10e   :  { %v715_v36 = vsel %vm703_vm1, %v2466_v34, 0.0  ;;  %v863_v37 = vmul.f32 %v2466_v34, %v2466_v34  ;;  %v1961_v38 = vpop.f32.mrb[13].mxu0  ;;  %v2037_v39 = vpop.f32.mrb[13].mxu1 }
 0x10f   :  { %v716_v40 = vadd.f32 %v715_v36, %v714_v31  ;;  %v2474_v41 = vpop.f32.mrb[14].mxu0  ;;  %v2476_v42 = vpop.f32.mrb[14].mxu1 }
 0x110   :  { %v941_v43 = vsel %vm703_vm1, %v863_v37, 0.0  ;;  %v717_v44 = vsel %vm703_vm1, %v2474_v41, 0.0  ;;  %v864_v45 = vmul.f32 %v2474_v41, %v2474_v41  ;;  %v1962_v48 = vpop.f32.mrb[15].mxu0  ;;  %v2038_v49 = vpop.f32.mrb[15].mxu1 }
 0x111   :  { %v942_v50 = vadd.f32 %v941_v43, %v940_v33  ;;  %v718_v53 = vadd.f32 %v717_v44, %v716_v40 }
 0x112   :  { %v943_v54 = vsel %vm703_vm1, %v864_v45, 0.0 }
 0x113   :  { %v944_v55 = vadd.f32 %v943_v54, %v942_v50 }
 0x115   :  { %v2484_v56 = vpop.f32.mrb[16].mxu0  ;;  %v2486_v57 = vpop.f32.mrb[16].mxu1 }
 0x116   :  { %v719_v58 = vsel %vm703_vm1, %v2484_v56, 0.0  ;;  %v865_v59 = vmul.f32 %v2484_v56, %v2484_v56  ;;  %v1965_v60 = vpop.f32.mrb[17].mxu0  ;;  %v2041_v61 = vpop.f32.mrb[17].mxu1 }
 0x117   :  { %v720_v0 = vadd.f32 %v719_v58, %v718_v53  ;;  %v2492_v1 = vpop.f32.mrb[18].mxu0  ;;  %v2494_v2 = vpop.f32.mrb[18].mxu1 }
 0x118   :  { %v945_v3 = vsel %vm703_vm1, %v865_v59, 0.0  ;;  %v721_v4 = vsel %vm703_vm1, %v2492_v1, 0.0  ;;  %v866_v7 = vmul.f32 %v2492_v1, %v2492_v1  ;;  %v1966_v8 = vpop.f32.mrb[19].mxu0  ;;  %v2042_v9 = vpop.f32.mrb[19].mxu1 }
 0x119   :  { %v946_v10 = vadd.f32 %v945_v3, %v944_v55  ;;  %v722_v11 = vadd.f32 %v721_v4, %v720_v0 }
 0x11a   :  { %v947_v12 = vsel %vm703_vm1, %v866_v7, 0.0 }
 0x11b   :  { %v948_v13 = vadd.f32 %v947_v12, %v946_v10 }
 0x11d   :  { %v2502_v14 = vpop.f32.mrb[20].mxu0  ;;  %v2504_v15 = vpop.f32.mrb[20].mxu1 }
 0x11e   :  { %v723_v18 = vsel %vm703_vm1, %v2502_v14, 0.0  ;;  %v867_v19 = vmul.f32 %v2502_v14, %v2502_v14  ;;  %v1969_v20 = vpop.f32.mrb[21].mxu0  ;;  %v2045_v21 = vpop.f32.mrb[21].mxu1 }
 0x11f   :  { %v724_v22 = vadd.f32 %v723_v18, %v722_v11  ;;  %v2510_v25 = vpop.f32.mrb[22].mxu0  ;;  %v2512_v26 = vpop.f32.mrb[22].mxu1 }
 0x120   :  { %4189 = vst [vmem:[#allocation2_spill] sm:$0xff] %v2510_v25  ;;  %v949_v27 = vsel %vm703_vm1, %v867_v19, 0.0  ;;  %v725_v28 = vsel %vm703_vm1, %v2510_v25, 0.0  ;;  %v868_v29 = vmul.f32 %v2510_v25, %v2510_v25  ;;  %v1970_v30 = vpop.f32.mrb[23].mxu0  ;;  %v2046_v31 = vpop.f32.mrb[23].mxu1 }
 0x121   :  { %v950_v32 = vadd.f32 %v949_v27, %v948_v13  ;;  %v726_v33 = vadd.f32 %v725_v28, %v724_v22 }
 0x122   :  { %v951_v36 = vsel %vm703_vm1, %v868_v29, 0.0 }
 0x123   :  { %v952_v37 = vadd.f32 %v951_v36, %v950_v32 }
 0x125   :  { %v2520_v38 = vpop.f32.mrb[24].mxu0  ;;  %v2522_v39 = vpop.f32.mrb[24].mxu1 }
 0x126   :  { %4190 = vst [vmem:[#allocation3_spill] sm:$0xff] %v2520_v38  ;;  %v727_v40 = vsel %vm703_vm1, %v2520_v38, 0.0  ;;  %v869_v43 = vmul.f32 %v2520_v38, %v2520_v38  ;;  %v1973_v44 = vpop.f32.mrb[25].mxu0  ;;  %v2049_v45 = vpop.f32.mrb[25].mxu1 }
 0x127   :  { %v728_v48 = vadd.f32 %v727_v40, %v726_v33  ;;  %v2528_v49 = vpop.f32.mrb[26].mxu0  ;;  %v2530_v50 = vpop.f32.mrb[26].mxu1 }
 0x128   :  { %4191 = vst [vmem:[#allocation4_spill] sm:$0xff] %v2528_v49  ;;  %v953_v53 = vsel %vm703_vm1, %v869_v43, 0.0  ;;  %v729_v54 = vsel %vm703_vm1, %v2528_v49, 0.0  ;;  %v870_v55 = vmul.f32 %v2528_v49, %v2528_v49  ;;  %v1974_v58 = vpop.f32.mrb[27].mxu0  ;;  %v2050_v59 = vpop.f32.mrb[27].mxu1 }
 0x129   :  { %v954_v60 = vadd.f32 %v953_v53, %v952_v37  ;;  %v730_v61 = vadd.f32 %v729_v54, %v728_v48 }
 0x12a   :  { %v955_v0 = vsel %vm703_vm1, %v870_v55, 0.0 }
 0x12b   :  { %v956_v3 = vadd.f32 %v955_v0, %v954_v60 }
 0x12d   :  { %v2538_v4 = vpop.f32.mrb[28].mxu0  ;;  %v2540_v7 = vpop.f32.mrb[28].mxu1 }
 0x12e   :  { %4192 = vst [vmem:[#allocation5_spill] sm:$0xff] %v2538_v4  ;;  %v731_v8 = vsel %vm703_vm1, %v2538_v4, 0.0  ;;  %v871_v9 = vmul.f32 %v2538_v4, %v2538_v4  ;;  %v1977_v10 = vpop.f32.mrb[29].mxu0  ;;  %v2053_v11 = vpop.f32.mrb[29].mxu1 }
 0x12f   :  { %v732_v12 = vadd.f32 %v731_v8, %v730_v61  ;;  %v2546_v13 = vpop.f32.mrb[30].mxu0  ;;  %v2548_v18 = vpop.f32.mrb[30].mxu1 }
 0x130   :  { %4193 = vst [vmem:[#allocation6_spill] sm:$0xff] %v2546_v13  ;;  %v957_v19 = vsel %vm703_vm1, %v871_v9, 0.0  ;;  %v733_v20 = vsel %vm703_vm1, %v2546_v13, 0.0  ;;  %v872_v21 = vmul.f32 %v2546_v13, %v2546_v13  ;;  %v1978_v22 = vpop.f32.mrb[31].mxu0  ;;  %v2054_v27 = vpop.f32.mrb[31].mxu1 }
 0x131   :  { %v958_v28 = vadd.f32 %v957_v19, %v956_v3  ;;  %v734_v29 = vadd.f32 %v733_v20, %v732_v12 }
 0x132   :  { %v959_v30 = vsel %vm703_vm1, %v872_v21, 0.0 }
 0x133   :  { %v960_v31 = vadd.f32 %v959_v30, %v958_v28 }
 0x135   :  { %v2556_v32 = vpop.f32.mrb[32].mxu0  ;;  %v2558_v33 = vpop.f32.mrb[32].mxu1 }
 0x136   :  { %4194 = vst [vmem:[#allocation7_spill] sm:$0xff] %v2556_v32  ;;  %v735_v36 = vsel %vm703_vm1, %v2556_v32, 0.0  ;;  %v873_v37 = vmul.f32 %v2556_v32, %v2556_v32  ;;  %v1981_v40 = vpop.f32.mrb[33].mxu0  ;;  %v2057_v43 = vpop.f32.mrb[33].mxu1 }
 0x137   :  { %v736_v44 = vadd.f32 %v735_v36, %v734_v29  ;;  %v2564_v45 = vpop.f32.mrb[34].mxu0  ;;  %v2566_v48 = vpop.f32.mrb[34].mxu1 }
 0x138   :  { %4195 = vst [vmem:[#allocation8_spill] sm:$0xff] %v2564_v45  ;;  %v961_v53 = vsel %vm703_vm1, %v873_v37, 0.0  ;;  %v737_v54 = vsel %vm703_vm1, %v2564_v45, 0.0  ;;  %v874_v55 = vmul.f32 %v2564_v45, %v2564_v45  ;;  %v1982_v58 = vpop.f32.mrb[35].mxu0  ;;  %v2058_v59 = vpop.f32.mrb[35].mxu1 }
 0x139   :  { %v962_v60 = vadd.f32 %v961_v53, %v960_v31  ;;  %v738_v61 = vadd.f32 %v737_v54, %v736_v44 }
 0x13a   :  { %v963_v0 = vsel %vm703_vm1, %v874_v55, 0.0 }
 0x13b   :  { %v964_v3 = vadd.f32 %v963_v0, %v962_v60 }
 0x13d   :  { %v2574_v8 = vpop.f32.mrb[36].mxu0  ;;  %v2576_v9 = vpop.f32.mrb[36].mxu1 }
 0x13e   :  { %4196 = vst [vmem:[#allocation9_spill] sm:$0xff] %v2574_v8  ;;  %v739_v10 = vsel %vm703_vm1, %v2574_v8, 0.0  ;;  %v875_v11 = vmul.f32 %v2574_v8, %v2574_v8  ;;  %v1985_v12 = vpop.f32.mrb[37].mxu0  ;;  %v2061_v19 = vpop.f32.mrb[37].mxu1 }
 0x13f   :  { %v740_v20 = vadd.f32 %v739_v10, %v738_v61  ;;  %v2582_v21 = vpop.f32.mrb[38].mxu0  ;;  %v2584_v22 = vpop.f32.mrb[38].mxu1 }
 0x140   :  { %4197 = vst [vmem:[#allocation10_spill] sm:$0xff] %v2582_v21  ;;  %v965_v27 = vsel %vm703_vm1, %v875_v11, 0.0  ;;  %v741_v28 = vsel %vm703_vm1, %v2582_v21, 0.0  ;;  %v876_v29 = vmul.f32 %v2582_v21, %v2582_v21  ;;  %v1986_v30 = vpop.f32.mrb[39].mxu0  ;;  %v2062_v31 = vpop.f32.mrb[39].mxu1 }
 0x141   :  { %v966_v36 = vadd.f32 %v965_v27, %v964_v3  ;;  %v742_v37 = vadd.f32 %v741_v28, %v740_v20 }
 0x142   :  { %v967_v40 = vsel %vm703_vm1, %v876_v29, 0.0 }
 0x143   :  { %v968_v43 = vadd.f32 %v967_v40, %v966_v36 }
 0x145   :  { %v2592_v44 = vpop.f32.mrb[40].mxu0  ;;  %v2594_v53 = vpop.f32.mrb[40].mxu1 }
 0x146   :  { %4198 = vst [vmem:[#allocation11_spill] sm:$0xff] %v2592_v44  ;;  %v743_v54 = vsel %vm703_vm1, %v2592_v44, 0.0  ;;  %v877_v55 = vmul.f32 %v2592_v44, %v2592_v44  ;;  %v1989_v58 = vpop.f32.mrb[41].mxu0  ;;  %v2065_v59 = vpop.f32.mrb[41].mxu1 }
 0x147   :  { %v744_v60 = vadd.f32 %v743_v54, %v742_v37  ;;  %v2600_v61 = vpop.f32.mrb[42].mxu0  ;;  %v2602_v0 = vpop.f32.mrb[42].mxu1 }
 0x148   :  { %4199 = vst [vmem:[#allocation12_spill] sm:$0xff] %v2600_v61  ;;  %v969_v3 = vsel %vm703_vm1, %v877_v55, 0.0  ;;  %v745_v10 = vsel %vm703_vm1, %v2600_v61, 0.0  ;;  %v878_v11 = vmul.f32 %v2600_v61, %v2600_v61  ;;  %v1990_v12 = vpop.f32.mrb[43].mxu0  ;;  %v2066_v19 = vpop.f32.mrb[43].mxu1 }
 0x149   :  { %v970_v20 = vadd.f32 %v969_v3, %v968_v43  ;;  %v746_v27 = vadd.f32 %v745_v10, %v744_v60 }
 0x14a   :  { %v971_v28 = vsel %vm703_vm1, %v878_v11, 0.0 }
 0x14b   :  { %v972_v29 = vadd.f32 %v971_v28, %v970_v20 }
 0x14d   :  { %v2610_v30 = vpop.f32.mrb[44].mxu0  ;;  %v2612_v31 = vpop.f32.mrb[44].mxu1 }
 0x14e   :  { %4200 = vst [vmem:[#allocation13_spill] sm:$0xff] %v2610_v30  ;;  %v747_v36 = vsel %vm703_vm1, %v2610_v30, 0.0  ;;  %v879_v37 = vmul.f32 %v2610_v30, %v2610_v30  ;;  %v1993_v40 = vpop.f32.mrb[45].mxu0  ;;  %v2069_v54 = vpop.f32.mrb[45].mxu1 }
 0x14f   :  { %v748_v55 = vadd.f32 %v747_v36, %v746_v27  ;;  %v2618_v58 = vpop.f32.mrb[46].mxu0  ;;  %v2620_v43 = vpop.f32.mrb[46].mxu1 }
 0x150   :  { %4201 = vst [vmem:[#allocation14_spill] sm:$0xff] %v2618_v58  ;;  %v973_v59 = vsel %vm703_vm1, %v879_v37, 0.0  ;;  %v749_v60 = vsel %vm703_vm1, %v2618_v58, 0.0  ;;  %v880_v3 = vmul.f32 %v2618_v58, %v2618_v58  ;;  %v1994_v10 = vpop.f32.mrb[47].mxu0  ;;  %v2070_v11 = vpop.f32.mrb[47].mxu1 }
 0x151   :  { %v974_v12 = vadd.f32 %v973_v59, %v972_v29  ;;  %v750_v19 = vadd.f32 %v749_v60, %v748_v55 }
 0x152   :  { %v975_v20 = vsel %vm703_vm1, %v880_v3, 0.0 }
 0x153   :  { %v976_v28 = vadd.f32 %v975_v20, %v974_v12 }
 0x155   :  { %v2628_v27 = vpop.f32.mrb[48].mxu0  ;;  %v2630_v36 = vpop.f32.mrb[48].mxu1 }
 0x156   :  { %4202 = vst [vmem:[#allocation15_spill] sm:$0xff] %v2628_v27  ;;  %v751_v37 = vsel %vm703_vm1, %v2628_v27, 0.0  ;;  %v881_v40 = vmul.f32 %v2628_v27, %v2628_v27  ;;  %v1997_v54 = vpop.f32.mrb[49].mxu0  ;;  %v2073_v30 = vpop.f32.mrb[49].mxu1 }
 0x157   :  { %v752_v58 = vadd.f32 %v751_v37, %v750_v19  ;;  %v2636_v10 = vpop.f32.mrb[50].mxu0  ;;  %v2638_v29 = vpop.f32.mrb[50].mxu1 }
 0x158   :  { %4203 = vst [vmem:[#allocation16_spill] sm:$0xff] %v2636_v10  ;;  %4204 = vst [vmem:[#allocation17_spill] sm:$0xff] %v2638_v29  ;;  %v977_v55 = vsel %vm703_vm1, %v881_v40, 0.0  ;;  %v753_v59 = vsel %vm703_vm1, %v2636_v10, 0.0  ;;  %v882_v60 = vmul.f32 %v2636_v10, %v2636_v10  ;;  %v1998_v3 = vpop.f32.mrb[51].mxu0  ;;  %v2074_v11 = vpop.f32.mrb[51].mxu1 }
 0x159   :  { %v978_v12 = vadd.f32 %v977_v55, %v976_v28  ;;  %v754_v20 = vadd.f32 %v753_v59, %v752_v58 }
 0x15a   :  { %v979_v54 = vsel %vm703_vm1, %v882_v60, 0.0 }
 0x15b   :  { %v980_v30 = vadd.f32 %v979_v54, %v978_v12 }
 0x15d   :  { %v2646_v19 = vpop.f32.mrb[52].mxu0  ;;  %v2648_v37 = vpop.f32.mrb[52].mxu1 }
 0x15e   :  { %4205 = vst [vmem:[#allocation18_spill] sm:$0xff] %v2646_v19  ;;  %4206 = vst [vmem:[#allocation19_spill] sm:$0xff] %v2648_v37  ;;  %v755_v40 = vsel %vm703_vm1, %v2646_v19, 0.0  ;;  %v883_v27 = vmul.f32 %v2646_v19, %v2646_v19  ;;  %v2001_v61 = vpop.f32.mrb[53].mxu0  ;;  %v2077_v44 = vpop.f32.mrb[53].mxu1 }
 0x15f   :  { %v756_v10 = vadd.f32 %v755_v40, %v754_v20  ;;  %v2654_v3 = vpop.f32.mrb[54].mxu0  ;;  %v2656_v28 = vpop.f32.mrb[54].mxu1 }
 0x160   :  { %4207 = vst [vmem:[#allocation20_spill] sm:$0xff] %v2654_v3  ;;  %4208 = vst [vmem:[#allocation21_spill] sm:$0xff] %v2656_v28  ;;  %v981_v58 = vsel %vm703_vm1, %v883_v27, 0.0  ;;  %v757_v55 = vsel %vm703_vm1, %v2654_v3, 0.0  ;;  %v884_v59 = vmul.f32 %v2654_v3, %v2654_v3  ;;  %v2002_v60 = vpop.f32.mrb[55].mxu0  ;;  %v2078_v11 = vpop.f32.mrb[55].mxu1 }
 0x161   :  { %v982_v12 = vadd.f32 %v981_v58, %v980_v30  ;;  %v758_v54 = vadd.f32 %v757_v55, %v756_v10 }
 0x162   :  { %v983_v61 = vsel %vm703_vm1, %v884_v59, 0.0 }
 0x163   :  { %v984_v44 = vadd.f32 %v983_v61, %v982_v12 }
 0x165   :  { %v2664_v20 = vpop.f32.mrb[56].mxu0  ;;  %v2666_v40 = vpop.f32.mrb[56].mxu1 }
 0x166   :  { %4209 = vst [vmem:[#allocation22_spill] sm:$0xff] %v2664_v20  ;;  %4210 = vst [vmem:[#allocation23_spill] sm:$0xff] %v2666_v40  ;;  %v759_v27 = vsel %vm703_vm1, %v2664_v20, 0.0  ;;  %v885_v19 = vmul.f32 %v2664_v20, %v2664_v20  ;;  %v2005_v21 = vpop.f32.mrb[57].mxu0  ;;  %v2081_v8 = vpop.f32.mrb[57].mxu1 }
 0x167   :  { %v760_v3 = vadd.f32 %v759_v27, %v758_v54  ;;  %v2672_v60 = vpop.f32.mrb[58].mxu0  ;;  %v2674_v30 = vpop.f32.mrb[58].mxu1 }
 0x168   :  { %4211 = vst [vmem:[#allocation24_spill] sm:$0xff] %v2672_v60  ;;  %4212 = vst [vmem:[#allocation25_spill] sm:$0xff] %v2674_v30  ;;  %v985_v10 = vsel %vm703_vm1, %v885_v19, 0.0  ;;  %v761_v58 = vsel %vm703_vm1, %v2672_v60, 0.0  ;;  %v886_v55 = vmul.f32 %v2672_v60, %v2672_v60  ;;  %v2006_v59 = vpop.f32.mrb[59].mxu0  ;;  %v2082_v11 = vpop.f32.mrb[59].mxu1 }
 0x169   :  { %v986_v12 = vadd.f32 %v985_v10, %v984_v44  ;;  %v762_v61 = vadd.f32 %v761_v58, %v760_v3 }
 0x16a   :  { %v987_v21 = vsel %vm703_vm1, %v886_v55, 0.0 }
 0x16b   :  { %v988_v8 = vadd.f32 %v987_v21, %v986_v12 }
 0x16d   :  { %v2682_v54 = vpop.f32.mrb[60].mxu0  ;;  %v2684_v27 = vpop.f32.mrb[60].mxu1 }
 0x16e   :  { %4213 = vst [vmem:[#allocation26_spill] sm:$0xff] %v2682_v54  ;;  %4214 = vst [vmem:[#allocation27_spill] sm:$0xff] %v2684_v27  ;;  %v763_v19 = vsel %vm703_vm1, %v2682_v54, 0.0  ;;  %v887_v20 = vmul.f32 %v2682_v54, %v2682_v54  ;;  %v2009_v45 = vpop.f32.mrb[61].mxu0  ;;  %v2085_v32 = vpop.f32.mrb[61].mxu1 }
 0x16f   :  { %v764_v60 = vadd.f32 %v763_v19, %v762_v61  ;;  %v2690_v59 = vpop.f32.mrb[62].mxu0  ;;  %v2692_v44 = vpop.f32.mrb[62].mxu1 }
 0x170   :  { %4215 = vst [vmem:[#allocation28_spill] sm:$0xff] %v2690_v59  ;;  %4216 = vst [vmem:[#allocation29_spill] sm:$0xff] %v2692_v44  ;;  %v989_v3 = vsel %vm703_vm1, %v887_v20, 0.0  ;;  %v765_v10 = vsel %vm703_vm1, %v2690_v59, 0.0  ;;  %v888_v58 = vmul.f32 %v2690_v59, %v2690_v59  ;;  %v2010_v55 = vpop.f32.mrb[63].mxu0  ;;  %v2086_v11 = vpop.f32.mrb[63].mxu1 }
 0x171   :  { %v990_v12 = vadd.f32 %v989_v3, %v988_v8  ;;  %v766_v21 = vadd.f32 %v765_v10, %v764_v60 }
 0x172   :  { %v991_v45 = vsel %vm703_vm1, %v888_v58, 0.0 }
 0x173   :  { %v992_v32 = vadd.f32 %v991_v45, %v990_v12 }
 0x175   :  { %v2700_v61 = vpop.f32.mrb[64].mxu0  ;;  %v2702_v19 = vpop.f32.mrb[64].mxu1 }
 0x176   :  { %4217 = vst [vmem:[#allocation30_spill] sm:$0xff] %v2700_v61  ;;  %4218 = vst [vmem:[#allocation31_spill] sm:$0xff] %v2702_v19  ;;  %v767_v20 = vsel %vm703_vm1, %v2700_v61, 0.0  ;;  %v889_v54 = vmul.f32 %v2700_v61, %v2700_v61  ;;  %v2013_v13 = vpop.f32.mrb[65].mxu0  ;;  %v2089_v4 = vpop.f32.mrb[65].mxu1 }
 0x177   :  { %v768_v59 = vadd.f32 %v767_v20, %v766_v21  ;;  %v2708_v55 = vpop.f32.mrb[66].mxu0  ;;  %v2710_v8 = vpop.f32.mrb[66].mxu1 }
 0x178   :  { %4219 = vst [vmem:[#allocation32_spill] sm:$0xff] %v2708_v55  ;;  %4220 = vst [vmem:[#allocation33_spill] sm:$0xff] %v2710_v8  ;;  %v993_v60 = vsel %vm703_vm1, %v889_v54, 0.0  ;;  %v769_v3 = vsel %vm703_vm1, %v2708_v55, 0.0  ;;  %v890_v10 = vmul.f32 %v2708_v55, %v2708_v55  ;;  %v2014_v58 = vpop.f32.mrb[67].mxu0  ;;  %v2090_v11 = vpop.f32.mrb[67].mxu1 }
 0x179   :  { %v994_v12 = vadd.f32 %v993_v60, %v992_v32  ;;  %v770_v45 = vadd.f32 %v769_v3, %v768_v59 }
 0x17a   :  { %v995_v13 = vsel %vm703_vm1, %v890_v10, 0.0 }
 0x17b   :  { %v996_v4 = vadd.f32 %v995_v13, %v994_v12 }
 0x17d   :  { %v2718_v21 = vpop.f32.mrb[68].mxu0  ;;  %v2720_v20 = vpop.f32.mrb[68].mxu1 }
 0x17e   :  { %4221 = vst [vmem:[#allocation34_spill] sm:$0xff] %v2718_v21  ;;  %4222 = vst [vmem:[#allocation35_spill] sm:$0xff] %v2720_v20  ;;  %v771_v54 = vsel %vm703_vm1, %v2718_v21, 0.0  ;;  %v891_v61 = vmul.f32 %v2718_v21, %v2718_v21  ;;  %v2017_v49 = vpop.f32.mrb[69].mxu0  ;;  %v2093_v38 = vpop.f32.mrb[69].mxu1 }
 0x17f   :  { %v772_v55 = vadd.f32 %v771_v54, %v770_v45  ;;  %v2726_v58 = vpop.f32.mrb[70].mxu0  ;;  %v700_v32 = vpop.f32.mrb[70].mxu1 }
 0x180   :  { %v997_v59 = vsel %vm703_vm1, %v891_v61, 0.0  ;;  %v773_v60 = vsel %vm703_vm1, %v2726_v58, 0.0  ;;  %v892_v3 = vmul.f32 %v2726_v58, %v2726_v58  ;;  %v2018_v10 = vpop.f32.mrb[71].mxu0  ;;  %v2094_v11 = vpop.f32.mrb[71].mxu1 }
 0x181   :  { %v998_v12 = vadd.f32 %v997_v59, %v996_v4  ;;  %v774_v13 = vadd.f32 %v773_v60, %v772_v55  ;;  %v895_v10 = vmul.f32 %v2414_v47, %v2414_v47  ;;  %v779_v11 = vsel %vm703_vm1, %v2414_v47, 0.0 }
 0x182   :  { %v999_v21 = vsel %vm703_vm1, %v892_v3, 0.0 }
 0x183   :  { %v1000_v49 = vadd.f32 %v999_v21, %v998_v12  ;;  %v896_v12 = vmul.f32 %v2420_v52, %v2420_v52 }
 0x185   :  { %v2734_v38 = vpop.f32.mrb[72].mxu0 }
 0x186   :  { %4223 = vst [vmem:[#allocation36_spill] sm:$0xff] %v2734_v38  ;;  %v775_v45 = vsel %vm703_vm1, %v2734_v38, 0.0  ;;  %v893_v61 = vmul.f32 %v2734_v38, %v2734_v38  ;;  %v2021_v54 = vpop.f32.mrb[73].mxu0  ;;  %v781_v38 = vsel %vm703_vm1, %v2420_v52, 0.0 }
 0x187   :  { %v776_v32 = vadd.f32 %v775_v45, %v774_v13  ;;  %v2740_v25 = vpop.f32.mrb[74].mxu0 }
 0x188   :  { %v1001_v55 = vsel %vm703_vm1, %v893_v61, 0.0  ;;  %v777_v4 = vsel %vm703_vm1, %v2740_v25, 0.0  ;;  %v894_v21 = vmul.f32 %v2740_v25, %v2740_v25  ;;  %v2022_v59 = vpop.f32.mrb[75].mxu0  ;;  %v1005_v61 = vsel %vm703_vm1, %v895_v10, 0.0 }
 0x189   :  { %v1002_v60 = vadd.f32 %v1001_v55, %v1000_v49  ;;  %v778_v3 = vadd.f32 %v777_v4, %v776_v32  ;;  %v897_v59 = vmul.f32 %v2432_v63, %v2432_v63  ;;  %v1007_v55 = vsel %vm703_vm1, %v896_v12, 0.0 }
 0x18a   :  { %v1003_v13 = vsel %vm703_vm1, %v894_v21, 0.0  ;;  %v783_v4 = vsel %vm703_vm1, %v2432_v63, 0.0  ;;  %v898_v21 = vmul.f32 %v2440_v6, %v2440_v6 }
 0x18b   :  { %v780_v45 = vadd.f32 %v779_v11, %v778_v3  ;;  %v1004_v54 = vadd.f32 %v1003_v13, %v1002_v60  ;;  %v1009_v10 = vsel %vm703_vm1, %v897_v59, 0.0  ;;  %v785_v11 = vsel %vm703_vm1, %v2440_v6, 0.0 }
 0x18c   :  { %v899_v13 = vmul.f32 %v2450_v17, %v2450_v17  ;;  %v1011_v12 = vsel %vm703_vm1, %v898_v21, 0.0 }
 0x18d   :  { %v782_v49 = vadd.f32 %v781_v38, %v780_v45  ;;  %v1006_v32 = vadd.f32 %v1005_v61, %v1004_v54  ;;  %v787_v54 = vsel %vm703_vm1, %v2450_v17, 0.0  ;;  %v900_v61 = vmul.f32 %v2458_v24, %v2458_v24 }
 0x18e   :  { %v1013_v59 = vsel %vm703_vm1, %v899_v13, 0.0 }
 0x18f   :  { %v784_v3 = vadd.f32 %v783_v4, %v782_v49  ;;  %v1008_v60 = vadd.f32 %v1007_v55, %v1006_v32  ;;  %v789_v55 = vsel %vm703_vm1, %v2458_v24, 0.0  ;;  %v901_v4 = vmul.f32 %v2468_v35, %v2468_v35 }
 0x190   :  { %v1015_v21 = vsel %vm703_vm1, %v900_v61, 0.0 }
 0x191   :  { %v786_v38 = vadd.f32 %v785_v11, %v784_v3  ;;  %v1010_v45 = vadd.f32 %v1009_v10, %v1008_v60  ;;  %v791_v10 = vsel %vm703_vm1, %v2468_v35, 0.0  ;;  %v902_v11 = vmul.f32 %v2476_v42, %v2476_v42 }
 0x192   :  { %v1017_v13 = vsel %vm703_vm1, %v901_v4, 0.0 }
 0x193   :  { %v788_v49 = vadd.f32 %v787_v54, %v786_v38  ;;  %v1012_v32 = vadd.f32 %v1011_v12, %v1010_v45  ;;  %v793_v12 = vsel %vm703_vm1, %v2476_v42, 0.0  ;;  %v903_v54 = vmul.f32 %v2486_v57, %v2486_v57 }
 0x194   :  { %v1019_v61 = vsel %vm703_vm1, %v902_v11, 0.0 }
 0x195   :  { %v790_v3 = vadd.f32 %v789_v55, %v788_v49  ;;  %v1014_v60 = vadd.f32 %v1013_v59, %v1012_v32  ;;  %v795_v59 = vsel %vm703_vm1, %v2486_v57, 0.0  ;;  %v904_v55 = vmul.f32 %v2494_v2, %v2494_v2 }
 0x196   :  { %v1021_v4 = vsel %vm703_vm1, %v903_v54, 0.0 }
 0x197   :  { %v792_v38 = vadd.f32 %v791_v10, %v790_v3  ;;  %v1016_v45 = vadd.f32 %v1015_v21, %v1014_v60  ;;  %v797_v21 = vsel %vm703_vm1, %v2494_v2, 0.0  ;;  %v905_v10 = vmul.f32 %v2504_v15, %v2504_v15 }
 0x198   :  { %v1023_v11 = vsel %vm703_vm1, %v904_v55, 0.0 }
 0x199   :  { %v794_v49 = vadd.f32 %v793_v12, %v792_v38  ;;  %v1018_v32 = vadd.f32 %v1017_v13, %v1016_v45  ;;  %v799_v13 = vsel %vm703_vm1, %v2504_v15, 0.0  ;;  %v906_v12 = vmul.f32 %v2512_v26, %v2512_v26 }
 0x19a   :  { %v1025_v54 = vsel %vm703_vm1, %v905_v10, 0.0 }
 0x19b   :  { %v796_v3 = vadd.f32 %v795_v59, %v794_v49  ;;  %v1020_v60 = vadd.f32 %v1019_v61, %v1018_v32  ;;  %v801_v61 = vsel %vm703_vm1, %v2512_v26, 0.0  ;;  %v907_v59 = vmul.f32 %v2522_v39, %v2522_v39 }
 0x19c   :  { %v1027_v55 = vsel %vm703_vm1, %v906_v12, 0.0 }
 0x19d   :  { %v1022_v38 = vadd.f32 %v1021_v4, %v1020_v60  ;;  %v798_v45 = vadd.f32 %v797_v21, %v796_v3  ;;  %v803_v4 = vsel %vm703_vm1, %v2522_v39, 0.0  ;;  %v908_v21 = vmul.f32 %v2530_v50, %v2530_v50 }
 0x19e   :  { %v1029_v10 = vsel %vm703_vm1, %v907_v59, 0.0 }
 0x19f   :  { %v800_v49 = vadd.f32 %v799_v13, %v798_v45  ;;  %v1024_v32 = vadd.f32 %v1023_v11, %v1022_v38  ;;  %v805_v11 = vsel %vm703_vm1, %v2530_v50, 0.0  ;;  %v909_v13 = vmul.f32 %v2540_v7, %v2540_v7 }
 0x1a0   :  { %v1031_v12 = vsel %vm703_vm1, %v908_v21, 0.0 }
 0x1a1   :  { %v802_v60 = vadd.f32 %v801_v61, %v800_v49  ;;  %v1026_v3 = vadd.f32 %v1025_v54, %v1024_v32  ;;  %v807_v54 = vsel %vm703_vm1, %v2540_v7, 0.0  ;;  %v910_v61 = vmul.f32 %v2548_v18, %v2548_v18 }
 0x1a2   :  { %v1033_v59 = vsel %vm703_vm1, %v909_v13, 0.0 }
 0x1a3   :  { %v804_v45 = vadd.f32 %v803_v4, %v802_v60  ;;  %v1028_v38 = vadd.f32 %v1027_v55, %v1026_v3  ;;  %v809_v55 = vsel %vm703_vm1, %v2548_v18, 0.0  ;;  %v911_v4 = vmul.f32 %v2558_v33, %v2558_v33 }
 0x1a4   :  { %v1035_v21 = vsel %vm703_vm1, %v910_v61, 0.0 }
 0x1a5   :  { %v806_v49 = vadd.f32 %v805_v11, %v804_v45  ;;  %v1030_v32 = vadd.f32 %v1029_v10, %v1028_v38  ;;  %v811_v10 = vsel %vm703_vm1, %v2558_v33, 0.0  ;;  %v912_v11 = vmul.f32 %v2566_v48, %v2566_v48 }
 0x1a6   :  { %v1037_v13 = vsel %vm703_vm1, %v911_v4, 0.0 }
 0x1a7   :  { %v808_v60 = vadd.f32 %v807_v54, %v806_v49  ;;  %v1032_v3 = vadd.f32 %v1031_v12, %v1030_v32  ;;  %v813_v12 = vsel %vm703_vm1, %v2566_v48, 0.0  ;;  %v913_v54 = vmul.f32 %v2576_v9, %v2576_v9 }
 0x1a8   :  { %v1039_v61 = vsel %vm703_vm1, %v912_v11, 0.0 }
 0x1a9   :  { %v810_v45 = vadd.f32 %v809_v55, %v808_v60  ;;  %v1034_v38 = vadd.f32 %v1033_v59, %v1032_v3  ;;  %v815_v59 = vsel %vm703_vm1, %v2576_v9, 0.0  ;;  %v914_v55 = vmul.f32 %v2584_v22, %v2584_v22 }
 0x1aa   :  { %v1041_v4 = vsel %vm703_vm1, %v913_v54, 0.0 }
 0x1ab   :  { %v812_v49 = vadd.f32 %v811_v10, %v810_v45  ;;  %v1036_v32 = vadd.f32 %v1035_v21, %v1034_v38  ;;  %v817_v21 = vsel %vm703_vm1, %v2584_v22, 0.0  ;;  %v915_v10 = vmul.f32 %v2594_v53, %v2594_v53 }
 0x1ac   :  { %v1043_v11 = vsel %vm703_vm1, %v914_v55, 0.0 }
 0x1ad   :  { %v814_v60 = vadd.f32 %v813_v12, %v812_v49  ;;  %v1038_v3 = vadd.f32 %v1037_v13, %v1036_v32  ;;  %v819_v13 = vsel %vm703_vm1, %v2594_v53, 0.0  ;;  %v916_v12 = vmul.f32 %v2602_v0, %v2602_v0 }
 0x1ae   :  { %v1045_v54 = vsel %vm703_vm1, %v915_v10, 0.0 }
 0x1af   :  { %v816_v45 = vadd.f32 %v815_v59, %v814_v60  ;;  %v1040_v38 = vadd.f32 %v1039_v61, %v1038_v3  ;;  %v821_v61 = vsel %vm703_vm1, %v2602_v0, 0.0  ;;  %v917_v59 = vmul.f32 %v2612_v31, %v2612_v31 }
 0x1b0   :  { %v1047_v55 = vsel %vm703_vm1, %v916_v12, 0.0 }
 0x1b1   :  { %v1042_v49 = vadd.f32 %v1041_v4, %v1040_v38  ;;  %v818_v32 = vadd.f32 %v817_v21, %v816_v45  ;;  %v823_v4 = vsel %vm703_vm1, %v2612_v31, 0.0  ;;  %v918_v21 = vmul.f32 %v2620_v43, %v2620_v43 }
 0x1b2   :  { %v1049_v10 = vsel %vm703_vm1, %v917_v59, 0.0 }
 0x1b3   :  { %v1044_v60 = vadd.f32 %v1043_v11, %v1042_v49  ;;  %v820_v3 = vadd.f32 %v819_v13, %v818_v32  ;;  %v825_v11 = vsel %vm703_vm1, %v2620_v43, 0.0  ;;  %v919_v13 = vmul.f32 %v2630_v36, %v2630_v36 }
 0x1b4   :  { %v1051_v12 = vsel %vm703_vm1, %v918_v21, 0.0 }
 0x1b5   :  { %v1046_v38 = vadd.f32 %v1045_v54, %v1044_v60  ;;  %v822_v45 = vadd.f32 %v821_v61, %v820_v3  ;;  %v827_v54 = vsel %vm703_vm1, %v2630_v36, 0.0  ;;  %v920_v61 = vmul.f32 %v2638_v29, %v2638_v29 }
 0x1b6   :  { %v1053_v59 = vsel %vm703_vm1, %v919_v13, 0.0 }
 0x1b7   :  { %v1048_v49 = vadd.f32 %v1047_v55, %v1046_v38  ;;  %v824_v32 = vadd.f32 %v823_v4, %v822_v45  ;;  %v829_v55 = vsel %vm703_vm1, %v2638_v29, 0.0  ;;  %v921_v4 = vmul.f32 %v2648_v37, %v2648_v37 }
 0x1b8   :  { %v1055_v21 = vsel %vm703_vm1, %v920_v61, 0.0 }
 0x1b9   :  { %v1050_v60 = vadd.f32 %v1049_v10, %v1048_v49  ;;  %v826_v3 = vadd.f32 %v825_v11, %v824_v32  ;;  %v831_v10 = vsel %vm703_vm1, %v2648_v37, 0.0  ;;  %v922_v11 = vmul.f32 %v2656_v28, %v2656_v28 }
 0x1ba   :  { %v1057_v13 = vsel %vm703_vm1, %v921_v4, 0.0 }
 0x1bb   :  { %v1052_v38 = vadd.f32 %v1051_v12, %v1050_v60  ;;  %v828_v45 = vadd.f32 %v827_v54, %v826_v3  ;;  %v833_v12 = vsel %vm703_vm1, %v2656_v28, 0.0  ;;  %v923_v54 = vmul.f32 %v2666_v40, %v2666_v40 }
 0x1bc   :  { %v1059_v61 = vsel %vm703_vm1, %v922_v11, 0.0 }
 0x1bd   :  { %v1054_v49 = vadd.f32 %v1053_v59, %v1052_v38  ;;  %v830_v32 = vadd.f32 %v829_v55, %v828_v45  ;;  %v835_v59 = vsel %vm703_vm1, %v2666_v40, 0.0  ;;  %v924_v55 = vmul.f32 %v2674_v30, %v2674_v30 }
 0x1be   :  { %v1061_v4 = vsel %vm703_vm1, %v923_v54, 0.0 }
 0x1bf   :  { %v1056_v60 = vadd.f32 %v1055_v21, %v1054_v49  ;;  %v832_v3 = vadd.f32 %v831_v10, %v830_v32  ;;  %v837_v21 = vsel %vm703_vm1, %v2674_v30, 0.0  ;;  %v925_v10 = vmul.f32 %v2684_v27, %v2684_v27 }
 0x1c0   :  { %v1063_v11 = vsel %vm703_vm1, %v924_v55, 0.0 }
 0x1c1   :  { %v1058_v38 = vadd.f32 %v1057_v13, %v1056_v60  ;;  %v834_v45 = vadd.f32 %v833_v12, %v832_v3  ;;  %v839_v13 = vsel %vm703_vm1, %v2684_v27, 0.0  ;;  %v926_v12 = vmul.f32 %v2692_v44, %v2692_v44 }
 0x1c2   :  { %v1065_v54 = vsel %vm703_vm1, %v925_v10, 0.0  ;;  %v929_v10 = vmul.f32 %v2720_v20, %v2720_v20 }
 0x1c3   :  { %v1060_v49 = vadd.f32 %v1059_v61, %v1058_v38  ;;  %v836_v32 = vadd.f32 %v835_v59, %v834_v45  ;;  %v841_v61 = vsel %vm703_vm1, %v2692_v44, 0.0  ;;  %v927_v59 = vmul.f32 %v2702_v19, %v2702_v19 }
 0x1c4   :  { %v1067_v55 = vsel %vm703_vm1, %v926_v12, 0.0 }
 0x1c5   :  { %v1062_v60 = vadd.f32 %v1061_v4, %v1060_v49  ;;  %v838_v3 = vadd.f32 %v837_v21, %v836_v32  ;;  %v843_v4 = vsel %vm703_vm1, %v2702_v19, 0.0  ;;  %v928_v21 = vmul.f32 %v2710_v8, %v2710_v8 }
 0x1c7   :  { %v1064_v38 = vadd.f32 %v1063_v11, %v1062_v60  ;;  %v840_v45 = vadd.f32 %v839_v13, %v838_v3  ;;  %v1069_v11 = vsel %vm703_vm1, %v927_v59, 0.0  ;;  %v845_v13 = vsel %vm703_vm1, %v2710_v8, 0.0 }
 0x1c9   :  { %v1066_v49 = vadd.f32 %v1065_v54, %v1064_v38  ;;  %v842_v32 = vadd.f32 %v841_v61, %v840_v45  ;;  %v848_v38 = vsel %vm847_vm2, %v2720_v20, 0.0  ;;  %v1071_v54 = vsel %vm703_vm1, %v928_v21, 0.0 }
 0x1ca   :  { %v1073_v61 = vsel %vm847_vm2, %v929_v10, 0.0 }
 0x1cb   :  { %v1068_v60 = vadd.f32 %v1067_v55, %v1066_v49  ;;  %v844_v3 = vadd.f32 %v843_v4, %v842_v32 }
 0x1cd   :  { %v1070_v45 = vadd.f32 %v1069_v11, %v1068_v60  ;;  %v846_v12 = vadd.f32 %v845_v13, %v844_v3 }
 0x1cf   :  { %v1072_v19 = vadd.f32 %v1071_v54, %v1070_v45  ;;  %v849_v44 = vadd.f32 %v848_v38, %v846_v12  ;;  %v1093_v38 = vlaneseq }
 0x1d1   :  { %v850_v27 = vrot.slane %v849_v44, 4  ;;  %v1074_v30 = vadd.f32 %v1073_v61, %v1072_v19  ;;  %v2921_v19 = vshrl.u32 %v1093_v38, 7  ;;  %v4232_v38 = vld [vmem:[#allocation10_spill] sm:$0xff] }
 0x1d3   :  { %v851_v40 = vadd.f32 %v850_v27, %v849_v44  ;;  %v1075_v28 = vrot.slane %v1074_v30, 4 }
 0x1d5   :  { %v852_v49 = vrot.slane %v851_v40, 2  ;;  %v1076_v32 = vadd.f32 %v1075_v28, %v1074_v30  ;;  %v1085_v28 = vld [vmem:[%s4117_s2] sm:$0x1] }
 0x1d7   :  { %v853_v55 = vadd.f32 %v852_v49, %v851_v40  ;;  %v1077_v59 = vrot.slane %v1076_v32, 2  ;;  %v4155_v40 = vsub.s32 0, %v2921_v19  ;;  %v4224_v49 = vld [vmem:[#allocation2_spill] sm:$0xff] }
 0x1d9   :  { %v854_v4 = vrot.slane %v853_v55, 1  ;;  %v1078_v37 = vadd.f32 %v1077_v59, %v1076_v32  ;;  %v4225_v32 = vld [vmem:[#allocation3_spill] sm:$0xff]  ;;  %v4227_v59 = vld [vmem:[#allocation5_spill] sm:$0xff] }
 0x1db   :  { %v855_v8 = vadd.f32 %v854_v4, %v853_v55  ;;  %v1079_v29 = vrot.slane %v1078_v37, 1  ;;  %v4226_v55 = vld [vmem:[#allocation4_spill] sm:$0xff]  ;;  %v4228_v4 = vld [vmem:[#allocation6_spill] sm:$0xff] }
 0x1dd   :  { %v856_v20 = vmul.f32 0.0017301039, %v855_v8  ;;  %v1080_v60 = vadd.f32 %v1079_v29, %v1078_v37  ;;  %v2930_v29 = vld [vmem:[%s4118_s3] sm:$0x1] }
 0x1de   :  { %v4243_v8 = vld [vmem:[#allocation18_spill] sm:$0xff] }
 0x1df   :  { %v1081_v3 = vmul.f32 0.0017301039, %v1080_v60  ;;  %v1082_v11 = vmul.f32 %v856_v20, %v856_v20  ;;  %v4229_v60 = vld [vmem:[#allocation7_spill] sm:$0xff] }
 0x1e1   :  { %v1083_v21 = vsub.f32 %v1081_v3, %v1082_v11  ;;  %v4230_v11 = vld [vmem:[#allocation8_spill] sm:$0xff] }
 0x1e3   :  { %v1084_v10 = vmax.f32 %v1083_v21, 0.0 }
 0x1e5   :  { %v1086_v13 = vadd.f32 0.001, %v1084_v10  ;;  %v4231_v10 = vld [vmem:[#allocation9_spill] sm:$0xff] }
 0x1e7   :  { %2158 = vrsqrt.f32 %v1086_v13 }
 0x1f1   :  { %v2159_v30 = vpop.eup %2158 }
 0x1f2   :  { %v1088_v27 = vmul.f32 %v2159_v30, %v1085_v28  ;;  %v4233_v30 = vld [vmem:[#allocation11_spill] sm:$0xff] }
 0x1f4   :  { %v2932_v37 = vmul.f32 %v1088_v27, %v856_v20  ;;  %v2936_v44 = vrot.slane %v1088_v27, %v4155_v40  ;;  %v4245_v40 = vld [vmem:[#allocation20_spill] sm:$0xff] }
 0x1f6   :  { %v2942_v45 = vmul.f32 %v2936_v44, %v2412_v46  ;;  %v2946_v12 = vmul.f32 %v2936_v44, %v2418_v51  ;;  %v2950_v54 = vmul.f32 %v2936_v44, %v2430_v62  ;;  %v2954_v20 = vmul.f32 %v2936_v44, %v2438_v5 }
 0x1f7   :  { %v2958_v61 = vmul.f32 %v2936_v44, %v2448_v16  ;;  %v2962_v46 = vmul.f32 %v2936_v44, %v2456_v23  ;;  %v2966_v51 = vmul.f32 %v2936_v44, %v2466_v34  ;;  %v2970_v62 = vmul.f32 %v2936_v44, %v2474_v41 }
 0x1f8   :  { %v2974_v5 = vmul.f32 %v2936_v44, %v2484_v56  ;;  %v2978_v16 = vmul.f32 %v2936_v44, %v2492_v1  ;;  %v2982_v23 = vmul.f32 %v2936_v44, %v2502_v14  ;;  %v2986_v34 = vmul.f32 %v2936_v44, %v4224_v49  ;;  %v4234_v49 = vld [vmem:[#allocation12_spill] sm:$0xff] }
 0x1f9   :  { %v2990_v41 = vmul.f32 %v2936_v44, %v4225_v32  ;;  %v2994_v56 = vmul.f32 %v2936_v44, %v4226_v55  ;;  %v2998_v1 = vmul.f32 %v2936_v44, %v4227_v59  ;;  %v3002_v14 = vmul.f32 %v2936_v44, %v4228_v4  ;;  %v4235_v55 = vld [vmem:[#allocation13_spill] sm:$0xff]  ;;  %v4237_v4 = vld [vmem:[#allocation14_spill] sm:$0xff] }
 0x1fa   :  { %v3006_v3 = vmul.f32 %v2936_v44, %v4229_v60  ;;  %v3010_v21 = vmul.f32 %v2936_v44, %v4230_v11  ;;  %v3014_v13 = vmul.f32 %v2936_v44, %v4231_v10  ;;  %v3018_v28 = vmul.f32 %v2936_v44, %v4232_v38  ;;  %v4239_v11 = vld [vmem:[#allocation15_spill] sm:$0xff]  ;;  %v4241_v38 = vld [vmem:[#allocation16_spill] sm:$0xff] }
 0x1fb   :  { %v3022_v27 = vmul.f32 %v2936_v44, %v4233_v30  ;;  %v3026_v32 = vmul.f32 %v2936_v44, %v4234_v49  ;;  %v3030_v59 = vmul.f32 %v2936_v44, %v4235_v55  ;;  %v3034_v60 = vmul.f32 %v2936_v44, %v4237_v4 }
 0x1fc   :  { %v3038_v10 = vmul.f32 %v2936_v44, %v4239_v11  ;;  %v3042_v30 = vmul.f32 %v2936_v44, %v4241_v38  ;;  %v3046_v49 = vmul.f32 %v2936_v44, %v4243_v8  ;;  %v3050_v55 = vmul.f32 %v2936_v44, %v4245_v40 }
 0x1fd   :  { %4236 = vst [vmem:[#allocation2_spill] sm:$0xff] %v3030_v59  ;;  %4238 = vst [vmem:[#allocation3_spill] sm:$0xff] %v3034_v60  ;;  %v4247_v59 = vld [vmem:[#allocation22_spill] sm:$0xff]  ;;  %v4249_v60 = vld [vmem:[#allocation24_spill] sm:$0xff] }
 0x1fe   :  { %4240 = vst [vmem:[#allocation4_spill] sm:$0xff] %v3038_v10  ;;  %4242 = vst [vmem:[#allocation5_spill] sm:$0xff] %v3042_v30  ;;  %v3054_v4 = vmul.f32 %v2936_v44, %v4247_v59  ;;  %v3058_v11 = vmul.f32 %v2936_v44, %v4249_v60  ;;  %v4250_v10 = vld [vmem:[#allocation26_spill] sm:$0xff]  ;;  %v4252_v30 = vld [vmem:[#allocation28_spill] sm:$0xff] }
 0x1ff   :  { %4244 = vst [vmem:[#allocation6_spill] sm:$0xff] %v3046_v49  ;;  %4246 = vst [vmem:[#allocation7_spill] sm:$0xff] %v3050_v55  ;;  %v3062_v38 = vmul.f32 %v2936_v44, %v4250_v10  ;;  %v3066_v8 = vmul.f32 %v2936_v44, %v4252_v30  ;;  %v4253_v49 = vld [vmem:[#allocation30_spill] sm:$0xff]  ;;  %v4254_v55 = vld [vmem:[#allocation32_spill] sm:$0xff]  ;;  %v3082_v10 = vmul.f32 %v2936_v44, %v2726_v58 }
 0x200   :  { %4248 = vst [vmem:[#allocation8_spill] sm:$0xff] %v3054_v4  ;;  %v3070_v40 = vmul.f32 %v2936_v44, %v4253_v49  ;;  %v3074_v59 = vmul.f32 %v2936_v44, %v4254_v55  ;;  %v4255_v4 = vld [vmem:[#allocation34_spill] sm:$0xff]  ;;  %v3090_v49 = vmul.f32 %v2936_v44, %v2740_v25  ;;  %v3094_v55 = vmul.f32 %v2936_v44, %v2414_v47 }
 0x201   :  { %4251 = vst [vmem:[#allocation9_spill] sm:$0xff] %v3062_v38  ;;  %v3078_v60 = vmul.f32 %v2936_v44, %v4255_v4  ;;  %v4256_v38 = vld [vmem:[#allocation36_spill] sm:$0xff]  ;;  %v3098_v4 = vmul.f32 %v2936_v44, %v2420_v52  ;;  %v3102_v58 = vmul.f32 %v2936_v44, %v2432_v63  ;;  %v3110_v25 = vmul.f32 %v2936_v44, %v2450_v17 }
 0x202   :  { %v3086_v30 = vmul.f32 %v2936_v44, %v4256_v38  ;;  %v3106_v38 = vmul.f32 %v2936_v44, %v2440_v6  ;;  %v3114_v47 = vmul.f32 %v2936_v44, %v2458_v24  ;;  %v3118_v52 = vmul.f32 %v2936_v44, %v2468_v35 }
 0x203   :  { %v3122_v63 = vmul.f32 %v2936_v44, %v2476_v42  ;;  %v3126_v6 = vmul.f32 %v2936_v44, %v2486_v57  ;;  %v3130_v17 = vmul.f32 %v2936_v44, %v2494_v2  ;;  %v3134_v24 = vmul.f32 %v2936_v44, %v2504_v15 }
 0x204   :  { %v3138_v35 = vmul.f32 %v2936_v44, %v2512_v26  ;;  %v3142_v42 = vmul.f32 %v2936_v44, %v2522_v39  ;;  %v3146_v57 = vmul.f32 %v2936_v44, %v2530_v50  ;;  %v3150_v2 = vmul.f32 %v2936_v44, %v2540_v7 }
 0x205   :  { %v3154_v15 = vmul.f32 %v2936_v44, %v2548_v18  ;;  %v3158_v26 = vmul.f32 %v2936_v44, %v2558_v33  ;;  %v3162_v39 = vmul.f32 %v2936_v44, %v2566_v48  ;;  %v3166_v50 = vmul.f32 %v2936_v44, %v2576_v9 }
 0x206   :  { %v3170_v7 = vmul.f32 %v2936_v44, %v2584_v22  ;;  %v3174_v18 = vmul.f32 %v2936_v44, %v2594_v53  ;;  %v3178_v33 = vmul.f32 %v2936_v44, %v2602_v0  ;;  %v3182_v48 = vmul.f32 %v2936_v44, %v2612_v31 }
 0x207   :  { %v3186_v9 = vmul.f32 %v2936_v44, %v2620_v43  ;;  %v3190_v22 = vmul.f32 %v2936_v44, %v2630_v36 }
 0x208   :  { %4257 = vst [vmem:[#allocation10_spill] sm:$0xff] %v3170_v7  ;;  %4258 = vst [vmem:[#allocation11_spill] sm:$0xff] %v3174_v18  ;;  %v4263_v7 = vld [vmem:[#allocation17_spill] sm:$0xff]  ;;  %v4265_v18 = vld [vmem:[#allocation19_spill] sm:$0xff] }
 0x209   :  { %4259 = vst [vmem:[#allocation12_spill] sm:$0xff] %v3178_v33  ;;  %4260 = vst [vmem:[#allocation13_spill] sm:$0xff] %v3182_v48  ;;  %v3194_v53 = vmul.f32 %v2936_v44, %v4263_v7  ;;  %v3198_v0 = vmul.f32 %v2936_v44, %v4265_v18  ;;  %v4267_v33 = vld [vmem:[#allocation21_spill] sm:$0xff]  ;;  %v4269_v48 = vld [vmem:[#allocation23_spill] sm:$0xff] }
 0x20a   :  { %4261 = vst [vmem:[#allocation14_spill] sm:$0xff] %v3186_v9  ;;  %4262 = vst [vmem:[#allocation15_spill] sm:$0xff] %v3190_v22  ;;  %v3202_v31 = vmul.f32 %v2936_v44, %v4267_v33  ;;  %v3206_v43 = vmul.f32 %v2936_v44, %v4269_v48  ;;  %v4271_v9 = vld [vmem:[#allocation25_spill] sm:$0xff]  ;;  %v4273_v22 = vld [vmem:[#allocation27_spill] sm:$0xff] }
 0x20b   :  { %4264 = vst [vmem:[#allocation16_spill] sm:$0xff] %v3194_v53  ;;  %4266 = vst [vmem:[#allocation18_spill] sm:$0xff] %v3198_v0  ;;  %v3210_v36 = vmul.f32 %v2936_v44, %v4271_v9  ;;  %v3214_v7 = vmul.f32 %v2936_v44, %v4273_v22  ;;  %v4275_v53 = vld [vmem:[#allocation29_spill] sm:$0xff]  ;;  %v4276_v0 = vld [vmem:[#allocation31_spill] sm:$0xff]  ;;  %v4280_v22 = vsub.f32 %v2930_v29, %v2932_v37 }
 0x20c   :  { %4268 = vst [vmem:[#allocation20_spill] sm:$0xff] %v3202_v31  ;;  %4270 = vst [vmem:[#allocation22_spill] sm:$0xff] %v3206_v43  ;;  %v3218_v18 = vmul.f32 %v2936_v44, %v4275_v53  ;;  %v3222_v33 = vmul.f32 %v2936_v44, %v4276_v0  ;;  %v4277_v31 = vld [vmem:[#allocation33_spill] sm:$0xff]  ;;  %v4278_v43 = vld [vmem:[#allocation35_spill] sm:$0xff] }
 0x20d   :  { %4272 = vst [vmem:[#allocation24_spill] sm:$0xff] %v3210_v36  ;;  %4274 = vst [vmem:[#allocation26_spill] sm:$0xff] %v3214_v7  ;;  %v3226_v48 = vmul.f32 %v2936_v44, %v4277_v31  ;;  %v3230_v9 = vmul.f32 %v2936_v44, %v4278_v43  ;;  %v4279_v36 = vsub.s32 0, %v2921_v19  ;;  %v4287_v43 = vld [vmem:[#allocation4_spill] sm:$0xff] }
 0x20f   :  { %v3237_v7 = vrot.slane %v4280_v22, %v4279_v36  ;;  %v4289_v36 = vld [vmem:[#allocation5_spill] sm:$0xff]  ;;  %v4290_v22 = vld [vmem:[#allocation6_spill] sm:$0xff] }
 0x211   :  { %v3241_v53 = vadd.f32 %v3237_v7, %v2942_v45  ;;  %v3245_v0 = vadd.f32 %v3237_v7, %v2946_v12  ;;  %v3249_v31 = vadd.f32 %v3237_v7, %v2950_v54  ;;  %v3253_v19 = vadd.f32 %v3237_v7, %v2954_v20 }
 0x212   :  { %v3257_v29 = vadd.f32 %v3237_v7, %v2958_v61  ;;  %v3261_v37 = vadd.f32 %v3237_v7, %v2962_v46  ;;  %v3265_v44 = vadd.f32 %v3237_v7, %v2966_v51  ;;  %v3269_v45 = vadd.f32 %v3237_v7, %v2970_v62 }
 0x213   :  { %v3273_v12 = vadd.f32 %v3237_v7, %v2974_v5  ;;  %v3277_v54 = vadd.f32 %v3237_v7, %v2978_v16  ;;  %v3281_v20 = vadd.f32 %v3237_v7, %v2982_v23  ;;  %v3285_v61 = vadd.f32 %v3237_v7, %v2986_v34 }
 0x214   :  { %v3289_v46 = vadd.f32 %v3237_v7, %v2990_v41  ;;  %v3293_v51 = vadd.f32 %v3237_v7, %v2994_v56  ;;  %v3297_v62 = vadd.f32 %v3237_v7, %v2998_v1  ;;  %v3301_v5 = vadd.f32 %v3237_v7, %v3002_v14  ;;  %v4284_v14 = vld [vmem:[#allocation2_spill] sm:$0xff] }
 0x215   :  { %4281 = vst [vmem:[#allocation28_spill] sm:$0xff] %v3285_v61  ;;  %v3305_v16 = vadd.f32 %v3237_v7, %v3006_v3  ;;  %v3309_v23 = vadd.f32 %v3237_v7, %v3010_v21  ;;  %v3313_v34 = vadd.f32 %v3237_v7, %v3014_v13  ;;  %v3317_v41 = vadd.f32 %v3237_v7, %v3018_v28  ;;  %v4286_v21 = vld [vmem:[#allocation3_spill] sm:$0xff] }
 0x216   :  { %4282 = vst [vmem:[#allocation30_spill] sm:$0xff] %v3293_v51  ;;  %v3321_v56 = vadd.f32 %v3237_v7, %v3022_v27  ;;  %v3325_v1 = vadd.f32 %v3237_v7, %v3026_v32  ;;  %v3329_v3 = vadd.f32 %v3237_v7, %v4284_v14  ;;  %v3333_v13 = vadd.f32 %v3237_v7, %v4286_v21 }
 0x217   :  { %v3337_v28 = vadd.f32 %v3237_v7, %v4287_v43  ;;  %v3341_v27 = vadd.f32 %v3237_v7, %v4289_v36  ;;  %v3345_v32 = vadd.f32 %v3237_v7, %v4290_v22  ;;  %v3357_v43 = vadd.f32 %v3237_v7, %v3058_v11 }
 0x218   :  { %4283 = vst [vmem:[#allocation32_spill] sm:$0xff] %v3325_v1  ;;  %4285 = vst [vmem:[#allocation34_spill] sm:$0xff] %v3329_v3  ;;  %v4291_v1 = vld [vmem:[#allocation7_spill] sm:$0xff]  ;;  %v4292_v3 = vld [vmem:[#allocation8_spill] sm:$0xff]  ;;  %v3365_v22 = vadd.f32 %v3237_v7, %v3066_v8  ;;  %v3377_v11 = vadd.f32 %v3237_v7, %v3078_v60  ;;  %v3385_v8 = vadd.f32 %v3237_v7, %v3086_v30 }
 0x219   :  { %4288 = vst [vmem:[#allocation36_spill] sm:$0xff] %v3337_v28  ;;  %v3349_v14 = vadd.f32 %v3237_v7, %v4291_v1  ;;  %v3353_v21 = vadd.f32 %v3237_v7, %v4292_v3  ;;  %v4293_v28 = vld [vmem:[#allocation9_spill] sm:$0xff]  ;;  %v3369_v1 = vadd.f32 %v3237_v7, %v3070_v40  ;;  %v3373_v3 = vadd.f32 %v3237_v7, %v3074_v59 }
 0x21a   :  { %v3361_v36 = vadd.f32 %v3237_v7, %v4293_v28  ;;  %v3381_v28 = vadd.f32 %v3237_v7, %v3082_v10  ;;  %v3389_v40 = vadd.f32 %v3237_v7, %v3090_v49  ;;  %v3393_v59 = vadd.f32 %v3237_v7, %v3094_v55 }
 0x21b   :  { %v3397_v60 = vadd.f32 %v3237_v7, %v3098_v4  ;;  %v3401_v10 = vadd.f32 %v3237_v7, %v3102_v58  ;;  %v3405_v30 = vadd.f32 %v3237_v7, %v3106_v38  ;;  %v3409_v49 = vadd.f32 %v3237_v7, %v3110_v25 }
 0x21c   :  { %v3413_v55 = vadd.f32 %v3237_v7, %v3114_v47  ;;  %v3417_v4 = vadd.f32 %v3237_v7, %v3118_v52  ;;  %v3421_v58 = vadd.f32 %v3237_v7, %v3122_v63  ;;  %v3425_v38 = vadd.f32 %v3237_v7, %v3126_v6 }
 0x21d   :  { %4294 = vst [vmem:[#allocation17_spill] sm:$0xff] %v3401_v10  ;;  %4295 = vst [vmem:[#allocation19_spill] sm:$0xff] %v3405_v30  ;;  %v3429_v25 = vadd.f32 %v3237_v7, %v3130_v17  ;;  %v3433_v47 = vadd.f32 %v3237_v7, %v3134_v24  ;;  %v3437_v52 = vadd.f32 %v3237_v7, %v3138_v35 }
 0x21e   :  { %4296 = vst [vmem:[#allocation21_spill] sm:$0xff] %v3409_v49  ;;  %4297 = vst [vmem:[#allocation23_spill] sm:$0xff] %v3413_v55  ;;  %v3441_v63 = vadd.f32 %v3237_v7, %v3142_v42  ;;  %v3445_v6 = vadd.f32 %v3237_v7, %v3146_v57  ;;  %v3449_v17 = vadd.f32 %v3237_v7, %v3150_v2 }
 0x21f   :  { %4298 = vst [vmem:[#allocation25_spill] sm:$0xff] %v3417_v4  ;;  %4299 = vst [vmem:[#allocation27_spill] sm:$0xff] %v3421_v58  ;;  %v3453_v24 = vadd.f32 %v3237_v7, %v3154_v15  ;;  %v3457_v35 = vadd.f32 %v3237_v7, %v3158_v26  ;;  %v3461_v42 = vadd.f32 %v3237_v7, %v3162_v39  ;;  %v4335_v61 = vld [vmem:[#allocation34_spill] sm:$0xff] }
 0x220   :  { %4300 = vst [vmem:[#allocation29_spill] sm:$0xff] %v3425_v38  ;;  %4301 = vst [vmem:[#allocation31_spill] sm:$0xff] %v3429_v25  ;;  %v3465_v57 = vadd.f32 %v3237_v7, %v3166_v50  ;;  %v4336_v51 = vld [vmem:[#allocation36_spill] sm:$0xff] }
 0x221   :  { %4302 = vst [vmem:[#allocation33_spill] sm:$0xff] %v3433_v47  ;;  %4303 = vst [vmem:[#allocation35_spill] sm:$0xff] %v3437_v52 }
 0x222   :  { %4304 = vst [vmem:[#allocation2_spill] sm:$0xff] %v3441_v63  ;;  %4305 = vst [vmem:[#allocation3_spill] sm:$0xff] %v3445_v6  ;;  %v4311_v6 = vld [vmem:[#allocation10_spill] sm:$0xff] }
 0x223   :  { %4306 = vst [vmem:[#allocation4_spill] sm:$0xff] %v3449_v17  ;;  %4307 = vst [vmem:[#allocation5_spill] sm:$0xff] %v3453_v24  ;;  %v3469_v2 = vadd.f32 %v3237_v7, %v4311_v6  ;;  %v4313_v17 = vld [vmem:[#allocation11_spill] sm:$0xff]  ;;  %v4315_v24 = vld [vmem:[#allocation12_spill] sm:$0xff] }
 0x224   :  { %4308 = vst [vmem:[#allocation6_spill] sm:$0xff] %v3457_v35  ;;  %4309 = vst [vmem:[#allocation7_spill] sm:$0xff] %v3461_v42  ;;  %v3473_v15 = vadd.f32 %v3237_v7, %v4313_v17  ;;  %v3477_v26 = vadd.f32 %v3237_v7, %v4315_v24  ;;  %v4317_v35 = vld [vmem:[#allocation13_spill] sm:$0xff]  ;;  %v4319_v42 = vld [vmem:[#allocation14_spill] sm:$0xff] }
 0x225   :  { %4310 = vst [vmem:[#allocation8_spill] sm:$0xff] %v3465_v57  ;;  %4312 = vst [vmem:[#allocation9_spill] sm:$0xff] %v3469_v2  ;;  %v3481_v39 = vadd.f32 %v3237_v7, %v4317_v35  ;;  %v3485_v50 = vadd.f32 %v3237_v7, %v4319_v42  ;;  %v4321_v57 = vld [vmem:[#allocation15_spill] sm:$0xff]  ;;  %v4323_v2 = vld [vmem:[#allocation16_spill] sm:$0xff] }
 0x226   :  { %4314 = vst [vmem:[#allocation10_spill] sm:$0xff] %v3473_v15  ;;  %4316 = vst [vmem:[#allocation11_spill] sm:$0xff] %v3477_v26  ;;  %v3489_v6 = vadd.f32 %v3237_v7, %v4321_v57  ;;  %v3493_v17 = vadd.f32 %v3237_v7, %v4323_v2  ;;  %v4324_v15 = vld [vmem:[#allocation18_spill] sm:$0xff]  ;;  %v4325_v26 = vld [vmem:[#allocation20_spill] sm:$0xff] }
 0x227   :  { %4318 = vst [vmem:[#allocation12_spill] sm:$0xff] %v3481_v39  ;;  %4320 = vst [vmem:[#allocation13_spill] sm:$0xff] %v3485_v50  ;;  %v3497_v24 = vadd.f32 %v3237_v7, %v4324_v15  ;;  %v3501_v35 = vadd.f32 %v3237_v7, %v4325_v26  ;;  %v4326_v39 = vld [vmem:[#allocation22_spill] sm:$0xff]  ;;  %v4327_v50 = vld [vmem:[#allocation24_spill] sm:$0xff]  ;;  %v3517_v15 = vadd.f32 %v3237_v7, %v3218_v18  ;;  %v4354_v18 = vmax.f32 %v3241_v53, 0.0 }
 0x228   :  { %4322 = vst [vmem:[#allocation14_spill] sm:$0xff] %v3489_v6  ;;  %v3505_v42 = vadd.f32 %v3237_v7, %v4326_v39  ;;  %v3509_v57 = vadd.f32 %v3237_v7, %v4327_v50  ;;  %v4329_v6 = vld [vmem:[#allocation26_spill] sm:$0xff]  ;;  %v3521_v26 = vadd.f32 %v3237_v7, %v3222_v33  ;;  %v3525_v39 = vadd.f32 %v3237_v7, %v3226_v48 }
 0x229   :  { %v3513_v2 = vadd.f32 %v3237_v7, %v4329_v6  ;;  %4331 = vst [vmem:[#allocation18_spill] sm:$0xff] %v3517_v15  ;;  %v3529_v50 = vadd.f32 %v3237_v7, %v3230_v9  ;;  %v4351_v25 = vmov %v3517_v15  ;;  %v1813_v15 = vpack.c.bf16 %v4354_v18, %v4354_v18 }
 0x22a   :  { %4328 = vst [vmem:[#allocation15_spill] sm:$0xff] %v3509_v57  ;;  %4332 = vst [vmem:[#allocation20_spill] sm:$0xff] %v3521_v26  ;;  %v4334_v57 = vld [vmem:[#allocation32_spill] sm:$0xff]  ;;  %v4339_v49 = vld [vmem:[#allocation5_spill] sm:$0xff]  ;;  %v4352_v47 = vmov %v3521_v26  ;;  %v4353_v52 = vmov %v3525_v39  ;;  %v4355_v33 = vmax.f32 %v3245_v0, 0.0  ;;  %v4356_v48 = vmax.f32 %v3249_v31, 0.0 }
 0x22b   :  { %4330 = vst [vmem:[#allocation16_spill] sm:$0xff] %v3513_v2  ;;  %4333 = vst [vmem:[#allocation22_spill] sm:$0xff] %v3525_v39  ;;  %v4338_v30 = vld [vmem:[#allocation4_spill] sm:$0xff]  ;;  %v4340_v55 = vld [vmem:[#allocation6_spill] sm:$0xff]  ;;  %v4350_v38 = vmov %v3513_v2  ;;  %v4357_v7 = vmax.f32 %v3253_v19, 0.0  ;;  %v4358_v6 = vmax.f32 %v3257_v29, 0.0 }
 0x22c   :  { %v4341_v4 = vld [vmem:[#allocation7_spill] sm:$0xff]  ;;  %v1814_v26 = vpack.c.bf16 %v4355_v33, %v4355_v33  ;;  %v1815_v39 = vpack.c.bf16 %v4356_v48, %v4356_v48  ;;  %v4359_v53 = vmax.f32 %v3261_v37, 0.0  ;;  %v4360_v0 = vmax.f32 %v3265_v44, 0.0  ;;  %1617 = vst.msk [vmem:[%s4119_s4] sm:$0xf] %vm1616_vm3, %v1813_v15 }
 0x22d   :  { %v1816_v9 = vpack.c.bf16 %v4357_v7, %v4357_v7  ;;  %v1817_v2 = vpack.c.bf16 %v4358_v6, %v4358_v6  ;;  %v4361_v31 = vmax.f32 %v3269_v45, 0.0  ;;  %v4362_v19 = vmax.f32 %v3273_v12, 0.0  ;;  %v4365_v45 = vld [vmem:[#allocation28_spill] sm:$0xff] }
 0x22e   :  { %v4347_v63 = vld [vmem:[#allocation13_spill] sm:$0xff]  ;;  %v1818_v18 = vpack.c.bf16 %v4359_v53, %v4359_v53  ;;  %v1819_v33 = vpack.c.bf16 %v4360_v0, %v4360_v0  ;;  %v4363_v29 = vmax.f32 %v3277_v54, 0.0  ;;  %1618 = vst.msk [vmem:[%s4119_s4 + $0x4] sm:$0xf] %vm1616_vm3, %v1814_v26  ;;  %v4364_v37 = vmax.f32 %v3281_v20, 0.0 }
 0x22f   :  { %v4348_v10 = vld [vmem:[#allocation14_spill] sm:$0xff]  ;;  %v1820_v48 = vpack.c.bf16 %v4361_v31, %v4361_v31  ;;  %v1821_v7 = vpack.c.bf16 %v4362_v19, %v4362_v19  ;;  %v4366_v12 = vmax.f32 %v4365_v45, 0.0  ;;  %v4367_v53 = vmax.f32 %v3289_v46, 0.0  ;;  %1619 = vst.msk [vmem:[%s4119_s4 + $0x8] sm:$0xf] %vm1616_vm3, %v1815_v39 }
 0x230   :  { %v1822_v6 = vpack.c.bf16 %v4363_v29, %v4363_v29  ;;  %v1823_v44 = vpack.c.bf16 %v4364_v37, %v4364_v37  ;;  %v4368_v31 = vld [vmem:[#allocation30_spill] sm:$0xff]  ;;  %1620 = vst.msk [vmem:[%s4119_s4 + $0xc] sm:$0xf] %vm1616_vm3, %v1816_v9  ;;  %1621 = vst.msk [vmem:[%s4119_s4 + $0x10] sm:$0xf] %vm1616_vm3, %v1817_v2  ;;  %v4370_v20 = vmax.f32 %v3297_v62, 0.0 }
 0x231   :  { %v4349_v58 = vld [vmem:[#allocation15_spill] sm:$0xff]  ;;  %v1824_v54 = vpack.c.bf16 %v4366_v12, %v4366_v12  ;;  %v1825_v0 = vpack.c.bf16 %v4367_v53, %v4367_v53  ;;  %v4369_v19 = vmax.f32 %v4368_v31, 0.0  ;;  %1622 = vst.msk [vmem:[%s4119_s4 + $0x14] sm:$0xf] %vm1616_vm3, %v1818_v18  ;;  %v4371_v26 = vmax.f32 %v3301_v5, 0.0 }
 0x232   :  { %v1827_v46 = vpack.c.bf16 %v4370_v20, %v4370_v20  ;;  %v4372_v9 = vmax.f32 %v3305_v16, 0.0  ;;  %v4373_v37 = vmax.f32 %v3309_v23, 0.0  ;;  %1623 = vst.msk [vmem:[%s4119_s4 + $0x18] sm:$0xf] %vm1616_vm3, %v1819_v33  ;;  %1624 = vst.msk [vmem:[%s4119_s4 + $0x1c] sm:$0xf] %vm1616_vm3, %v1820_v48 }
 0x233   :  { %v1826_v15 = vpack.c.bf16 %v4369_v19, %v4369_v19  ;;  %v1828_v39 = vpack.c.bf16 %v4371_v26, %v4371_v26  ;;  %1625 = vst.msk [vmem:[%s4119_s4 + $0x20] sm:$0xf] %vm1616_vm3, %v1821_v7  ;;  %1626 = vst.msk [vmem:[%s4119_s4 + $0x24] sm:$0xf] %vm1616_vm3, %v1822_v6  ;;  %v4374_v62 = vmax.f32 %v3313_v34, 0.0  ;;  %v4375_v16 = vmax.f32 %v3317_v41, 0.0 }
 0x234   :  { %v1829_v29 = vpack.c.bf16 %v4372_v9, %v4372_v9  ;;  %v1830_v2 = vpack.c.bf16 %v4373_v37, %v4373_v37  ;;  %v4376_v18 = vmax.f32 %v3321_v56, 0.0  ;;  %v4377_v48 = vmax.f32 %v4334_v57, 0.0  ;;  %1627 = vst.msk [vmem:[%s4119_s4 + $0x28] sm:$0xf] %vm1616_vm3, %v1823_v44  ;;  %1628 = vst.msk [vmem:[%s4119_s4 + $0x2c] sm:$0xf] %vm1616_vm3, %v1824_v54 }
 0x235   :  { %v1831_v5 = vpack.c.bf16 %v4374_v62, %v4374_v62  ;;  %v1832_v23 = vpack.c.bf16 %v4375_v16, %v4375_v16  ;;  %1629 = vst.msk [vmem:[%s4119_s4 + $0x30] sm:$0xf] %vm1616_vm3, %v1825_v0  ;;  %1630 = vst.msk [vmem:[%s4119_s4 + $0x34] sm:$0xf] %vm1616_vm3, %v1826_v15  ;;  %v4378_v34 = vmax.f32 %v4335_v61, 0.0  ;;  %v4379_v56 = vmax.f32 %v3333_v13, 0.0 }
 0x236   :  { %v1833_v33 = vpack.c.bf16 %v4376_v18, %v4376_v18  ;;  %v1834_v7 = vpack.c.bf16 %v4377_v48, %v4377_v48  ;;  %v4380_v6 = vmax.f32 %v4336_v51, 0.0  ;;  %v4381_v45 = vmax.f32 %v3341_v27, 0.0  ;;  %1631 = vst.msk [vmem:[%s4119_s4 + $0x38] sm:$0xf] %vm1616_vm3, %v1827_v46  ;;  %1632 = vst.msk [vmem:[%s4119_s4 + $0x3c] sm:$0xf] %vm1616_vm3, %v1828_v39 }
 0x237   :  { %v1835_v41 = vpack.c.bf16 %v4378_v34, %v4378_v34  ;;  %v1836_v57 = vpack.c.bf16 %v4379_v56, %v4379_v56  ;;  %1633 = vst.msk [vmem:[%s4119_s4 + $0x40] sm:$0xf] %vm1616_vm3, %v1829_v29  ;;  %1634 = vst.msk [vmem:[%s4119_s4 + $0x44] sm:$0xf] %vm1616_vm3, %v1830_v2  ;;  %v4382_v61 = vmax.f32 %v3345_v32, 0.0  ;;  %v4383_v13 = vmax.f32 %v3349_v14, 0.0 }
 0x238   :  { %v1837_v44 = vpack.c.bf16 %v4380_v6, %v4380_v6  ;;  %v1838_v12 = vpack.c.bf16 %v4381_v45, %v4381_v45  ;;  %v4384_v54 = vmax.f32 %v3353_v21, 0.0  ;;  %v4385_v0 = vmax.f32 %v3357_v43, 0.0  ;;  %1635 = vst.msk [vmem:[%s4119_s4 + $0x48] sm:$0xf] %vm1616_vm3, %v1831_v5  ;;  %1636 = vst.msk [vmem:[%s4119_s4 + $0x4c] sm:$0xf] %vm1616_vm3, %v1832_v23 }
 0x239   :  { %v1839_v51 = vpack.c.bf16 %v4382_v61, %v4382_v61  ;;  %v1840_v27 = vpack.c.bf16 %v4383_v13, %v4383_v13  ;;  %1637 = vst.msk [vmem:[%s4119_s4 + $0x50] sm:$0xf] %vm1616_vm3, %v1833_v33  ;;  %1638 = vst.msk [vmem:[%s4119_s4 + $0x54] sm:$0xf] %vm1616_vm3, %v1834_v7  ;;  %v4386_v32 = vmax.f32 %v3361_v36, 0.0  ;;  %v4387_v21 = vmax.f32 %v3365_v22, 0.0 }
 0x23a   :  { %v1841_v53 = vpack.c.bf16 %v4384_v54, %v4384_v54  ;;  %v1842_v31 = vpack.c.bf16 %v4385_v0, %v4385_v0  ;;  %v4388_v19 = vmax.f32 %v3369_v1, 0.0  ;;  %v4389_v20 = vmax.f32 %v3373_v3, 0.0  ;;  %1639 = vst.msk [vmem:[%s4119_s4 + $0x58] sm:$0xf] %vm1616_vm3, %v1835_v41  ;;  %1640 = vst.msk [vmem:[%s4119_s4 + $0x5c] sm:$0xf] %vm1616_vm3, %v1836_v57 }
 0x23b   :  { %v1843_v14 = vpack.c.bf16 %v4386_v32, %v4386_v32  ;;  %v1844_v43 = vpack.c.bf16 %v4387_v21, %v4387_v21  ;;  %1641 = vst.msk [vmem:[%s4119_s4 + $0x60] sm:$0xf] %vm1616_vm3, %v1837_v44  ;;  %1642 = vst.msk [vmem:[%s4119_s4 + $0x64] sm:$0xf] %vm1616_vm3, %v1838_v12  ;;  %v4390_v36 = vmax.f32 %v3377_v11, 0.0  ;;  %v4391_v1 = vmax.f32 %v3381_v28, 0.0 }
 0x23c   :  { %v1845_v15 = vpack.c.bf16 %v4388_v19, %v4388_v19  ;;  %v1846_v46 = vpack.c.bf16 %v4389_v20, %v4389_v20  ;;  %v4392_v26 = vmax.f32 %v3385_v8, 0.0  ;;  %v4393_v9 = vmax.f32 %v3389_v40, 0.0  ;;  %1643 = vst.msk [vmem:[%s4119_s4 + $0x68] sm:$0xf] %vm1616_vm3, %v1839_v51  ;;  %1644 = vst.msk [vmem:[%s4119_s4 + $0x6c] sm:$0xf] %vm1616_vm3, %v1840_v27 }
 0x23d   :  { %v1847_v22 = vpack.c.bf16 %v4390_v36, %v4390_v36  ;;  %v1848_v3 = vpack.c.bf16 %v4391_v1, %v4391_v1  ;;  %1645 = vst.msk [vmem:[%s4119_s4 + $0x70] sm:$0xf] %vm1616_vm3, %v1841_v53  ;;  %1646 = vst.msk [vmem:[%s4119_s4 + $0x74] sm:$0xf] %vm1616_vm3, %v1842_v31  ;;  %v4394_v11 = vmax.f32 %v3393_v59, 0.0  ;;  %v4395_v8 = vmax.f32 %v3397_v60, 0.0 }
 0x23e   :  { %v1849_v39 = vpack.c.bf16 %v4392_v26, %v4392_v26  ;;  %v1850_v29 = vpack.c.bf16 %v4393_v9, %v4393_v9  ;;  %v4396_v37 = vld [vmem:[#allocation17_spill] sm:$0xff]  ;;  %v4398_v5 = vld [vmem:[#allocation19_spill] sm:$0xff]  ;;  %1647 = vst.msk [vmem:[%s4119_s4 + $0x78] sm:$0xf] %vm1616_vm3, %v1843_v14  ;;  %1648 = vst.msk [vmem:[%s4119_s4 + $0x7c] sm:$0xf] %vm1616_vm3, %v1844_v43 }
 0x23f   :  { %v1851_v28 = vpack.c.bf16 %v4394_v11, %v4394_v11  ;;  %v1852_v40 = vpack.c.bf16 %v4395_v8, %v4395_v8  ;;  %v4397_v2 = vmax.f32 %v4396_v37, 0.0  ;;  %v4399_v16 = vmax.f32 %v4398_v5, 0.0  ;;  %1649 = vst.msk [vmem:[%s4119_s4 + $0x80] sm:$0xf] %vm1616_vm3, %v1845_v15  ;;  %1650 = vst.msk [vmem:[%s4119_s4 + $0x84] sm:$0xf] %vm1616_vm3, %v1846_v46 }
 0x240   :  { %v4400_v59 = vld [vmem:[#allocation21_spill] sm:$0xff]  ;;  %v4402_v33 = vld [vmem:[#allocation23_spill] sm:$0xff]  ;;  %1651 = vst.msk [vmem:[%s4119_s4 + $0x88] sm:$0xf] %vm1616_vm3, %v1847_v22  ;;  %1652 = vst.msk [vmem:[%s4119_s4 + $0x8c] sm:$0xf] %vm1616_vm3, %v1848_v3 }
 0x241   :  { %v1853_v62 = vpack.c.bf16 %v4397_v2, %v4397_v2  ;;  %v1854_v23 = vpack.c.bf16 %v4399_v16, %v4399_v16  ;;  %v4401_v60 = vmax.f32 %v4400_v59, 0.0  ;;  %v4403_v48 = vmax.f32 %v4402_v33, 0.0  ;;  %v4404_v34 = vld [vmem:[#allocation25_spill] sm:$0xff]  ;;  %v4406_v57 = vld [vmem:[#allocation27_spill] sm:$0xff]  ;;  %1653 = vst.msk [vmem:[%s4119_s4 + $0x90] sm:$0xf] %vm1616_vm3, %v1849_v39 }
 0x242   :  { %v4405_v41 = vmax.f32 %v4404_v34, 0.0  ;;  %v4407_v6 = vmax.f32 %v4406_v57, 0.0  ;;  %1654 = vst.msk [vmem:[%s4119_s4 + $0x94] sm:$0xf] %vm1616_vm3, %v1850_v29  ;;  %v4408_v45 = vld [vmem:[#allocation29_spill] sm:$0xff]  ;;  %v4410_v51 = vld [vmem:[#allocation31_spill] sm:$0xff] }
 0x243   :  { %v1855_v18 = vpack.c.bf16 %v4401_v60, %v4401_v60  ;;  %v1856_v7 = vpack.c.bf16 %v4403_v48, %v4403_v48  ;;  %v4409_v12 = vmax.f32 %v4408_v45, 0.0  ;;  %v4411_v13 = vmax.f32 %v4410_v51, 0.0  ;;  %v4412_v54 = vld [vmem:[#allocation33_spill] sm:$0xff]  ;;  %v4414_v31 = vld [vmem:[#allocation35_spill] sm:$0xff]  ;;  %1655 = vst.msk [vmem:[%s4119_s4 + $0x98] sm:$0xf] %vm1616_vm3, %v1851_v28 }
 0x244   :  { %v1857_v56 = vpack.c.bf16 %v4405_v41, %v4405_v41  ;;  %v1858_v44 = vpack.c.bf16 %v4407_v6, %v4407_v6  ;;  %v4413_v53 = vmax.f32 %v4412_v54, 0.0  ;;  %v4415_v32 = vmax.f32 %v4414_v31, 0.0  ;;  %1656 = vst.msk [vmem:[%s4119_s4 + $0x9c] sm:$0xf] %vm1616_vm3, %v1852_v40  ;;  %1657 = vst.msk [vmem:[%s4119_s4 + $0xa0] sm:$0xf] %vm1616_vm3, %v1853_v62 }
 0x245   :  { %v1859_v61 = vpack.c.bf16 %v4409_v12, %v4409_v12  ;;  %v1860_v27 = vpack.c.bf16 %v4411_v13, %v4411_v13  ;;  %1658 = vst.msk [vmem:[%s4119_s4 + $0xa4] sm:$0xf] %vm1616_vm3, %v1854_v23  ;;  %v4416_v21 = vld [vmem:[#allocation2_spill] sm:$0xff]  ;;  %v4418_v15 = vld [vmem:[#allocation3_spill] sm:$0xff]  ;;  %v4420_v36 = vmax.f32 %v4338_v30, 0.0  ;;  %v4421_v1 = vmax.f32 %v4339_v49, 0.0 }
 0x246   :  { %v1861_v0 = vpack.c.bf16 %v4413_v53, %v4413_v53  ;;  %v1862_v14 = vpack.c.bf16 %v4415_v32, %v4415_v32  ;;  %v4417_v43 = vmax.f32 %v4416_v21, 0.0  ;;  %v4419_v20 = vmax.f32 %v4418_v15, 0.0  ;;  %1659 = vst.msk [vmem:[%s4119_s4 + $0xa8] sm:$0xf] %vm1616_vm3, %v1855_v18  ;;  %1660 = vst.msk [vmem:[%s4119_s4 + $0xac] sm:$0xf] %vm1616_vm3, %v1856_v7 }
 0x247   :  { %v1865_v22 = vpack.c.bf16 %v4420_v36, %v4420_v36  ;;  %v1866_v3 = vpack.c.bf16 %v4421_v1, %v4421_v1  ;;  %1661 = vst.msk [vmem:[%s4119_s4 + $0xb0] sm:$0xf] %vm1616_vm3, %v1857_v56  ;;  %1662 = vst.msk [vmem:[%s4119_s4 + $0xb4] sm:$0xf] %vm1616_vm3, %v1858_v44  ;;  %v4422_v30 = vmax.f32 %v4340_v55, 0.0  ;;  %v4423_v26 = vmax.f32 %v4341_v4, 0.0 }
 0x248   :  { %v1863_v19 = vpack.c.bf16 %v4417_v43, %v4417_v43  ;;  %v1864_v46 = vpack.c.bf16 %v4419_v20, %v4419_v20  ;;  %v4424_v9 = vld [vmem:[#allocation8_spill] sm:$0xff]  ;;  %v4426_v28 = vld [vmem:[#allocation9_spill] sm:$0xff]  ;;  %1663 = vst.msk [vmem:[%s4119_s4 + $0xb8] sm:$0xf] %vm1616_vm3, %v1859_v61  ;;  %1664 = vst.msk [vmem:[%s4119_s4 + $0xbc] sm:$0xf] %vm1616_vm3, %v1860_v27 }
 0x249   :  { %v1867_v49 = vpack.c.bf16 %v4422_v30, %v4422_v30  ;;  %v1868_v39 = vpack.c.bf16 %v4423_v26, %v4423_v26  ;;  %v4425_v29 = vmax.f32 %v4424_v9, 0.0  ;;  %v4427_v8 = vmax.f32 %v4426_v28, 0.0  ;;  %1665 = vst.msk [vmem:[%s4119_s4 + $0xc0] sm:$0xf] %vm1616_vm3, %v1861_v0  ;;  %1666 = vst.msk [vmem:[%s4119_s4 + $0xc4] sm:$0xf] %vm1616_vm3, %v1862_v14 }
 0x24a   :  { %v4428_v55 = vld [vmem:[#allocation10_spill] sm:$0xff]  ;;  %v4430_v2 = vld [vmem:[#allocation11_spill] sm:$0xff]  ;;  %v4432_v16 = vld [vmem:[#allocation12_spill] sm:$0xff]  ;;  %v4434_v60 = vmax.f32 %v4347_v63, 0.0  ;;  %1667 = vst.msk [vmem:[%s4119_s4 + $0xc8] sm:$0xf] %vm1616_vm3, %v1863_v19 }
 0x24b   :  { %v1869_v11 = vpack.c.bf16 %v4425_v29, %v4425_v29  ;;  %v1870_v40 = vpack.c.bf16 %v4427_v8, %v4427_v8  ;;  %v4429_v4 = vmax.f32 %v4428_v55, 0.0  ;;  %v4431_v62 = vmax.f32 %v4430_v2, 0.0  ;;  %1668 = vst.msk [vmem:[%s4119_s4 + $0xcc] sm:$0xf] %vm1616_vm3, %v1864_v46  ;;  %1669 = vst.msk [vmem:[%s4119_s4 + $0xd0] sm:$0xf] %vm1616_vm3, %v1865_v22 }
 0x24c   :  { %v4433_v23 = vmax.f32 %v4432_v16, 0.0  ;;  %v1874_v18 = vpack.c.bf16 %v4434_v60, %v4434_v60  ;;  %1670 = vst.msk [vmem:[%s4119_s4 + $0xd4] sm:$0xf] %vm1616_vm3, %v1866_v3  ;;  %v4435_v63 = vmax.f32 %v4348_v10, 0.0  ;;  %v4436_v48 = vmax.f32 %v3493_v17, 0.0 }
 0x24d   :  { %v1871_v37 = vpack.c.bf16 %v4429_v4, %v4429_v4  ;;  %v1872_v5 = vpack.c.bf16 %v4431_v62, %v4431_v62  ;;  %v4437_v34 = vmax.f32 %v3497_v24, 0.0  ;;  %v4438_v56 = vmax.f32 %v3501_v35, 0.0  ;;  %1671 = vst.msk [vmem:[%s4119_s4 + $0xd8] sm:$0xf] %vm1616_vm3, %v1867_v49  ;;  %1672 = vst.msk [vmem:[%s4119_s4 + $0xdc] sm:$0xf] %vm1616_vm3, %v1868_v39 }
 0x24e   :  { %v1873_v59 = vpack.c.bf16 %v4433_v23, %v4433_v23  ;;  %v1875_v33 = vpack.c.bf16 %v4435_v63, %v4435_v63  ;;  %v1876_v7 = vpack.c.bf16 %v4436_v48, %v4436_v48  ;;  %1673 = vst.msk [vmem:[%s4119_s4 + $0xe0] sm:$0xf] %vm1616_vm3, %v1869_v11  ;;  %1674 = vst.msk [vmem:[%s4119_s4 + $0xe4] sm:$0xf] %vm1616_vm3, %v1870_v40  ;;  %v4439_v10 = vmax.f32 %v3505_v42, 0.0 }
 0x24f   :  { %v1877_v41 = vpack.c.bf16 %v4437_v34, %v4437_v34  ;;  %v1878_v57 = vpack.c.bf16 %v4438_v56, %v4438_v56  ;;  %v4440_v24 = vmax.f32 %v4349_v58, 0.0  ;;  %v4441_v6 = vmax.f32 %v4350_v38, 0.0  ;;  %1675 = vst.msk [vmem:[%s4119_s4 + $0xe8] sm:$0xf] %vm1616_vm3, %v1871_v37  ;;  %1676 = vst.msk [vmem:[%s4119_s4 + $0xec] sm:$0xf] %vm1616_vm3, %v1872_v5 }
 0x250   :  { %v1879_v17 = vpack.c.bf16 %v4439_v10, %v4439_v10  ;;  %v4442_v45 = vmax.f32 %v4351_v25, 0.0  ;;  %1677 = vst.msk [vmem:[%s4119_s4 + $0xf0] sm:$0xf] %vm1616_vm3, %v1873_v59  ;;  %1678 = vst.msk [vmem:[%s4119_s4 + $0xf4] sm:$0xf] %vm1616_vm3, %v1874_v18  ;;  %v4443_v58 = vmax.f32 %v4352_v47, 0.0 }
 0x251   :  { %v1880_v35 = vpack.c.bf16 %v4440_v24, %v4440_v24  ;;  %v1881_v44 = vpack.c.bf16 %v4441_v6, %v4441_v6  ;;  %v4444_v25 = vmax.f32 %v4353_v52, 0.0  ;;  %v4445_v61 = vmax.f32 %v3529_v50, 0.0  ;;  %1679 = vst.msk [vmem:[%s4119_s4 + $0xf8] sm:$0xf] %vm1616_vm3, %v1875_v33  ;;  %1680 = vst.msk [vmem:[%s4119_s4 + $0xfc] sm:$0xf] %vm1616_vm3, %v1876_v7 }
 0x252   :  { %v1882_v12 = vpack.c.bf16 %v4442_v45, %v4442_v45  ;;  %v1883_v38 = vpack.c.bf16 %v4443_v58, %v4443_v58  ;;  %1681 = vst.msk [vmem:[%s4119_s4 + $0x100] sm:$0xf] %vm1616_vm3, %v1877_v41  ;;  %1682 = vst.msk [vmem:[%s4119_s4 + $0x104] sm:$0xf] %vm1616_vm3, %v1878_v57 }
 0x253   :  { %v1884_v42 = vpack.c.bf16 %v4444_v25, %v4444_v25  ;;  %v1885_v51 = vpack.c.bf16 %v4445_v61, %v4445_v61  ;;  %1683 = vst.msk [vmem:[%s4119_s4 + $0x108] sm:$0xf] %vm1616_vm3, %v1879_v17  ;;  %1684 = vst.msk [vmem:[%s4119_s4 + $0x10c] sm:$0xf] %vm1616_vm3, %v1880_v35 }
 0x254   :  { %1685 = vst.msk [vmem:[%s4119_s4 + $0x110] sm:$0xf] %vm1616_vm3, %v1881_v44  ;;  %1686 = vst.msk [vmem:[%s4119_s4 + $0x114] sm:$0xf] %vm1616_vm3, %v1882_v12 }
 0x255   :  { %1687 = vst.msk [vmem:[%s4119_s4 + $0x118] sm:$0xf] %vm1616_vm3, %v1883_v38  ;;  %1688 = vst.msk [vmem:[%s4119_s4 + $0x11c] sm:$0xf] %vm1616_vm3, %v1884_v42 }
 0x256   :  { %1690 = vst.msk [vmem:[%s4119_s4 + $0x120] sm:$0x1] %vm1689_vm4, %v1885_v51 }

// kernel: inception_v4_stem_forward.10
= control target key start
LH: loop header
LB: loop body
LE: loop exit
PB: predicated region body
PF: predicated region fallthrough
CT: control target
= control target key end

     0   :  { %v1863_v0 = vmov 0   ;;  %vm754_vm0 = vcmask 130048   ;;  %vm866_vm1 = vcmask 123904   ;;  %vm1475_vm2 = vcmask 125952   ;;  %s3135_s1 = inlined_call_operand.vmem [shape: bf16[256,16], index: 1, kind: input, shape index: {}]   ;;  %s3136_s0 = inlined_call_operand.vmem [shape: bf16[450,256], index: 0, kind: input, shape index: {}]   ;;  %s3137_s2 = inlined_call_operand.vmem [shape: f32[1,16], index: 2, kind: input, shape index: {}]   ;;  %s3138_s3 = inlined_call_operand.vmem [shape: f32[1,16], index: 3, kind: input, shape index: {}]   ;;  %s3139_s4 = inlined_call_operand.vmem [shape: bf16[450,16], index: 4, kind: output, shape index: {}]  }
   0x1   :  { %490 = vmatprep.subr.bf16.mxu0 %v1863_v0  ;;  %v1759_v1 = vld [vmem:[%s3135_s1] sm:$0xff]   ;;  %1726 = vmatprep.subr.bf16.mxu1 %v1863_v0  ;;  %v1760_v2 = vld [vmem:[%s3135_s1 + $0x8] sm:$0xff]   ;;  %v1761_v3 = vld [vmem:[%s3135_s1 + $0x10] sm:$0xff]   ;;  %vm1532_vm3 = vcmask 122880  }
   0x2   :  { %491 = vmatpush1.bf16.msra.mxu0 %v1759_v1  ;;  %1742 = vmatpush1.bf16.msra.mxu1 %v1759_v1  ;;  %v1762_v4 = vld [vmem:[%s3135_s1 + $0x18] sm:$0xff]   ;;  %v1763_v5 = vld [vmem:[%s3135_s1 + $0x20] sm:$0xff]   ;;  %v1764_v7 = vld [vmem:[%s3135_s1 + $0x28] sm:$0xff]  }
   0x3   :  { %492 = vmatprep.subr.bf16.mxu0 %v1863_v0  ;;  %1727 = vmatprep.subr.bf16.mxu1 %v1863_v0  ;;  %v1777_v6 = vld [vmem:[%s3136_s0 + $0x4] ss:$8 sps:$4 sm:$0xff]   ;;  %v1765_v8 = vld [vmem:[%s3135_s1 + $0x30] sm:$0xff]   ;;  %v1766_v9 = vld [vmem:[%s3135_s1 + $0x38] sm:$0xff]  }
   0x4   :  { %522 = vmatprep.mubr.bf16.mxu0 %v1777_v6  ;;  %v1801_v10 = vld [vmem:[%s3136_s0 + $0xf4] ss:$8 sps:$4 sm:$0xff]   ;;  %v1767_v11 = vld [vmem:[%s3135_s1 + $0x40] sm:$0xff]   ;;  %v1768_v12 = vld [vmem:[%s3135_s1 + $0x48] sm:$0xff]  }
   0x5   :  { %642 = vmatprep.mubr.bf16.mxu1 %v1801_v10  ;;  %v1769_v13 = vld [vmem:[%s3135_s1 + $0x50] sm:$0xff]   ;;  %v1770_v14 = vld [vmem:[%s3135_s1 + $0x58] sm:$0xff]   ;;  %v1771_v15 = vld [vmem:[%s3135_s1 + $0x60] sm:$0xff]  }
   0x6   :  { %493 = vmatpush1.bf16.msra.mxu0 %v1760_v2  ;;  %1743 = vmatpush1.bf16.msra.mxu1 %v1760_v2  ;;  %v1772_v16 = vld [vmem:[%s3135_s1 + $0x68] sm:$0xff]   ;;  %v1773_v17 = vld [vmem:[%s3135_s1 + $0x70] sm:$0xff]   ;;  %v1774_v18 = vld [vmem:[%s3135_s1 + $0x78] sm:$0xff]  }
   0x7   :  { %494 = vmatprep.subr.bf16.mxu0 %v1863_v0  ;;  %1728 = vmatprep.subr.bf16.mxu1 %v1863_v0  ;;  %v1775_v19 = vld [vmem:[%s3136_s0] ss:$8 sps:$4 sm:$0xff]   ;;  %v1799_v20 = vld [vmem:[%s3136_s0 + $0xf0] ss:$8 sps:$4 sm:$0xff]   ;;  %v1778_v21 = vld [vmem:[%s3136_s0 + $0x14] ss:$8 sps:$4 sm:$0xff]  }
   0x8   :  { %v1805_v22 = vld [vmem:[%s3136_s0 + $0x104] ss:$8 sps:$4 sm:$0xff]   ;;  %v1780_v23 = vld [vmem:[%s3136_s0 + $0x10] ss:$8 sps:$4 sm:$0xff]   ;;  %v1807_v24 = vld [vmem:[%s3136_s0 + $0x100] ss:$8 sps:$4 sm:$0xff]  }
   0x9   :  { %v1781_v25 = vld [vmem:[%s3136_s0 + $0x24] ss:$8 sps:$4 sm:$0xff]   ;;  %v1811_v26 = vld [vmem:[%s3136_s0 + $0x114] ss:$8 sps:$4 sm:$0xff]   ;;  %v1783_v27 = vld [vmem:[%s3136_s0 + $0x20] ss:$8 sps:$4 sm:$0xff]  }
   0xa   :  { %495 = vmatpush1.bf16.msra.mxu0 %v1761_v3  ;;  %1744 = vmatpush1.bf16.msra.mxu1 %v1761_v3  ;;  %v1813_v28 = vld [vmem:[%s3136_s0 + $0x110] ss:$8 sps:$4 sm:$0xff]   ;;  %v1784_v29 = vld [vmem:[%s3136_s0 + $0x34] ss:$8 sps:$4 sm:$0xff]   ;;  %v1817_v30 = vld [vmem:[%s3136_s0 + $0x124] ss:$8 sps:$4 sm:$0xff]  }
   0xb   :  { %496 = vmatprep.subr.bf16.mxu0 %v1863_v0  ;;  %1729 = vmatprep.subr.bf16.mxu1 %v1863_v0  ;;  %v1786_v31 = vld [vmem:[%s3136_s0 + $0x30] ss:$8 sps:$4 sm:$0xff]   ;;  %v1819_v32 = vld [vmem:[%s3136_s0 + $0x120] ss:$8 sps:$4 sm:$0xff]   ;;  %v1787_v33 = vld [vmem:[%s3136_s0 + $0x44] ss:$8 sps:$4 sm:$0xff]  }
   0xc   :  { %v1823_v34 = vld [vmem:[%s3136_s0 + $0x134] ss:$8 sps:$4 sm:$0xff]   ;;  %v1789_v35 = vld [vmem:[%s3136_s0 + $0x40] ss:$8 sps:$4 sm:$0xff]   ;;  %v1825_v36 = vld [vmem:[%s3136_s0 + $0x130] ss:$8 sps:$4 sm:$0xff]  }
   0xd   :  { %v1790_v37 = vld [vmem:[%s3136_s0 + $0x54] ss:$8 sps:$4 sm:$0xff]   ;;  %v1829_v38 = vld [vmem:[%s3136_s0 + $0x144] ss:$8 sps:$4 sm:$0xff]   ;;  %v1792_v39 = vld [vmem:[%s3136_s0 + $0x50] ss:$8 sps:$4 sm:$0xff]  }
   0xe   :  { %497 = vmatpush1.bf16.msra.mxu0 %v1762_v4  ;;  %1745 = vmatpush1.bf16.msra.mxu1 %v1762_v4  ;;  %v1831_v40 = vld [vmem:[%s3136_s0 + $0x140] ss:$8 sps:$4 sm:$0xff]   ;;  %v1793_v41 = vld [vmem:[%s3136_s0 + $0x64] ss:$8 sps:$4 sm:$0xff]   ;;  %v1835_v42 = vld [vmem:[%s3136_s0 + $0x154] ss:$8 sps:$4 sm:$0xff]  }
   0xf   :  { %498 = vmatprep.subr.bf16.mxu0 %v1863_v0  ;;  %1730 = vmatprep.subr.bf16.mxu1 %v1863_v0  ;;  %v1795_v43 = vld [vmem:[%s3136_s0 + $0x60] ss:$8 sps:$4 sm:$0xff]   ;;  %v1837_v44 = vld [vmem:[%s3136_s0 + $0x150] ss:$8 sps:$4 sm:$0xff]   ;;  %v1796_v45 = vld [vmem:[%s3136_s0 + $0x74] ss:$8 sps:$4 sm:$0xff]  }
  0x10   :  { %v1841_v46 = vld [vmem:[%s3136_s0 + $0x164] ss:$8 sps:$4 sm:$0xff]   ;;  %v1798_v47 = vld [vmem:[%s3136_s0 + $0x70] ss:$8 sps:$4 sm:$0xff]   ;;  %v1843_v48 = vld [vmem:[%s3136_s0 + $0x160] ss:$8 sps:$4 sm:$0xff]  }
  0x11   :  { %v1802_v49 = vld [vmem:[%s3136_s0 + $0x84] ss:$8 sps:$4 sm:$0xff]   ;;  %v1844_v50 = vld [vmem:[%s3136_s0 + $0x174] ss:$8 sps:$4 sm:$0xff]   ;;  %v1804_v51 = vld [vmem:[%s3136_s0 + $0x80] ss:$8 sps:$4 sm:$0xff]  }
  0x12   :  { %499 = vmatpush1.bf16.msra.mxu0 %v1763_v5  ;;  %1746 = vmatpush1.bf16.msra.mxu1 %v1763_v5  ;;  %v1846_v52 = vld [vmem:[%s3136_s0 + $0x170] ss:$8 sps:$4 sm:$0xff]   ;;  %v1808_v53 = vld [vmem:[%s3136_s0 + $0x94] ss:$8 sps:$4 sm:$0xff]   ;;  %v1847_v54 = vld [vmem:[%s3136_s0 + $0x184] ss:$8 sps:$4 sm:$0xff]  }
  0x13   :  { %500 = vmatprep.subr.bf16.mxu0 %v1863_v0  ;;  %1731 = vmatprep.subr.bf16.mxu1 %v1863_v0  ;;  %v1810_v55 = vld [vmem:[%s3136_s0 + $0x90] ss:$8 sps:$4 sm:$0xff]   ;;  %v1849_v56 = vld [vmem:[%s3136_s0 + $0x180] ss:$8 sps:$4 sm:$0xff]   ;;  %v1814_v57 = vld [vmem:[%s3136_s0 + $0xa4] ss:$8 sps:$4 sm:$0xff]  }
  0x14   :  { %v1850_v58 = vld [vmem:[%s3136_s0 + $0x194] ss:$8 sps:$4 sm:$0xff]   ;;  %v1816_v59 = vld [vmem:[%s3136_s0 + $0xa0] ss:$8 sps:$4 sm:$0xff]   ;;  %v1852_v60 = vld [vmem:[%s3136_s0 + $0x190] ss:$8 sps:$4 sm:$0xff]  }
  0x15   :  { %v1820_v61 = vld [vmem:[%s3136_s0 + $0xb4] ss:$8 sps:$4 sm:$0xff]   ;;  %v1853_v62 = vld [vmem:[%s3136_s0 + $0x1a4] ss:$8 sps:$4 sm:$0xff]   ;;  %v1822_v63 = vld [vmem:[%s3136_s0 + $0xb0] ss:$8 sps:$4 sm:$0xff]  }
  0x16   :  { %501 = vmatpush1.bf16.msra.mxu0 %v1764_v7  ;;  %1747 = vmatpush1.bf16.msra.mxu1 %v1764_v7  ;;  %v1826_v1 = vld [vmem:[%s3136_s0 + $0xc4] ss:$8 sps:$4 sm:$0xff]   ;;  %v1856_v2 = vld [vmem:[%s3136_s0 + $0x1b4] ss:$8 sps:$4 sm:$0xff]   ;;  %v1828_v4 = vld [vmem:[%s3136_s0 + $0xc0] ss:$8 sps:$4 sm:$0xff]  }
  0x17   :  { %502 = vmatprep.subr.bf16.mxu0 %v1863_v0  ;;  %1732 = vmatprep.subr.bf16.mxu1 %v1863_v0  ;;  %v74_v3 = vld [vmem:[%s3136_s0 + $0x1c0] sm:$0x11]  ;;  %v1858_v5 = vld [vmem:[%s3136_s0 + $0x1b0] ss:$8 sps:$4 sm:$0xff]   ;;  %v1832_v6 = vld [vmem:[%s3136_s0 + $0xd4] ss:$8 sps:$4 sm:$0xff]  }
  0x18   :  { %v1595_v7 = vcombine.high %v74_v3, %v74_v3  ;;  %v1838_v10 = vld [vmem:[%s3136_s0 + $0xe4] ss:$8 sps:$4 sm:$0xff]  }
  0x1a   :  { %503 = vmatpush1.bf16.msra.mxu0 %v1765_v8  ;;  %1748 = vmatpush1.bf16.msra.mxu1 %v1765_v8  ;;  %v1834_v8 = vld [vmem:[%s3136_s0 + $0xd0] ss:$8 sps:$4 sm:$0xff]  }
  0x1b   :  { %504 = vmatprep.subr.bf16.mxu0 %v1863_v0  ;;  %1733 = vmatprep.subr.bf16.mxu1 %v1863_v0 }
  0x1e   :  { %505 = vmatpush1.bf16.msra.mxu0 %v1766_v9  ;;  %1749 = vmatpush1.bf16.msra.mxu1 %v1766_v9  ;;  %v1594_v9 = vcombine.low %v74_v3, %v74_v3 }
  0x1f   :  { %506 = vmatprep.subr.bf16.mxu0 %v1863_v0  ;;  %1734 = vmatprep.subr.bf16.mxu1 %v1863_v0 }
  0x22   :  { %507 = vmatpush1.bf16.msra.mxu0 %v1767_v11  ;;  %1750 = vmatpush1.bf16.msra.mxu1 %v1767_v11  ;;  %v1840_v11 = vld [vmem:[%s3136_s0 + $0xe0] ss:$8 sps:$4 sm:$0xff]  }
  0x23   :  { %508 = vmatprep.subr.bf16.mxu0 %v1863_v0  ;;  %1735 = vmatprep.subr.bf16.mxu1 %v1863_v0 }
  0x26   :  { %509 = vmatpush1.bf16.msra.mxu0 %v1768_v12  ;;  %1751 = vmatpush1.bf16.msra.mxu1 %v1768_v12 }
  0x27   :  { %510 = vmatprep.subr.bf16.mxu0 %v1863_v0  ;;  %1736 = vmatprep.subr.bf16.mxu1 %v1863_v0 }
  0x2a   :  { %511 = vmatpush1.bf16.msra.mxu0 %v1769_v13  ;;  %1752 = vmatpush1.bf16.msra.mxu1 %v1769_v13 }
  0x2b   :  { %512 = vmatprep.subr.bf16.mxu0 %v1863_v0  ;;  %1737 = vmatprep.subr.bf16.mxu1 %v1863_v0 }
  0x2e   :  { %513 = vmatpush1.bf16.msra.mxu0 %v1770_v14  ;;  %1753 = vmatpush1.bf16.msra.mxu1 %v1770_v14 }
  0x2f   :  { %514 = vmatprep.subr.bf16.mxu0 %v1863_v0  ;;  %1738 = vmatprep.subr.bf16.mxu1 %v1863_v0 }
  0x32   :  { %515 = vmatpush1.bf16.msra.mxu0 %v1771_v15  ;;  %1754 = vmatpush1.bf16.msra.mxu1 %v1771_v15 }
  0x33   :  { %516 = vmatprep.subr.bf16.mxu0 %v1863_v0  ;;  %1739 = vmatprep.subr.bf16.mxu1 %v1863_v0 }
  0x36   :  { %517 = vmatpush1.bf16.msra.mxu0 %v1772_v16  ;;  %1755 = vmatpush1.bf16.msra.mxu1 %v1772_v16 }
  0x37   :  { %518 = vmatprep.subr.bf16.mxu0 %v1863_v0  ;;  %1740 = vmatprep.subr.bf16.mxu1 %v1863_v0 }
  0x3a   :  { %519 = vmatpush1.bf16.msra.mxu0 %v1773_v17  ;;  %1756 = vmatpush1.bf16.msra.mxu1 %v1773_v17 }
  0x3b   :  { %520 = vmatprep.subr.bf16.mxu0 %v1863_v0  ;;  %1741 = vmatprep.subr.bf16.mxu1 %v1863_v0  ;;  %v1855_v0 = vld [vmem:[%s3136_s0 + $0x1a0] ss:$8 sps:$4 sm:$0xff]  }
  0x3e   :  { %521 = vmatpush1.bf16.msra.mxu0 %v1774_v18  ;;  %1757 = vmatpush1.bf16.msra.mxu1 %v1774_v18 }
  0x41   :  { %523 = vmatmul.mubr.bf16.vlgmr.msra.gmra.mrb[0].mxu0 %v1775_v19  ;;  %643 = vmatmul.mubr.bf16.vlgmr.msra.gmra.mrb[0].mxu1 %v1799_v20 }
  0x42   :  { %530 = vmatprep.mubr.bf16.mxu0 %v1778_v21  ;;  %650 = vmatprep.mubr.bf16.mxu1 %v1805_v22 }
  0x49   :  { %531 = vmatmul.mubr.bf16.gmra.mrb[4].mxu0 %v1780_v23  ;;  %651 = vmatmul.mubr.bf16.gmra.mrb[4].mxu1 %v1807_v24 }
  0x4a   :  { %538 = vmatprep.mubr.bf16.mxu0 %v1781_v25  ;;  %658 = vmatprep.mubr.bf16.mxu1 %v1811_v26 }
  0x51   :  { %539 = vmatmul.mubr.bf16.gmra.mrb[8].mxu0 %v1783_v27  ;;  %659 = vmatmul.mubr.bf16.gmra.mrb[8].mxu1 %v1813_v28 }
  0x52   :  { %546 = vmatprep.mubr.bf16.mxu0 %v1784_v29  ;;  %666 = vmatprep.mubr.bf16.mxu1 %v1817_v30 }
  0x59   :  { %547 = vmatmul.mubr.bf16.gmra.mrb[12].mxu0 %v1786_v31  ;;  %667 = vmatmul.mubr.bf16.gmra.mrb[12].mxu1 %v1819_v32 }
  0x5a   :  { %554 = vmatprep.mubr.bf16.mxu0 %v1787_v33  ;;  %674 = vmatprep.mubr.bf16.mxu1 %v1823_v34 }
  0x61   :  { %555 = vmatmul.mubr.bf16.gmra.mrb[16].mxu0 %v1789_v35  ;;  %675 = vmatmul.mubr.bf16.gmra.mrb[16].mxu1 %v1825_v36 }
  0x62   :  { %562 = vmatprep.mubr.bf16.mxu0 %v1790_v37  ;;  %682 = vmatprep.mubr.bf16.mxu1 %v1829_v38 }
  0x69   :  { %563 = vmatmul.mubr.bf16.gmra.mrb[20].mxu0 %v1792_v39  ;;  %683 = vmatmul.mubr.bf16.gmra.mrb[20].mxu1 %v1831_v40 }
  0x6a   :  { %570 = vmatprep.mubr.bf16.mxu0 %v1793_v41  ;;  %690 = vmatprep.mubr.bf16.mxu1 %v1835_v42 }
  0x71   :  { %571 = vmatmul.mubr.bf16.gmra.mrb[24].mxu0 %v1795_v43  ;;  %691 = vmatmul.mubr.bf16.gmra.mrb[24].mxu1 %v1837_v44 }
  0x72   :  { %578 = vmatprep.mubr.bf16.mxu0 %v1796_v45  ;;  %698 = vmatprep.mubr.bf16.mxu1 %v1841_v46 }
  0x79   :  { %579 = vmatmul.mubr.bf16.gmra.mrb[28].mxu0 %v1798_v47  ;;  %699 = vmatmul.mubr.bf16.gmra.mrb[28].mxu1 %v1843_v48 }
  0x7a   :  { %586 = vmatprep.mubr.bf16.mxu0 %v1802_v49  ;;  %706 = vmatprep.mubr.bf16.mxu1 %v1844_v50 }
  0x81   :  { %587 = vmatmul.mubr.bf16.gmra.mrb[32].mxu0 %v1804_v51  ;;  %707 = vmatmul.mubr.bf16.gmra.mrb[32].mxu1 %v1846_v52 }
  0x82   :  { %594 = vmatprep.mubr.bf16.mxu0 %v1808_v53  ;;  %714 = vmatprep.mubr.bf16.mxu1 %v1847_v54 }
  0x89   :  { %595 = vmatmul.mubr.bf16.gmra.mrb[36].mxu0 %v1810_v55  ;;  %715 = vmatmul.mubr.bf16.gmra.mrb[36].mxu1 %v1849_v56 }
  0x8a   :  { %602 = vmatprep.mubr.bf16.mxu0 %v1814_v57  ;;  %722 = vmatprep.mubr.bf16.mxu1 %v1850_v58 }
  0x91   :  { %603 = vmatmul.mubr.bf16.gmra.mrb[40].mxu0 %v1816_v59  ;;  %723 = vmatmul.mubr.bf16.gmra.mrb[40].mxu1 %v1852_v60 }
  0x92   :  { %610 = vmatprep.mubr.bf16.mxu0 %v1820_v61  ;;  %730 = vmatprep.mubr.bf16.mxu1 %v1853_v62 }
  0x99   :  { %611 = vmatmul.mubr.bf16.gmra.mrb[44].mxu0 %v1822_v63  ;;  %731 = vmatmul.mubr.bf16.gmra.mrb[44].mxu1 %v1855_v0 }
  0x9a   :  { %618 = vmatprep.mubr.bf16.mxu0 %v1826_v1  ;;  %738 = vmatprep.mubr.bf16.mxu1 %v1856_v2 }
  0xa1   :  { %619 = vmatmul.mubr.bf16.gmra.mrb[48].mxu0 %v1828_v4  ;;  %739 = vmatmul.mubr.bf16.gmra.mrb[48].mxu1 %v1858_v5 }
  0xa2   :  { %626 = vmatprep.mubr.bf16.mxu0 %v1832_v6  ;;  %746 = vmatprep.mubr.bf16.mxu1 %v1595_v7 }
  0xa9   :  { %627 = vmatmul.mubr.bf16.gmra.mrb[52].mxu0 %v1834_v8  ;;  %747 = vmatmul.mubr.bf16.gmra.mrb[52].mxu1 %v1594_v9 }
  0xaa   :  { %634 = vmatprep.mubr.bf16.mxu0 %v1838_v10 }
  0xb1   :  { %635 = vmatmul.mubr.bf16.gmra.mrb[56].mxu0 %v1840_v11 }
 0x114   :  { %v2140_v12 = vpop.f32.mrb[0].mxu0  ;;  %v2142_v13 = vpop.f32.mrb[0].mxu1 }
 0x115   :  { %v876_v14 = vmul.f32 %v2140_v12, %v2140_v12  ;;  %v526_v15 = vpop.f32.mrb[1].mxu0  ;;  %v646_v16 = vpop.f32.mrb[1].mxu1  ;;  %v755_v19 = vsel %vm754_vm0, %v2140_v12, 0.0 }
 0x116   :  { %v2146_v17 = vpop.f32.mrb[2].mxu0  ;;  %v2148_v18 = vpop.f32.mrb[2].mxu1 }
 0x117   :  { %v756_v20 = vsel %vm754_vm0, %v2146_v17, 0.0  ;;  %v877_v21 = vmul.f32 %v2146_v17, %v2146_v17  ;;  %v529_v22 = vpop.f32.mrb[3].mxu0  ;;  %v649_v23 = vpop.f32.mrb[3].mxu1  ;;  %v933_v25 = vsel %vm754_vm0, %v876_v14, 0.0 }
 0x118   :  { %v757_v24 = vadd.f32 %v756_v20, %v755_v19 }
 0x119   :  { %v934_v26 = vsel %vm754_vm0, %v877_v21, 0.0 }
 0x11a   :  { %v935_v27 = vadd.f32 %v934_v26, %v933_v25 }
 0x11c   :  { %v2158_v28 = vpop.f32.mrb[4].mxu0  ;;  %v2160_v29 = vpop.f32.mrb[4].mxu1 }
 0x11d   :  { %v758_v30 = vsel %vm754_vm0, %v2158_v28, 0.0  ;;  %v878_v31 = vmul.f32 %v2158_v28, %v2158_v28  ;;  %v534_v32 = vpop.f32.mrb[5].mxu0  ;;  %v654_v33 = vpop.f32.mrb[5].mxu1 }
 0x11e   :  { %v759_v34 = vadd.f32 %v758_v30, %v757_v24  ;;  %v2166_v35 = vpop.f32.mrb[6].mxu0  ;;  %v2168_v36 = vpop.f32.mrb[6].mxu1 }
 0x11f   :  { %v936_v37 = vsel %vm754_vm0, %v878_v31, 0.0  ;;  %v760_v38 = vsel %vm754_vm0, %v2166_v35, 0.0  ;;  %v879_v39 = vmul.f32 %v2166_v35, %v2166_v35  ;;  %v537_v40 = vpop.f32.mrb[7].mxu0  ;;  %v657_v41 = vpop.f32.mrb[7].mxu1 }
 0x120   :  { %v937_v42 = vadd.f32 %v936_v37, %v935_v27  ;;  %v761_v43 = vadd.f32 %v760_v38, %v759_v34 }
 0x121   :  { %v938_v44 = vsel %vm754_vm0, %v879_v39, 0.0 }
 0x122   :  { %v939_v45 = vadd.f32 %v938_v44, %v937_v42 }
 0x124   :  { %v2176_v46 = vpop.f32.mrb[8].mxu0  ;;  %v2178_v47 = vpop.f32.mrb[8].mxu1 }
 0x125   :  { %v762_v48 = vsel %vm754_vm0, %v2176_v46, 0.0  ;;  %v880_v49 = vmul.f32 %v2176_v46, %v2176_v46  ;;  %v542_v50 = vpop.f32.mrb[9].mxu0  ;;  %v662_v51 = vpop.f32.mrb[9].mxu1 }
 0x126   :  { %v763_v52 = vadd.f32 %v762_v48, %v761_v43  ;;  %v2184_v53 = vpop.f32.mrb[10].mxu0  ;;  %v2186_v54 = vpop.f32.mrb[10].mxu1 }
 0x127   :  { %v940_v55 = vsel %vm754_vm0, %v880_v49, 0.0  ;;  %v764_v56 = vsel %vm754_vm0, %v2184_v53, 0.0  ;;  %v881_v57 = vmul.f32 %v2184_v53, %v2184_v53  ;;  %v545_v58 = vpop.f32.mrb[11].mxu0  ;;  %v665_v59 = vpop.f32.mrb[11].mxu1 }
 0x128   :  { %v941_v60 = vadd.f32 %v940_v55, %v939_v45  ;;  %v765_v61 = vadd.f32 %v764_v56, %v763_v52 }
 0x129   :  { %v942_v62 = vsel %vm754_vm0, %v881_v57, 0.0 }
 0x12a   :  { %v943_v63 = vadd.f32 %v942_v62, %v941_v60 }
 0x12c   :  { %v2194_v0 = vpop.f32.mrb[12].mxu0  ;;  %v2196_v1 = vpop.f32.mrb[12].mxu1 }
 0x12d   :  { %v766_v2 = vsel %vm754_vm0, %v2194_v0, 0.0  ;;  %v882_v3 = vmul.f32 %v2194_v0, %v2194_v0  ;;  %v550_v4 = vpop.f32.mrb[13].mxu0  ;;  %v670_v5 = vpop.f32.mrb[13].mxu1 }
 0x12e   :  { %v767_v6 = vadd.f32 %v766_v2, %v765_v61  ;;  %v2202_v7 = vpop.f32.mrb[14].mxu0  ;;  %v2204_v8 = vpop.f32.mrb[14].mxu1 }
 0x12f   :  { %v944_v9 = vsel %vm754_vm0, %v882_v3, 0.0  ;;  %v768_v10 = vsel %vm754_vm0, %v2202_v7, 0.0  ;;  %v883_v11 = vmul.f32 %v2202_v7, %v2202_v7  ;;  %v553_v14 = vpop.f32.mrb[15].mxu0  ;;  %v673_v15 = vpop.f32.mrb[15].mxu1 }
 0x130   :  { %v945_v16 = vadd.f32 %v944_v9, %v943_v63  ;;  %v769_v19 = vadd.f32 %v768_v10, %v767_v6 }
 0x131   :  { %v946_v20 = vsel %vm754_vm0, %v883_v11, 0.0 }
 0x132   :  { %v947_v21 = vadd.f32 %v946_v20, %v945_v16 }
 0x134   :  { %v2212_v22 = vpop.f32.mrb[16].mxu0  ;;  %v2214_v23 = vpop.f32.mrb[16].mxu1 }
 0x135   :  { %v770_v24 = vsel %vm754_vm0, %v2212_v22, 0.0  ;;  %v884_v25 = vmul.f32 %v2212_v22, %v2212_v22  ;;  %v558_v26 = vpop.f32.mrb[17].mxu0  ;;  %v678_v27 = vpop.f32.mrb[17].mxu1 }
 0x136   :  { %v771_v30 = vadd.f32 %v770_v24, %v769_v19  ;;  %v2220_v31 = vpop.f32.mrb[18].mxu0  ;;  %v2222_v32 = vpop.f32.mrb[18].mxu1 }
 0x137   :  { %v948_v33 = vsel %vm754_vm0, %v884_v25, 0.0  ;;  %v772_v34 = vsel %vm754_vm0, %v2220_v31, 0.0  ;;  %v885_v37 = vmul.f32 %v2220_v31, %v2220_v31  ;;  %v561_v38 = vpop.f32.mrb[19].mxu0  ;;  %v681_v39 = vpop.f32.mrb[19].mxu1 }
 0x138   :  { %v949_v40 = vadd.f32 %v948_v33, %v947_v21  ;;  %v773_v41 = vadd.f32 %v772_v34, %v771_v30 }
 0x139   :  { %v950_v42 = vsel %vm754_vm0, %v885_v37, 0.0 }
 0x13a   :  { %v951_v43 = vadd.f32 %v950_v42, %v949_v40 }
 0x13c   :  { %v2230_v44 = vpop.f32.mrb[20].mxu0  ;;  %v2232_v45 = vpop.f32.mrb[20].mxu1 }
 0x13d   :  { %v774_v48 = vsel %vm754_vm0, %v2230_v44, 0.0  ;;  %v886_v49 = vmul.f32 %v2230_v44, %v2230_v44  ;;  %v566_v50 = vpop.f32.mrb[21].mxu0  ;;  %v686_v51 = vpop.f32.mrb[21].mxu1 }
 0x13e   :  { %v775_v52 = vadd.f32 %v774_v48, %v773_v41  ;;  %v2238_v55 = vpop.f32.mrb[22].mxu0  ;;  %v2240_v56 = vpop.f32.mrb[22].mxu1 }
 0x13f   :  { %v952_v57 = vsel %vm754_vm0, %v886_v49, 0.0  ;;  %v776_v58 = vsel %vm754_vm0, %v2238_v55, 0.0  ;;  %v887_v59 = vmul.f32 %v2238_v55, %v2238_v55  ;;  %v569_v60 = vpop.f32.mrb[23].mxu0  ;;  %v689_v61 = vpop.f32.mrb[23].mxu1 }
 0x140   :  { %v953_v62 = vadd.f32 %v952_v57, %v951_v43  ;;  %v777_v63 = vadd.f32 %v776_v58, %v775_v52 }
 0x141   :  { %v954_v2 = vsel %vm754_vm0, %v887_v59, 0.0 }
 0x142   :  { %v955_v3 = vadd.f32 %v954_v2, %v953_v62 }
 0x144   :  { %v2248_v4 = vpop.f32.mrb[24].mxu0  ;;  %v2250_v5 = vpop.f32.mrb[24].mxu1 }
 0x145   :  { %v778_v6 = vsel %vm754_vm0, %v2248_v4, 0.0  ;;  %v888_v9 = vmul.f32 %v2248_v4, %v2248_v4  ;;  %v574_v10 = vpop.f32.mrb[25].mxu0  ;;  %v694_v11 = vpop.f32.mrb[25].mxu1 }
 0x146   :  { %v779_v14 = vadd.f32 %v778_v6, %v777_v63  ;;  %v2256_v15 = vpop.f32.mrb[26].mxu0  ;;  %v2258_v16 = vpop.f32.mrb[26].mxu1 }
 0x147   :  { %v956_v19 = vsel %vm754_vm0, %v888_v9, 0.0  ;;  %v780_v20 = vsel %vm754_vm0, %v2256_v15, 0.0  ;;  %v889_v21 = vmul.f32 %v2256_v15, %v2256_v15  ;;  %v577_v24 = vpop.f32.mrb[27].mxu0  ;;  %v697_v25 = vpop.f32.mrb[27].mxu1 }
 0x148   :  { %v957_v26 = vadd.f32 %v956_v19, %v955_v3  ;;  %v781_v27 = vadd.f32 %v780_v20, %v779_v14 }
 0x149   :  { %v958_v30 = vsel %vm754_vm0, %v889_v21, 0.0 }
 0x14a   :  { %v959_v33 = vadd.f32 %v958_v30, %v957_v26 }
 0x14c   :  { %v2266_v34 = vpop.f32.mrb[28].mxu0  ;;  %v2268_v37 = vpop.f32.mrb[28].mxu1 }
 0x14d   :  { %v782_v38 = vsel %vm754_vm0, %v2266_v34, 0.0  ;;  %v890_v39 = vmul.f32 %v2266_v34, %v2266_v34  ;;  %v582_v40 = vpop.f32.mrb[29].mxu0  ;;  %v702_v41 = vpop.f32.mrb[29].mxu1 }
 0x14e   :  { %v783_v42 = vadd.f32 %v782_v38, %v781_v27  ;;  %v2274_v43 = vpop.f32.mrb[30].mxu0  ;;  %v2276_v48 = vpop.f32.mrb[30].mxu1 }
 0x14f   :  { %v960_v49 = vsel %vm754_vm0, %v890_v39, 0.0  ;;  %v784_v50 = vsel %vm754_vm0, %v2274_v43, 0.0  ;;  %v891_v51 = vmul.f32 %v2274_v43, %v2274_v43  ;;  %v585_v52 = vpop.f32.mrb[31].mxu0  ;;  %v705_v57 = vpop.f32.mrb[31].mxu1 }
 0x150   :  { %v961_v58 = vadd.f32 %v960_v49, %v959_v33  ;;  %v785_v59 = vadd.f32 %v784_v50, %v783_v42 }
 0x151   :  { %v962_v60 = vsel %vm754_vm0, %v891_v51, 0.0 }
 0x152   :  { %v963_v61 = vadd.f32 %v962_v60, %v961_v58 }
 0x154   :  { %v2284_v62 = vpop.f32.mrb[32].mxu0  ;;  %v2286_v63 = vpop.f32.mrb[32].mxu1 }
 0x155   :  { %v786_v2 = vsel %vm754_vm0, %v2284_v62, 0.0  ;;  %v892_v3 = vmul.f32 %v2284_v62, %v2284_v62  ;;  %v590_v6 = vpop.f32.mrb[33].mxu0  ;;  %v710_v9 = vpop.f32.mrb[33].mxu1 }
 0x156   :  { %v787_v10 = vadd.f32 %v786_v2, %v785_v59  ;;  %v2292_v11 = vpop.f32.mrb[34].mxu0  ;;  %v2294_v14 = vpop.f32.mrb[34].mxu1 }
 0x157   :  { %3169 = vst [vmem:[#allocation2_spill] sm:$0xff] %v2294_v14  ;;  %v964_v19 = vsel %vm754_vm0, %v892_v3, 0.0  ;;  %v788_v20 = vsel %vm754_vm0, %v2292_v11, 0.0  ;;  %v893_v21 = vmul.f32 %v2292_v11, %v2292_v11  ;;  %v593_v24 = vpop.f32.mrb[35].mxu0  ;;  %v713_v25 = vpop.f32.mrb[35].mxu1 }
 0x158   :  { %v965_v26 = vadd.f32 %v964_v19, %v963_v61  ;;  %v789_v27 = vadd.f32 %v788_v20, %v787_v10 }
 0x159   :  { %v966_v30 = vsel %vm754_vm0, %v893_v21, 0.0 }
 0x15a   :  { %v967_v33 = vadd.f32 %v966_v30, %v965_v26 }
 0x15c   :  { %v2302_v38 = vpop.f32.mrb[36].mxu0  ;;  %v2304_v39 = vpop.f32.mrb[36].mxu1 }
 0x15d   :  { %3170 = vst [vmem:[#allocation3_spill] sm:$0xff] %v2304_v39  ;;  %v790_v40 = vsel %vm754_vm0, %v2302_v38, 0.0  ;;  %v894_v41 = vmul.f32 %v2302_v38, %v2302_v38  ;;  %v598_v42 = vpop.f32.mrb[37].mxu0  ;;  %v718_v49 = vpop.f32.mrb[37].mxu1 }
 0x15e   :  { %v791_v50 = vadd.f32 %v790_v40, %v789_v27  ;;  %v2310_v51 = vpop.f32.mrb[38].mxu0  ;;  %v2312_v52 = vpop.f32.mrb[38].mxu1 }
 0x15f   :  { %3171 = vst [vmem:[#allocation4_spill] sm:$0xff] %v2310_v51  ;;  %3172 = vst [vmem:[#allocation5_spill] sm:$0xff] %v2312_v52  ;;  %v968_v57 = vsel %vm754_vm0, %v894_v41, 0.0  ;;  %v792_v58 = vsel %vm754_vm0, %v2310_v51, 0.0  ;;  %v895_v59 = vmul.f32 %v2310_v51, %v2310_v51  ;;  %v601_v60 = vpop.f32.mrb[39].mxu0  ;;  %v721_v61 = vpop.f32.mrb[39].mxu1 }
 0x160   :  { %v969_v2 = vadd.f32 %v968_v57, %v967_v33  ;;  %v793_v3 = vadd.f32 %v792_v58, %v791_v50 }
 0x161   :  { %v970_v6 = vsel %vm754_vm0, %v895_v59, 0.0 }
 0x162   :  { %v971_v9 = vadd.f32 %v970_v6, %v969_v2 }
 0x164   :  { %v2320_v10 = vpop.f32.mrb[40].mxu0  ;;  %v2322_v19 = vpop.f32.mrb[40].mxu1 }
 0x165   :  { %3173 = vst [vmem:[#allocation6_spill] sm:$0xff] %v2320_v10  ;;  %3174 = vst [vmem:[#allocation7_spill] sm:$0xff] %v2322_v19  ;;  %v794_v20 = vsel %vm754_vm0, %v2320_v10, 0.0  ;;  %v896_v21 = vmul.f32 %v2320_v10, %v2320_v10  ;;  %v606_v24 = vpop.f32.mrb[41].mxu0  ;;  %v726_v25 = vpop.f32.mrb[41].mxu1 }
 0x166   :  { %v795_v26 = vadd.f32 %v794_v20, %v793_v3  ;;  %v2328_v27 = vpop.f32.mrb[42].mxu0  ;;  %v2330_v30 = vpop.f32.mrb[42].mxu1 }
 0x167   :  { %3175 = vst [vmem:[#allocation8_spill] sm:$0xff] %v2328_v27  ;;  %3176 = vst [vmem:[#allocation9_spill] sm:$0xff] %v2330_v30  ;;  %v972_v33 = vsel %vm754_vm0, %v896_v21, 0.0  ;;  %v796_v40 = vsel %vm754_vm0, %v2328_v27, 0.0  ;;  %v897_v41 = vmul.f32 %v2328_v27, %v2328_v27  ;;  %v609_v42 = vpop.f32.mrb[43].mxu0  ;;  %v729_v49 = vpop.f32.mrb[43].mxu1 }
 0x168   :  { %v973_v50 = vadd.f32 %v972_v33, %v971_v9  ;;  %v797_v57 = vadd.f32 %v796_v40, %v795_v26 }
 0x169   :  { %v974_v58 = vsel %vm754_vm0, %v897_v41, 0.0 }
 0x16a   :  { %v975_v59 = vadd.f32 %v974_v58, %v973_v50 }
 0x16c   :  { %v2338_v60 = vpop.f32.mrb[44].mxu0  ;;  %v2340_v61 = vpop.f32.mrb[44].mxu1 }
 0x16d   :  { %3177 = vst [vmem:[#allocation10_spill] sm:$0xff] %v2338_v60  ;;  %3178 = vst [vmem:[#allocation11_spill] sm:$0xff] %v2340_v61  ;;  %v798_v2 = vsel %vm754_vm0, %v2338_v60, 0.0  ;;  %v898_v3 = vmul.f32 %v2338_v60, %v2338_v60  ;;  %v614_v6 = vpop.f32.mrb[45].mxu0  ;;  %v734_v20 = vpop.f32.mrb[45].mxu1 }
 0x16e   :  { %v799_v21 = vadd.f32 %v798_v2, %v797_v57  ;;  %v2346_v24 = vpop.f32.mrb[46].mxu0  ;;  %v2348_v9 = vpop.f32.mrb[46].mxu1 }
 0x16f   :  { %3179 = vst [vmem:[#allocation12_spill] sm:$0xff] %v2346_v24  ;;  %3180 = vst [vmem:[#allocation13_spill] sm:$0xff] %v2348_v9  ;;  %v976_v25 = vsel %vm754_vm0, %v898_v3, 0.0  ;;  %v800_v26 = vsel %vm754_vm0, %v2346_v24, 0.0  ;;  %v899_v33 = vmul.f32 %v2346_v24, %v2346_v24  ;;  %v617_v40 = vpop.f32.mrb[47].mxu0  ;;  %v737_v41 = vpop.f32.mrb[47].mxu1 }
 0x170   :  { %v977_v42 = vadd.f32 %v976_v25, %v975_v59  ;;  %v801_v49 = vadd.f32 %v800_v26, %v799_v21 }
 0x171   :  { %v978_v50 = vsel %vm754_vm0, %v899_v33, 0.0 }
 0x172   :  { %v979_v58 = vadd.f32 %v978_v50, %v977_v42 }
 0x174   :  { %v2356_v57 = vpop.f32.mrb[48].mxu0  ;;  %v2358_v2 = vpop.f32.mrb[48].mxu1 }
 0x175   :  { %3181 = vst [vmem:[#allocation14_spill] sm:$0xff] %v2356_v57  ;;  %3182 = vst [vmem:[#allocation15_spill] sm:$0xff] %v2358_v2  ;;  %v802_v3 = vsel %vm754_vm0, %v2356_v57, 0.0  ;;  %v900_v6 = vmul.f32 %v2356_v57, %v2356_v57  ;;  %v622_v20 = vpop.f32.mrb[49].mxu0  ;;  %v742_v60 = vpop.f32.mrb[49].mxu1 }
 0x176   :  { %v803_v24 = vadd.f32 %v802_v3, %v801_v49  ;;  %v2364_v40 = vpop.f32.mrb[50].mxu0  ;;  %v2366_v59 = vpop.f32.mrb[50].mxu1 }
 0x177   :  { %3183 = vst [vmem:[#allocation16_spill] sm:$0xff] %v2364_v40  ;;  %3184 = vst [vmem:[#allocation17_spill] sm:$0xff] %v2366_v59  ;;  %v980_v21 = vsel %vm754_vm0, %v900_v6, 0.0  ;;  %v804_v25 = vsel %vm754_vm0, %v2364_v40, 0.0  ;;  %v901_v26 = vmul.f32 %v2364_v40, %v2364_v40  ;;  %v625_v33 = vpop.f32.mrb[51].mxu0  ;;  %v745_v41 = vpop.f32.mrb[51].mxu1 }
 0x178   :  { %v981_v42 = vadd.f32 %v980_v21, %v979_v58  ;;  %v805_v50 = vadd.f32 %v804_v25, %v803_v24 }
 0x179   :  { %v982_v20 = vsel %vm754_vm0, %v901_v26, 0.0 }
 0x17a   :  { %v983_v60 = vadd.f32 %v982_v20, %v981_v42 }
 0x17c   :  { %v2374_v49 = vpop.f32.mrb[52].mxu0  ;;  %v2376_v3 = vpop.f32.mrb[52].mxu1 }
 0x17d   :  { %3185 = vst [vmem:[#allocation18_spill] sm:$0xff] %v2374_v49  ;;  %3186 = vst [vmem:[#allocation19_spill] sm:$0xff] %v2376_v3  ;;  %v806_v6 = vsel %vm754_vm0, %v2374_v49, 0.0  ;;  %v902_v57 = vmul.f32 %v2374_v49, %v2374_v49  ;;  %v630_v27 = vpop.f32.mrb[53].mxu0  ;;  %v750_v10 = vpop.f32.mrb[53].mxu1 }
 0x17e   :  { %v807_v40 = vadd.f32 %v806_v6, %v805_v50  ;;  %v2382_v33 = vpop.f32.mrb[54].mxu0  ;;  %v751_v58 = vpop.f32.mrb[54].mxu1 }
 0x17f   :  { %v984_v24 = vsel %vm754_vm0, %v902_v57, 0.0  ;;  %v808_v21 = vsel %vm754_vm0, %v2382_v33, 0.0  ;;  %v903_v25 = vmul.f32 %v2382_v33, %v2382_v33  ;;  %v633_v26 = vpop.f32.mrb[55].mxu0  ;;  %v752_v41 = vpop.f32.mrb[55].mxu1 }
 0x180   :  { %v985_v42 = vadd.f32 %v984_v24, %v983_v60  ;;  %v809_v20 = vadd.f32 %v808_v21, %v807_v40  ;;  %v906_v26 = vmul.f32 %v2142_v13, %v2142_v13  ;;  %v814_v41 = vsel %vm754_vm0, %v2142_v13, 0.0 }
 0x181   :  { %v986_v49 = vsel %vm754_vm0, %v903_v25, 0.0 }
 0x182   :  { %v987_v27 = vadd.f32 %v986_v49, %v985_v42  ;;  %v907_v42 = vmul.f32 %v2148_v18, %v2148_v18 }
 0x184   :  { %v2390_v10 = vpop.f32.mrb[56].mxu0 }
 0x185   :  { %3187 = vst [vmem:[#allocation20_spill] sm:$0xff] %v2390_v10  ;;  %v810_v50 = vsel %vm754_vm0, %v2390_v10, 0.0  ;;  %v904_v57 = vmul.f32 %v2390_v10, %v2390_v10  ;;  %v638_v6 = vpop.f32.mrb[57].mxu0  ;;  %v816_v10 = vsel %vm754_vm0, %v2148_v18, 0.0 }
 0x186   :  { %v811_v58 = vadd.f32 %v810_v50, %v809_v20  ;;  %v2396_v51 = vpop.f32.mrb[58].mxu0 }
 0x187   :  { %v988_v40 = vsel %vm754_vm0, %v904_v57, 0.0  ;;  %v812_v60 = vsel %vm754_vm0, %v2396_v51, 0.0  ;;  %v905_v49 = vmul.f32 %v2396_v51, %v2396_v51  ;;  %v641_v24 = vpop.f32.mrb[59].mxu0  ;;  %v992_v57 = vsel %vm754_vm0, %v906_v26, 0.0 }
 0x188   :  { %v989_v21 = vadd.f32 %v988_v40, %v987_v27  ;;  %v813_v25 = vadd.f32 %v812_v60, %v811_v58  ;;  %v908_v24 = vmul.f32 %v2160_v29, %v2160_v29  ;;  %v994_v40 = vsel %vm754_vm0, %v907_v42, 0.0 }
 0x189   :  { %v990_v20 = vsel %vm754_vm0, %v905_v49, 0.0  ;;  %v818_v60 = vsel %vm754_vm0, %v2160_v29, 0.0  ;;  %v909_v49 = vmul.f32 %v2168_v36, %v2168_v36 }
 0x18a   :  { %v815_v50 = vadd.f32 %v814_v41, %v813_v25  ;;  %v991_v6 = vadd.f32 %v990_v20, %v989_v21  ;;  %v996_v26 = vsel %vm754_vm0, %v908_v24, 0.0  ;;  %v820_v41 = vsel %vm754_vm0, %v2168_v36, 0.0 }
 0x18b   :  { %v910_v20 = vmul.f32 %v2178_v47, %v2178_v47  ;;  %v998_v42 = vsel %vm754_vm0, %v909_v49, 0.0 }
 0x18c   :  { %v817_v27 = vadd.f32 %v816_v10, %v815_v50  ;;  %v993_v58 = vadd.f32 %v992_v57, %v991_v6  ;;  %v822_v6 = vsel %vm754_vm0, %v2178_v47, 0.0  ;;  %v911_v57 = vmul.f32 %v2186_v54, %v2186_v54 }
 0x18d   :  { %v1000_v24 = vsel %vm754_vm0, %v910_v20, 0.0 }
 0x18e   :  { %v819_v25 = vadd.f32 %v818_v60, %v817_v27  ;;  %v995_v21 = vadd.f32 %v994_v40, %v993_v58  ;;  %v824_v40 = vsel %vm754_vm0, %v2186_v54, 0.0  ;;  %v912_v60 = vmul.f32 %v2196_v1, %v2196_v1 }
 0x18f   :  { %v1002_v49 = vsel %vm754_vm0, %v911_v57, 0.0 }
 0x190   :  { %v821_v10 = vadd.f32 %v820_v41, %v819_v25  ;;  %v997_v50 = vadd.f32 %v996_v26, %v995_v21  ;;  %v826_v26 = vsel %vm754_vm0, %v2196_v1, 0.0  ;;  %v913_v41 = vmul.f32 %v2204_v8, %v2204_v8 }
 0x191   :  { %v1004_v20 = vsel %vm754_vm0, %v912_v60, 0.0 }
 0x192   :  { %v823_v27 = vadd.f32 %v822_v6, %v821_v10  ;;  %v999_v58 = vadd.f32 %v998_v42, %v997_v50  ;;  %v828_v42 = vsel %vm754_vm0, %v2204_v8, 0.0  ;;  %v914_v6 = vmul.f32 %v2214_v23, %v2214_v23 }
 0x193   :  { %v1006_v57 = vsel %vm754_vm0, %v913_v41, 0.0 }
 0x194   :  { %v825_v25 = vadd.f32 %v824_v40, %v823_v27  ;;  %v1001_v21 = vadd.f32 %v1000_v24, %v999_v58  ;;  %v830_v24 = vsel %vm754_vm0, %v2214_v23, 0.0  ;;  %v915_v40 = vmul.f32 %v2222_v32, %v2222_v32 }
 0x195   :  { %v1008_v60 = vsel %vm754_vm0, %v914_v6, 0.0 }
 0x196   :  { %v827_v10 = vadd.f32 %v826_v26, %v825_v25  ;;  %v1003_v50 = vadd.f32 %v1002_v49, %v1001_v21  ;;  %v832_v49 = vsel %vm754_vm0, %v2222_v32, 0.0  ;;  %v916_v26 = vmul.f32 %v2232_v45, %v2232_v45 }
 0x197   :  { %v1010_v41 = vsel %vm754_vm0, %v915_v40, 0.0 }
 0x198   :  { %v1005_v27 = vadd.f32 %v1004_v20, %v1003_v50  ;;  %v829_v58 = vadd.f32 %v828_v42, %v827_v10  ;;  %v834_v20 = vsel %vm754_vm0, %v2232_v45, 0.0  ;;  %v917_v42 = vmul.f32 %v2240_v56, %v2240_v56 }
 0x199   :  { %v1012_v6 = vsel %vm754_vm0, %v916_v26, 0.0 }
 0x19a   :  { %v831_v25 = vadd.f32 %v830_v24, %v829_v58  ;;  %v1007_v21 = vadd.f32 %v1006_v57, %v1005_v27  ;;  %v836_v57 = vsel %vm754_vm0, %v2240_v56, 0.0  ;;  %v918_v24 = vmul.f32 %v2250_v5, %v2250_v5 }
 0x19b   :  { %v1014_v40 = vsel %vm754_vm0, %v917_v42, 0.0 }
 0x19c   :  { %v833_v50 = vadd.f32 %v832_v49, %v831_v25  ;;  %v1009_v10 = vadd.f32 %v1008_v60, %v1007_v21  ;;  %v838_v60 = vsel %vm754_vm0, %v2250_v5, 0.0  ;;  %v919_v49 = vmul.f32 %v2258_v16, %v2258_v16 }
 0x19d   :  { %v1016_v26 = vsel %vm754_vm0, %v918_v24, 0.0 }
 0x19e   :  { %v835_v58 = vadd.f32 %v834_v20, %v833_v50  ;;  %v1011_v27 = vadd.f32 %v1010_v41, %v1009_v10  ;;  %v840_v41 = vsel %vm754_vm0, %v2258_v16, 0.0  ;;  %v920_v20 = vmul.f32 %v2268_v37, %v2268_v37 }
 0x19f   :  { %v1018_v42 = vsel %vm754_vm0, %v919_v49, 0.0 }
 0x1a0   :  { %v837_v25 = vadd.f32 %v836_v57, %v835_v58  ;;  %v1013_v21 = vadd.f32 %v1012_v6, %v1011_v27  ;;  %v842_v6 = vsel %vm754_vm0, %v2268_v37, 0.0  ;;  %v921_v57 = vmul.f32 %v2276_v48, %v2276_v48 }
 0x1a1   :  { %v1020_v24 = vsel %vm754_vm0, %v920_v20, 0.0 }
 0x1a2   :  { %v839_v50 = vadd.f32 %v838_v60, %v837_v25  ;;  %v1015_v10 = vadd.f32 %v1014_v40, %v1013_v21  ;;  %v844_v40 = vsel %vm754_vm0, %v2276_v48, 0.0  ;;  %v922_v60 = vmul.f32 %v2286_v63, %v2286_v63 }
 0x1a3   :  { %v1022_v49 = vsel %vm754_vm0, %v921_v57, 0.0 }
 0x1a4   :  { %v841_v58 = vadd.f32 %v840_v41, %v839_v50  ;;  %v1017_v27 = vadd.f32 %v1016_v26, %v1015_v10  ;;  %v846_v26 = vsel %vm754_vm0, %v2286_v63, 0.0  ;;  %v923_v41 = vmul.f32 %v2294_v14, %v2294_v14 }
 0x1a5   :  { %v1024_v20 = vsel %vm754_vm0, %v922_v60, 0.0 }
 0x1a6   :  { %v843_v25 = vadd.f32 %v842_v6, %v841_v58  ;;  %v1019_v21 = vadd.f32 %v1018_v42, %v1017_v27  ;;  %v848_v42 = vsel %vm754_vm0, %v2294_v14, 0.0  ;;  %v924_v6 = vmul.f32 %v2304_v39, %v2304_v39 }
 0x1a7   :  { %v1026_v57 = vsel %vm754_vm0, %v923_v41, 0.0 }
 0x1a8   :  { %v1021_v50 = vadd.f32 %v1020_v24, %v1019_v21  ;;  %v845_v10 = vadd.f32 %v844_v40, %v843_v25  ;;  %v850_v24 = vsel %vm754_vm0, %v2304_v39, 0.0  ;;  %v925_v40 = vmul.f32 %v2312_v52, %v2312_v52 }
 0x1a9   :  { %v1028_v60 = vsel %vm754_vm0, %v924_v6, 0.0 }
 0x1aa   :  { %v1023_v58 = vadd.f32 %v1022_v49, %v1021_v50  ;;  %v847_v27 = vadd.f32 %v846_v26, %v845_v10  ;;  %v852_v49 = vsel %vm754_vm0, %v2312_v52, 0.0  ;;  %v926_v26 = vmul.f32 %v2322_v19, %v2322_v19 }
 0x1ab   :  { %v1030_v41 = vsel %vm754_vm0, %v925_v40, 0.0 }
 0x1ac   :  { %v1025_v21 = vadd.f32 %v1024_v20, %v1023_v58  ;;  %v849_v25 = vadd.f32 %v848_v42, %v847_v27  ;;  %v854_v20 = vsel %vm754_vm0, %v2322_v19, 0.0  ;;  %v927_v42 = vmul.f32 %v2330_v30, %v2330_v30 }
 0x1ad   :  { %v1032_v6 = vsel %vm754_vm0, %v926_v26, 0.0 }
 0x1ae   :  { %v1027_v50 = vadd.f32 %v1026_v57, %v1025_v21  ;;  %v851_v10 = vadd.f32 %v850_v24, %v849_v25  ;;  %v856_v57 = vsel %vm754_vm0, %v2330_v30, 0.0  ;;  %v928_v24 = vmul.f32 %v2340_v61, %v2340_v61 }
 0x1af   :  { %v1034_v40 = vsel %vm754_vm0, %v927_v42, 0.0 }
 0x1b0   :  { %v1029_v58 = vadd.f32 %v1028_v60, %v1027_v50  ;;  %v853_v27 = vadd.f32 %v852_v49, %v851_v10  ;;  %v858_v60 = vsel %vm754_vm0, %v2340_v61, 0.0  ;;  %v929_v49 = vmul.f32 %v2348_v9, %v2348_v9 }
 0x1b1   :  { %v1036_v26 = vsel %vm754_vm0, %v928_v24, 0.0  ;;  %v932_v24 = vmul.f32 %v2376_v3, %v2376_v3 }
 0x1b2   :  { %v1031_v21 = vadd.f32 %v1030_v41, %v1029_v58  ;;  %v855_v25 = vadd.f32 %v854_v20, %v853_v27  ;;  %v860_v41 = vsel %vm754_vm0, %v2348_v9, 0.0  ;;  %v930_v20 = vmul.f32 %v2358_v2, %v2358_v2 }
 0x1b3   :  { %v1038_v42 = vsel %vm754_vm0, %v929_v49, 0.0 }
 0x1b4   :  { %v1033_v50 = vadd.f32 %v1032_v6, %v1031_v21  ;;  %v857_v10 = vadd.f32 %v856_v57, %v855_v25  ;;  %v862_v6 = vsel %vm754_vm0, %v2358_v2, 0.0  ;;  %v931_v57 = vmul.f32 %v2366_v59, %v2366_v59 }
 0x1b6   :  { %v1035_v58 = vadd.f32 %v1034_v40, %v1033_v50  ;;  %v859_v27 = vadd.f32 %v858_v60, %v857_v10  ;;  %v1040_v40 = vsel %vm754_vm0, %v930_v20, 0.0  ;;  %v864_v60 = vsel %vm754_vm0, %v2366_v59, 0.0 }
 0x1b8   :  { %v1037_v21 = vadd.f32 %v1036_v26, %v1035_v58  ;;  %v861_v25 = vadd.f32 %v860_v41, %v859_v27  ;;  %v867_v58 = vsel %vm866_vm1, %v2376_v3, 0.0  ;;  %v1042_v26 = vsel %vm754_vm0, %v931_v57, 0.0 }
 0x1b9   :  { %v1044_v41 = vsel %vm866_vm1, %v932_v24, 0.0 }
 0x1ba   :  { %v1039_v50 = vadd.f32 %v1038_v42, %v1037_v21  ;;  %v863_v10 = vadd.f32 %v862_v6, %v861_v25 }
 0x1bc   :  { %v1041_v27 = vadd.f32 %v1040_v40, %v1039_v50  ;;  %v865_v49 = vadd.f32 %v864_v60, %v863_v10 }
 0x1be   :  { %v1043_v2 = vadd.f32 %v1042_v26, %v1041_v27  ;;  %v868_v9 = vadd.f32 %v867_v58, %v865_v49  ;;  %v1064_v58 = vlaneseq }
 0x1c0   :  { %v869_v61 = vrot.slane %v868_v9, 4  ;;  %v1045_v30 = vadd.f32 %v1044_v41, %v1043_v2  ;;  %v2537_v2 = vshrl.u32 %v1064_v58, 7  ;;  %v3195_v58 = vld [vmem:[#allocation16_spill] sm:$0xff] }
 0x1c2   :  { %v870_v19 = vadd.f32 %v869_v61, %v868_v9  ;;  %v1046_v52 = vrot.slane %v1045_v30, 4  ;;  %3188 = vst [vmem:[#allocation21_spill] sm:$0xff] %v2537_v2 }
 0x1c4   :  { %v871_v21 = vrot.slane %v870_v19, 2  ;;  %v1047_v25 = vadd.f32 %v1046_v52, %v1045_v30  ;;  %v1056_v52 = vld [vmem:[%s3137_s2] sm:$0x1] }
 0x1c6   :  { %v872_v42 = vadd.f32 %v871_v21, %v870_v19  ;;  %v1048_v20 = vrot.slane %v1047_v25, 2  ;;  %v3159_v19 = vsub.s32 0, %v2537_v2  ;;  %v3202_v2 = vld [vmem:[#allocation9_spill] sm:$0xff] }
 0x1c8   :  { %v873_v6 = vrot.slane %v872_v42, 1  ;;  %v1049_v39 = vadd.f32 %v1048_v20, %v1047_v25 }
 0x1ca   :  { %v874_v59 = vadd.f32 %v873_v6, %v872_v42  ;;  %v1050_v14 = vrot.slane %v1049_v39, 1 }
 0x1cc   :  { %v875_v3 = vmul.f32 0.0022222223, %v874_v59  ;;  %v1051_v50 = vadd.f32 %v1050_v14, %v1049_v39  ;;  %v1060_v14 = vld [vmem:[%s3138_s3] sm:$0x1] }
 0x1ce   :  { %v1052_v10 = vmul.f32 0.0022222223, %v1051_v50  ;;  %v1053_v40 = vmul.f32 %v875_v3, %v875_v3  ;;  %v3189_v50 = vld [vmem:[#allocation4_spill] sm:$0xff] }
 0x1d0   :  { %v1054_v57 = vsub.f32 %v1052_v10, %v1053_v40  ;;  %v3190_v10 = vld [vmem:[#allocation6_spill] sm:$0xff]  ;;  %v3191_v40 = vld [vmem:[#allocation8_spill] sm:$0xff] }
 0x1d2   :  { %v1055_v24 = vmax.f32 %v1054_v57, 0.0  ;;  %v3192_v57 = vld [vmem:[#allocation10_spill] sm:$0xff] }
 0x1d4   :  { %v1057_v60 = vadd.f32 0.001, %v1055_v24  ;;  %v3193_v24 = vld [vmem:[#allocation12_spill] sm:$0xff] }
 0x1d6   :  { %1861 = vrsqrt.f32 %v1057_v60  ;;  %v3194_v60 = vld [vmem:[#allocation14_spill] sm:$0xff] }
 0x1e0   :  { %v1862_v30 = vpop.eup %1861 }
 0x1e1   :  { %v1059_v61 = vmul.f32 %v1862_v30, %v1056_v52  ;;  %v3196_v52 = vld [vmem:[#allocation18_spill] sm:$0xff]  ;;  %v3197_v30 = vld [vmem:[#allocation20_spill] sm:$0xff] }
 0x1e3   :  { %v1061_v39 = vmul.f32 %v1059_v61, %v875_v3  ;;  %v1067_v9 = vrot.slane %v1059_v61, %v3159_v19  ;;  %v3201_v19 = vld [vmem:[#allocation7_spill] sm:$0xff] }
 0x1e5   :  { %v1062_v59 = vsub.f32 %v1060_v14, %v1061_v39  ;;  %v1069_v27 = vmul.f32 %v1067_v9, %v2140_v12  ;;  %v1070_v49 = vmul.f32 %v1067_v9, %v2146_v17  ;;  %v1071_v26 = vmul.f32 %v1067_v9, %v2158_v28 }
 0x1e6   :  { %v1072_v41 = vmul.f32 %v1067_v9, %v2166_v35  ;;  %v1073_v21 = vmul.f32 %v1067_v9, %v2176_v46  ;;  %v1074_v25 = vmul.f32 %v1067_v9, %v2184_v53  ;;  %v1075_v42 = vmul.f32 %v1067_v9, %v2194_v0 }
 0x1e7   :  { %v1076_v3 = vmul.f32 %v1067_v9, %v2202_v7  ;;  %v1077_v20 = vmul.f32 %v1067_v9, %v2212_v22  ;;  %v1078_v6 = vmul.f32 %v1067_v9, %v2220_v31  ;;  %v1079_v12 = vmul.f32 %v1067_v9, %v2230_v44 }
 0x1e8   :  { %v1080_v17 = vmul.f32 %v1067_v9, %v2238_v55  ;;  %v1081_v28 = vmul.f32 %v1067_v9, %v2248_v4  ;;  %v1082_v35 = vmul.f32 %v1067_v9, %v2256_v15  ;;  %v1083_v46 = vmul.f32 %v1067_v9, %v2266_v34 }
 0x1e9   :  { %v1084_v53 = vmul.f32 %v1067_v9, %v2274_v43  ;;  %v1085_v0 = vmul.f32 %v1067_v9, %v2284_v62  ;;  %v1086_v7 = vmul.f32 %v1067_v9, %v2292_v11  ;;  %v1087_v22 = vmul.f32 %v1067_v9, %v2302_v38 }
 0x1ea   :  { %v1088_v31 = vmul.f32 %v1067_v9, %v3189_v50  ;;  %v1089_v44 = vmul.f32 %v1067_v9, %v3190_v10  ;;  %v1090_v55 = vmul.f32 %v1067_v9, %v3191_v40  ;;  %v1091_v4 = vmul.f32 %v1067_v9, %v3192_v57 }
 0x1eb   :  { %v1092_v15 = vmul.f32 %v1067_v9, %v3193_v24  ;;  %v1093_v34 = vmul.f32 %v1067_v9, %v3194_v60  ;;  %v1094_v43 = vmul.f32 %v1067_v9, %v3195_v58  ;;  %v1095_v62 = vmul.f32 %v1067_v9, %v3196_v52  ;;  %v3198_v58 = vld [vmem:[#allocation2_spill] sm:$0xff]  ;;  %v3199_v52 = vld [vmem:[#allocation3_spill] sm:$0xff] }
 0x1ec   :  { %v1096_v11 = vmul.f32 %v1067_v9, %v2382_v33  ;;  %v1097_v38 = vmul.f32 %v1067_v9, %v3197_v30  ;;  %v1098_v61 = vmul.f32 %v1067_v9, %v2396_v51  ;;  %v1099_v14 = vmul.f32 %v1067_v9, %v2142_v13  ;;  %v3200_v30 = vld [vmem:[#allocation5_spill] sm:$0xff] }
 0x1ed   :  { %v1100_v39 = vmul.f32 %v1067_v9, %v2148_v18  ;;  %v1101_v50 = vmul.f32 %v1067_v9, %v2160_v29  ;;  %v1102_v10 = vmul.f32 %v1067_v9, %v2168_v36  ;;  %v1103_v40 = vmul.f32 %v1067_v9, %v2178_v47 }
 0x1ee   :  { %v1104_v57 = vmul.f32 %v1067_v9, %v2186_v54  ;;  %v1105_v24 = vmul.f32 %v1067_v9, %v2196_v1  ;;  %v1106_v33 = vmul.f32 %v1067_v9, %v2204_v8  ;;  %v1107_v60 = vmul.f32 %v1067_v9, %v2214_v23 }
 0x1ef   :  { %v1108_v51 = vmul.f32 %v1067_v9, %v2222_v32  ;;  %v1109_v13 = vmul.f32 %v1067_v9, %v2232_v45  ;;  %v1110_v18 = vmul.f32 %v1067_v9, %v2240_v56  ;;  %v1111_v29 = vmul.f32 %v1067_v9, %v2250_v5  ;;  %v3203_v5 = vld [vmem:[#allocation11_spill] sm:$0xff] }
 0x1f0   :  { %v1112_v36 = vmul.f32 %v1067_v9, %v2258_v16  ;;  %v1113_v47 = vmul.f32 %v1067_v9, %v2268_v37  ;;  %v1114_v54 = vmul.f32 %v1067_v9, %v2276_v48  ;;  %v1115_v1 = vmul.f32 %v1067_v9, %v2286_v63  ;;  %v3204_v37 = vld [vmem:[#allocation13_spill] sm:$0xff]  ;;  %v3205_v63 = vld [vmem:[#allocation15_spill] sm:$0xff] }
 0x1f1   :  { %v1116_v8 = vmul.f32 %v1067_v9, %v3198_v58  ;;  %v1117_v23 = vmul.f32 %v1067_v9, %v3199_v52  ;;  %v1118_v32 = vmul.f32 %v1067_v9, %v3200_v30  ;;  %v1119_v45 = vmul.f32 %v1067_v9, %v3201_v19  ;;  %v3206_v52 = vld [vmem:[#allocation17_spill] sm:$0xff]  ;;  %v3207_v19 = vld [vmem:[#allocation19_spill] sm:$0xff] }
 0x1f2   :  { %v1120_v56 = vmul.f32 %v1067_v9, %v3202_v2  ;;  %v1121_v16 = vmul.f32 %v1067_v9, %v3203_v5  ;;  %v1122_v48 = vmul.f32 %v1067_v9, %v3204_v37  ;;  %v1123_v58 = vmul.f32 %v1067_v9, %v3205_v63  ;;  %v3208_v5 = vld [vmem:[#allocation21_spill] sm:$0xff] }
 0x1f3   :  { %v1124_v30 = vmul.f32 %v1067_v9, %v3206_v52  ;;  %v1125_v2 = vmul.f32 %v1067_v9, %v3207_v19  ;;  %v3209_v37 = vsub.s32 0, %v3208_v5 }
 0x1f5   :  { %v1130_v63 = vrot.slane %v1062_v59, %v3209_v37 }
 0x1f7   :  { %v2607_v52 = vadd.f32 %v1130_v63, %v1069_v27  ;;  %v2609_v9 = vadd.f32 %v1130_v63, %v1070_v49  ;;  %v2611_v19 = vadd.f32 %v1130_v63, %v1071_v26  ;;  %v2613_v5 = vadd.f32 %v1130_v63, %v1072_v41 }
 0x1f8   :  { %v2615_v37 = vadd.f32 %v1130_v63, %v1073_v21  ;;  %v2617_v59 = vadd.f32 %v1130_v63, %v1074_v25  ;;  %v2619_v27 = vadd.f32 %v1130_v63, %v1075_v42  ;;  %v2623_v49 = vadd.f32 %v1130_v63, %v1077_v20 }
 0x1f9   :  { %3210 = vst [vmem:[#allocation4_spill] sm:$0xff] %v2607_v52  ;;  %3211 = vst [vmem:[#allocation6_spill] sm:$0xff] %v2609_v9  ;;  %v2621_v52 = vadd.f32 %v1130_v63, %v1076_v3  ;;  %v2625_v9 = vadd.f32 %v1130_v63, %v1078_v6  ;;  %v2627_v26 = vadd.f32 %v1130_v63, %v1079_v12 }
 0x1fa   :  { %3212 = vst [vmem:[#allocation8_spill] sm:$0xff] %v2611_v19  ;;  %3213 = vst [vmem:[#allocation10_spill] sm:$0xff] %v2613_v5  ;;  %v2629_v19 = vadd.f32 %v1130_v63, %v1080_v17  ;;  %v2631_v41 = vadd.f32 %v1130_v63, %v1081_v28  ;;  %v2633_v5 = vadd.f32 %v1130_v63, %v1082_v35 }
 0x1fb   :  { %v2635_v21 = vadd.f32 %v1130_v63, %v1083_v46  ;;  %v2637_v25 = vadd.f32 %v1130_v63, %v1084_v53  ;;  %v2639_v42 = vadd.f32 %v1130_v63, %v1085_v0  ;;  %v2641_v3 = vadd.f32 %v1130_v63, %v1086_v7 }
 0x1fc   :  { %v2643_v20 = vadd.f32 %v1130_v63, %v1087_v22  ;;  %v2645_v6 = vadd.f32 %v1130_v63, %v1088_v31  ;;  %v2647_v12 = vadd.f32 %v1130_v63, %v1089_v44  ;;  %v2649_v17 = vadd.f32 %v1130_v63, %v1090_v55 }
 0x1fd   :  { %v2651_v28 = vadd.f32 %v1130_v63, %v1091_v4  ;;  %v2653_v35 = vadd.f32 %v1130_v63, %v1092_v15  ;;  %v2655_v46 = vadd.f32 %v1130_v63, %v1093_v34  ;;  %v2657_v53 = vadd.f32 %v1130_v63, %v1094_v43 }
 0x1fe   :  { %v2659_v0 = vadd.f32 %v1130_v63, %v1095_v62  ;;  %v2661_v7 = vadd.f32 %v1130_v63, %v1096_v11  ;;  %v2663_v22 = vadd.f32 %v1130_v63, %v1097_v38  ;;  %v2665_v31 = vadd.f32 %v1130_v63, %v1098_v61 }
 0x1ff   :  { %v2667_v44 = vadd.f32 %v1130_v63, %v1099_v14  ;;  %v2669_v55 = vadd.f32 %v1130_v63, %v1100_v39  ;;  %v2671_v4 = vadd.f32 %v1130_v63, %v1101_v50  ;;  %v2673_v15 = vadd.f32 %v1130_v63, %v1102_v10 }
 0x200   :  { %v2675_v34 = vadd.f32 %v1130_v63, %v1103_v40  ;;  %v2677_v43 = vadd.f32 %v1130_v63, %v1104_v57  ;;  %v2679_v62 = vadd.f32 %v1130_v63, %v1105_v24  ;;  %v2681_v11 = vadd.f32 %v1130_v63, %v1106_v33 }
 0x201   :  { %v2683_v38 = vadd.f32 %v1130_v63, %v1107_v60  ;;  %v2685_v61 = vadd.f32 %v1130_v63, %v1108_v51  ;;  %v2687_v14 = vadd.f32 %v1130_v63, %v1109_v13  ;;  %v2689_v39 = vadd.f32 %v1130_v63, %v1110_v18 }
 0x202   :  { %3214 = vst [vmem:[#allocation12_spill] sm:$0xff] %v2681_v11  ;;  %v2691_v50 = vadd.f32 %v1130_v63, %v1111_v29  ;;  %v2693_v10 = vadd.f32 %v1130_v63, %v1112_v36  ;;  %v2695_v40 = vadd.f32 %v1130_v63, %v1113_v47  ;;  %v2697_v57 = vadd.f32 %v1130_v63, %v1114_v54 }
 0x203   :  { %3215 = vst [vmem:[#allocation14_spill] sm:$0xff] %v2683_v38  ;;  %3216 = vst [vmem:[#allocation16_spill] sm:$0xff] %v2685_v61  ;;  %v2699_v24 = vadd.f32 %v1130_v63, %v1115_v1  ;;  %v2701_v33 = vadd.f32 %v1130_v63, %v1116_v8  ;;  %v2703_v60 = vadd.f32 %v1130_v63, %v1117_v23  ;;  %v3222_v8 = vld [vmem:[#allocation4_spill] sm:$0xff]  ;;  %v3223_v23 = vld [vmem:[#allocation6_spill] sm:$0xff] }
 0x204   :  { %v2705_v51 = vadd.f32 %v1130_v63, %v1118_v32  ;;  %v2707_v13 = vadd.f32 %v1130_v63, %v1119_v45  ;;  %v2709_v18 = vadd.f32 %v1130_v63, %v1120_v56  ;;  %v2711_v29 = vadd.f32 %v1130_v63, %v1121_v16  ;;  %v3224_v32 = vld [vmem:[#allocation8_spill] sm:$0xff]  ;;  %v3225_v45 = vld [vmem:[#allocation10_spill] sm:$0xff] }
 0x205   :  { %3217 = vst [vmem:[#allocation18_spill] sm:$0xff] %v2699_v24  ;;  %3218 = vst [vmem:[#allocation20_spill] sm:$0xff] %v2701_v33  ;;  %v2713_v36 = vadd.f32 %v1130_v63, %v1122_v48  ;;  %v2715_v47 = vadd.f32 %v1130_v63, %v1123_v58  ;;  %v2717_v54 = vadd.f32 %v1130_v63, %v1124_v30  ;;  %v1189_v33 = vmax.f32 %v3222_v8, 0.0 }
 0x206   :  { %3219 = vst [vmem:[#allocation2_spill] sm:$0xff] %v2703_v60  ;;  %3220 = vst [vmem:[#allocation3_spill] sm:$0xff] %v2705_v51  ;;  %v2719_v1 = vadd.f32 %v1130_v63, %v1125_v2  ;;  %v1190_v60 = vmax.f32 %v3223_v23, 0.0  ;;  %v1191_v51 = vmax.f32 %v3224_v32, 0.0  ;;  %v1193_v56 = vmax.f32 %v2615_v37, 0.0 }
 0x207   :  { %3221 = vst [vmem:[#allocation5_spill] sm:$0xff] %v2707_v13  ;;  %v1192_v13 = vmax.f32 %v3225_v45, 0.0  ;;  %v1194_v16 = vmax.f32 %v2617_v59, 0.0  ;;  %v1195_v48 = vmax.f32 %v2619_v27, 0.0  ;;  %v1196_v58 = vmax.f32 %v2621_v52, 0.0 }
 0x208   :  { %v1197_v30 = vmax.f32 %v2623_v49, 0.0  ;;  %v1198_v2 = vmax.f32 %v2625_v9, 0.0  ;;  %v1199_v63 = vmax.f32 %v2627_v26, 0.0  ;;  %v1200_v8 = vmax.f32 %v2629_v19, 0.0 }
 0x209   :  { %v1201_v23 = vmax.f32 %v2631_v41, 0.0  ;;  %v1202_v32 = vmax.f32 %v2633_v5, 0.0  ;;  %v1241_v41 = vmax.f32 %v2711_v29, 0.0  ;;  %v1242_v5 = vmax.f32 %v2713_v36, 0.0 }
 0x20a   :  { %v1243_v45 = vmax.f32 %v2715_v47, 0.0  ;;  %v1244_v59 = vmax.f32 %v2717_v54, 0.0  ;;  %v1245_v27 = vmax.f32 %v2719_v1, 0.0  ;;  %v1669_v24 = vpack.c.bf16 %v1189_v33, %v1189_v33 }
 0x20b   :  { %v1670_v52 = vpack.c.bf16 %v1190_v60, %v1190_v60  ;;  %v1671_v37 = vpack.c.bf16 %v1191_v51, %v1191_v51  ;;  %v1672_v49 = vpack.c.bf16 %v1192_v13, %v1192_v13  ;;  %v1673_v11 = vpack.c.bf16 %v1193_v56, %v1193_v56 }
 0x20c   :  { %v1674_v9 = vpack.c.bf16 %v1194_v16, %v1194_v16  ;;  %v1675_v38 = vpack.c.bf16 %v1195_v48, %v1195_v48  ;;  %v1676_v26 = vpack.c.bf16 %v1196_v58, %v1196_v58  ;;  %v1677_v61 = vpack.c.bf16 %v1197_v30, %v1197_v30  ;;  %1476 = vst.msk [vmem:[%s3139_s4] sm:$0xf] %vm1475_vm2, %v1669_v24 }
 0x20d   :  { %v1678_v19 = vpack.c.bf16 %v1198_v2, %v1198_v2  ;;  %1477 = vst.msk [vmem:[%s3139_s4 + $0x4] sm:$0xf] %vm1475_vm2, %v1670_v52  ;;  %v1679_v33 = vpack.c.bf16 %v1199_v63, %v1199_v63  ;;  %v1680_v60 = vpack.c.bf16 %v1200_v8, %v1200_v8  ;;  %v1681_v51 = vpack.c.bf16 %v1201_v23, %v1201_v23 }
 0x20e   :  { %v1682_v13 = vpack.c.bf16 %v1202_v32, %v1202_v32  ;;  %1478 = vst.msk [vmem:[%s3139_s4 + $0x8] sm:$0xf] %vm1475_vm2, %v1671_v37  ;;  %1479 = vst.msk [vmem:[%s3139_s4 + $0xc] sm:$0xf] %vm1475_vm2, %v1672_v49  ;;  %v3230_v24 = vmax.f32 %v2635_v21, 0.0  ;;  %v3231_v16 = vmax.f32 %v2637_v25, 0.0  ;;  %v1724_v29 = vpack.c.bf16 %v1244_v59, %v1244_v59 }
 0x20f   :  { %1480 = vst.msk [vmem:[%s3139_s4 + $0x10] sm:$0xf] %vm1475_vm2, %v1673_v11  ;;  %1481 = vst.msk [vmem:[%s3139_s4 + $0x14] sm:$0xf] %vm1475_vm2, %v1674_v9  ;;  %v3232_v58 = vmax.f32 %v2639_v42, 0.0  ;;  %v3233_v2 = vmax.f32 %v2641_v3, 0.0  ;;  %v1725_v36 = vpack.c.bf16 %v1245_v27, %v1245_v27 }
 0x210   :  { %v1683_v56 = vpack.c.bf16 %v3230_v24, %v3230_v24  ;;  %v1684_v48 = vpack.c.bf16 %v3231_v16, %v3231_v16  ;;  %1482 = vst.msk [vmem:[%s3139_s4 + $0x18] sm:$0xf] %vm1475_vm2, %v1675_v38  ;;  %1483 = vst.msk [vmem:[%s3139_s4 + $0x1c] sm:$0xf] %vm1475_vm2, %v1676_v26  ;;  %v3234_v21 = vmax.f32 %v2643_v20, 0.0  ;;  %v3235_v42 = vmax.f32 %v2645_v6, 0.0 }
 0x211   :  { %v1685_v30 = vpack.c.bf16 %v3232_v58, %v3232_v58  ;;  %v1686_v11 = vpack.c.bf16 %v3233_v2, %v3233_v2  ;;  %1484 = vst.msk [vmem:[%s3139_s4 + $0x20] sm:$0xf] %vm1475_vm2, %v1677_v61  ;;  %1485 = vst.msk [vmem:[%s3139_s4 + $0x24] sm:$0xf] %vm1475_vm2, %v1678_v19  ;;  %v3236_v38 = vmax.f32 %v2647_v12, 0.0  ;;  %v3237_v8 = vmax.f32 %v2649_v17, 0.0 }
 0x212   :  { %v1687_v25 = vpack.c.bf16 %v3234_v21, %v3234_v21  ;;  %v1688_v3 = vpack.c.bf16 %v3235_v42, %v3235_v42  ;;  %1486 = vst.msk [vmem:[%s3139_s4 + $0x28] sm:$0xf] %vm1475_vm2, %v1679_v33  ;;  %1487 = vst.msk [vmem:[%s3139_s4 + $0x2c] sm:$0xf] %vm1475_vm2, %v1680_v60  ;;  %v3238_v20 = vmax.f32 %v2651_v28, 0.0  ;;  %v3239_v12 = vmax.f32 %v2653_v35, 0.0 }
 0x213   :  { %v1689_v63 = vpack.c.bf16 %v3236_v38, %v3236_v38  ;;  %v1690_v61 = vpack.c.bf16 %v3237_v8, %v3237_v8  ;;  %1488 = vst.msk [vmem:[%s3139_s4 + $0x30] sm:$0xf] %vm1475_vm2, %v1681_v51  ;;  %1489 = vst.msk [vmem:[%s3139_s4 + $0x34] sm:$0xf] %vm1475_vm2, %v1682_v13  ;;  %v3240_v23 = vmax.f32 %v2655_v46, 0.0  ;;  %v3241_v37 = vmax.f32 %v2657_v53, 0.0 }
 0x214   :  { %v1691_v6 = vpack.c.bf16 %v3238_v20, %v3238_v20  ;;  %v1692_v17 = vpack.c.bf16 %v3239_v12, %v3239_v12  ;;  %1490 = vst.msk [vmem:[%s3139_s4 + $0x38] sm:$0xf] %vm1475_vm2, %v1683_v56  ;;  %1491 = vst.msk [vmem:[%s3139_s4 + $0x3c] sm:$0xf] %vm1475_vm2, %v1684_v48  ;;  %v3242_v28 = vmax.f32 %v2659_v0, 0.0  ;;  %v3243_v46 = vmax.f32 %v2661_v7, 0.0 }
 0x215   :  { %v1693_v32 = vpack.c.bf16 %v3240_v23, %v3240_v23  ;;  %v1694_v52 = vpack.c.bf16 %v3241_v37, %v3241_v37  ;;  %1492 = vst.msk [vmem:[%s3139_s4 + $0x40] sm:$0xf] %vm1475_vm2, %v1685_v30  ;;  %1493 = vst.msk [vmem:[%s3139_s4 + $0x44] sm:$0xf] %vm1475_vm2, %v1686_v11  ;;  %v3244_v49 = vmax.f32 %v2663_v22, 0.0  ;;  %v3245_v26 = vmax.f32 %v2665_v31, 0.0 }
 0x216   :  { %v1695_v35 = vpack.c.bf16 %v3242_v28, %v3242_v28  ;;  %v1696_v53 = vpack.c.bf16 %v3243_v46, %v3243_v46  ;;  %1494 = vst.msk [vmem:[%s3139_s4 + $0x48] sm:$0xf] %vm1475_vm2, %v1687_v25  ;;  %1495 = vst.msk [vmem:[%s3139_s4 + $0x4c] sm:$0xf] %vm1475_vm2, %v1688_v3  ;;  %v3246_v0 = vmax.f32 %v2667_v44, 0.0  ;;  %v3247_v22 = vmax.f32 %v2669_v55, 0.0 }
 0x217   :  { %v1697_v9 = vpack.c.bf16 %v3244_v49, %v3244_v49  ;;  %v1698_v19 = vpack.c.bf16 %v3245_v26, %v3245_v26  ;;  %1496 = vst.msk [vmem:[%s3139_s4 + $0x50] sm:$0xf] %vm1475_vm2, %v1689_v63  ;;  %1497 = vst.msk [vmem:[%s3139_s4 + $0x54] sm:$0xf] %vm1475_vm2, %v1690_v61  ;;  %v3248_v33 = vmax.f32 %v2671_v4, 0.0  ;;  %v3249_v51 = vmax.f32 %v2673_v15, 0.0 }
 0x218   :  { %v1699_v7 = vpack.c.bf16 %v3246_v0, %v3246_v0  ;;  %v1700_v31 = vpack.c.bf16 %v3247_v22, %v3247_v22  ;;  %1498 = vst.msk [vmem:[%s3139_s4 + $0x58] sm:$0xf] %vm1475_vm2, %v1691_v6  ;;  %1499 = vst.msk [vmem:[%s3139_s4 + $0x5c] sm:$0xf] %vm1475_vm2, %v1692_v17  ;;  %v3250_v44 = vmax.f32 %v2675_v34, 0.0  ;;  %v3251_v4 = vmax.f32 %v2677_v43, 0.0 }
 0x219   :  { %v1701_v60 = vpack.c.bf16 %v3248_v33, %v3248_v33  ;;  %v1702_v13 = vpack.c.bf16 %v3249_v51, %v3249_v51  ;;  %1500 = vst.msk [vmem:[%s3139_s4 + $0x60] sm:$0xf] %vm1475_vm2, %v1693_v32  ;;  %1501 = vst.msk [vmem:[%s3139_s4 + $0x64] sm:$0xf] %vm1475_vm2, %v1694_v52  ;;  %v3252_v24 = vmax.f32 %v2679_v62, 0.0  ;;  %v3253_v16 = vld [vmem:[#allocation12_spill] sm:$0xff]  ;;  %v1722_v0 = vpack.c.bf16 %v1242_v5, %v1242_v5 }
 0x21a   :  { %v1703_v55 = vpack.c.bf16 %v3250_v44, %v3250_v44  ;;  %v1704_v15 = vpack.c.bf16 %v3251_v4, %v3251_v4  ;;  %v3254_v48 = vmax.f32 %v3253_v16, 0.0  ;;  %1502 = vst.msk [vmem:[%s3139_s4 + $0x68] sm:$0xf] %vm1475_vm2, %v1695_v35  ;;  %1503 = vst.msk [vmem:[%s3139_s4 + $0x6c] sm:$0xf] %vm1475_vm2, %v1696_v53  ;;  %v3255_v34 = vld [vmem:[#allocation14_spill] sm:$0xff] }
 0x21b   :  { %v1705_v56 = vpack.c.bf16 %v3252_v24, %v3252_v24  ;;  %1504 = vst.msk [vmem:[%s3139_s4 + $0x70] sm:$0xf] %vm1475_vm2, %v1697_v9  ;;  %1505 = vst.msk [vmem:[%s3139_s4 + $0x74] sm:$0xf] %vm1475_vm2, %v1698_v19  ;;  %v3256_v43 = vmax.f32 %v3255_v34, 0.0  ;;  %v3257_v30 = vld [vmem:[#allocation16_spill] sm:$0xff]  ;;  %v1721_v19 = vpack.c.bf16 %v1241_v41, %v1241_v41 }
 0x21c   :  { %v1706_v58 = vpack.c.bf16 %v3254_v48, %v3254_v48  ;;  %v3258_v2 = vmax.f32 %v3257_v30, 0.0  ;;  %v3259_v21 = vmax.f32 %v2687_v14, 0.0  ;;  %v3260_v42 = vmax.f32 %v2689_v39, 0.0  ;;  %1506 = vst.msk [vmem:[%s3139_s4 + $0x78] sm:$0xf] %vm1475_vm2, %v1699_v7  ;;  %v3269_v23 = vld [vmem:[#allocation2_spill] sm:$0xff] }
 0x21d   :  { %v1707_v62 = vpack.c.bf16 %v3256_v43, %v3256_v43  ;;  %1507 = vst.msk [vmem:[%s3139_s4 + $0x7c] sm:$0xf] %vm1475_vm2, %v1700_v31  ;;  %1508 = vst.msk [vmem:[%s3139_s4 + $0x80] sm:$0xf] %vm1475_vm2, %v1701_v60  ;;  %v3261_v14 = vmax.f32 %v2691_v50, 0.0  ;;  %v3262_v38 = vmax.f32 %v2693_v10, 0.0 }
 0x21e   :  { %v1708_v11 = vpack.c.bf16 %v3258_v2, %v3258_v2  ;;  %v1709_v25 = vpack.c.bf16 %v3259_v21, %v3259_v21  ;;  %v1710_v3 = vpack.c.bf16 %v3260_v42, %v3260_v42  ;;  %1509 = vst.msk [vmem:[%s3139_s4 + $0x84] sm:$0xf] %vm1475_vm2, %v1702_v13  ;;  %v3263_v8 = vmax.f32 %v2695_v40, 0.0  ;;  %1510 = vst.msk [vmem:[%s3139_s4 + $0x88] sm:$0xf] %vm1475_vm2, %v1703_v55  ;;  %v3265_v50 = vld [vmem:[#allocation18_spill] sm:$0xff] }
 0x21f   :  { %v1711_v39 = vpack.c.bf16 %v3261_v14, %v3261_v14  ;;  %v1712_v63 = vpack.c.bf16 %v3262_v38, %v3262_v38  ;;  %v3264_v20 = vmax.f32 %v2697_v57, 0.0  ;;  %1511 = vst.msk [vmem:[%s3139_s4 + $0x8c] sm:$0xf] %vm1475_vm2, %v1704_v15  ;;  %1512 = vst.msk [vmem:[%s3139_s4 + $0x90] sm:$0xf] %vm1475_vm2, %v1705_v56  ;;  %v3266_v10 = vmax.f32 %v3265_v50, 0.0 }
 0x220   :  { %v1713_v61 = vpack.c.bf16 %v3263_v8, %v3263_v8  ;;  %1513 = vst.msk [vmem:[%s3139_s4 + $0x94] sm:$0xf] %vm1475_vm2, %v1706_v58  ;;  %v3267_v57 = vld [vmem:[#allocation20_spill] sm:$0xff]  ;;  %v3270_v32 = vmax.f32 %v3269_v23, 0.0  ;;  %v3271_v52 = vld [vmem:[#allocation3_spill] sm:$0xff]  ;;  %v3273_v46 = vld [vmem:[#allocation5_spill] sm:$0xff] }
 0x221   :  { %v1714_v6 = vpack.c.bf16 %v3264_v20, %v3264_v20  ;;  %v1715_v40 = vpack.c.bf16 %v3266_v10, %v3266_v10  ;;  %v3268_v12 = vmax.f32 %v3267_v57, 0.0  ;;  %v3272_v28 = vmax.f32 %v3271_v52, 0.0  ;;  %1514 = vst.msk [vmem:[%s3139_s4 + $0x98] sm:$0xf] %vm1475_vm2, %v1707_v62  ;;  %1515 = vst.msk [vmem:[%s3139_s4 + $0x9c] sm:$0xf] %vm1475_vm2, %v1708_v11 }
 0x222   :  { %v1717_v37 = vpack.c.bf16 %v3270_v32, %v3270_v32  ;;  %1516 = vst.msk [vmem:[%s3139_s4 + $0xa0] sm:$0xf] %vm1475_vm2, %v1709_v25  ;;  %1517 = vst.msk [vmem:[%s3139_s4 + $0xa4] sm:$0xf] %vm1475_vm2, %v1710_v3  ;;  %v3274_v53 = vmax.f32 %v3273_v46, 0.0  ;;  %v3275_v9 = vmax.f32 %v2709_v18, 0.0  ;;  %v1723_v18 = vpack.c.bf16 %v1243_v45, %v1243_v45 }
 0x223   :  { %v1716_v17 = vpack.c.bf16 %v3268_v12, %v3268_v12  ;;  %v1718_v35 = vpack.c.bf16 %v3272_v28, %v3272_v28  ;;  %1518 = vst.msk [vmem:[%s3139_s4 + $0xa8] sm:$0xf] %vm1475_vm2, %v1711_v39  ;;  %1519 = vst.msk [vmem:[%s3139_s4 + $0xac] sm:$0xf] %vm1475_vm2, %v1712_v63 }
 0x224   :  { %v1719_v49 = vpack.c.bf16 %v3274_v53, %v3274_v53  ;;  %v1720_v26 = vpack.c.bf16 %v3275_v9, %v3275_v9  ;;  %1520 = vst.msk [vmem:[%s3139_s4 + $0xb0] sm:$0xf] %vm1475_vm2, %v1713_v61  ;;  %1521 = vst.msk [vmem:[%s3139_s4 + $0xb4] sm:$0xf] %vm1475_vm2, %v1714_v6 }
 0x225   :  { %1522 = vst.msk [vmem:[%s3139_s4 + $0xb8] sm:$0xf] %vm1475_vm2, %v1715_v40  ;;  %1523 = vst.msk [vmem:[%s3139_s4 + $0xbc] sm:$0xf] %vm1475_vm2, %v1716_v17 }
 0x226   :  { %1524 = vst.msk [vmem:[%s3139_s4 + $0xc0] sm:$0xf] %vm1475_vm2, %v1717_v37  ;;  %1525 = vst.msk [vmem:[%s3139_s4 + $0xc4] sm:$0xf] %vm1475_vm2, %v1718_v35 }
 0x227   :  { %1526 = vst.msk [vmem:[%s3139_s4 + $0xc8] sm:$0xf] %vm1475_vm2, %v1719_v49  ;;  %1527 = vst.msk [vmem:[%s3139_s4 + $0xcc] sm:$0xf] %vm1475_vm2, %v1720_v26 }
 0x228   :  { %1528 = vst.msk [vmem:[%s3139_s4 + $0xd0] sm:$0xf] %vm1475_vm2, %v1721_v19  ;;  %1529 = vst.msk [vmem:[%s3139_s4 + $0xd4] sm:$0xf] %vm1475_vm2, %v1722_v0 }
 0x229   :  { %1530 = vst.msk [vmem:[%s3139_s4 + $0xd8] sm:$0xf] %vm1475_vm2, %v1723_v18  ;;  %1531 = vst.msk [vmem:[%s3139_s4 + $0xdc] sm:$0xf] %vm1475_vm2, %v1724_v29 }
 0x22a   :  { %1533 = vst.msk [vmem:[%s3139_s4 + $0xe0] sm:$0x1] %vm1532_vm3, %v1725_v36 }

// kernel: inception_v4_stem_forward.11
= control target key start
LH: loop header
LB: loop body
LE: loop exit
PB: predicated region body
PF: predicated region fallthrough
CT: control target
= control target key end

     0   :  { %v1863_v0 = vmov 0   ;;  %vm754_vm0 = vcmask 261120   ;;  %vm866_vm1 = vcmask 254976   ;;  %vm1475_vm2 = vcmask 257024   ;;  %s3135_s1 = inlined_call_operand.vmem [shape: bf16[256,32], index: 1, kind: input, shape index: {}]   ;;  %s3136_s0 = inlined_call_operand.vmem [shape: bf16[450,256], index: 0, kind: input, shape index: {}]   ;;  %s3137_s2 = inlined_call_operand.vmem [shape: f32[1,32], index: 2, kind: input, shape index: {}]   ;;  %s3138_s3 = inlined_call_operand.vmem [shape: f32[1,32], index: 3, kind: input, shape index: {}]   ;;  %s3139_s4 = inlined_call_operand.vmem [shape: bf16[450,32], index: 4, kind: output, shape index: {}]  }
   0x1   :  { %490 = vmatprep.subr.bf16.mxu0 %v1863_v0  ;;  %v1759_v1 = vld [vmem:[%s3135_s1] sm:$0xff]   ;;  %1726 = vmatprep.subr.bf16.mxu1 %v1863_v0  ;;  %v1760_v2 = vld [vmem:[%s3135_s1 + $0x8] sm:$0xff]   ;;  %v1761_v3 = vld [vmem:[%s3135_s1 + $0x10] sm:$0xff]   ;;  %vm1532_vm3 = vcmask 253952  }
   0x2   :  { %491 = vmatpush1.bf16.msra.mxu0 %v1759_v1  ;;  %1742 = vmatpush1.bf16.msra.mxu1 %v1759_v1  ;;  %v1762_v4 = vld [vmem:[%s3135_s1 + $0x18] sm:$0xff]   ;;  %v1763_v5 = vld [vmem:[%s3135_s1 + $0x20] sm:$0xff]   ;;  %v1764_v7 = vld [vmem:[%s3135_s1 + $0x28] sm:$0xff]  }
   0x3   :  { %492 = vmatprep.subr.bf16.mxu0 %v1863_v0  ;;  %1727 = vmatprep.subr.bf16.mxu1 %v1863_v0  ;;  %v1777_v6 = vld [vmem:[%s3136_s0 + $0x4] ss:$8 sps:$4 sm:$0xff]   ;;  %v1765_v8 = vld [vmem:[%s3135_s1 + $0x30] sm:$0xff]   ;;  %v1766_v9 = vld [vmem:[%s3135_s1 + $0x38] sm:$0xff]  }
   0x4   :  { %522 = vmatprep.mubr.bf16.mxu0 %v1777_v6  ;;  %v1801_v10 = vld [vmem:[%s3136_s0 + $0xf4] ss:$8 sps:$4 sm:$0xff]   ;;  %v1767_v11 = vld [vmem:[%s3135_s1 + $0x40] sm:$0xff]   ;;  %v1768_v12 = vld [vmem:[%s3135_s1 + $0x48] sm:$0xff]  }
   0x5   :  { %642 = vmatprep.mubr.bf16.mxu1 %v1801_v10  ;;  %v1769_v13 = vld [vmem:[%s3135_s1 + $0x50] sm:$0xff]   ;;  %v1770_v14 = vld [vmem:[%s3135_s1 + $0x58] sm:$0xff]   ;;  %v1771_v15 = vld [vmem:[%s3135_s1 + $0x60] sm:$0xff]  }
   0x6   :  { %493 = vmatpush1.bf16.msra.mxu0 %v1760_v2  ;;  %1743 = vmatpush1.bf16.msra.mxu1 %v1760_v2  ;;  %v1772_v16 = vld [vmem:[%s3135_s1 + $0x68] sm:$0xff]   ;;  %v1773_v17 = vld [vmem:[%s3135_s1 + $0x70] sm:$0xff]   ;;  %v1774_v18 = vld [vmem:[%s3135_s1 + $0x78] sm:$0xff]  }
   0x7   :  { %494 = vmatprep.subr.bf16.mxu0 %v1863_v0  ;;  %1728 = vmatprep.subr.bf16.mxu1 %v1863_v0  ;;  %v1775_v19 = vld [vmem:[%s3136_s0] ss:$8 sps:$4 sm:$0xff]   ;;  %v1799_v20 = vld [vmem:[%s3136_s0 + $0xf0] ss:$8 sps:$4 sm:$0xff]   ;;  %v1778_v21 = vld [vmem:[%s3136_s0 + $0x14] ss:$8 sps:$4 sm:$0xff]  }
   0x8   :  { %v1805_v22 = vld [vmem:[%s3136_s0 + $0x104] ss:$8 sps:$4 sm:$0xff]   ;;  %v1780_v23 = vld [vmem:[%s3136_s0 + $0x10] ss:$8 sps:$4 sm:$0xff]   ;;  %v1807_v24 = vld [vmem:[%s3136_s0 + $0x100] ss:$8 sps:$4 sm:$0xff]  }
   0x9   :  { %v1781_v25 = vld [vmem:[%s3136_s0 + $0x24] ss:$8 sps:$4 sm:$0xff]   ;;  %v1811_v26 = vld [vmem:[%s3136_s0 + $0x114] ss:$8 sps:$4 sm:$0xff]   ;;  %v1783_v27 = vld [vmem:[%s3136_s0 + $0x20] ss:$8 sps:$4 sm:$0xff]  }
   0xa   :  { %495 = vmatpush1.bf16.msra.mxu0 %v1761_v3  ;;  %1744 = vmatpush1.bf16.msra.mxu1 %v1761_v3  ;;  %v1813_v28 = vld [vmem:[%s3136_s0 + $0x110] ss:$8 sps:$4 sm:$0xff]   ;;  %v1784_v29 = vld [vmem:[%s3136_s0 + $0x34] ss:$8 sps:$4 sm:$0xff]   ;;  %v1817_v30 = vld [vmem:[%s3136_s0 + $0x124] ss:$8 sps:$4 sm:$0xff]  }
   0xb   :  { %496 = vmatprep.subr.bf16.mxu0 %v1863_v0  ;;  %1729 = vmatprep.subr.bf16.mxu1 %v1863_v0  ;;  %v1786_v31 = vld [vmem:[%s3136_s0 + $0x30] ss:$8 sps:$4 sm:$0xff]   ;;  %v1819_v32 = vld [vmem:[%s3136_s0 + $0x120] ss:$8 sps:$4 sm:$0xff]   ;;  %v1787_v33 = vld [vmem:[%s3136_s0 + $0x44] ss:$8 sps:$4 sm:$0xff]  }
   0xc   :  { %v1823_v34 = vld [vmem:[%s3136_s0 + $0x134] ss:$8 sps:$4 sm:$0xff]   ;;  %v1789_v35 = vld [vmem:[%s3136_s0 + $0x40] ss:$8 sps:$4 sm:$0xff]   ;;  %v1825_v36 = vld [vmem:[%s3136_s0 + $0x130] ss:$8 sps:$4 sm:$0xff]  }
   0xd   :  { %v1790_v37 = vld [vmem:[%s3136_s0 + $0x54] ss:$8 sps:$4 sm:$0xff]   ;;  %v1829_v38 = vld [vmem:[%s3136_s0 + $0x144] ss:$8 sps:$4 sm:$0xff]   ;;  %v1792_v39 = vld [vmem:[%s3136_s0 + $0x50] ss:$8 sps:$4 sm:$0xff]  }
   0xe   :  { %497 = vmatpush1.bf16.msra.mxu0 %v1762_v4  ;;  %1745 = vmatpush1.bf16.msra.mxu1 %v1762_v4  ;;  %v1831_v40 = vld [vmem:[%s3136_s0 + $0x140] ss:$8 sps:$4 sm:$0xff]   ;;  %v1793_v41 = vld [vmem:[%s3136_s0 + $0x64] ss:$8 sps:$4 sm:$0xff]   ;;  %v1835_v42 = vld [vmem:[%s3136_s0 + $0x154] ss:$8 sps:$4 sm:$0xff]  }
   0xf   :  { %498 = vmatprep.subr.bf16.mxu0 %v1863_v0  ;;  %1730 = vmatprep.subr.bf16.mxu1 %v1863_v0  ;;  %v1795_v43 = vld [vmem:[%s3136_s0 + $0x60] ss:$8 sps:$4 sm:$0xff]   ;;  %v1837_v44 = vld [vmem:[%s3136_s0 + $0x150] ss:$8 sps:$4 sm:$0xff]   ;;  %v1796_v45 = vld [vmem:[%s3136_s0 + $0x74] ss:$8 sps:$4 sm:$0xff]  }
  0x10   :  { %v1841_v46 = vld [vmem:[%s3136_s0 + $0x164] ss:$8 sps:$4 sm:$0xff]   ;;  %v1798_v47 = vld [vmem:[%s3136_s0 + $0x70] ss:$8 sps:$4 sm:$0xff]   ;;  %v1843_v48 = vld [vmem:[%s3136_s0 + $0x160] ss:$8 sps:$4 sm:$0xff]  }
  0x11   :  { %v1802_v49 = vld [vmem:[%s3136_s0 + $0x84] ss:$8 sps:$4 sm:$0xff]   ;;  %v1844_v50 = vld [vmem:[%s3136_s0 + $0x174] ss:$8 sps:$4 sm:$0xff]   ;;  %v1804_v51 = vld [vmem:[%s3136_s0 + $0x80] ss:$8 sps:$4 sm:$0xff]  }
  0x12   :  { %499 = vmatpush1.bf16.msra.mxu0 %v1763_v5  ;;  %1746 = vmatpush1.bf16.msra.mxu1 %v1763_v5  ;;  %v1846_v52 = vld [vmem:[%s3136_s0 + $0x170] ss:$8 sps:$4 sm:$0xff]   ;;  %v1808_v53 = vld [vmem:[%s3136_s0 + $0x94] ss:$8 sps:$4 sm:$0xff]   ;;  %v1847_v54 = vld [vmem:[%s3136_s0 + $0x184] ss:$8 sps:$4 sm:$0xff]  }
  0x13   :  { %500 = vmatprep.subr.bf16.mxu0 %v1863_v0  ;;  %1731 = vmatprep.subr.bf16.mxu1 %v1863_v0  ;;  %v1810_v55 = vld [vmem:[%s3136_s0 + $0x90] ss:$8 sps:$4 sm:$0xff]   ;;  %v1849_v56 = vld [vmem:[%s3136_s0 + $0x180] ss:$8 sps:$4 sm:$0xff]   ;;  %v1814_v57 = vld [vmem:[%s3136_s0 + $0xa4] ss:$8 sps:$4 sm:$0xff]  }
  0x14   :  { %v1850_v58 = vld [vmem:[%s3136_s0 + $0x194] ss:$8 sps:$4 sm:$0xff]   ;;  %v1816_v59 = vld [vmem:[%s3136_s0 + $0xa0] ss:$8 sps:$4 sm:$0xff]   ;;  %v1852_v60 = vld [vmem:[%s3136_s0 + $0x190] ss:$8 sps:$4 sm:$0xff]  }
  0x15   :  { %v1820_v61 = vld [vmem:[%s3136_s0 + $0xb4] ss:$8 sps:$4 sm:$0xff]   ;;  %v1853_v62 = vld [vmem:[%s3136_s0 + $0x1a4] ss:$8 sps:$4 sm:$0xff]   ;;  %v1822_v63 = vld [vmem:[%s3136_s0 + $0xb0] ss:$8 sps:$4 sm:$0xff]  }
  0x16   :  { %501 = vmatpush1.bf16.msra.mxu0 %v1764_v7  ;;  %1747 = vmatpush1.bf16.msra.mxu1 %v1764_v7  ;;  %v1826_v1 = vld [vmem:[%s3136_s0 + $0xc4] ss:$8 sps:$4 sm:$0xff]   ;;  %v1856_v2 = vld [vmem:[%s3136_s0 + $0x1b4] ss:$8 sps:$4 sm:$0xff]   ;;  %v1828_v4 = vld [vmem:[%s3136_s0 + $0xc0] ss:$8 sps:$4 sm:$0xff]  }
  0x17   :  { %502 = vmatprep.subr.bf16.mxu0 %v1863_v0  ;;  %1732 = vmatprep.subr.bf16.mxu1 %v1863_v0  ;;  %v74_v3 = vld [vmem:[%s3136_s0 + $0x1c0] sm:$0x11]  ;;  %v1858_v5 = vld [vmem:[%s3136_s0 + $0x1b0] ss:$8 sps:$4 sm:$0xff]   ;;  %v1832_v6 = vld [vmem:[%s3136_s0 + $0xd4] ss:$8 sps:$4 sm:$0xff]  }
  0x18   :  { %v1595_v7 = vcombine.high %v74_v3, %v74_v3  ;;  %v1838_v10 = vld [vmem:[%s3136_s0 + $0xe4] ss:$8 sps:$4 sm:$0xff]  }
  0x1a   :  { %503 = vmatpush1.bf16.msra.mxu0 %v1765_v8  ;;  %1748 = vmatpush1.bf16.msra.mxu1 %v1765_v8  ;;  %v1834_v8 = vld [vmem:[%s3136_s0 + $0xd0] ss:$8 sps:$4 sm:$0xff]  }
  0x1b   :  { %504 = vmatprep.subr.bf16.mxu0 %v1863_v0  ;;  %1733 = vmatprep.subr.bf16.mxu1 %v1863_v0 }
  0x1e   :  { %505 = vmatpush1.bf16.msra.mxu0 %v1766_v9  ;;  %1749 = vmatpush1.bf16.msra.mxu1 %v1766_v9  ;;  %v1594_v9 = vcombine.low %v74_v3, %v74_v3 }
  0x1f   :  { %506 = vmatprep.subr.bf16.mxu0 %v1863_v0  ;;  %1734 = vmatprep.subr.bf16.mxu1 %v1863_v0 }
  0x22   :  { %507 = vmatpush1.bf16.msra.mxu0 %v1767_v11  ;;  %1750 = vmatpush1.bf16.msra.mxu1 %v1767_v11  ;;  %v1840_v11 = vld [vmem:[%s3136_s0 + $0xe0] ss:$8 sps:$4 sm:$0xff]  }
  0x23   :  { %508 = vmatprep.subr.bf16.mxu0 %v1863_v0  ;;  %1735 = vmatprep.subr.bf16.mxu1 %v1863_v0 }
  0x26   :  { %509 = vmatpush1.bf16.msra.mxu0 %v1768_v12  ;;  %1751 = vmatpush1.bf16.msra.mxu1 %v1768_v12 }
  0x27   :  { %510 = vmatprep.subr.bf16.mxu0 %v1863_v0  ;;  %1736 = vmatprep.subr.bf16.mxu1 %v1863_v0 }
  0x2a   :  { %511 = vmatpush1.bf16.msra.mxu0 %v1769_v13  ;;  %1752 = vmatpush1.bf16.msra.mxu1 %v1769_v13 }
  0x2b   :  { %512 = vmatprep.subr.bf16.mxu0 %v1863_v0  ;;  %1737 = vmatprep.subr.bf16.mxu1 %v1863_v0 }
  0x2e   :  { %513 = vmatpush1.bf16.msra.mxu0 %v1770_v14  ;;  %1753 = vmatpush1.bf16.msra.mxu1 %v1770_v14 }
  0x2f   :  { %514 = vmatprep.subr.bf16.mxu0 %v1863_v0  ;;  %1738 = vmatprep.subr.bf16.mxu1 %v1863_v0 }
  0x32   :  { %515 = vmatpush1.bf16.msra.mxu0 %v1771_v15  ;;  %1754 = vmatpush1.bf16.msra.mxu1 %v1771_v15 }
  0x33   :  { %516 = vmatprep.subr.bf16.mxu0 %v1863_v0  ;;  %1739 = vmatprep.subr.bf16.mxu1 %v1863_v0 }
  0x36   :  { %517 = vmatpush1.bf16.msra.mxu0 %v1772_v16  ;;  %1755 = vmatpush1.bf16.msra.mxu1 %v1772_v16 }
  0x37   :  { %518 = vmatprep.subr.bf16.mxu0 %v1863_v0  ;;  %1740 = vmatprep.subr.bf16.mxu1 %v1863_v0 }
  0x3a   :  { %519 = vmatpush1.bf16.msra.mxu0 %v1773_v17  ;;  %1756 = vmatpush1.bf16.msra.mxu1 %v1773_v17 }
  0x3b   :  { %520 = vmatprep.subr.bf16.mxu0 %v1863_v0  ;;  %1741 = vmatprep.subr.bf16.mxu1 %v1863_v0  ;;  %v1855_v0 = vld [vmem:[%s3136_s0 + $0x1a0] ss:$8 sps:$4 sm:$0xff]  }
  0x3e   :  { %521 = vmatpush1.bf16.msra.mxu0 %v1774_v18  ;;  %1757 = vmatpush1.bf16.msra.mxu1 %v1774_v18 }
  0x41   :  { %523 = vmatmul.mubr.bf16.vlgmr.msra.gmra.mrb[0].mxu0 %v1775_v19  ;;  %643 = vmatmul.mubr.bf16.vlgmr.msra.gmra.mrb[0].mxu1 %v1799_v20 }
  0x42   :  { %530 = vmatprep.mubr.bf16.mxu0 %v1778_v21  ;;  %650 = vmatprep.mubr.bf16.mxu1 %v1805_v22 }
  0x49   :  { %531 = vmatmul.mubr.bf16.gmra.mrb[4].mxu0 %v1780_v23  ;;  %651 = vmatmul.mubr.bf16.gmra.mrb[4].mxu1 %v1807_v24 }
  0x4a   :  { %538 = vmatprep.mubr.bf16.mxu0 %v1781_v25  ;;  %658 = vmatprep.mubr.bf16.mxu1 %v1811_v26 }
  0x51   :  { %539 = vmatmul.mubr.bf16.gmra.mrb[8].mxu0 %v1783_v27  ;;  %659 = vmatmul.mubr.bf16.gmra.mrb[8].mxu1 %v1813_v28 }
  0x52   :  { %546 = vmatprep.mubr.bf16.mxu0 %v1784_v29  ;;  %666 = vmatprep.mubr.bf16.mxu1 %v1817_v30 }
  0x59   :  { %547 = vmatmul.mubr.bf16.gmra.mrb[12].mxu0 %v1786_v31  ;;  %667 = vmatmul.mubr.bf16.gmra.mrb[12].mxu1 %v1819_v32 }
  0x5a   :  { %554 = vmatprep.mubr.bf16.mxu0 %v1787_v33  ;;  %674 = vmatprep.mubr.bf16.mxu1 %v1823_v34 }
  0x61   :  { %555 = vmatmul.mubr.bf16.gmra.mrb[16].mxu0 %v1789_v35  ;;  %675 = vmatmul.mubr.bf16.gmra.mrb[16].mxu1 %v1825_v36 }
  0x62   :  { %562 = vmatprep.mubr.bf16.mxu0 %v1790_v37  ;;  %682 = vmatprep.mubr.bf16.mxu1 %v1829_v38 }
  0x69   :  { %563 = vmatmul.mubr.bf16.gmra.mrb[20].mxu0 %v1792_v39  ;;  %683 = vmatmul.mubr.bf16.gmra.mrb[20].mxu1 %v1831_v40 }
  0x6a   :  { %570 = vmatprep.mubr.bf16.mxu0 %v1793_v41  ;;  %690 = vmatprep.mubr.bf16.mxu1 %v1835_v42 }
  0x71   :  { %571 = vmatmul.mubr.bf16.gmra.mrb[24].mxu0 %v1795_v43  ;;  %691 = vmatmul.mubr.bf16.gmra.mrb[24].mxu1 %v1837_v44 }
  0x72   :  { %578 = vmatprep.mubr.bf16.mxu0 %v1796_v45  ;;  %698 = vmatprep.mubr.bf16.mxu1 %v1841_v46 }
  0x79   :  { %579 = vmatmul.mubr.bf16.gmra.mrb[28].mxu0 %v1798_v47  ;;  %699 = vmatmul.mubr.bf16.gmra.mrb[28].mxu1 %v1843_v48 }
  0x7a   :  { %586 = vmatprep.mubr.bf16.mxu0 %v1802_v49  ;;  %706 = vmatprep.mubr.bf16.mxu1 %v1844_v50 }
  0x81   :  { %587 = vmatmul.mubr.bf16.gmra.mrb[32].mxu0 %v1804_v51  ;;  %707 = vmatmul.mubr.bf16.gmra.mrb[32].mxu1 %v1846_v52 }
  0x82   :  { %594 = vmatprep.mubr.bf16.mxu0 %v1808_v53  ;;  %714 = vmatprep.mubr.bf16.mxu1 %v1847_v54 }
  0x89   :  { %595 = vmatmul.mubr.bf16.gmra.mrb[36].mxu0 %v1810_v55  ;;  %715 = vmatmul.mubr.bf16.gmra.mrb[36].mxu1 %v1849_v56 }
  0x8a   :  { %602 = vmatprep.mubr.bf16.mxu0 %v1814_v57  ;;  %722 = vmatprep.mubr.bf16.mxu1 %v1850_v58 }
  0x91   :  { %603 = vmatmul.mubr.bf16.gmra.mrb[40].mxu0 %v1816_v59  ;;  %723 = vmatmul.mubr.bf16.gmra.mrb[40].mxu1 %v1852_v60 }
  0x92   :  { %610 = vmatprep.mubr.bf16.mxu0 %v1820_v61  ;;  %730 = vmatprep.mubr.bf16.mxu1 %v1853_v62 }
  0x99   :  { %611 = vmatmul.mubr.bf16.gmra.mrb[44].mxu0 %v1822_v63  ;;  %731 = vmatmul.mubr.bf16.gmra.mrb[44].mxu1 %v1855_v0 }
  0x9a   :  { %618 = vmatprep.mubr.bf16.mxu0 %v1826_v1  ;;  %738 = vmatprep.mubr.bf16.mxu1 %v1856_v2 }
  0xa1   :  { %619 = vmatmul.mubr.bf16.gmra.mrb[48].mxu0 %v1828_v4  ;;  %739 = vmatmul.mubr.bf16.gmra.mrb[48].mxu1 %v1858_v5 }
  0xa2   :  { %626 = vmatprep.mubr.bf16.mxu0 %v1832_v6  ;;  %746 = vmatprep.mubr.bf16.mxu1 %v1595_v7 }
  0xa9   :  { %627 = vmatmul.mubr.bf16.gmra.mrb[52].mxu0 %v1834_v8  ;;  %747 = vmatmul.mubr.bf16.gmra.mrb[52].mxu1 %v1594_v9 }
  0xaa   :  { %634 = vmatprep.mubr.bf16.mxu0 %v1838_v10 }
  0xb1   :  { %635 = vmatmul.mubr.bf16.gmra.mrb[56].mxu0 %v1840_v11 }
 0x114   :  { %v2140_v12 = vpop.f32.mrb[0].mxu0  ;;  %v2142_v13 = vpop.f32.mrb[0].mxu1 }
 0x115   :  { %v876_v14 = vmul.f32 %v2140_v12, %v2140_v12  ;;  %v526_v15 = vpop.f32.mrb[1].mxu0  ;;  %v646_v16 = vpop.f32.mrb[1].mxu1  ;;  %v755_v19 = vsel %vm754_vm0, %v2140_v12, 0.0 }
 0x116   :  { %v2146_v17 = vpop.f32.mrb[2].mxu0  ;;  %v2148_v18 = vpop.f32.mrb[2].mxu1 }
 0x117   :  { %v756_v20 = vsel %vm754_vm0, %v2146_v17, 0.0  ;;  %v877_v21 = vmul.f32 %v2146_v17, %v2146_v17  ;;  %v529_v22 = vpop.f32.mrb[3].mxu0  ;;  %v649_v23 = vpop.f32.mrb[3].mxu1  ;;  %v933_v25 = vsel %vm754_vm0, %v876_v14, 0.0 }
 0x118   :  { %v757_v24 = vadd.f32 %v756_v20, %v755_v19 }
 0x119   :  { %v934_v26 = vsel %vm754_vm0, %v877_v21, 0.0 }
 0x11a   :  { %v935_v27 = vadd.f32 %v934_v26, %v933_v25 }
 0x11c   :  { %v2158_v28 = vpop.f32.mrb[4].mxu0  ;;  %v2160_v29 = vpop.f32.mrb[4].mxu1 }
 0x11d   :  { %v758_v30 = vsel %vm754_vm0, %v2158_v28, 0.0  ;;  %v878_v31 = vmul.f32 %v2158_v28, %v2158_v28  ;;  %v534_v32 = vpop.f32.mrb[5].mxu0  ;;  %v654_v33 = vpop.f32.mrb[5].mxu1 }
 0x11e   :  { %v759_v34 = vadd.f32 %v758_v30, %v757_v24  ;;  %v2166_v35 = vpop.f32.mrb[6].mxu0  ;;  %v2168_v36 = vpop.f32.mrb[6].mxu1 }
 0x11f   :  { %v936_v37 = vsel %vm754_vm0, %v878_v31, 0.0  ;;  %v760_v38 = vsel %vm754_vm0, %v2166_v35, 0.0  ;;  %v879_v39 = vmul.f32 %v2166_v35, %v2166_v35  ;;  %v537_v40 = vpop.f32.mrb[7].mxu0  ;;  %v657_v41 = vpop.f32.mrb[7].mxu1 }
 0x120   :  { %v937_v42 = vadd.f32 %v936_v37, %v935_v27  ;;  %v761_v43 = vadd.f32 %v760_v38, %v759_v34 }
 0x121   :  { %v938_v44 = vsel %vm754_vm0, %v879_v39, 0.0 }
 0x122   :  { %v939_v45 = vadd.f32 %v938_v44, %v937_v42 }
 0x124   :  { %v2176_v46 = vpop.f32.mrb[8].mxu0  ;;  %v2178_v47 = vpop.f32.mrb[8].mxu1 }
 0x125   :  { %v762_v48 = vsel %vm754_vm0, %v2176_v46, 0.0  ;;  %v880_v49 = vmul.f32 %v2176_v46, %v2176_v46  ;;  %v542_v50 = vpop.f32.mrb[9].mxu0  ;;  %v662_v51 = vpop.f32.mrb[9].mxu1 }
 0x126   :  { %v763_v52 = vadd.f32 %v762_v48, %v761_v43  ;;  %v2184_v53 = vpop.f32.mrb[10].mxu0  ;;  %v2186_v54 = vpop.f32.mrb[10].mxu1 }
 0x127   :  { %v940_v55 = vsel %vm754_vm0, %v880_v49, 0.0  ;;  %v764_v56 = vsel %vm754_vm0, %v2184_v53, 0.0  ;;  %v881_v57 = vmul.f32 %v2184_v53, %v2184_v53  ;;  %v545_v58 = vpop.f32.mrb[11].mxu0  ;;  %v665_v59 = vpop.f32.mrb[11].mxu1 }
 0x128   :  { %v941_v60 = vadd.f32 %v940_v55, %v939_v45  ;;  %v765_v61 = vadd.f32 %v764_v56, %v763_v52 }
 0x129   :  { %v942_v62 = vsel %vm754_vm0, %v881_v57, 0.0 }
 0x12a   :  { %v943_v63 = vadd.f32 %v942_v62, %v941_v60 }
 0x12c   :  { %v2194_v0 = vpop.f32.mrb[12].mxu0  ;;  %v2196_v1 = vpop.f32.mrb[12].mxu1 }
 0x12d   :  { %v766_v2 = vsel %vm754_vm0, %v2194_v0, 0.0  ;;  %v882_v3 = vmul.f32 %v2194_v0, %v2194_v0  ;;  %v550_v4 = vpop.f32.mrb[13].mxu0  ;;  %v670_v5 = vpop.f32.mrb[13].mxu1 }
 0x12e   :  { %v767_v6 = vadd.f32 %v766_v2, %v765_v61  ;;  %v2202_v7 = vpop.f32.mrb[14].mxu0  ;;  %v2204_v8 = vpop.f32.mrb[14].mxu1 }
 0x12f   :  { %v944_v9 = vsel %vm754_vm0, %v882_v3, 0.0  ;;  %v768_v10 = vsel %vm754_vm0, %v2202_v7, 0.0  ;;  %v883_v11 = vmul.f32 %v2202_v7, %v2202_v7  ;;  %v553_v14 = vpop.f32.mrb[15].mxu0  ;;  %v673_v15 = vpop.f32.mrb[15].mxu1 }
 0x130   :  { %v945_v16 = vadd.f32 %v944_v9, %v943_v63  ;;  %v769_v19 = vadd.f32 %v768_v10, %v767_v6 }
 0x131   :  { %v946_v20 = vsel %vm754_vm0, %v883_v11, 0.0 }
 0x132   :  { %v947_v21 = vadd.f32 %v946_v20, %v945_v16 }
 0x134   :  { %v2212_v22 = vpop.f32.mrb[16].mxu0  ;;  %v2214_v23 = vpop.f32.mrb[16].mxu1 }
 0x135   :  { %v770_v24 = vsel %vm754_vm0, %v2212_v22, 0.0  ;;  %v884_v25 = vmul.f32 %v2212_v22, %v2212_v22  ;;  %v558_v26 = vpop.f32.mrb[17].mxu0  ;;  %v678_v27 = vpop.f32.mrb[17].mxu1 }
 0x136   :  { %v771_v30 = vadd.f32 %v770_v24, %v769_v19  ;;  %v2220_v31 = vpop.f32.mrb[18].mxu0  ;;  %v2222_v32 = vpop.f32.mrb[18].mxu1 }
 0x137   :  { %v948_v33 = vsel %vm754_vm0, %v884_v25, 0.0  ;;  %v772_v34 = vsel %vm754_vm0, %v2220_v31, 0.0  ;;  %v885_v37 = vmul.f32 %v2220_v31, %v2220_v31  ;;  %v561_v38 = vpop.f32.mrb[19].mxu0  ;;  %v681_v39 = vpop.f32.mrb[19].mxu1 }
 0x138   :  { %v949_v40 = vadd.f32 %v948_v33, %v947_v21  ;;  %v773_v41 = vadd.f32 %v772_v34, %v771_v30 }
 0x139   :  { %v950_v42 = vsel %vm754_vm0, %v885_v37, 0.0 }
 0x13a   :  { %v951_v43 = vadd.f32 %v950_v42, %v949_v40 }
 0x13c   :  { %v2230_v44 = vpop.f32.mrb[20].mxu0  ;;  %v2232_v45 = vpop.f32.mrb[20].mxu1 }
 0x13d   :  { %v774_v48 = vsel %vm754_vm0, %v2230_v44, 0.0  ;;  %v886_v49 = vmul.f32 %v2230_v44, %v2230_v44  ;;  %v566_v50 = vpop.f32.mrb[21].mxu0  ;;  %v686_v51 = vpop.f32.mrb[21].mxu1 }
 0x13e   :  { %v775_v52 = vadd.f32 %v774_v48, %v773_v41  ;;  %v2238_v55 = vpop.f32.mrb[22].mxu0  ;;  %v2240_v56 = vpop.f32.mrb[22].mxu1 }
 0x13f   :  { %v952_v57 = vsel %vm754_vm0, %v886_v49, 0.0  ;;  %v776_v58 = vsel %vm754_vm0, %v2238_v55, 0.0  ;;  %v887_v59 = vmul.f32 %v2238_v55, %v2238_v55  ;;  %v569_v60 = vpop.f32.mrb[23].mxu0  ;;  %v689_v61 = vpop.f32.mrb[23].mxu1 }
 0x140   :  { %v953_v62 = vadd.f32 %v952_v57, %v951_v43  ;;  %v777_v63 = vadd.f32 %v776_v58, %v775_v52 }
 0x141   :  { %v954_v2 = vsel %vm754_vm0, %v887_v59, 0.0 }
 0x142   :  { %v955_v3 = vadd.f32 %v954_v2, %v953_v62 }
 0x144   :  { %v2248_v4 = vpop.f32.mrb[24].mxu0  ;;  %v2250_v5 = vpop.f32.mrb[24].mxu1 }
 0x145   :  { %v778_v6 = vsel %vm754_vm0, %v2248_v4, 0.0  ;;  %v888_v9 = vmul.f32 %v2248_v4, %v2248_v4  ;;  %v574_v10 = vpop.f32.mrb[25].mxu0  ;;  %v694_v11 = vpop.f32.mrb[25].mxu1 }
 0x146   :  { %v779_v14 = vadd.f32 %v778_v6, %v777_v63  ;;  %v2256_v15 = vpop.f32.mrb[26].mxu0  ;;  %v2258_v16 = vpop.f32.mrb[26].mxu1 }
 0x147   :  { %v956_v19 = vsel %vm754_vm0, %v888_v9, 0.0  ;;  %v780_v20 = vsel %vm754_vm0, %v2256_v15, 0.0  ;;  %v889_v21 = vmul.f32 %v2256_v15, %v2256_v15  ;;  %v577_v24 = vpop.f32.mrb[27].mxu0  ;;  %v697_v25 = vpop.f32.mrb[27].mxu1 }
 0x148   :  { %v957_v26 = vadd.f32 %v956_v19, %v955_v3  ;;  %v781_v27 = vadd.f32 %v780_v20, %v779_v14 }
 0x149   :  { %v958_v30 = vsel %vm754_vm0, %v889_v21, 0.0 }
 0x14a   :  { %v959_v33 = vadd.f32 %v958_v30, %v957_v26 }
 0x14c   :  { %v2266_v34 = vpop.f32.mrb[28].mxu0  ;;  %v2268_v37 = vpop.f32.mrb[28].mxu1 }
 0x14d   :  { %v782_v38 = vsel %vm754_vm0, %v2266_v34, 0.0  ;;  %v890_v39 = vmul.f32 %v2266_v34, %v2266_v34  ;;  %v582_v40 = vpop.f32.mrb[29].mxu0  ;;  %v702_v41 = vpop.f32.mrb[29].mxu1 }
 0x14e   :  { %v783_v42 = vadd.f32 %v782_v38, %v781_v27  ;;  %v2274_v43 = vpop.f32.mrb[30].mxu0  ;;  %v2276_v48 = vpop.f32.mrb[30].mxu1 }
 0x14f   :  { %v960_v49 = vsel %vm754_vm0, %v890_v39, 0.0  ;;  %v784_v50 = vsel %vm754_vm0, %v2274_v43, 0.0  ;;  %v891_v51 = vmul.f32 %v2274_v43, %v2274_v43  ;;  %v585_v52 = vpop.f32.mrb[31].mxu0  ;;  %v705_v57 = vpop.f32.mrb[31].mxu1 }
 0x150   :  { %v961_v58 = vadd.f32 %v960_v49, %v959_v33  ;;  %v785_v59 = vadd.f32 %v784_v50, %v783_v42 }
 0x151   :  { %v962_v60 = vsel %vm754_vm0, %v891_v51, 0.0 }
 0x152   :  { %v963_v61 = vadd.f32 %v962_v60, %v961_v58 }
 0x154   :  { %v2284_v62 = vpop.f32.mrb[32].mxu0  ;;  %v2286_v63 = vpop.f32.mrb[32].mxu1 }
 0x155   :  { %v786_v2 = vsel %vm754_vm0, %v2284_v62, 0.0  ;;  %v892_v3 = vmul.f32 %v2284_v62, %v2284_v62  ;;  %v590_v6 = vpop.f32.mrb[33].mxu0  ;;  %v710_v9 = vpop.f32.mrb[33].mxu1 }
 0x156   :  { %v787_v10 = vadd.f32 %v786_v2, %v785_v59  ;;  %v2292_v11 = vpop.f32.mrb[34].mxu0  ;;  %v2294_v14 = vpop.f32.mrb[34].mxu1 }
 0x157   :  { %3169 = vst [vmem:[#allocation2_spill] sm:$0xff] %v2294_v14  ;;  %v964_v19 = vsel %vm754_vm0, %v892_v3, 0.0  ;;  %v788_v20 = vsel %vm754_vm0, %v2292_v11, 0.0  ;;  %v893_v21 = vmul.f32 %v2292_v11, %v2292_v11  ;;  %v593_v24 = vpop.f32.mrb[35].mxu0  ;;  %v713_v25 = vpop.f32.mrb[35].mxu1 }
 0x158   :  { %v965_v26 = vadd.f32 %v964_v19, %v963_v61  ;;  %v789_v27 = vadd.f32 %v788_v20, %v787_v10 }
 0x159   :  { %v966_v30 = vsel %vm754_vm0, %v893_v21, 0.0 }
 0x15a   :  { %v967_v33 = vadd.f32 %v966_v30, %v965_v26 }
 0x15c   :  { %v2302_v38 = vpop.f32.mrb[36].mxu0  ;;  %v2304_v39 = vpop.f32.mrb[36].mxu1 }
 0x15d   :  { %3170 = vst [vmem:[#allocation3_spill] sm:$0xff] %v2304_v39  ;;  %v790_v40 = vsel %vm754_vm0, %v2302_v38, 0.0  ;;  %v894_v41 = vmul.f32 %v2302_v38, %v2302_v38  ;;  %v598_v42 = vpop.f32.mrb[37].mxu0  ;;  %v718_v49 = vpop.f32.mrb[37].mxu1 }
 0x15e   :  { %v791_v50 = vadd.f32 %v790_v40, %v789_v27  ;;  %v2310_v51 = vpop.f32.mrb[38].mxu0  ;;  %v2312_v52 = vpop.f32.mrb[38].mxu1 }
 0x15f   :  { %3171 = vst [vmem:[#allocation4_spill] sm:$0xff] %v2310_v51  ;;  %3172 = vst [vmem:[#allocation5_spill] sm:$0xff] %v2312_v52  ;;  %v968_v57 = vsel %vm754_vm0, %v894_v41, 0.0  ;;  %v792_v58 = vsel %vm754_vm0, %v2310_v51, 0.0  ;;  %v895_v59 = vmul.f32 %v2310_v51, %v2310_v51  ;;  %v601_v60 = vpop.f32.mrb[39].mxu0  ;;  %v721_v61 = vpop.f32.mrb[39].mxu1 }
 0x160   :  { %v969_v2 = vadd.f32 %v968_v57, %v967_v33  ;;  %v793_v3 = vadd.f32 %v792_v58, %v791_v50 }
 0x161   :  { %v970_v6 = vsel %vm754_vm0, %v895_v59, 0.0 }
 0x162   :  { %v971_v9 = vadd.f32 %v970_v6, %v969_v2 }
 0x164   :  { %v2320_v10 = vpop.f32.mrb[40].mxu0  ;;  %v2322_v19 = vpop.f32.mrb[40].mxu1 }
 0x165   :  { %3173 = vst [vmem:[#allocation6_spill] sm:$0xff] %v2320_v10  ;;  %3174 = vst [vmem:[#allocation7_spill] sm:$0xff] %v2322_v19  ;;  %v794_v20 = vsel %vm754_vm0, %v2320_v10, 0.0  ;;  %v896_v21 = vmul.f32 %v2320_v10, %v2320_v10  ;;  %v606_v24 = vpop.f32.mrb[41].mxu0  ;;  %v726_v25 = vpop.f32.mrb[41].mxu1 }
 0x166   :  { %v795_v26 = vadd.f32 %v794_v20, %v793_v3  ;;  %v2328_v27 = vpop.f32.mrb[42].mxu0  ;;  %v2330_v30 = vpop.f32.mrb[42].mxu1 }
 0x167   :  { %3175 = vst [vmem:[#allocation8_spill] sm:$0xff] %v2328_v27  ;;  %3176 = vst [vmem:[#allocation9_spill] sm:$0xff] %v2330_v30  ;;  %v972_v33 = vsel %vm754_vm0, %v896_v21, 0.0  ;;  %v796_v40 = vsel %vm754_vm0, %v2328_v27, 0.0  ;;  %v897_v41 = vmul.f32 %v2328_v27, %v2328_v27  ;;  %v609_v42 = vpop.f32.mrb[43].mxu0  ;;  %v729_v49 = vpop.f32.mrb[43].mxu1 }
 0x168   :  { %v973_v50 = vadd.f32 %v972_v33, %v971_v9  ;;  %v797_v57 = vadd.f32 %v796_v40, %v795_v26 }
 0x169   :  { %v974_v58 = vsel %vm754_vm0, %v897_v41, 0.0 }
 0x16a   :  { %v975_v59 = vadd.f32 %v974_v58, %v973_v50 }
 0x16c   :  { %v2338_v60 = vpop.f32.mrb[44].mxu0  ;;  %v2340_v61 = vpop.f32.mrb[44].mxu1 }
 0x16d   :  { %3177 = vst [vmem:[#allocation10_spill] sm:$0xff] %v2338_v60  ;;  %3178 = vst [vmem:[#allocation11_spill] sm:$0xff] %v2340_v61  ;;  %v798_v2 = vsel %vm754_vm0, %v2338_v60, 0.0  ;;  %v898_v3 = vmul.f32 %v2338_v60, %v2338_v60  ;;  %v614_v6 = vpop.f32.mrb[45].mxu0  ;;  %v734_v20 = vpop.f32.mrb[45].mxu1 }
 0x16e   :  { %v799_v21 = vadd.f32 %v798_v2, %v797_v57  ;;  %v2346_v24 = vpop.f32.mrb[46].mxu0  ;;  %v2348_v9 = vpop.f32.mrb[46].mxu1 }
 0x16f   :  { %3179 = vst [vmem:[#allocation12_spill] sm:$0xff] %v2346_v24  ;;  %3180 = vst [vmem:[#allocation13_spill] sm:$0xff] %v2348_v9  ;;  %v976_v25 = vsel %vm754_vm0, %v898_v3, 0.0  ;;  %v800_v26 = vsel %vm754_vm0, %v2346_v24, 0.0  ;;  %v899_v33 = vmul.f32 %v2346_v24, %v2346_v24  ;;  %v617_v40 = vpop.f32.mrb[47].mxu0  ;;  %v737_v41 = vpop.f32.mrb[47].mxu1 }
 0x170   :  { %v977_v42 = vadd.f32 %v976_v25, %v975_v59  ;;  %v801_v49 = vadd.f32 %v800_v26, %v799_v21 }
 0x171   :  { %v978_v50 = vsel %vm754_vm0, %v899_v33, 0.0 }
 0x172   :  { %v979_v58 = vadd.f32 %v978_v50, %v977_v42 }
 0x174   :  { %v2356_v57 = vpop.f32.mrb[48].mxu0  ;;  %v2358_v2 = vpop.f32.mrb[48].mxu1 }
 0x175   :  { %3181 = vst [vmem:[#allocation14_spill] sm:$0xff] %v2356_v57  ;;  %3182 = vst [vmem:[#allocation15_spill] sm:$0xff] %v2358_v2  ;;  %v802_v3 = vsel %vm754_vm0, %v2356_v57, 0.0  ;;  %v900_v6 = vmul.f32 %v2356_v57, %v2356_v57  ;;  %v622_v20 = vpop.f32.mrb[49].mxu0  ;;  %v742_v60 = vpop.f32.mrb[49].mxu1 }
 0x176   :  { %v803_v24 = vadd.f32 %v802_v3, %v801_v49  ;;  %v2364_v40 = vpop.f32.mrb[50].mxu0  ;;  %v2366_v59 = vpop.f32.mrb[50].mxu1 }
 0x177   :  { %3183 = vst [vmem:[#allocation16_spill] sm:$0xff] %v2364_v40  ;;  %3184 = vst [vmem:[#allocation17_spill] sm:$0xff] %v2366_v59  ;;  %v980_v21 = vsel %vm754_vm0, %v900_v6, 0.0  ;;  %v804_v25 = vsel %vm754_vm0, %v2364_v40, 0.0  ;;  %v901_v26 = vmul.f32 %v2364_v40, %v2364_v40  ;;  %v625_v33 = vpop.f32.mrb[51].mxu0  ;;  %v745_v41 = vpop.f32.mrb[51].mxu1 }
 0x178   :  { %v981_v42 = vadd.f32 %v980_v21, %v979_v58  ;;  %v805_v50 = vadd.f32 %v804_v25, %v803_v24 }
 0x179   :  { %v982_v20 = vsel %vm754_vm0, %v901_v26, 0.0 }
 0x17a   :  { %v983_v60 = vadd.f32 %v982_v20, %v981_v42 }
 0x17c   :  { %v2374_v49 = vpop.f32.mrb[52].mxu0  ;;  %v2376_v3 = vpop.f32.mrb[52].mxu1 }
 0x17d   :  { %3185 = vst [vmem:[#allocation18_spill] sm:$0xff] %v2374_v49  ;;  %3186 = vst [vmem:[#allocation19_spill] sm:$0xff] %v2376_v3  ;;  %v806_v6 = vsel %vm754_vm0, %v2374_v49, 0.0  ;;  %v902_v57 = vmul.f32 %v2374_v49, %v2374_v49  ;;  %v630_v27 = vpop.f32.mrb[53].mxu0  ;;  %v750_v10 = vpop.f32.mrb[53].mxu1 }
 0x17e   :  { %v807_v40 = vadd.f32 %v806_v6, %v805_v50  ;;  %v2382_v33 = vpop.f32.mrb[54].mxu0  ;;  %v751_v58 = vpop.f32.mrb[54].mxu1 }
 0x17f   :  { %v984_v24 = vsel %vm754_vm0, %v902_v57, 0.0  ;;  %v808_v21 = vsel %vm754_vm0, %v2382_v33, 0.0  ;;  %v903_v25 = vmul.f32 %v2382_v33, %v2382_v33  ;;  %v633_v26 = vpop.f32.mrb[55].mxu0  ;;  %v752_v41 = vpop.f32.mrb[55].mxu1 }
 0x180   :  { %v985_v42 = vadd.f32 %v984_v24, %v983_v60  ;;  %v809_v20 = vadd.f32 %v808_v21, %v807_v40  ;;  %v906_v26 = vmul.f32 %v2142_v13, %v2142_v13  ;;  %v814_v41 = vsel %vm754_vm0, %v2142_v13, 0.0 }
 0x181   :  { %v986_v49 = vsel %vm754_vm0, %v903_v25, 0.0 }
 0x182   :  { %v987_v27 = vadd.f32 %v986_v49, %v985_v42  ;;  %v907_v42 = vmul.f32 %v2148_v18, %v2148_v18 }
 0x184   :  { %v2390_v10 = vpop.f32.mrb[56].mxu0 }
 0x185   :  { %3187 = vst [vmem:[#allocation20_spill] sm:$0xff] %v2390_v10  ;;  %v810_v50 = vsel %vm754_vm0, %v2390_v10, 0.0  ;;  %v904_v57 = vmul.f32 %v2390_v10, %v2390_v10  ;;  %v638_v6 = vpop.f32.mrb[57].mxu0  ;;  %v816_v10 = vsel %vm754_vm0, %v2148_v18, 0.0 }
 0x186   :  { %v811_v58 = vadd.f32 %v810_v50, %v809_v20  ;;  %v2396_v51 = vpop.f32.mrb[58].mxu0 }
 0x187   :  { %v988_v40 = vsel %vm754_vm0, %v904_v57, 0.0  ;;  %v812_v60 = vsel %vm754_vm0, %v2396_v51, 0.0  ;;  %v905_v49 = vmul.f32 %v2396_v51, %v2396_v51  ;;  %v641_v24 = vpop.f32.mrb[59].mxu0  ;;  %v992_v57 = vsel %vm754_vm0, %v906_v26, 0.0 }
 0x188   :  { %v989_v21 = vadd.f32 %v988_v40, %v987_v27  ;;  %v813_v25 = vadd.f32 %v812_v60, %v811_v58  ;;  %v908_v24 = vmul.f32 %v2160_v29, %v2160_v29  ;;  %v994_v40 = vsel %vm754_vm0, %v907_v42, 0.0 }
 0x189   :  { %v990_v20 = vsel %vm754_vm0, %v905_v49, 0.0  ;;  %v818_v60 = vsel %vm754_vm0, %v2160_v29, 0.0  ;;  %v909_v49 = vmul.f32 %v2168_v36, %v2168_v36 }
 0x18a   :  { %v815_v50 = vadd.f32 %v814_v41, %v813_v25  ;;  %v991_v6 = vadd.f32 %v990_v20, %v989_v21  ;;  %v996_v26 = vsel %vm754_vm0, %v908_v24, 0.0  ;;  %v820_v41 = vsel %vm754_vm0, %v2168_v36, 0.0 }
 0x18b   :  { %v910_v20 = vmul.f32 %v2178_v47, %v2178_v47  ;;  %v998_v42 = vsel %vm754_vm0, %v909_v49, 0.0 }
 0x18c   :  { %v817_v27 = vadd.f32 %v816_v10, %v815_v50  ;;  %v993_v58 = vadd.f32 %v992_v57, %v991_v6  ;;  %v822_v6 = vsel %vm754_vm0, %v2178_v47, 0.0  ;;  %v911_v57 = vmul.f32 %v2186_v54, %v2186_v54 }
 0x18d   :  { %v1000_v24 = vsel %vm754_vm0, %v910_v20, 0.0 }
 0x18e   :  { %v819_v25 = vadd.f32 %v818_v60, %v817_v27  ;;  %v995_v21 = vadd.f32 %v994_v40, %v993_v58  ;;  %v824_v40 = vsel %vm754_vm0, %v2186_v54, 0.0  ;;  %v912_v60 = vmul.f32 %v2196_v1, %v2196_v1 }
 0x18f   :  { %v1002_v49 = vsel %vm754_vm0, %v911_v57, 0.0 }
 0x190   :  { %v821_v10 = vadd.f32 %v820_v41, %v819_v25  ;;  %v997_v50 = vadd.f32 %v996_v26, %v995_v21  ;;  %v826_v26 = vsel %vm754_vm0, %v2196_v1, 0.0  ;;  %v913_v41 = vmul.f32 %v2204_v8, %v2204_v8 }
 0x191   :  { %v1004_v20 = vsel %vm754_vm0, %v912_v60, 0.0 }
 0x192   :  { %v823_v27 = vadd.f32 %v822_v6, %v821_v10  ;;  %v999_v58 = vadd.f32 %v998_v42, %v997_v50  ;;  %v828_v42 = vsel %vm754_vm0, %v2204_v8, 0.0  ;;  %v914_v6 = vmul.f32 %v2214_v23, %v2214_v23 }
 0x193   :  { %v1006_v57 = vsel %vm754_vm0, %v913_v41, 0.0 }
 0x194   :  { %v825_v25 = vadd.f32 %v824_v40, %v823_v27  ;;  %v1001_v21 = vadd.f32 %v1000_v24, %v999_v58  ;;  %v830_v24 = vsel %vm754_vm0, %v2214_v23, 0.0  ;;  %v915_v40 = vmul.f32 %v2222_v32, %v2222_v32 }
 0x195   :  { %v1008_v60 = vsel %vm754_vm0, %v914_v6, 0.0 }
 0x196   :  { %v827_v10 = vadd.f32 %v826_v26, %v825_v25  ;;  %v1003_v50 = vadd.f32 %v1002_v49, %v1001_v21  ;;  %v832_v49 = vsel %vm754_vm0, %v2222_v32, 0.0  ;;  %v916_v26 = vmul.f32 %v2232_v45, %v2232_v45 }
 0x197   :  { %v1010_v41 = vsel %vm754_vm0, %v915_v40, 0.0 }
 0x198   :  { %v1005_v27 = vadd.f32 %v1004_v20, %v1003_v50  ;;  %v829_v58 = vadd.f32 %v828_v42, %v827_v10  ;;  %v834_v20 = vsel %vm754_vm0, %v2232_v45, 0.0  ;;  %v917_v42 = vmul.f32 %v2240_v56, %v2240_v56 }
 0x199   :  { %v1012_v6 = vsel %vm754_vm0, %v916_v26, 0.0 }
 0x19a   :  { %v831_v25 = vadd.f32 %v830_v24, %v829_v58  ;;  %v1007_v21 = vadd.f32 %v1006_v57, %v1005_v27  ;;  %v836_v57 = vsel %vm754_vm0, %v2240_v56, 0.0  ;;  %v918_v24 = vmul.f32 %v2250_v5, %v2250_v5 }
 0x19b   :  { %v1014_v40 = vsel %vm754_vm0, %v917_v42, 0.0 }
 0x19c   :  { %v833_v50 = vadd.f32 %v832_v49, %v831_v25  ;;  %v1009_v10 = vadd.f32 %v1008_v60, %v1007_v21  ;;  %v838_v60 = vsel %vm754_vm0, %v2250_v5, 0.0  ;;  %v919_v49 = vmul.f32 %v2258_v16, %v2258_v16 }
 0x19d   :  { %v1016_v26 = vsel %vm754_vm0, %v918_v24, 0.0 }
 0x19e   :  { %v835_v58 = vadd.f32 %v834_v20, %v833_v50  ;;  %v1011_v27 = vadd.f32 %v1010_v41, %v1009_v10  ;;  %v840_v41 = vsel %vm754_vm0, %v2258_v16, 0.0  ;;  %v920_v20 = vmul.f32 %v2268_v37, %v2268_v37 }
 0x19f   :  { %v1018_v42 = vsel %vm754_vm0, %v919_v49, 0.0 }
 0x1a0   :  { %v837_v25 = vadd.f32 %v836_v57, %v835_v58  ;;  %v1013_v21 = vadd.f32 %v1012_v6, %v1011_v27  ;;  %v842_v6 = vsel %vm754_vm0, %v2268_v37, 0.0  ;;  %v921_v57 = vmul.f32 %v2276_v48, %v2276_v48 }
 0x1a1   :  { %v1020_v24 = vsel %vm754_vm0, %v920_v20, 0.0 }
 0x1a2   :  { %v839_v50 = vadd.f32 %v838_v60, %v837_v25  ;;  %v1015_v10 = vadd.f32 %v1014_v40, %v1013_v21  ;;  %v844_v40 = vsel %vm754_vm0, %v2276_v48, 0.0  ;;  %v922_v60 = vmul.f32 %v2286_v63, %v2286_v63 }
 0x1a3   :  { %v1022_v49 = vsel %vm754_vm0, %v921_v57, 0.0 }
 0x1a4   :  { %v841_v58 = vadd.f32 %v840_v41, %v839_v50  ;;  %v1017_v27 = vadd.f32 %v1016_v26, %v1015_v10  ;;  %v846_v26 = vsel %vm754_vm0, %v2286_v63, 0.0  ;;  %v923_v41 = vmul.f32 %v2294_v14, %v2294_v14 }
 0x1a5   :  { %v1024_v20 = vsel %vm754_vm0, %v922_v60, 0.0 }
 0x1a6   :  { %v843_v25 = vadd.f32 %v842_v6, %v841_v58  ;;  %v1019_v21 = vadd.f32 %v1018_v42, %v1017_v27  ;;  %v848_v42 = vsel %vm754_vm0, %v2294_v14, 0.0  ;;  %v924_v6 = vmul.f32 %v2304_v39, %v2304_v39 }
 0x1a7   :  { %v1026_v57 = vsel %vm754_vm0, %v923_v41, 0.0 }
 0x1a8   :  { %v1021_v50 = vadd.f32 %v1020_v24, %v1019_v21  ;;  %v845_v10 = vadd.f32 %v844_v40, %v843_v25  ;;  %v850_v24 = vsel %vm754_vm0, %v2304_v39, 0.0  ;;  %v925_v40 = vmul.f32 %v2312_v52, %v2312_v52 }
 0x1a9   :  { %v1028_v60 = vsel %vm754_vm0, %v924_v6, 0.0 }
 0x1aa   :  { %v1023_v58 = vadd.f32 %v1022_v49, %v1021_v50  ;;  %v847_v27 = vadd.f32 %v846_v26, %v845_v10  ;;  %v852_v49 = vsel %vm754_vm0, %v2312_v52, 0.0  ;;  %v926_v26 = vmul.f32 %v2322_v19, %v2322_v19 }
 0x1ab   :  { %v1030_v41 = vsel %vm754_vm0, %v925_v40, 0.0 }
 0x1ac   :  { %v1025_v21 = vadd.f32 %v1024_v20, %v1023_v58  ;;  %v849_v25 = vadd.f32 %v848_v42, %v847_v27  ;;  %v854_v20 = vsel %vm754_vm0, %v2322_v19, 0.0  ;;  %v927_v42 = vmul.f32 %v2330_v30, %v2330_v30 }
 0x1ad   :  { %v1032_v6 = vsel %vm754_vm0, %v926_v26, 0.0 }
 0x1ae   :  { %v1027_v50 = vadd.f32 %v1026_v57, %v1025_v21  ;;  %v851_v10 = vadd.f32 %v850_v24, %v849_v25  ;;  %v856_v57 = vsel %vm754_vm0, %v2330_v30, 0.0  ;;  %v928_v24 = vmul.f32 %v2340_v61, %v2340_v61 }
 0x1af   :  { %v1034_v40 = vsel %vm754_vm0, %v927_v42, 0.0 }
 0x1b0   :  { %v1029_v58 = vadd.f32 %v1028_v60, %v1027_v50  ;;  %v853_v27 = vadd.f32 %v852_v49, %v851_v10  ;;  %v858_v60 = vsel %vm754_vm0, %v2340_v61, 0.0  ;;  %v929_v49 = vmul.f32 %v2348_v9, %v2348_v9 }
 0x1b1   :  { %v1036_v26 = vsel %vm754_vm0, %v928_v24, 0.0  ;;  %v932_v24 = vmul.f32 %v2376_v3, %v2376_v3 }
 0x1b2   :  { %v1031_v21 = vadd.f32 %v1030_v41, %v1029_v58  ;;  %v855_v25 = vadd.f32 %v854_v20, %v853_v27  ;;  %v860_v41 = vsel %vm754_vm0, %v2348_v9, 0.0  ;;  %v930_v20 = vmul.f32 %v2358_v2, %v2358_v2 }
 0x1b3   :  { %v1038_v42 = vsel %vm754_vm0, %v929_v49, 0.0 }
 0x1b4   :  { %v1033_v50 = vadd.f32 %v1032_v6, %v1031_v21  ;;  %v857_v10 = vadd.f32 %v856_v57, %v855_v25  ;;  %v862_v6 = vsel %vm754_vm0, %v2358_v2, 0.0  ;;  %v931_v57 = vmul.f32 %v2366_v59, %v2366_v59 }
 0x1b6   :  { %v1035_v58 = vadd.f32 %v1034_v40, %v1033_v50  ;;  %v859_v27 = vadd.f32 %v858_v60, %v857_v10  ;;  %v1040_v40 = vsel %vm754_vm0, %v930_v20, 0.0  ;;  %v864_v60 = vsel %vm754_vm0, %v2366_v59, 0.0 }
 0x1b8   :  { %v1037_v21 = vadd.f32 %v1036_v26, %v1035_v58  ;;  %v861_v25 = vadd.f32 %v860_v41, %v859_v27  ;;  %v867_v58 = vsel %vm866_vm1, %v2376_v3, 0.0  ;;  %v1042_v26 = vsel %vm754_vm0, %v931_v57, 0.0 }
 0x1b9   :  { %v1044_v41 = vsel %vm866_vm1, %v932_v24, 0.0 }
 0x1ba   :  { %v1039_v50 = vadd.f32 %v1038_v42, %v1037_v21  ;;  %v863_v10 = vadd.f32 %v862_v6, %v861_v25 }
 0x1bc   :  { %v1041_v27 = vadd.f32 %v1040_v40, %v1039_v50  ;;  %v865_v49 = vadd.f32 %v864_v60, %v863_v10 }
 0x1be   :  { %v1043_v2 = vadd.f32 %v1042_v26, %v1041_v27  ;;  %v868_v9 = vadd.f32 %v867_v58, %v865_v49  ;;  %v1064_v58 = vlaneseq }
 0x1c0   :  { %v869_v61 = vrot.slane %v868_v9, 4  ;;  %v1045_v30 = vadd.f32 %v1044_v41, %v1043_v2  ;;  %v2537_v2 = vshrl.u32 %v1064_v58, 7  ;;  %v3195_v58 = vld [vmem:[#allocation16_spill] sm:$0xff] }
 0x1c2   :  { %v870_v19 = vadd.f32 %v869_v61, %v868_v9  ;;  %v1046_v52 = vrot.slane %v1045_v30, 4  ;;  %3188 = vst [vmem:[#allocation21_spill] sm:$0xff] %v2537_v2 }
 0x1c4   :  { %v871_v21 = vrot.slane %v870_v19, 2  ;;  %v1047_v25 = vadd.f32 %v1046_v52, %v1045_v30  ;;  %v1056_v52 = vld [vmem:[%s3137_s2] sm:$0x1] }
 0x1c6   :  { %v872_v42 = vadd.f32 %v871_v21, %v870_v19  ;;  %v1048_v20 = vrot.slane %v1047_v25, 2  ;;  %v3159_v19 = vsub.s32 0, %v2537_v2  ;;  %v3202_v2 = vld [vmem:[#allocation9_spill] sm:$0xff] }
 0x1c8   :  { %v873_v6 = vrot.slane %v872_v42, 1  ;;  %v1049_v39 = vadd.f32 %v1048_v20, %v1047_v25 }
 0x1ca   :  { %v874_v59 = vadd.f32 %v873_v6, %v872_v42  ;;  %v1050_v14 = vrot.slane %v1049_v39, 1 }
 0x1cc   :  { %v875_v3 = vmul.f32 0.0022222223, %v874_v59  ;;  %v1051_v50 = vadd.f32 %v1050_v14, %v1049_v39  ;;  %v1060_v14 = vld [vmem:[%s3138_s3] sm:$0x1] }
 0x1ce   :  { %v1052_v10 = vmul.f32 0.0022222223, %v1051_v50  ;;  %v1053_v40 = vmul.f32 %v875_v3, %v875_v3  ;;  %v3189_v50 = vld [vmem:[#allocation4_spill] sm:$0xff] }
 0x1d0   :  { %v1054_v57 = vsub.f32 %v1052_v10, %v1053_v40  ;;  %v3190_v10 = vld [vmem:[#allocation6_spill] sm:$0xff]  ;;  %v3191_v40 = vld [vmem:[#allocation8_spill] sm:$0xff] }
 0x1d2   :  { %v1055_v24 = vmax.f32 %v1054_v57, 0.0  ;;  %v3192_v57 = vld [vmem:[#allocation10_spill] sm:$0xff] }
 0x1d4   :  { %v1057_v60 = vadd.f32 0.001, %v1055_v24  ;;  %v3193_v24 = vld [vmem:[#allocation12_spill] sm:$0xff] }
 0x1d6   :  { %1861 = vrsqrt.f32 %v1057_v60  ;;  %v3194_v60 = vld [vmem:[#allocation14_spill] sm:$0xff] }
 0x1e0   :  { %v1862_v30 = vpop.eup %1861 }
 0x1e1   :  { %v1059_v61 = vmul.f32 %v1862_v30, %v1056_v52  ;;  %v3196_v52 = vld [vmem:[#allocation18_spill] sm:$0xff]  ;;  %v3197_v30 = vld [vmem:[#allocation20_spill] sm:$0xff] }
 0x1e3   :  { %v1061_v39 = vmul.f32 %v1059_v61, %v875_v3  ;;  %v1067_v9 = vrot.slane %v1059_v61, %v3159_v19  ;;  %v3201_v19 = vld [vmem:[#allocation7_spill] sm:$0xff] }
 0x1e5   :  { %v1062_v59 = vsub.f32 %v1060_v14, %v1061_v39  ;;  %v1069_v27 = vmul.f32 %v1067_v9, %v2140_v12  ;;  %v1070_v49 = vmul.f32 %v1067_v9, %v2146_v17  ;;  %v1071_v26 = vmul.f32 %v1067_v9, %v2158_v28 }
 0x1e6   :  { %v1072_v41 = vmul.f32 %v1067_v9, %v2166_v35  ;;  %v1073_v21 = vmul.f32 %v1067_v9, %v2176_v46  ;;  %v1074_v25 = vmul.f32 %v1067_v9, %v2184_v53  ;;  %v1075_v42 = vmul.f32 %v1067_v9, %v2194_v0 }
 0x1e7   :  { %v1076_v3 = vmul.f32 %v1067_v9, %v2202_v7  ;;  %v1077_v20 = vmul.f32 %v1067_v9, %v2212_v22  ;;  %v1078_v6 = vmul.f32 %v1067_v9, %v2220_v31  ;;  %v1079_v12 = vmul.f32 %v1067_v9, %v2230_v44 }
 0x1e8   :  { %v1080_v17 = vmul.f32 %v1067_v9, %v2238_v55  ;;  %v1081_v28 = vmul.f32 %v1067_v9, %v2248_v4  ;;  %v1082_v35 = vmul.f32 %v1067_v9, %v2256_v15  ;;  %v1083_v46 = vmul.f32 %v1067_v9, %v2266_v34 }
 0x1e9   :  { %v1084_v53 = vmul.f32 %v1067_v9, %v2274_v43  ;;  %v1085_v0 = vmul.f32 %v1067_v9, %v2284_v62  ;;  %v1086_v7 = vmul.f32 %v1067_v9, %v2292_v11  ;;  %v1087_v22 = vmul.f32 %v1067_v9, %v2302_v38 }
 0x1ea   :  { %v1088_v31 = vmul.f32 %v1067_v9, %v3189_v50  ;;  %v1089_v44 = vmul.f32 %v1067_v9, %v3190_v10  ;;  %v1090_v55 = vmul.f32 %v1067_v9, %v3191_v40  ;;  %v1091_v4 = vmul.f32 %v1067_v9, %v3192_v57 }
 0x1eb   :  { %v1092_v15 = vmul.f32 %v1067_v9, %v3193_v24  ;;  %v1093_v34 = vmul.f32 %v1067_v9, %v3194_v60  ;;  %v1094_v43 = vmul.f32 %v1067_v9, %v3195_v58  ;;  %v1095_v62 = vmul.f32 %v1067_v9, %v3196_v52  ;;  %v3198_v58 = vld [vmem:[#allocation2_spill] sm:$0xff]  ;;  %v3199_v52 = vld [vmem:[#allocation3_spill] sm:$0xff] }
 0x1ec   :  { %v1096_v11 = vmul.f32 %v1067_v9, %v2382_v33  ;;  %v1097_v38 = vmul.f32 %v1067_v9, %v3197_v30  ;;  %v1098_v61 = vmul.f32 %v1067_v9, %v2396_v51  ;;  %v1099_v14 = vmul.f32 %v1067_v9, %v2142_v13  ;;  %v3200_v30 = vld [vmem:[#allocation5_spill] sm:$0xff] }
 0x1ed   :  { %v1100_v39 = vmul.f32 %v1067_v9, %v2148_v18  ;;  %v1101_v50 = vmul.f32 %v1067_v9, %v2160_v29  ;;  %v1102_v10 = vmul.f32 %v1067_v9, %v2168_v36  ;;  %v1103_v40 = vmul.f32 %v1067_v9, %v2178_v47 }
 0x1ee   :  { %v1104_v57 = vmul.f32 %v1067_v9, %v2186_v54  ;;  %v1105_v24 = vmul.f32 %v1067_v9, %v2196_v1  ;;  %v1106_v33 = vmul.f32 %v1067_v9, %v2204_v8  ;;  %v1107_v60 = vmul.f32 %v1067_v9, %v2214_v23 }
 0x1ef   :  { %v1108_v51 = vmul.f32 %v1067_v9, %v2222_v32  ;;  %v1109_v13 = vmul.f32 %v1067_v9, %v2232_v45  ;;  %v1110_v18 = vmul.f32 %v1067_v9, %v2240_v56  ;;  %v1111_v29 = vmul.f32 %v1067_v9, %v2250_v5  ;;  %v3203_v5 = vld [vmem:[#allocation11_spill] sm:$0xff] }
 0x1f0   :  { %v1112_v36 = vmul.f32 %v1067_v9, %v2258_v16  ;;  %v1113_v47 = vmul.f32 %v1067_v9, %v2268_v37  ;;  %v1114_v54 = vmul.f32 %v1067_v9, %v2276_v48  ;;  %v1115_v1 = vmul.f32 %v1067_v9, %v2286_v63  ;;  %v3204_v37 = vld [vmem:[#allocation13_spill] sm:$0xff]  ;;  %v3205_v63 = vld [vmem:[#allocation15_spill] sm:$0xff] }
 0x1f1   :  { %v1116_v8 = vmul.f32 %v1067_v9, %v3198_v58  ;;  %v1117_v23 = vmul.f32 %v1067_v9, %v3199_v52  ;;  %v1118_v32 = vmul.f32 %v1067_v9, %v3200_v30  ;;  %v1119_v45 = vmul.f32 %v1067_v9, %v3201_v19  ;;  %v3206_v52 = vld [vmem:[#allocation17_spill] sm:$0xff]  ;;  %v3207_v19 = vld [vmem:[#allocation19_spill] sm:$0xff] }
 0x1f2   :  { %v1120_v56 = vmul.f32 %v1067_v9, %v3202_v2  ;;  %v1121_v16 = vmul.f32 %v1067_v9, %v3203_v5  ;;  %v1122_v48 = vmul.f32 %v1067_v9, %v3204_v37  ;;  %v1123_v58 = vmul.f32 %v1067_v9, %v3205_v63  ;;  %v3208_v5 = vld [vmem:[#allocation21_spill] sm:$0xff] }
 0x1f3   :  { %v1124_v30 = vmul.f32 %v1067_v9, %v3206_v52  ;;  %v1125_v2 = vmul.f32 %v1067_v9, %v3207_v19  ;;  %v3209_v37 = vsub.s32 0, %v3208_v5 }
 0x1f5   :  { %v1130_v63 = vrot.slane %v1062_v59, %v3209_v37 }
 0x1f7   :  { %v2607_v52 = vadd.f32 %v1130_v63, %v1069_v27  ;;  %v2609_v9 = vadd.f32 %v1130_v63, %v1070_v49  ;;  %v2611_v19 = vadd.f32 %v1130_v63, %v1071_v26  ;;  %v2613_v5 = vadd.f32 %v1130_v63, %v1072_v41 }
 0x1f8   :  { %v2615_v37 = vadd.f32 %v1130_v63, %v1073_v21  ;;  %v2617_v59 = vadd.f32 %v1130_v63, %v1074_v25  ;;  %v2619_v27 = vadd.f32 %v1130_v63, %v1075_v42  ;;  %v2623_v49 = vadd.f32 %v1130_v63, %v1077_v20 }
 0x1f9   :  { %3210 = vst [vmem:[#allocation4_spill] sm:$0xff] %v2607_v52  ;;  %3211 = vst [vmem:[#allocation6_spill] sm:$0xff] %v2609_v9  ;;  %v2621_v52 = vadd.f32 %v1130_v63, %v1076_v3  ;;  %v2625_v9 = vadd.f32 %v1130_v63, %v1078_v6  ;;  %v2627_v26 = vadd.f32 %v1130_v63, %v1079_v12 }
 0x1fa   :  { %3212 = vst [vmem:[#allocation8_spill] sm:$0xff] %v2611_v19  ;;  %3213 = vst [vmem:[#allocation10_spill] sm:$0xff] %v2613_v5  ;;  %v2629_v19 = vadd.f32 %v1130_v63, %v1080_v17  ;;  %v2631_v41 = vadd.f32 %v1130_v63, %v1081_v28  ;;  %v2633_v5 = vadd.f32 %v1130_v63, %v1082_v35 }
 0x1fb   :  { %v2635_v21 = vadd.f32 %v1130_v63, %v1083_v46  ;;  %v2637_v25 = vadd.f32 %v1130_v63, %v1084_v53  ;;  %v2639_v42 = vadd.f32 %v1130_v63, %v1085_v0  ;;  %v2641_v3 = vadd.f32 %v1130_v63, %v1086_v7 }
 0x1fc   :  { %v2643_v20 = vadd.f32 %v1130_v63, %v1087_v22  ;;  %v2645_v6 = vadd.f32 %v1130_v63, %v1088_v31  ;;  %v2647_v12 = vadd.f32 %v1130_v63, %v1089_v44  ;;  %v2649_v17 = vadd.f32 %v1130_v63, %v1090_v55 }
 0x1fd   :  { %v2651_v28 = vadd.f32 %v1130_v63, %v1091_v4  ;;  %v2653_v35 = vadd.f32 %v1130_v63, %v1092_v15  ;;  %v2655_v46 = vadd.f32 %v1130_v63, %v1093_v34  ;;  %v2657_v53 = vadd.f32 %v1130_v63, %v1094_v43 }
 0x1fe   :  { %v2659_v0 = vadd.f32 %v1130_v63, %v1095_v62  ;;  %v2661_v7 = vadd.f32 %v1130_v63, %v1096_v11  ;;  %v2663_v22 = vadd.f32 %v1130_v63, %v1097_v38  ;;  %v2665_v31 = vadd.f32 %v1130_v63, %v1098_v61 }
 0x1ff   :  { %v2667_v44 = vadd.f32 %v1130_v63, %v1099_v14  ;;  %v2669_v55 = vadd.f32 %v1130_v63, %v1100_v39  ;;  %v2671_v4 = vadd.f32 %v1130_v63, %v1101_v50  ;;  %v2673_v15 = vadd.f32 %v1130_v63, %v1102_v10 }
 0x200   :  { %v2675_v34 = vadd.f32 %v1130_v63, %v1103_v40  ;;  %v2677_v43 = vadd.f32 %v1130_v63, %v1104_v57  ;;  %v2679_v62 = vadd.f32 %v1130_v63, %v1105_v24  ;;  %v2681_v11 = vadd.f32 %v1130_v63, %v1106_v33 }
 0x201   :  { %v2683_v38 = vadd.f32 %v1130_v63, %v1107_v60  ;;  %v2685_v61 = vadd.f32 %v1130_v63, %v1108_v51  ;;  %v2687_v14 = vadd.f32 %v1130_v63, %v1109_v13  ;;  %v2689_v39 = vadd.f32 %v1130_v63, %v1110_v18 }
 0x202   :  { %3214 = vst [vmem:[#allocation12_spill] sm:$0xff] %v2681_v11  ;;  %v2691_v50 = vadd.f32 %v1130_v63, %v1111_v29  ;;  %v2693_v10 = vadd.f32 %v1130_v63, %v1112_v36  ;;  %v2695_v40 = vadd.f32 %v1130_v63, %v1113_v47  ;;  %v2697_v57 = vadd.f32 %v1130_v63, %v1114_v54 }
 0x203   :  { %3215 = vst [vmem:[#allocation14_spill] sm:$0xff] %v2683_v38  ;;  %3216 = vst [vmem:[#allocation16_spill] sm:$0xff] %v2685_v61  ;;  %v2699_v24 = vadd.f32 %v1130_v63, %v1115_v1  ;;  %v2701_v33 = vadd.f32 %v1130_v63, %v1116_v8  ;;  %v2703_v60 = vadd.f32 %v1130_v63, %v1117_v23  ;;  %v3222_v8 = vld [vmem:[#allocation4_spill] sm:$0xff]  ;;  %v3223_v23 = vld [vmem:[#allocation6_spill] sm:$0xff] }
 0x204   :  { %v2705_v51 = vadd.f32 %v1130_v63, %v1118_v32  ;;  %v2707_v13 = vadd.f32 %v1130_v63, %v1119_v45  ;;  %v2709_v18 = vadd.f32 %v1130_v63, %v1120_v56  ;;  %v2711_v29 = vadd.f32 %v1130_v63, %v1121_v16  ;;  %v3224_v32 = vld [vmem:[#allocation8_spill] sm:$0xff]  ;;  %v3225_v45 = vld [vmem:[#allocation10_spill] sm:$0xff] }
 0x205   :  { %3217 = vst [vmem:[#allocation18_spill] sm:$0xff] %v2699_v24  ;;  %3218 = vst [vmem:[#allocation20_spill] sm:$0xff] %v2701_v33  ;;  %v2713_v36 = vadd.f32 %v1130_v63, %v1122_v48  ;;  %v2715_v47 = vadd.f32 %v1130_v63, %v1123_v58  ;;  %v2717_v54 = vadd.f32 %v1130_v63, %v1124_v30  ;;  %v1189_v33 = vmax.f32 %v3222_v8, 0.0 }
 0x206   :  { %3219 = vst [vmem:[#allocation2_spill] sm:$0xff] %v2703_v60  ;;  %3220 = vst [vmem:[#allocation3_spill] sm:$0xff] %v2705_v51  ;;  %v2719_v1 = vadd.f32 %v1130_v63, %v1125_v2  ;;  %v1190_v60 = vmax.f32 %v3223_v23, 0.0  ;;  %v1191_v51 = vmax.f32 %v3224_v32, 0.0  ;;  %v1193_v56 = vmax.f32 %v2615_v37, 0.0 }
 0x207   :  { %3221 = vst [vmem:[#allocation5_spill] sm:$0xff] %v2707_v13  ;;  %v1192_v13 = vmax.f32 %v3225_v45, 0.0  ;;  %v1194_v16 = vmax.f32 %v2617_v59, 0.0  ;;  %v1195_v48 = vmax.f32 %v2619_v27, 0.0  ;;  %v1196_v58 = vmax.f32 %v2621_v52, 0.0 }
 0x208   :  { %v1197_v30 = vmax.f32 %v2623_v49, 0.0  ;;  %v1198_v2 = vmax.f32 %v2625_v9, 0.0  ;;  %v1199_v63 = vmax.f32 %v2627_v26, 0.0  ;;  %v1200_v8 = vmax.f32 %v2629_v19, 0.0 }
 0x209   :  { %v1201_v23 = vmax.f32 %v2631_v41, 0.0  ;;  %v1202_v32 = vmax.f32 %v2633_v5, 0.0  ;;  %v1241_v41 = vmax.f32 %v2711_v29, 0.0  ;;  %v1242_v5 = vmax.f32 %v2713_v36, 0.0 }
 0x20a   :  { %v1243_v45 = vmax.f32 %v2715_v47, 0.0  ;;  %v1244_v59 = vmax.f32 %v2717_v54, 0.0  ;;  %v1245_v27 = vmax.f32 %v2719_v1, 0.0  ;;  %v1669_v24 = vpack.c.bf16 %v1189_v33, %v1189_v33 }
 0x20b   :  { %v1670_v52 = vpack.c.bf16 %v1190_v60, %v1190_v60  ;;  %v1671_v37 = vpack.c.bf16 %v1191_v51, %v1191_v51  ;;  %v1672_v49 = vpack.c.bf16 %v1192_v13, %v1192_v13  ;;  %v1673_v11 = vpack.c.bf16 %v1193_v56, %v1193_v56 }
 0x20c   :  { %v1674_v9 = vpack.c.bf16 %v1194_v16, %v1194_v16  ;;  %v1675_v38 = vpack.c.bf16 %v1195_v48, %v1195_v48  ;;  %v1676_v26 = vpack.c.bf16 %v1196_v58, %v1196_v58  ;;  %v1677_v61 = vpack.c.bf16 %v1197_v30, %v1197_v30  ;;  %1476 = vst.msk [vmem:[%s3139_s4] sm:$0xf] %vm1475_vm2, %v1669_v24 }
 0x20d   :  { %v1678_v19 = vpack.c.bf16 %v1198_v2, %v1198_v2  ;;  %1477 = vst.msk [vmem:[%s3139_s4 + $0x4] sm:$0xf] %vm1475_vm2, %v1670_v52  ;;  %v1679_v33 = vpack.c.bf16 %v1199_v63, %v1199_v63  ;;  %v1680_v60 = vpack.c.bf16 %v1200_v8, %v1200_v8  ;;  %v1681_v51 = vpack.c.bf16 %v1201_v23, %v1201_v23 }
 0x20e   :  { %v1682_v13 = vpack.c.bf16 %v1202_v32, %v1202_v32  ;;  %1478 = vst.msk [vmem:[%s3139_s4 + $0x8] sm:$0xf] %vm1475_vm2, %v1671_v37  ;;  %1479 = vst.msk [vmem:[%s3139_s4 + $0xc] sm:$0xf] %vm1475_vm2, %v1672_v49  ;;  %v3230_v24 = vmax.f32 %v2635_v21, 0.0  ;;  %v3231_v16 = vmax.f32 %v2637_v25, 0.0  ;;  %v1724_v29 = vpack.c.bf16 %v1244_v59, %v1244_v59 }
 0x20f   :  { %1480 = vst.msk [vmem:[%s3139_s4 + $0x10] sm:$0xf] %vm1475_vm2, %v1673_v11  ;;  %1481 = vst.msk [vmem:[%s3139_s4 + $0x14] sm:$0xf] %vm1475_vm2, %v1674_v9  ;;  %v3232_v58 = vmax.f32 %v2639_v42, 0.0  ;;  %v3233_v2 = vmax.f32 %v2641_v3, 0.0  ;;  %v1725_v36 = vpack.c.bf16 %v1245_v27, %v1245_v27 }
 0x210   :  { %v1683_v56 = vpack.c.bf16 %v3230_v24, %v3230_v24  ;;  %v1684_v48 = vpack.c.bf16 %v3231_v16, %v3231_v16  ;;  %1482 = vst.msk [vmem:[%s3139_s4 + $0x18] sm:$0xf] %vm1475_vm2, %v1675_v38  ;;  %1483 = vst.msk [vmem:[%s3139_s4 + $0x1c] sm:$0xf] %vm1475_vm2, %v1676_v26  ;;  %v3234_v21 = vmax.f32 %v2643_v20, 0.0  ;;  %v3235_v42 = vmax.f32 %v2645_v6, 0.0 }
 0x211   :  { %v1685_v30 = vpack.c.bf16 %v3232_v58, %v3232_v58  ;;  %v1686_v11 = vpack.c.bf16 %v3233_v2, %v3233_v2  ;;  %1484 = vst.msk [vmem:[%s3139_s4 + $0x20] sm:$0xf] %vm1475_vm2, %v1677_v61  ;;  %1485 = vst.msk [vmem:[%s3139_s4 + $0x24] sm:$0xf] %vm1475_vm2, %v1678_v19  ;;  %v3236_v38 = vmax.f32 %v2647_v12, 0.0  ;;  %v3237_v8 = vmax.f32 %v2649_v17, 0.0 }
 0x212   :  { %v1687_v25 = vpack.c.bf16 %v3234_v21, %v3234_v21  ;;  %v1688_v3 = vpack.c.bf16 %v3235_v42, %v3235_v42  ;;  %1486 = vst.msk [vmem:[%s3139_s4 + $0x28] sm:$0xf] %vm1475_vm2, %v1679_v33  ;;  %1487 = vst.msk [vmem:[%s3139_s4 + $0x2c] sm:$0xf] %vm1475_vm2, %v1680_v60  ;;  %v3238_v20 = vmax.f32 %v2651_v28, 0.0  ;;  %v3239_v12 = vmax.f32 %v2653_v35, 0.0 }
 0x213   :  { %v1689_v63 = vpack.c.bf16 %v3236_v38, %v3236_v38  ;;  %v1690_v61 = vpack.c.bf16 %v3237_v8, %v3237_v8  ;;  %1488 = vst.msk [vmem:[%s3139_s4 + $0x30] sm:$0xf] %vm1475_vm2, %v1681_v51  ;;  %1489 = vst.msk [vmem:[%s3139_s4 + $0x34] sm:$0xf] %vm1475_vm2, %v1682_v13  ;;  %v3240_v23 = vmax.f32 %v2655_v46, 0.0  ;;  %v3241_v37 = vmax.f32 %v2657_v53, 0.0 }
 0x214   :  { %v1691_v6 = vpack.c.bf16 %v3238_v20, %v3238_v20  ;;  %v1692_v17 = vpack.c.bf16 %v3239_v12, %v3239_v12  ;;  %1490 = vst.msk [vmem:[%s3139_s4 + $0x38] sm:$0xf] %vm1475_vm2, %v1683_v56  ;;  %1491 = vst.msk [vmem:[%s3139_s4 + $0x3c] sm:$0xf] %vm1475_vm2, %v1684_v48  ;;  %v3242_v28 = vmax.f32 %v2659_v0, 0.0  ;;  %v3243_v46 = vmax.f32 %v2661_v7, 0.0 }
 0x215   :  { %v1693_v32 = vpack.c.bf16 %v3240_v23, %v3240_v23  ;;  %v1694_v52 = vpack.c.bf16 %v3241_v37, %v3241_v37  ;;  %1492 = vst.msk [vmem:[%s3139_s4 + $0x40] sm:$0xf] %vm1475_vm2, %v1685_v30  ;;  %1493 = vst.msk [vmem:[%s3139_s4 + $0x44] sm:$0xf] %vm1475_vm2, %v1686_v11  ;;  %v3244_v49 = vmax.f32 %v2663_v22, 0.0  ;;  %v3245_v26 = vmax.f32 %v2665_v31, 0.0 }
 0x216   :  { %v1695_v35 = vpack.c.bf16 %v3242_v28, %v3242_v28  ;;  %v1696_v53 = vpack.c.bf16 %v3243_v46, %v3243_v46  ;;  %1494 = vst.msk [vmem:[%s3139_s4 + $0x48] sm:$0xf] %vm1475_vm2, %v1687_v25  ;;  %1495 = vst.msk [vmem:[%s3139_s4 + $0x4c] sm:$0xf] %vm1475_vm2, %v1688_v3  ;;  %v3246_v0 = vmax.f32 %v2667_v44, 0.0  ;;  %v3247_v22 = vmax.f32 %v2669_v55, 0.0 }
 0x217   :  { %v1697_v9 = vpack.c.bf16 %v3244_v49, %v3244_v49  ;;  %v1698_v19 = vpack.c.bf16 %v3245_v26, %v3245_v26  ;;  %1496 = vst.msk [vmem:[%s3139_s4 + $0x50] sm:$0xf] %vm1475_vm2, %v1689_v63  ;;  %1497 = vst.msk [vmem:[%s3139_s4 + $0x54] sm:$0xf] %vm1475_vm2, %v1690_v61  ;;  %v3248_v33 = vmax.f32 %v2671_v4, 0.0  ;;  %v3249_v51 = vmax.f32 %v2673_v15, 0.0 }
 0x218   :  { %v1699_v7 = vpack.c.bf16 %v3246_v0, %v3246_v0  ;;  %v1700_v31 = vpack.c.bf16 %v3247_v22, %v3247_v22  ;;  %1498 = vst.msk [vmem:[%s3139_s4 + $0x58] sm:$0xf] %vm1475_vm2, %v1691_v6  ;;  %1499 = vst.msk [vmem:[%s3139_s4 + $0x5c] sm:$0xf] %vm1475_vm2, %v1692_v17  ;;  %v3250_v44 = vmax.f32 %v2675_v34, 0.0  ;;  %v3251_v4 = vmax.f32 %v2677_v43, 0.0 }
 0x219   :  { %v1701_v60 = vpack.c.bf16 %v3248_v33, %v3248_v33  ;;  %v1702_v13 = vpack.c.bf16 %v3249_v51, %v3249_v51  ;;  %1500 = vst.msk [vmem:[%s3139_s4 + $0x60] sm:$0xf] %vm1475_vm2, %v1693_v32  ;;  %1501 = vst.msk [vmem:[%s3139_s4 + $0x64] sm:$0xf] %vm1475_vm2, %v1694_v52  ;;  %v3252_v24 = vmax.f32 %v2679_v62, 0.0  ;;  %v3253_v16 = vld [vmem:[#allocation12_spill] sm:$0xff]  ;;  %v1722_v0 = vpack.c.bf16 %v1242_v5, %v1242_v5 }
 0x21a   :  { %v1703_v55 = vpack.c.bf16 %v3250_v44, %v3250_v44  ;;  %v1704_v15 = vpack.c.bf16 %v3251_v4, %v3251_v4  ;;  %v3254_v48 = vmax.f32 %v3253_v16, 0.0  ;;  %1502 = vst.msk [vmem:[%s3139_s4 + $0x68] sm:$0xf] %vm1475_vm2, %v1695_v35  ;;  %1503 = vst.msk [vmem:[%s3139_s4 + $0x6c] sm:$0xf] %vm1475_vm2, %v1696_v53  ;;  %v3255_v34 = vld [vmem:[#allocation14_spill] sm:$0xff] }
 0x21b   :  { %v1705_v56 = vpack.c.bf16 %v3252_v24, %v3252_v24  ;;  %1504 = vst.msk [vmem:[%s3139_s4 + $0x70] sm:$0xf] %vm1475_vm2, %v1697_v9  ;;  %1505 = vst.msk [vmem:[%s3139_s4 + $0x74] sm:$0xf] %vm1475_vm2, %v1698_v19  ;;  %v3256_v43 = vmax.f32 %v3255_v34, 0.0  ;;  %v3257_v30 = vld [vmem:[#allocation16_spill] sm:$0xff]  ;;  %v1721_v19 = vpack.c.bf16 %v1241_v41, %v1241_v41 }
 0x21c   :  { %v1706_v58 = vpack.c.bf16 %v3254_v48, %v3254_v48  ;;  %v3258_v2 = vmax.f32 %v3257_v30, 0.0  ;;  %v3259_v21 = vmax.f32 %v2687_v14, 0.0  ;;  %v3260_v42 = vmax.f32 %v2689_v39, 0.0  ;;  %1506 = vst.msk [vmem:[%s3139_s4 + $0x78] sm:$0xf] %vm1475_vm2, %v1699_v7  ;;  %v3269_v23 = vld [vmem:[#allocation2_spill] sm:$0xff] }
 0x21d   :  { %v1707_v62 = vpack.c.bf16 %v3256_v43, %v3256_v43  ;;  %1507 = vst.msk [vmem:[%s3139_s4 + $0x7c] sm:$0xf] %vm1475_vm2, %v1700_v31  ;;  %1508 = vst.msk [vmem:[%s3139_s4 + $0x80] sm:$0xf] %vm1475_vm2, %v1701_v60  ;;  %v3261_v14 = vmax.f32 %v2691_v50, 0.0  ;;  %v3262_v38 = vmax.f32 %v2693_v10, 0.0 }
 0x21e   :  { %v1708_v11 = vpack.c.bf16 %v3258_v2, %v3258_v2  ;;  %v1709_v25 = vpack.c.bf16 %v3259_v21, %v3259_v21  ;;  %v1710_v3 = vpack.c.bf16 %v3260_v42, %v3260_v42  ;;  %1509 = vst.msk [vmem:[%s3139_s4 + $0x84] sm:$0xf] %vm1475_vm2, %v1702_v13  ;;  %v3263_v8 = vmax.f32 %v2695_v40, 0.0  ;;  %1510 = vst.msk [vmem:[%s3139_s4 + $0x88] sm:$0xf] %vm1475_vm2, %v1703_v55  ;;  %v3265_v50 = vld [vmem:[#allocation18_spill] sm:$0xff] }
 0x21f   :  { %v1711_v39 = vpack.c.bf16 %v3261_v14, %v3261_v14  ;;  %v1712_v63 = vpack.c.bf16 %v3262_v38, %v3262_v38  ;;  %v3264_v20 = vmax.f32 %v2697_v57, 0.0  ;;  %1511 = vst.msk [vmem:[%s3139_s4 + $0x8c] sm:$0xf] %vm1475_vm2, %v1704_v15  ;;  %1512 = vst.msk [vmem:[%s3139_s4 + $0x90] sm:$0xf] %vm1475_vm2, %v1705_v56  ;;  %v3266_v10 = vmax.f32 %v3265_v50, 0.0 }
 0x220   :  { %v1713_v61 = vpack.c.bf16 %v3263_v8, %v3263_v8  ;;  %1513 = vst.msk [vmem:[%s3139_s4 + $0x94] sm:$0xf] %vm1475_vm2, %v1706_v58  ;;  %v3267_v57 = vld [vmem:[#allocation20_spill] sm:$0xff]  ;;  %v3270_v32 = vmax.f32 %v3269_v23, 0.0  ;;  %v3271_v52 = vld [vmem:[#allocation3_spill] sm:$0xff]  ;;  %v3273_v46 = vld [vmem:[#allocation5_spill] sm:$0xff] }
 0x221   :  { %v1714_v6 = vpack.c.bf16 %v3264_v20, %v3264_v20  ;;  %v1715_v40 = vpack.c.bf16 %v3266_v10, %v3266_v10  ;;  %v3268_v12 = vmax.f32 %v3267_v57, 0.0  ;;  %v3272_v28 = vmax.f32 %v3271_v52, 0.0  ;;  %1514 = vst.msk [vmem:[%s3139_s4 + $0x98] sm:$0xf] %vm1475_vm2, %v1707_v62  ;;  %1515 = vst.msk [vmem:[%s3139_s4 + $0x9c] sm:$0xf] %vm1475_vm2, %v1708_v11 }
 0x222   :  { %v1717_v37 = vpack.c.bf16 %v3270_v32, %v3270_v32  ;;  %1516 = vst.msk [vmem:[%s3139_s4 + $0xa0] sm:$0xf] %vm1475_vm2, %v1709_v25  ;;  %1517 = vst.msk [vmem:[%s3139_s4 + $0xa4] sm:$0xf] %vm1475_vm2, %v1710_v3  ;;  %v3274_v53 = vmax.f32 %v3273_v46, 0.0  ;;  %v3275_v9 = vmax.f32 %v2709_v18, 0.0  ;;  %v1723_v18 = vpack.c.bf16 %v1243_v45, %v1243_v45 }
 0x223   :  { %v1716_v17 = vpack.c.bf16 %v3268_v12, %v3268_v12  ;;  %v1718_v35 = vpack.c.bf16 %v3272_v28, %v3272_v28  ;;  %1518 = vst.msk [vmem:[%s3139_s4 + $0xa8] sm:$0xf] %vm1475_vm2, %v1711_v39  ;;  %1519 = vst.msk [vmem:[%s3139_s4 + $0xac] sm:$0xf] %vm1475_vm2, %v1712_v63 }
 0x224   :  { %v1719_v49 = vpack.c.bf16 %v3274_v53, %v3274_v53  ;;  %v1720_v26 = vpack.c.bf16 %v3275_v9, %v3275_v9  ;;  %1520 = vst.msk [vmem:[%s3139_s4 + $0xb0] sm:$0xf] %vm1475_vm2, %v1713_v61  ;;  %1521 = vst.msk [vmem:[%s3139_s4 + $0xb4] sm:$0xf] %vm1475_vm2, %v1714_v6 }
 0x225   :  { %1522 = vst.msk [vmem:[%s3139_s4 + $0xb8] sm:$0xf] %vm1475_vm2, %v1715_v40  ;;  %1523 = vst.msk [vmem:[%s3139_s4 + $0xbc] sm:$0xf] %vm1475_vm2, %v1716_v17 }
 0x226   :  { %1524 = vst.msk [vmem:[%s3139_s4 + $0xc0] sm:$0xf] %vm1475_vm2, %v1717_v37  ;;  %1525 = vst.msk [vmem:[%s3139_s4 + $0xc4] sm:$0xf] %vm1475_vm2, %v1718_v35 }
 0x227   :  { %1526 = vst.msk [vmem:[%s3139_s4 + $0xc8] sm:$0xf] %vm1475_vm2, %v1719_v49  ;;  %1527 = vst.msk [vmem:[%s3139_s4 + $0xcc] sm:$0xf] %vm1475_vm2, %v1720_v26 }
 0x228   :  { %1528 = vst.msk [vmem:[%s3139_s4 + $0xd0] sm:$0xf] %vm1475_vm2, %v1721_v19  ;;  %1529 = vst.msk [vmem:[%s3139_s4 + $0xd4] sm:$0xf] %vm1475_vm2, %v1722_v0 }
 0x229   :  { %1530 = vst.msk [vmem:[%s3139_s4 + $0xd8] sm:$0xf] %vm1475_vm2, %v1723_v18  ;;  %1531 = vst.msk [vmem:[%s3139_s4 + $0xdc] sm:$0xf] %vm1475_vm2, %v1724_v29 }
 0x22a   :  { %1533 = vst.msk [vmem:[%s3139_s4 + $0xe0] sm:$0x1] %vm1532_vm3, %v1725_v36 }

// kernel: inception_v4_stem_forward.12
= control target key start
LH: loop header
LB: loop body
LE: loop exit
PB: predicated region body
PF: predicated region fallthrough
CT: control target
= control target key end

     0   :  { %v1675_v1 = vmov 0.0   ;;  %vm1676_vm0 = vmmov 0   ;;  %s1677_s12 = smov 96   ;;  %s1678_s22 = smov 64   ;;  %vm519_vm1 = vcmask 392192   ;;  %vm1213_vm2 = vcmask 257024   ;;  %s2618_s1 = inlined_call_operand.vmem [shape: bf16[384,48], index: 1, kind: input, shape index: {}]   ;;  %s2619_s0 = inlined_call_operand.vmem [shape: bf16[98,384], index: 0, kind: input, shape index: {}]   ;;  %s2620_s4 = inlined_call_operand.vmem [shape: bf16[98,80], index: 4, kind: output, shape index: {}]   ;;  %s2621_s2 = inlined_call_operand.vmem [shape: f32[1,48], index: 2, kind: input, shape index: {}]   ;;  %s2622_s3 = inlined_call_operand.vmem [shape: f32[1,48], index: 3, kind: input, shape index: {}]  }
   0x1   :  { %v1628_v0 = vld [vmem:[%s2618_s1 + $0x40] sm:$0xff]   ;;  %1489 = vmatprep.subr.bf16.mxu1 %v1675_v1  ;;  %1505 = vmatprep.mubr.msk.bf16.mxu1 %vm1676_vm0, %v1675_v1  ;;  %v1631_v4 = vld [vmem:[%s2618_s1 + $0x48] sm:$0xff]   ;;  %v1634_v7 = vld [vmem:[%s2618_s1 + $0x50] sm:$0xff]   ;;  %s1679_s5 = smov 32   ;;  %vm1226_vm3 = vcmask 253952   ;;  %vm543_vm4 = vcmask 386048  }
   0x2   :  { %v1629_v2 = vld [vmem:[%s2618_s1] sm:$0xff]   ;;  %1416 = vmatprep.subr.bf16.mxu0 %v1628_v0  ;;  %v1632_v5 = vld [vmem:[%s2618_s1 + $0x8] sm:$0xff]   ;;  %v1635_v8 = vld [vmem:[%s2618_s1 + $0x10] sm:$0xff]   ;;  %vm1300_vm5 = vcmask 650496   ;;  %vm1313_vm6 = vcmask 647424  }
   0x3   :  { %v1630_v3 = vld [vmem:[%s2618_s1 + $0x80] sm:$0xff]   ;;  %1417 = vmatpush3.bf16.msra.mxu0 %v1629_v2  ;;  %v1633_v6 = vld [vmem:[%s2618_s1 + $0x88] sm:$0xff]   ;;  %v1636_v9 = vld [vmem:[%s2618_s1 + $0x90] sm:$0xff]  }
   0x4   :  { %1490 = vmatpush3.bf16.msra.mxu1 %v1630_v3  ;;  %1418 = vmatprep.subr.bf16.mxu0 %v1631_v4  ;;  %v1637_v10 = vld [vmem:[%s2618_s1 + $0x58] sm:$0xff]   ;;  %v1640_v13 = vld [vmem:[%s2618_s1 + $0x60] sm:$0xff]   ;;  %v1643_v16 = vld [vmem:[%s2618_s1 + $0x68] sm:$0xff]  }
   0x5   :  { %1491 = vmatprep.subr.bf16.mxu1 %v1675_v1  ;;  %v1638_v11 = vld [vmem:[%s2618_s1 + $0x18] sm:$0xff]   ;;  %v1641_v14 = vld [vmem:[%s2618_s1 + $0x20] sm:$0xff]   ;;  %v1644_v17 = vld [vmem:[%s2618_s1 + $0x28] sm:$0xff]  }
   0x6   :  { %v1639_v12 = vld [vmem:[%s2618_s1 + $0x98] sm:$0xff]   ;;  %v1642_v15 = vld [vmem:[%s2618_s1 + $0xa0] sm:$0xff]   ;;  %v1645_v18 = vld [vmem:[%s2618_s1 + $0xa8] sm:$0xff]  }
   0x7   :  { %1419 = vmatpush3.bf16.msra.mxu0 %v1632_v5  ;;  %v1646_v19 = vld [vmem:[%s2618_s1 + $0x70] sm:$0xff]   ;;  %v1649_v22 = vld [vmem:[%s2618_s1 + $0x78] sm:$0xff]   ;;  %v1782_v23 = vld [vmem:[%s2619_s0] sm:$0xff] }
   0x8   :  { %1492 = vmatpush3.bf16.msra.mxu1 %v1633_v6  ;;  %1420 = vmatprep.subr.bf16.mxu0 %v1634_v7  ;;  %v1647_v20 = vld [vmem:[%s2618_s1 + $0x30] sm:$0xff]   ;;  %v1650_v26 = vld [vmem:[%s2618_s1 + $0x38] sm:$0xff]   ;;  %v1801_v28 = vld [vmem:[%s2619_s0 + $0x8] sm:$0xf]  ;;  %v666_v39 = vunpack.c.l.bf16 %v1782_v23 }
   0x9   :  { %1493 = vmatprep.subr.bf16.mxu1 %v1675_v1  ;;  %v1648_v21 = vld [vmem:[%s2618_s1 + $0xb0] sm:$0xff]   ;;  %v1651_v27 = vld [vmem:[%s2618_s1 + $0xb8] sm:$0xff]   ;;  %v1816_v31 = vld [vmem:[%s2619_s0 + $0x24] sm:$0xff] }
   0xa   :  { %v1787_v24 = vld [vmem:[%s2619_s0 + $0xc] sm:$0xff]  ;;  %v1806_v29 = vld [vmem:[%s2619_s0 + $0x14] sm:$0xf]  ;;  %v1811_v30 = vld [vmem:[%s2619_s0 + $0x18] sm:$0xff]  ;;  %v669_v49 = vunpack.c.l.bf16 %v1816_v31 }
   0xb   :  { %1421 = vmatpush3.bf16.msra.mxu0 %v1635_v8  ;;  %v1320_v25 = vcombine.high %v1782_v23, %v1787_v24  ;;  %2629 = vst [vmem:[#allocation2_spill] sm:$0xff] %v1806_v29  ;;  %v1822_v32 = vld [vmem:[%s2619_s0 + $0x30] sm:$0xff]  ;;  %v1319_v33 = vcombine.low %v1782_v23, %v1787_v24  ;;  %v1829_v34 = vld [vmem:[%s2619_s0 + $0x3c] sm:$0xff]  ;;  %v1321_v36 = vcombine.low %v1801_v28, %v1806_v29  ;;  %v1841_v40 = vld [vmem:[%s2619_s0 + $0x48] sm:$0xff]  ;;  %v667_v43 = vunpack.c.l.bf16 %v1787_v24 }
   0xc   :  { %1494 = vmatpush3.bf16.msra.mxu1 %v1636_v9  ;;  %1422 = vmatprep.subr.bf16.mxu0 %v1637_v10  ;;  %v670_v35 = vunpack.c.l.bf16 %v1822_v32  ;;  %v1323_v37 = vcombine.high %v1811_v30, %v1816_v31  ;;  %v671_v38 = vunpack.c.l.bf16 %v1829_v34  ;;  %v1846_v41 = vld [vmem:[%s2619_s0 + $0x54] sm:$0xff]  ;;  %v672_v44 = vunpack.c.l.bf16 %v1841_v40  ;;  %v1864_v46 = vld [vmem:[%s2619_s0 + $0x84] sm:$0xff]  ;;  %v1874_v50 = vld [vmem:[%s2619_s0 + $0x20] sm:$0xf] }
   0xd   :  { %1495 = vmatprep.subr.bf16.mxu1 %v1675_v1  ;;  %375 = vmatprep.mubr.bf16.mxu0 %v1320_v25  ;;  %v1859_v45 = vld [vmem:[%s2619_s0 + $0x78] sm:$0xff]  ;;  %v673_v47 = vunpack.c.l.bf16 %v1846_v41  ;;  %v668_v48 = vunpack.c.l.bf16 %v1811_v30  ;;  %2630 = vst [vmem:[#allocation3_spill] sm:$0xff] %v1874_v50  ;;  %v1879_v51 = vld [vmem:[%s2619_s0 + $0x2c] sm:$0xf]  ;;  %v1538_v52 = vpack.i.bf16 %v667_v43, %v666_v39  ;;  %v677_v54 = vunpack.c.l.bf16 %v1864_v46  ;;  %v1892_v55 = vld [vmem:[%s2619_s0 + $0x60] sm:$0xff] }
   0xe   :  { %v1852_v42 = vpack.i.bf16 %v671_v38, %v670_v35  ;;  %2631 = vst [vmem:[#allocation4_spill] sm:$0xff] %v1879_v51  ;;  %v676_v53 = vunpack.c.l.bf16 %v1859_v45  ;;  %v1897_v56 = vld [vmem:[%s2619_s0 + $0x6c] sm:$0xff]  ;;  %v1322_v58 = vcombine.low %v1811_v30, %v1816_v31  ;;  %v674_v60 = vunpack.c.l.bf16 %v1892_v55  ;;  %v1931_v3 = vld [vmem:[%s2619_s0 + $0x38] sm:$0xf]  ;;  %v1936_v4 = vld [vmem:[%s2619_s0 + $0x44] sm:$0xf] }
   0xf   :  { %1423 = vmatpush3.bf16.msra.mxu0 %v1638_v11  ;;  %v1553_v57 = vpack.i.bf16 %v673_v47, %v672_v44  ;;  %1539 = vrot.lane.b32.xlu0 %v1538_v52, %s1677_s12  ;;  %v1543_v59 = vpack.i.bf16 %v669_v49, %v668_v48  ;;  %v675_v61 = vunpack.c.l.bf16 %v1897_v56  ;;  %v1324_v62 = vcombine.low %v1874_v50, %v1879_v51  ;;  %v1942_v5 = vld [vmem:[%s2619_s0 + $0x90] sm:$0x11]  ;;  %v1967_v11 = vld [vmem:[%s2619_s0 + $0x5c] sm:$0xf] }
  0x10   :  { %1496 = vmatpush3.bf16.msra.mxu1 %v1639_v12  ;;  %1424 = vmatprep.subr.bf16.mxu0 %v1640_v13  ;;  %v1326_v63 = vcombine.high %v1822_v32, %v1829_v34  ;;  %v1563_v0 = vpack.i.bf16 %v677_v54, %v676_v53  ;;  %2632 = vst [vmem:[#allocation5_spill] sm:$0xff] %v1936_v4  ;;  %v1948_v7 = vunpack.c.l.bf16 %v1942_v5  ;;  %v1962_v10 = vld [vmem:[%s2619_s0 + $0x50] sm:$0xf] }
  0x11   :  { %1497 = vmatprep.subr.bf16.mxu1 %v1675_v1  ;;  %1549 = vrot.lane.b32.xlu1 %v1852_v42, %s1677_s12  ;;  %v1558_v2 = vpack.i.bf16 %v675_v61, %v674_v60  ;;  %v1325_v6 = vcombine.low %v1822_v32, %v1829_v34  ;;  %v1327_v8 = vcombine.low %v1931_v3, %v1936_v4 }
  0x12   :  { %v1329_v9 = vcombine.high %v1841_v40, %v1846_v41  ;;  %v1328_v12 = vcombine.low %v1841_v40, %v1846_v41  ;;  %v1330_v13 = vcombine.low %v1962_v10, %v1967_v11 }
  0x13   :  { %1425 = vmatpush3.bf16.msra.mxu0 %v1641_v14  ;;  %1544 = vrot.lane.b32.xlu0 %v1543_v59, %s1677_s12  ;;  %v1332_v14 = vcombine.high %v1892_v55, %v1897_v56 }
  0x14   :  { %1498 = vmatpush3.bf16.msra.mxu1 %v1642_v15  ;;  %1426 = vmatprep.subr.bf16.mxu0 %v1643_v16  ;;  %v1985_v15 = vld [vmem:[%s2619_s0 + $0x68] sm:$0xf]  ;;  %v1990_v16 = vld [vmem:[%s2619_s0 + $0x74] sm:$0xf] }
  0x15   :  { %1499 = vmatprep.subr.bf16.mxu1 %v1675_v1  ;;  %1554 = vrot.lane.b32.xlu1 %v1553_v57, %s1677_s12  ;;  %2633 = vst [vmem:[#allocation6_spill] sm:$0xff] %v1990_v16 }
  0x17   :  { %1427 = vmatpush3.bf16.msra.mxu0 %v1644_v17  ;;  %1559 = vrot.lane.b32.xlu0 %v1558_v2, %s1677_s12  ;;  %v1331_v17 = vcombine.low %v1892_v55, %v1897_v56 }
  0x18   :  { %1500 = vmatpush3.bf16.msra.mxu1 %v1645_v18  ;;  %1428 = vmatprep.subr.bf16.mxu0 %v1646_v19  ;;  %v1333_v18 = vcombine.low %v1985_v15, %v1990_v16  ;;  %v1335_v19 = vcombine.high %v1859_v45, %v1864_v46 }
  0x19   :  { %1501 = vmatprep.subr.bf16.mxu1 %v1675_v1  ;;  %1564 = vrot.lane.b32.xlu1 %v1563_v0, %s1677_s12 }
  0x1b   :  { %1429 = vmatpush3.bf16.msra.mxu0 %v1647_v20  ;;  %716 = vrot.lane.b32.xlu0 %v1948_v7, %s1677_s12  ;;  %v2008_v20 = vld [vmem:[%s2619_s0 + $0x80] sm:$0xf] }
  0x1c   :  { %1502 = vmatpush3.bf16.msra.mxu1 %v1648_v21  ;;  %1430 = vmatprep.subr.bf16.mxu0 %v1649_v22  ;;  %v2013_v21 = vld [vmem:[%s2619_s0 + $0x8c] sm:$0xf]  ;;  %v1334_v22 = vcombine.low %v1859_v45, %v1864_v46 }
  0x1d   :  { %1503 = vmatprep.subr.bf16.mxu1 %v1675_v1  ;;  %1569 = vrot.lane.b32.xlu1 %v1538_v52, %s1678_s22  ;;  %2634 = vst [vmem:[#allocation7_spill] sm:$0xff] %v2013_v21  ;;  %v1336_v25 = vcombine.low %v2008_v20, %v2013_v21 }
  0x1f   :  { %1431 = vmatpush3.bf16.msra.mxu0 %v1650_v26  ;;  %1574 = vrot.lane.b32.xlu0 %v1543_v59, %s1678_s22  ;;  %v1338_v26 = vcombine.high %v1942_v5, %v1942_v5 }
  0x20   :  { %1504 = vmatpush3.bf16.msra.mxu1 %v1651_v27  ;;  %v2031_v27 = vld [vmem:[%s2619_s0 + $0x98] sm:$0x1] }
  0x21   :  { %1579 = vrot.lane.b32.xlu1 %v1852_v42, %s1678_s22 }
  0x22   :  { %376 = vmatmul.mubr.bf16.vlgmr.msra.gmra.mrb[0].mxu0 %v1319_v33  ;;  %v1337_v33 = vcombine.low %v1942_v5, %v1942_v5 }
  0x23   :  { %1506 = vmatmul.mubr.bf16.vlgmr.msra.gmra.mrb[0].mxu1 %v1321_v36  ;;  %383 = vmatprep.mubr.bf16.mxu0 %v1323_v37  ;;  %v1339_v36 = vcombine.low %v2031_v27, %v2031_v27 }
  0x24   :  { %1509 = vmatprep.mubr.msk.bf16.mxu1 %vm1676_vm0, %v1675_v1  ;;  %1584 = vrot.lane.b32.xlu0 %v1553_v57, %s1678_s22 }
  0x25   :  { %1589 = vrot.lane.b32.xlu1 %v1558_v2, %s1678_s22 }
  0x28   :  { %1594 = vrot.lane.b32.xlu0 %v1563_v0, %s1678_s22 }
  0x29   :  { %768 = vrot.lane.b32.xlu1 %v1948_v7, %s1678_s22 }
  0x2a   :  { %384 = vmatmul.mubr.bf16.gmra.mrb[4].mxu0 %v1322_v58 }
  0x2b   :  { %1510 = vmatmul.mubr.bf16.gmra.mrb[4].mxu1 %v1324_v62  ;;  %391 = vmatprep.mubr.bf16.mxu0 %v1326_v63 }
  0x2c   :  { %1513 = vmatprep.mubr.msk.bf16.mxu1 %vm1676_vm0, %v1675_v1  ;;  %1599 = vrot.lane.b32.xlu0 %v1538_v52, %s1679_s5 }
  0x2d   :  { %1604 = vrot.lane.b32.xlu1 %v1543_v59, %s1679_s5 }
  0x30   :  { %1609 = vrot.lane.b32.xlu0 %v1852_v42, %s1679_s5 }
  0x31   :  { %1614 = vrot.lane.b32.xlu1 %v1553_v57, %s1679_s5 }
  0x32   :  { %392 = vmatmul.mubr.bf16.gmra.mrb[8].mxu0 %v1325_v6 }
  0x33   :  { %1514 = vmatmul.mubr.bf16.gmra.mrb[8].mxu1 %v1327_v8  ;;  %399 = vmatprep.mubr.bf16.mxu0 %v1329_v9 }
  0x34   :  { %1517 = vmatprep.mubr.msk.bf16.mxu1 %vm1676_vm0, %v1675_v1  ;;  %1619 = vrot.lane.b32.xlu0 %v1558_v2, %s1679_s5 }
  0x35   :  { %1624 = vrot.lane.b32.xlu1 %v1563_v0, %s1679_s5 }
  0x38   :  { %820 = vrot.lane.b32.xlu0 %v1948_v7, %s1679_s5 }
  0x39   :  { %900 = vrot.lane.b32.xlu1 %v1782_v23, %s1677_s12 }
  0x3a   :  { %400 = vmatmul.mubr.bf16.gmra.mrb[12].mxu0 %v1328_v12 }
  0x3b   :  { %1518 = vmatmul.mubr.bf16.gmra.mrb[12].mxu1 %v1330_v13  ;;  %407 = vmatprep.mubr.bf16.mxu0 %v1332_v14 }
  0x3c   :  { %1521 = vmatprep.mubr.msk.bf16.mxu1 %vm1676_vm0, %v1675_v1  ;;  %902 = vrot.lane.b32.xlu0 %v1787_v24, %s1677_s12 }
  0x3d   :  { %904 = vrot.lane.b32.xlu1 %v1811_v30, %s1677_s12 }
  0x40   :  { %906 = vrot.lane.b32.xlu0 %v1816_v31, %s1677_s12 }
  0x41   :  { %908 = vrot.lane.b32.xlu1 %v1822_v32, %s1677_s12 }
  0x42   :  { %408 = vmatmul.mubr.bf16.gmra.mrb[16].mxu0 %v1331_v17 }
  0x43   :  { %1522 = vmatmul.mubr.bf16.gmra.mrb[16].mxu1 %v1333_v18  ;;  %415 = vmatprep.mubr.bf16.mxu0 %v1335_v19 }
  0x44   :  { %1525 = vmatprep.mubr.msk.bf16.mxu1 %vm1676_vm0, %v1675_v1  ;;  %910 = vrot.lane.b32.xlu0 %v1829_v34, %s1677_s12 }
  0x45   :  { %912 = vrot.lane.b32.xlu1 %v1841_v40, %s1677_s12 }
  0x48   :  { %914 = vrot.lane.b32.xlu0 %v1846_v41, %s1677_s12 }
  0x49   :  { %916 = vrot.lane.b32.xlu1 %v1892_v55, %s1677_s12 }
  0x4a   :  { %416 = vmatmul.mubr.bf16.gmra.mrb[20].mxu0 %v1334_v22 }
  0x4b   :  { %1526 = vmatmul.mubr.bf16.gmra.mrb[20].mxu1 %v1336_v25  ;;  %423 = vmatprep.mubr.bf16.mxu0 %v1338_v26 }
  0x4c   :  { %1529 = vmatprep.mubr.msk.bf16.mxu1 %vm1676_vm0, %v1675_v1  ;;  %918 = vrot.lane.b32.xlu0 %v1897_v56, %s1677_s12 }
  0x4d   :  { %920 = vrot.lane.b32.xlu1 %v1859_v45, %s1677_s12 }
  0x50   :  { %922 = vrot.lane.b32.xlu0 %v1864_v46, %s1677_s12 }
  0x51   :  { %924 = vrot.lane.b32.xlu1 %v1942_v5, %s1677_s12 }
  0x52   :  { %424 = vmatmul.mubr.bf16.gmra.mrb[24].mxu0 %v1337_v33 }
  0x53   :  { %1530 = vmatmul.mubr.bf16.gmra.mrb[24].mxu1 %v1339_v36 }
  0x54   :  { %978 = vrot.lane.b32.xlu0 %v1782_v23, %s1678_s22 }
  0x55   :  { %980 = vrot.lane.b32.xlu1 %v1787_v24, %s1678_s22 }
  0x58   :  { %982 = vrot.lane.b32.xlu0 %v1811_v30, %s1678_s22 }
  0x59   :  { %984 = vrot.lane.b32.xlu1 %v1816_v31, %s1678_s22 }
  0x5c   :  { %986 = vrot.lane.b32.xlu0 %v1822_v32, %s1678_s22 }
  0x5d   :  { %988 = vrot.lane.b32.xlu1 %v1829_v34, %s1678_s22 }
  0x60   :  { %990 = vrot.lane.b32.xlu0 %v1841_v40, %s1678_s22 }
  0x61   :  { %992 = vrot.lane.b32.xlu1 %v1846_v41, %s1678_s22 }
  0x64   :  { %994 = vrot.lane.b32.xlu0 %v1892_v55, %s1678_s22 }
  0x65   :  { %996 = vrot.lane.b32.xlu1 %v1897_v56, %s1678_s22 }
  0x68   :  { %998 = vrot.lane.b32.xlu0 %v1859_v45, %s1678_s22 }
  0x69   :  { %1000 = vrot.lane.b32.xlu1 %v1864_v46, %s1678_s22 }
  0x6c   :  { %1002 = vrot.lane.b32.xlu0 %v1942_v5, %s1678_s22 }
  0x6d   :  { %1056 = vrot.lane.b32.xlu1 %v1782_v23, %s1679_s5 }
  0x70   :  { %1058 = vrot.lane.b32.xlu0 %v1787_v24, %s1679_s5 }
  0x71   :  { %1060 = vrot.lane.b32.xlu1 %v1811_v30, %s1679_s5 }
  0x74   :  { %1062 = vrot.lane.b32.xlu0 %v1816_v31, %s1679_s5 }
  0x75   :  { %1064 = vrot.lane.b32.xlu1 %v1822_v32, %s1679_s5 }
  0x78   :  { %1066 = vrot.lane.b32.xlu0 %v1829_v34, %s1679_s5 }
  0x79   :  { %1068 = vrot.lane.b32.xlu1 %v1841_v40, %s1679_s5 }
  0x7c   :  { %1070 = vrot.lane.b32.xlu0 %v1846_v41, %s1679_s5 }
  0x7d   :  { %1072 = vrot.lane.b32.xlu1 %v1892_v55, %s1679_s5 }
  0x80   :  { %1074 = vrot.lane.b32.xlu0 %v1897_v56, %s1679_s5 }
  0x81   :  { %1076 = vrot.lane.b32.xlu1 %v1859_v45, %s1679_s5  ;;  %v1540_v37 = vpop.permute.xlu0 %1539 }
  0x82   :  { %v1542_v57 = vunpack.i.h.bf16 %v1540_v37  ;;  %v1541_v58 = vunpack.i.l.bf16 %v1540_v37 }
  0x83   :  { %v1550_v1 = vpop.permute.xlu1 %1549 }
  0x84   :  { %1078 = vrot.lane.b32.xlu0 %v1864_v46, %s1679_s5  ;;  %v1552_v63 = vunpack.i.h.bf16 %v1550_v1  ;;  %v1551_v0 = vunpack.i.l.bf16 %v1550_v1  ;;  %v732_v2 = vmax.f32 %v667_v43, %v1542_v57  ;;  %v731_v6 = vmax.f32 %v666_v39, %v1541_v58 }
  0x85   :  { %1080 = vrot.lane.b32.xlu1 %v1942_v5, %s1679_s5  ;;  %v1545_v52 = vpop.permute.xlu0 %1544 }
  0x86   :  { %v1547_v9 = vunpack.i.h.bf16 %v1545_v52  ;;  %v1546_v12 = vunpack.i.l.bf16 %v1545_v52  ;;  %v736_v25 = vmax.f32 %v671_v38, %v1552_v63  ;;  %v735_v26 = vmax.f32 %v670_v35, %v1551_v0 }
  0x87   :  { %v1555_v42 = vpop.permute.xlu1 %1554 }
  0x88   :  { %v1557_v17 = vunpack.i.h.bf16 %v1555_v42  ;;  %v1556_v39 = vunpack.i.l.bf16 %v1555_v42  ;;  %v734_v1 = vmax.f32 %v669_v49, %v1547_v9  ;;  %v733_v37 = vmax.f32 %v668_v48, %v1546_v12 }
  0x89   :  { %v1560_v62 = vpop.permute.xlu0 %1559 }
  0x8a   :  { %v1562_v18 = vunpack.i.h.bf16 %v1560_v62  ;;  %v1561_v19 = vunpack.i.l.bf16 %v1560_v62  ;;  %v738_v38 = vmax.f32 %v673_v47, %v1557_v17  ;;  %v737_v48 = vmax.f32 %v672_v44, %v1556_v39 }
  0x8b   :  { %v1565_v59 = vpop.permute.xlu1 %1564 }
  0x8c   :  { %v740_v35 = vmax.f32 %v675_v61, %v1562_v18  ;;  %v739_v58 = vmax.f32 %v674_v60, %v1561_v19 }
  0x8d   :  { %v717_v22 = vpop.permute.xlu0 %716 }
  0x8f   :  { %v1570_v8 = vpop.permute.xlu1 %1569 }
  0x90   :  { %v1572_v13 = vunpack.i.h.bf16 %v1570_v8  ;;  %v1571_v14 = vunpack.i.l.bf16 %v1570_v8  ;;  %v743_v8 = vmax.f32 %v1948_v7, %v717_v22 }
  0x91   :  { %v1575_v62 = vpop.permute.xlu0 %1574 }
  0x92   :  { %v2125_v33 = vmax.f32 %v731_v6, %v1571_v14  ;;  %v2127_v43 = vmax.f32 %v732_v2, %v1572_v13  ;;  %v1577_v0 = vunpack.i.h.bf16 %v1575_v62  ;;  %v1576_v49 = vunpack.i.l.bf16 %v1575_v62 }
  0x93   :  { %v1580_v36 = vpop.permute.xlu1 %1579  ;;  %v1567_v2 = vunpack.i.h.bf16 %v1565_v59  ;;  %v1566_v6 = vunpack.i.l.bf16 %v1565_v59 }
  0x94   :  { %v1582_v52 = vunpack.i.h.bf16 %v1580_v36  ;;  %v1581_v57 = vunpack.i.l.bf16 %v1580_v36  ;;  %v785_v9 = vmax.f32 %v733_v37, %v1576_v49  ;;  %v786_v12 = vmax.f32 %v734_v1, %v1577_v0 }
  0x95   :  { %v741_v44 = vmax.f32 %v676_v53, %v1566_v6 }
  0x96   :  { %v788_v42 = vmax.f32 %v736_v25, %v1582_v52  ;;  %v2139_v63 = vmax.f32 %v735_v26, %v1581_v57  ;;  %v1585_v14 = vpop.permute.xlu0 %1584  ;;  %v742_v25 = vmax.f32 %v677_v54, %v1567_v2 }
  0x97   :  { %v1590_v47 = vpop.permute.xlu1 %1589  ;;  %v1587_v18 = vunpack.i.h.bf16 %v1585_v14  ;;  %v1586_v19 = vunpack.i.l.bf16 %v1585_v14 }
  0x98   :  { %v1592_v61 = vunpack.i.h.bf16 %v1590_v47  ;;  %v1591_v13 = vunpack.i.l.bf16 %v1590_v47 }
  0x99   :  { %v790_v59 = vmax.f32 %v738_v38, %v1587_v18  ;;  %v789_v39 = vmax.f32 %v737_v48, %v1586_v19 }
  0x9a   :  { %v791_v60 = vmax.f32 %v739_v58, %v1591_v13  ;;  %v792_v17 = vmax.f32 %v740_v35, %v1592_v61  ;;  %v1595_v22 = vpop.permute.xlu0 %1594 }
  0x9b   :  { %v769_v26 = vpop.permute.xlu1 %768  ;;  %v1597_v36 = vunpack.i.h.bf16 %v1595_v22  ;;  %v1596_v1 = vunpack.i.l.bf16 %v1595_v22 }
  0x9c   :  { %v2148_v7 = vmax.f32 %v743_v8, %v769_v26 }
  0x9d   :  { %v794_v52 = vmax.f32 %v742_v25, %v1597_v36  ;;  %v793_v57 = vmax.f32 %v741_v44, %v1596_v1 }
  0x9e   :  { %v2150_v62 = vpop.permute.xlu0 %1599 }
  0x9f   :  { %v1605_v37 = vpop.permute.xlu1 %1604 }
  0xa0   :  { %v1607_v35 = vunpack.i.h.bf16 %v1605_v37  ;;  %v1606_v58 = vunpack.i.l.bf16 %v1605_v37 }
  0xa2   :  { %v2152_v0 = vmax.f32 %v785_v9, %v1606_v58  ;;  %v2154_v54 = vmax.f32 %v786_v12, %v1607_v35  ;;  %v2156_v48 = vpop.permute.xlu0 %1609 }
  0xa3   :  { %v1615_v49 = vpop.permute.xlu1 %1614  ;;  %v1612_v8 = vunpack.i.h.bf16 %v2156_v48 }
  0xa4   :  { %v1617_v53 = vunpack.i.h.bf16 %v1615_v49  ;;  %v1616_v38 = vunpack.i.l.bf16 %v1615_v49 }
  0xa5   :  { %v2163_v61 = vmax.f32 %v788_v42, %v1612_v8  ;;  %v848_v8 = vrot.slane %v1782_v23, 4  ;;  %v1602_v23 = vunpack.i.h.bf16 %v2150_v62 }
  0xa6   :  { %v2158_v2 = vmax.f32 %v789_v39, %v1616_v38  ;;  %v2160_v6 = vmax.f32 %v790_v59, %v1617_v53  ;;  %v1620_v9 = vpop.permute.xlu0 %1619  ;;  %v1601_v38 = vunpack.i.l.bf16 %v2150_v62 }
  0xa7   :  { %v1625_v47 = vpop.permute.xlu1 %1624  ;;  %v1622_v19 = vunpack.i.h.bf16 %v1620_v9  ;;  %v1621_v25 = vunpack.i.l.bf16 %v1620_v9  ;;  %v874_v29 = vunpack.c.l.bf16 %v848_v8  ;;  %v851_v8 = vrot.slane %v1816_v31, 4 }
  0xa8   :  { %v1627_v13 = vunpack.i.h.bf16 %v1625_v47  ;;  %v1626_v14 = vunpack.i.l.bf16 %v1625_v47  ;;  %v835_v9 = vmax.f32 %v2125_v33, %v1601_v38  ;;  %v836_v33 = vmax.f32 %v2127_v43, %v1602_v23 }
  0xa9   :  { %v2169_v44 = vmax.f32 %v791_v60, %v1621_v25  ;;  %v2171_v39 = vmax.f32 %v792_v17, %v1622_v19  ;;  %v1146_v43 = vunpack.c.l.bf16 %v2031_v27 }
  0xaa   :  { %v2165_v18 = vmax.f32 %v793_v57, %v1626_v14  ;;  %v2167_v12 = vmax.f32 %v794_v52, %v1627_v13  ;;  %v2173_v59 = vpop.permute.xlu0 %820  ;;  %v850_v14 = vrot.slane %v1811_v30, 4  ;;  %v849_v13 = vrot.slane %v1787_v24, 4 }
  0xab   :  { %v901_v26 = vpop.permute.xlu1 %900  ;;  %2636 = vst [vmem:[#allocation9_spill] sm:$0xff] %v2171_v39  ;;  %v860_v39 = vrot.slane %v1942_v5, 4  ;;  %v1611_v24 = vunpack.i.l.bf16 %v2156_v48  ;;  %v852_v30 = vrot.slane %v1822_v32, 4  ;;  %v887_v25 = vmax.f32 %v835_v9, %v874_v29 }
  0xac   :  { %2635 = vst [vmem:[#allocation8_spill] sm:$0xff] %v2167_v12  ;;  %v926_v19 = vrot.slane %v901_v26, 4  ;;  %v876_v51 = vunpack.c.l.bf16 %v850_v14  ;;  %v875_v38 = vunpack.c.l.bf16 %v849_v13  ;;  %v853_v14 = vrot.slane %v1829_v34, 4 }
  0xad   :  { %v886_v26 = vunpack.c.l.bf16 %v860_v39  ;;  %v839_v39 = vmax.f32 %v2139_v63, %v1611_v24  ;;  %v878_v31 = vunpack.c.l.bf16 %v852_v30  ;;  %v856_v29 = vrot.slane %v1892_v55, 4 }
  0xae   :  { %v2177_v36 = vpop.permute.xlu0 %902  ;;  %v952_v42 = vunpack.c.l.bf16 %v926_v19  ;;  %v889_v48 = vmax.f32 %v2152_v0, %v876_v51  ;;  %v2637_v63 = vmax.f32 %v2148_v7, %v2173_v59 }
  0xaf   :  { %v905_v22 = vpop.permute.xlu1 %904  ;;  %v927_v32 = vrot.slane %v2177_v36, 4  ;;  %v891_v24 = vmax.f32 %v839_v39, %v878_v31 }
  0xb0   :  { %v928_v12 = vrot.slane %v905_v22, 4  ;;  %v854_v22 = vrot.slane %v1841_v40, 4  ;;  %v877_v40 = vunpack.c.l.bf16 %v851_v8  ;;  %v2244_v0 = vmax.f32 %v887_v25, %v952_v42 }
  0xb1   :  { %v2251_v55 = vmax.f32 %v2637_v63, %v886_v26  ;;  %v953_v30 = vunpack.c.l.bf16 %v927_v32  ;;  %v855_v42 = vrot.slane %v1846_v41, 4 }
  0xb2   :  { %v2181_v37 = vpop.permute.xlu0 %906  ;;  %v954_v5 = vunpack.c.l.bf16 %v928_v12  ;;  %v888_v12 = vmax.f32 %v836_v33, %v875_v38  ;;  %v880_v36 = vunpack.c.l.bf16 %v854_v22  ;;  %v890_v33 = vmax.f32 %v2154_v54, %v877_v40 }
  0xb3   :  { %v2179_v1 = vpop.permute.xlu1 %908  ;;  %v929_v34 = vrot.slane %v2181_v37, 4 }
  0xb4   :  { %v930_v16 = vrot.slane %v2179_v1, 4  ;;  %v879_v1 = vunpack.c.l.bf16 %v853_v14  ;;  %v2253_v23 = vmax.f32 %v889_v48, %v954_v5  ;;  %v893_v7 = vmax.f32 %v2158_v2, %v880_v36 }
  0xb5   :  { %v955_v38 = vunpack.c.l.bf16 %v929_v34  ;;  %v858_v5 = vrot.slane %v1859_v45, 4  ;;  %v859_v14 = vrot.slane %v1864_v46, 4 }
  0xb6   :  { %v2185_v57 = vpop.permute.xlu0 %910  ;;  %v956_v37 = vunpack.c.l.bf16 %v930_v16  ;;  %v892_v59 = vmax.f32 %v2163_v61, %v879_v1  ;;  %v857_v16 = vrot.slane %v1897_v56, 4  ;;  %v881_v61 = vunpack.c.l.bf16 %v855_v42 }
  0xb7   :  { %v2183_v52 = vpop.permute.xlu1 %912  ;;  %v931_v51 = vrot.slane %v2185_v57, 4  ;;  %v2276_v45 = vmax.f32 %v890_v33, %v955_v38  ;;  %v2639_v33 = vld [vmem:[#allocation8_spill] sm:$0xff] }
  0xb8   :  { %v932_v9 = vrot.slane %v2183_v52, 4  ;;  %v882_v52 = vunpack.c.l.bf16 %v856_v29  ;;  %v2271_v48 = vmax.f32 %v891_v24, %v956_v37  ;;  %v883_v40 = vunpack.c.l.bf16 %v857_v16 }
  0xb9   :  { %v957_v22 = vunpack.c.l.bf16 %v931_v51 }
  0xba   :  { %v2189_v17 = vpop.permute.xlu0 %914  ;;  %v958_v8 = vunpack.c.l.bf16 %v932_v9  ;;  %v895_v2 = vmax.f32 %v2169_v44, %v882_v52  ;;  %v885_v9 = vunpack.c.l.bf16 %v859_v14  ;;  %v2638_v52 = vld [vmem:[#allocation9_spill] sm:$0xff] }
  0xbb   :  { %v2187_v60 = vpop.permute.xlu1 %916  ;;  %v933_v41 = vrot.slane %v2189_v17, 4  ;;  %v2283_v46 = vmax.f32 %v892_v59, %v957_v22 }
  0xbc   :  { %v934_v57 = vrot.slane %v2187_v60, 4  ;;  %v2266_v60 = vmax.f32 %v888_v12, %v953_v30  ;;  %v2281_v29 = vmax.f32 %v893_v7, %v958_v8 }
  0xbd   :  { %v959_v44 = vunpack.c.l.bf16 %v933_v41 }
  0xbe   :  { %v2193_v58 = vpop.permute.xlu0 %918  ;;  %v960_v32 = vunpack.c.l.bf16 %v934_v57  ;;  %v896_v57 = vmax.f32 %v2638_v52, %v883_v40 }
  0xbf   :  { %v2191_v35 = vpop.permute.xlu1 %920  ;;  %v935_v31 = vrot.slane %v2193_v58, 4 }
  0xc0   :  { %v936_v56 = vrot.slane %v2191_v35, 4  ;;  %v2288_v36 = vmax.f32 %v895_v2, %v960_v32  ;;  %v894_v35 = vmax.f32 %v2160_v6, %v881_v61 }
  0xc1   :  { %v961_v30 = vunpack.c.l.bf16 %v935_v31 }
  0xc2   :  { %v2197_v53 = vpop.permute.xlu0 %922  ;;  %v962_v63 = vunpack.c.l.bf16 %v936_v56  ;;  %v2310_v16 = vmax.f32 %v894_v35, %v959_v44 }
  0xc3   :  { %v2195_v49 = vpop.permute.xlu1 %924  ;;  %v937_v51 = vrot.slane %v2197_v53, 4  ;;  %v2318_v32 = vmax.f32 %v896_v57, %v961_v30 }
  0xc4   :  { %v938_v17 = vrot.slane %v2195_v49, 4 }
  0xc5   :  { %v963_v38 = vunpack.c.l.bf16 %v937_v51 }
  0xc6   :  { %v2209_v21 = vpop.permute.xlu0 %978  ;;  %v2295_v37 = vunpack.c.l.bf16 %v938_v17 }
  0xc7   :  { %v2201_v47 = vpop.permute.xlu1 %980  ;;  %v1004_v54 = vrot.slane %v2209_v21, 4  ;;  %v884_v21 = vunpack.c.l.bf16 %v858_v5 }
  0xc8   :  { %v1005_v58 = vrot.slane %v2201_v47, 4 }
  0xc9   :  { %v1030_v12 = vunpack.c.l.bf16 %v1004_v54  ;;  %v897_v53 = vmax.f32 %v2165_v18, %v884_v21 }
  0xca   :  { %v2225_v4 = vpop.permute.xlu0 %982  ;;  %v2304_v7 = vunpack.c.l.bf16 %v1005_v58 }
  0xcb   :  { %v2217_v50 = vpop.permute.xlu1 %984  ;;  %v1006_v24 = vrot.slane %v2225_v4, 4  ;;  %v1043_v8 = vmax.f32 %v2244_v0, %v1030_v12  ;;  %v2316_v2 = vmax.f32 %v897_v53, %v962_v63 }
  0xcc   :  { %v1007_v49 = vrot.slane %v2217_v50, 4  ;;  %v898_v50 = vmax.f32 %v2639_v33, %v885_v9  ;;  %v1044_v51 = vmax.f32 %v2266_v60, %v2304_v7 }
  0xce   :  { %v2239_v13 = vpop.permute.xlu0 %986  ;;  %v2306_v59 = vunpack.c.l.bf16 %v1007_v49  ;;  %v2324_v17 = vmax.f32 %v898_v50, %v963_v38 }
  0xcf   :  { %v2231_v62 = vpop.permute.xlu1 %988  ;;  %v1008_v6 = vrot.slane %v2239_v13, 4  ;;  %v1032_v13 = vunpack.c.l.bf16 %v1006_v24 }
  0xd0   :  { %v1009_v42 = vrot.slane %v2231_v62, 4  ;;  %v977_v62 = vmax.f32 %v2251_v55, %v2295_v37  ;;  %v1046_v12 = vmax.f32 %v2276_v45, %v2306_v59 }
  0xd1   :  { %v1045_v24 = vmax.f32 %v2253_v23, %v1032_v13 }
  0xd2   :  { %v2257_v25 = vpop.permute.xlu0 %990  ;;  %v2320_v61 = vunpack.c.l.bf16 %v1009_v42 }
  0xd3   :  { %v2246_v19 = vpop.permute.xlu1 %992  ;;  %v1010_v18 = vrot.slane %v2257_v25, 4 }
  0xd4   :  { %v1011_v4 = vrot.slane %v2246_v19, 4  ;;  %v2322_v19 = vunpack.c.l.bf16 %v1008_v6  ;;  %v1048_v60 = vmax.f32 %v2283_v46, %v2320_v61 }
  0xd5   :  { %v2333_v58 = vunpack.c.l.bf16 %v1010_v18 }
  0xd6   :  { %v2274_v39 = vpop.permute.xlu0 %994  ;;  %v2331_v35 = vunpack.c.l.bf16 %v1011_v4  ;;  %v1047_v57 = vmax.f32 %v2271_v48, %v2322_v19 }
  0xd7   :  { %v2264_v26 = vpop.permute.xlu1 %996  ;;  %v1049_v38 = vmax.f32 %v2281_v29, %v2333_v58 }
  0xd8   :  { %v1013_v21 = vrot.slane %v2264_v26, 4  ;;  %v2640_v26 = vunpack.c.l.bf16 %v1801_v28  ;;  %v1050_v28 = vmax.f32 %v2310_v16, %v2331_v35 }
  0xda   :  { %v2293_v1 = vpop.permute.xlu0 %998  ;;  %v2348_v33 = vunpack.c.l.bf16 %v1013_v21 }
  0xdb   :  { %v2285_v34 = vpop.permute.xlu1 %1000 }
  0xdc   :  { %v1015_v45 = vrot.slane %v2285_v34, 4 }
  0xde   :  { %v2314_v14 = vpop.permute.xlu0 %1002 }
  0xdf   :  { %v1057_v47 = vpop.permute.xlu1 %1056  ;;  %v1016_v59 = vrot.slane %v2314_v14, 4 }
  0xe0   :  { %v1082_v22 = vrot.slane %v1057_v47, 4 }
  0xe2   :  { %v1108_v41 = vunpack.c.l.bf16 %v1082_v22  ;;  %v1059_v50 = vpop.permute.xlu0 %1058 }
  0xe3   :  { %v1061_v52 = vpop.permute.xlu1 %1060  ;;  %v1083_v22 = vrot.slane %v1059_v50, 4 }
  0xe4   :  { %v1121_v40 = vmax.f32 %v1043_v8, %v1108_v41  ;;  %v1084_v42 = vrot.slane %v1061_v52, 4 }
  0xe6   :  { %v1147_v53 = vmax.f32 %v1121_v40, %v2640_v26  ;;  %v1110_v8 = vunpack.c.l.bf16 %v1084_v42 }
  0xe7   :  { %v1065_v13 = vpop.permute.xlu1 %1064 }
  0xe8   :  { %v1390_v23 = vpack.c.bf16 %v1147_v53, %v1147_v53  ;;  %v1123_v19 = vmax.f32 %v1045_v24, %v1110_v8  ;;  %v2641_v53 = vld [vmem:[#allocation3_spill] sm:$0xff] }
  0xe9   :  { %v2642_v52 = vunpack.c.l.bf16 %v2641_v53 }
  0xea   :  { %1214 = vst.msk [vmem:[%s2620_s4] sm:$0xf] %vm1213_vm2, %v1390_v23 }
  0xeb   :  { %v1149_v42 = vmax.f32 %v1123_v19, %v2642_v52 }
  0xf5   :  { %v1432_v5 = vpop.f32.mrb[0].mxu0 }
  0xf6   :  { %v465_v0 = vpop.f32.mrb[0].mxu1  ;;  %v1433_v54 = vpop.f32.mrb[1].mxu0 }
  0xf7   :  { %v1434_v25 = vadd.f32 %v1433_v54, %v1432_v5  ;;  %v1507_v56 = vpop.f32.mrb[1].mxu1  ;;  %v1435_v31 = vpop.f32.mrb[2].mxu0  ;;  %v1012_v5 = vrot.slane %v2274_v39, 4  ;;  %v1052_v39 = vmax.f32 %v2318_v32, %v2348_v33  ;;  %v2654_v32 = vld [vmem:[#allocation6_spill] sm:$0xff] }
  0xf8   :  { %v468_v44 = vpop.f32.mrb[2].mxu1  ;;  %v1436_v9 = vpop.f32.mrb[3].mxu0  ;;  %v1086_v56 = vrot.slane %v1065_v13, 4  ;;  %v2655_v33 = vunpack.c.l.bf16 %v2654_v32 }
  0xf9   :  { %v2335_v49 = vadd.f32 %v1434_v25, %v465_v0  ;;  %v1437_v63 = vadd.f32 %v1436_v9, %v1435_v31  ;;  %v1508_v30 = vpop.f32.mrb[3].mxu1  ;;  %v1109_v25 = vunpack.c.l.bf16 %v1083_v22  ;;  %v2373_v22 = vunpack.c.l.bf16 %v1012_v5 }
  0xfa   :  { %v1112_v24 = vunpack.c.l.bf16 %v1086_v56 }
  0xfb   :  { %v553_v6 = vmul.f32 %v2335_v49, %v2335_v49  ;;  %v2346_v47 = vadd.f32 %v1437_v63, %v468_v44  ;;  %v520_v48 = vsel %vm519_vm1, %v2335_v49, 0.0  ;;  %v1122_v23 = vmax.f32 %v1044_v51, %v1109_v25 }
  0xfc   :  { %v1051_v34 = vmax.f32 %v2288_v36, %v2373_v22 }
  0xfd   :  { %v521_v7 = vsel %vm519_vm1, %v2346_v47, 0.0  ;;  %v554_v4 = vmul.f32 %v2346_v47, %v2346_v47  ;;  %v1438_v18 = vpop.f32.mrb[4].mxu0  ;;  %v566_v31 = vsel %vm519_vm1, %v553_v6, 0.0 }
  0xfe   :  { %v522_v41 = vadd.f32 %v521_v7, %v520_v48  ;;  %v473_v0 = vpop.f32.mrb[4].mxu1  ;;  %v1439_v54 = vpop.f32.mrb[5].mxu0  ;;  %v1014_v48 = vrot.slane %v2293_v1, 4  ;;  %v2645_v1 = vunpack.c.l.bf16 %v1931_v3 }
  0xff   :  { %v567_v21 = vsel %vm519_vm1, %v554_v4, 0.0  ;;  %v1440_v40 = vadd.f32 %v1439_v54, %v1438_v18  ;;  %v1511_v44 = vpop.f32.mrb[5].mxu1  ;;  %v1441_v9 = vpop.f32.mrb[6].mxu0  ;;  %v1392_v4 = vpack.c.bf16 %v1149_v42, %v1149_v42  ;;  %v2643_v18 = vld [vmem:[#allocation2_spill] sm:$0xff] }
 0x100   :  { %v568_v63 = vadd.f32 %v567_v21, %v566_v31  ;;  %v476_v30 = vpop.f32.mrb[6].mxu1  ;;  %v1442_v26 = vpop.f32.mrb[7].mxu0  ;;  %v2644_v13 = vunpack.c.l.bf16 %v2643_v18  ;;  %v1125_v31 = vmax.f32 %v1047_v57, %v1112_v24  ;;  %v1040_v14 = vunpack.c.l.bf16 %v1014_v48 }
 0x101   :  { %v2371_v50 = vadd.f32 %v1440_v40, %v473_v0  ;;  %v1443_v8 = vadd.f32 %v1442_v26, %v1441_v9  ;;  %v1512_v6 = vpop.f32.mrb[7].mxu1  ;;  %v1063_v7 = vpop.permute.xlu0 %1062  ;;  %1216 = vst.msk [vmem:[%s2620_s4 + $0x8] sm:$0xf] %vm1213_vm2, %v1392_v4 }
 0x102   :  { %v1148_v54 = vmax.f32 %v1122_v23, %v2644_v13  ;;  %v1085_v21 = vrot.slane %v1063_v7, 4  ;;  %v1069_v44 = vpop.permute.xlu1 %1068  ;;  %v1151_v40 = vmax.f32 %v1125_v31, %v2645_v1 }
 0x103   :  { %v523_v51 = vsel %vm519_vm1, %v2371_v50, 0.0  ;;  %v555_v0 = vmul.f32 %v2371_v50, %v2371_v50  ;;  %v2382_v19 = vadd.f32 %v1443_v8, %v476_v30  ;;  %v1088_v5 = vrot.slane %v1069_v44, 4 }
 0x104   :  { %v524_v25 = vadd.f32 %v523_v51, %v522_v41  ;;  %v1391_v56 = vpack.c.bf16 %v1148_v54, %v1148_v54  ;;  %v1111_v9 = vunpack.c.l.bf16 %v1085_v21  ;;  %v1394_v8 = vpack.c.bf16 %v1151_v40, %v1151_v40 }
 0x105   :  { %v569_v57 = vsel %vm519_vm1, %v555_v0, 0.0  ;;  %v525_v26 = vsel %vm519_vm1, %v2382_v19, 0.0  ;;  %v556_v30 = vmul.f32 %v2382_v19, %v2382_v19  ;;  %v1444_v53 = vpop.f32.mrb[8].mxu0  ;;  %v1114_v41 = vunpack.c.l.bf16 %v1088_v5  ;;  %v1067_v52 = vpop.permute.xlu0 %1066 }
 0x106   :  { %v570_v42 = vadd.f32 %v569_v57, %v568_v63  ;;  %v526_v3 = vadd.f32 %v525_v26, %v524_v25  ;;  %v481_v23 = vpop.f32.mrb[8].mxu1  ;;  %v1445_v24 = vpop.f32.mrb[9].mxu0  ;;  %v1124_v6 = vmax.f32 %v1046_v12, %v1111_v9  ;;  %1215 = vst.msk [vmem:[%s2620_s4 + $0x4] sm:$0xf] %vm1213_vm2, %v1391_v56  ;;  %v1087_v54 = vrot.slane %v1067_v52, 4  ;;  %v2646_v12 = vld [vmem:[#allocation4_spill] sm:$0xff] }
 0x107   :  { %v571_v7 = vsel %vm519_vm1, %v556_v30, 0.0  ;;  %v1446_v4 = vadd.f32 %v1445_v24, %v1444_v53  ;;  %v1515_v18 = vpop.f32.mrb[9].mxu1  ;;  %v1447_v13 = vpop.f32.mrb[10].mxu0  ;;  %v1127_v63 = vmax.f32 %v1049_v38, %v1114_v41  ;;  %v2647_v51 = vunpack.c.l.bf16 %v2646_v12  ;;  %1218 = vst.msk [vmem:[%s2620_s4 + $0x10] sm:$0xf] %vm1213_vm2, %v1394_v8 }
 0x108   :  { %v572_v31 = vadd.f32 %v571_v7, %v570_v42  ;;  %v484_v21 = vpop.f32.mrb[10].mxu1  ;;  %v1448_v44 = vpop.f32.mrb[11].mxu0  ;;  %v2648_v38 = vunpack.c.l.bf16 %v1962_v10  ;;  %v1113_v56 = vunpack.c.l.bf16 %v1087_v54  ;;  %v1042_v24 = vunpack.c.l.bf16 %v1016_v59  ;;  %v2649_v7 = vld [vmem:[#allocation5_spill] sm:$0xff] }
 0x109   :  { %v1150_v0 = vmax.f32 %v1124_v6, %v2647_v51  ;;  %v2414_v5 = vadd.f32 %v1446_v4, %v481_v23  ;;  %v1449_v29 = vadd.f32 %v1448_v44, %v1447_v13  ;;  %v1516_v58 = vpop.f32.mrb[11].mxu1  ;;  %v1073_v1 = vpop.permute.xlu1 %1072  ;;  %v2650_v4 = vunpack.c.l.bf16 %v2649_v7 }
 0x10a   :  { %v1153_v25 = vmax.f32 %v1127_v63, %v2648_v38  ;;  %v1090_v9 = vrot.slane %v1073_v1, 4  ;;  %v1071_v41 = vpop.permute.xlu0 %1070  ;;  %v1126_v52 = vmax.f32 %v1048_v60, %v1113_v56  ;;  %v1053_v58 = vmax.f32 %v2316_v2, %v1040_v14 }
 0x10b   :  { %v1393_v40 = vpack.c.bf16 %v1150_v0, %v1150_v0  ;;  %v527_v57 = vsel %vm519_vm1, %v2414_v5, 0.0  ;;  %v557_v26 = vmul.f32 %v2414_v5, %v2414_v5  ;;  %v2424_v30 = vadd.f32 %v1449_v29, %v484_v21 }
 0x10c   :  { %v1396_v53 = vpack.c.bf16 %v1153_v25, %v1153_v25  ;;  %v528_v10 = vadd.f32 %v527_v57, %v526_v3  ;;  %v1116_v42 = vunpack.c.l.bf16 %v1090_v9  ;;  %v1089_v36 = vrot.slane %v1071_v41, 4 }
 0x10d   :  { %1217 = vst.msk [vmem:[%s2620_s4 + $0xc] sm:$0xf] %vm1213_vm2, %v1393_v40  ;;  %v573_v22 = vsel %vm519_vm1, %v557_v26, 0.0  ;;  %v529_v48 = vsel %vm519_vm1, %v2424_v30, 0.0  ;;  %v558_v23 = vmul.f32 %v2424_v30, %v2424_v30  ;;  %v1450_v3 = vpop.f32.mrb[12].mxu0  ;;  %v1077_v8 = vpop.permute.xlu1 %1076  ;;  %v1152_v18 = vmax.f32 %v1126_v52, %v2650_v4 }
 0x10e   :  { %1220 = vst.msk [vmem:[%s2620_s4 + $0x18] sm:$0xf] %vm1213_vm2, %v1396_v53  ;;  %v574_v46 = vadd.f32 %v573_v22, %v572_v31  ;;  %v530_v61 = vadd.f32 %v529_v48, %v528_v10  ;;  %v489_v60 = vpop.f32.mrb[12].mxu1  ;;  %v1451_v6 = vpop.f32.mrb[13].mxu0  ;;  %v1129_v13 = vmax.f32 %v1051_v34, %v1116_v42  ;;  %v1115_v59 = vunpack.c.l.bf16 %v1089_v36 }
 0x10f   :  { %v575_v63 = vsel %vm519_vm1, %v558_v23, 0.0  ;;  %v1452_v54 = vadd.f32 %v1451_v6, %v1450_v3  ;;  %v1519_v21 = vpop.f32.mrb[13].mxu1  ;;  %v1453_v44 = vpop.f32.mrb[14].mxu0  ;;  %v1092_v12 = vrot.slane %v1077_v8, 4  ;;  %v1395_v31 = vpack.c.bf16 %v1152_v18, %v1152_v18 }
 0x110   :  { %v576_v51 = vadd.f32 %v575_v63, %v574_v46  ;;  %v492_v0 = vpop.f32.mrb[14].mxu1  ;;  %v1454_v29 = vpop.f32.mrb[15].mxu0  ;;  %v2651_v38 = vunpack.c.l.bf16 %v1985_v15  ;;  %v1128_v40 = vmax.f32 %v1050_v28, %v1115_v59  ;;  %v1041_v26 = vunpack.c.l.bf16 %v1015_v45 }
 0x111   :  { %v2448_v56 = vadd.f32 %v1452_v54, %v489_v60  ;;  %v1455_v1 = vadd.f32 %v1454_v29, %v1453_v44  ;;  %v1520_v34 = vpop.f32.mrb[15].mxu1  ;;  %v1118_v9 = vunpack.c.l.bf16 %v1092_v12  ;;  %v1075_v57 = vpop.permute.xlu0 %1074  ;;  %v1055_v53 = vmax.f32 %v977_v62, %v1042_v24  ;;  %1219 = vst.msk [vmem:[%s2620_s4 + $0x14] sm:$0xf] %vm1213_vm2, %v1395_v31  ;;  %v2656_v31 = vld [vmem:[#allocation7_spill] sm:$0xff] }
 0x112   :  { %v1155_v25 = vmax.f32 %v1129_v13, %v2651_v38  ;;  %v1091_v14 = vrot.slane %v1075_v57, 4  ;;  %v1081_v41 = vpop.permute.xlu1 %1080  ;;  %v2652_v28 = vunpack.c.l.bf16 %v1967_v11  ;;  %v2653_v46 = vunpack.c.l.bf16 %v2008_v20 }
 0x113   :  { %v531_v15 = vsel %vm519_vm1, %v2448_v56, 0.0  ;;  %v559_v16 = vmul.f32 %v2448_v56, %v2448_v56  ;;  %v2464_v35 = vadd.f32 %v1455_v1, %v492_v0  ;;  %v1131_v62 = vmax.f32 %v1053_v58, %v1118_v9 }
 0x114   :  { %v1398_v2 = vpack.c.bf16 %v1155_v25, %v1155_v25  ;;  %v1154_v55 = vmax.f32 %v1128_v40, %v2652_v28  ;;  %v532_v37 = vadd.f32 %v531_v15, %v530_v61  ;;  %v1117_v45 = vunpack.c.l.bf16 %v1091_v14 }
 0x115   :  { %v1094_v10 = vrot.slane %v1081_v41, 4  ;;  %v577_v52 = vsel %vm519_vm1, %v559_v16, 0.0  ;;  %v533_v42 = vsel %vm519_vm1, %v2464_v35, 0.0  ;;  %v560_v36 = vmul.f32 %v2464_v35, %v2464_v35  ;;  %v1456_v22 = vpop.f32.mrb[16].mxu0  ;;  %v1079_v48 = vpop.permute.xlu0 %1078 }
 0x116   :  { %1222 = vst.msk [vmem:[%s2620_s4 + $0x20] sm:$0xf] %vm1213_vm2, %v1398_v2  ;;  %v1397_v11 = vpack.c.bf16 %v1154_v55, %v1154_v55  ;;  %v578_v23 = vadd.f32 %v577_v52, %v576_v51  ;;  %v534_v3 = vadd.f32 %v533_v42, %v532_v37  ;;  %v497_v24 = vpop.f32.mrb[16].mxu1  ;;  %v1457_v8 = vpop.f32.mrb[17].mxu0  ;;  %v1157_v61 = vmax.f32 %v1131_v62, %v2653_v46 }
 0x117   :  { %v1130_v60 = vmax.f32 %v1052_v39, %v1117_v45  ;;  %v579_v6 = vsel %vm519_vm1, %v560_v36, 0.0  ;;  %v1458_v7 = vadd.f32 %v1457_v8, %v1456_v22  ;;  %v1523_v4 = vpop.f32.mrb[17].mxu1  ;;  %v1459_v18 = vpop.f32.mrb[18].mxu0  ;;  %v1120_v13 = vunpack.c.l.bf16 %v1094_v10 }
 0x118   :  { %v1093_v63 = vrot.slane %v1079_v48, 4  ;;  %1221 = vst.msk [vmem:[%s2620_s4 + $0x1c] sm:$0xf] %vm1213_vm2, %v1397_v11  ;;  %v580_v54 = vadd.f32 %v579_v6, %v578_v23  ;;  %v500_v21 = vpop.f32.mrb[18].mxu1  ;;  %v1460_v20 = vpop.f32.mrb[19].mxu0  ;;  %v1054_v44 = vmax.f32 %v2324_v17, %v1041_v26  ;;  %v1400_v59 = vpack.c.bf16 %v1157_v61, %v1157_v61 }
 0x119   :  { %v1156_v39 = vmax.f32 %v1130_v60, %v2655_v33  ;;  %v2490_v12 = vadd.f32 %v1458_v7, %v497_v24  ;;  %v1461_v51 = vadd.f32 %v1460_v20, %v1459_v18  ;;  %v1524_v0 = vpop.f32.mrb[19].mxu1  ;;  %v1133_v29 = vmax.f32 %v1055_v53, %v1120_v13 }
 0x11a   :  { %v1119_v58 = vunpack.c.l.bf16 %v1093_v63  ;;  %v1145_v38 = vunpack.c.l.bf16 %v2656_v31  ;;  %1224 = vst.msk [vmem:[%s2620_s4 + $0x28] sm:$0xf] %vm1213_vm2, %v1400_v59 }
 0x11b   :  { %v1399_v25 = vpack.c.bf16 %v1156_v39, %v1156_v39  ;;  %v535_v17 = vsel %vm519_vm1, %v2490_v12, 0.0  ;;  %v561_v1 = vmul.f32 %v2490_v12, %v2490_v12  ;;  %v2501_v34 = vadd.f32 %v1461_v51, %v500_v21 }
 0x11c   :  { %v1159_v40 = vmax.f32 %v1133_v29, %v1146_v43  ;;  %v536_v9 = vadd.f32 %v535_v17, %v534_v3  ;;  %v1132_v57 = vmax.f32 %v1054_v44, %v1119_v58 }
 0x11d   :  { %1223 = vst.msk [vmem:[%s2620_s4 + $0x24] sm:$0xf] %vm1213_vm2, %v1399_v25  ;;  %v581_v26 = vsel %vm519_vm1, %v561_v1, 0.0  ;;  %v537_v53 = vsel %vm519_vm1, %v2501_v34, 0.0  ;;  %v562_v2 = vmul.f32 %v2501_v34, %v2501_v34  ;;  %v1462_v14 = vpop.f32.mrb[20].mxu0 }
 0x11e   :  { %v1402_v41 = vpack.c.bf16 %v1159_v40, %v1159_v40  ;;  %v582_v27 = vadd.f32 %v581_v26, %v580_v54  ;;  %v538_v43 = vadd.f32 %v537_v53, %v536_v9  ;;  %v505_v15 = vpop.f32.mrb[20].mxu1  ;;  %v1463_v16 = vpop.f32.mrb[21].mxu0  ;;  %v1158_v28 = vmax.f32 %v1132_v57, %v1145_v38 }
 0x11f   :  { %v583_v55 = vsel %vm519_vm1, %v562_v2, 0.0  ;;  %v1464_v37 = vadd.f32 %v1463_v16, %v1462_v14  ;;  %v1527_v62 = vpop.f32.mrb[21].mxu1  ;;  %v1465_v45 = vpop.f32.mrb[22].mxu0 }
 0x120   :  { %1227 = vst.msk [vmem:[%s2620_s4 + $0x30] sm:$0x1] %vm1226_vm3, %v1402_v41  ;;  %v584_v10 = vadd.f32 %v583_v55, %v582_v27  ;;  %v508_v52 = vpop.f32.mrb[22].mxu1  ;;  %v1466_v42 = vpop.f32.mrb[23].mxu0  ;;  %v1401_v36 = vpack.c.bf16 %v1158_v28, %v1158_v28 }
 0x121   :  { %v2518_v22 = vadd.f32 %v1464_v37, %v505_v15  ;;  %v1467_v11 = vadd.f32 %v1466_v42, %v1465_v45  ;;  %v1528_v48 = vpop.f32.mrb[23].mxu1  ;;  %v609_v37 = vlaneseq  ;;  %v601_v45 = vld [vmem:[%s2621_s2] sm:$0x1] }
 0x122   :  { %1225 = vst.msk [vmem:[%s2620_s4 + $0x2c] sm:$0xf] %vm1213_vm2, %v1401_v36  ;;  %v605_v36 = vld [vmem:[%s2622_s3] sm:$0x1] }
 0x123   :  { %v539_v23 = vsel %vm519_vm1, %v2518_v22, 0.0  ;;  %v563_v3 = vmul.f32 %v2518_v22, %v2518_v22  ;;  %v2528_v24 = vadd.f32 %v1467_v11, %v508_v52  ;;  %v610_v62 = vshrl.u32 %v609_v37, 7 }
 0x124   :  { %v540_v8 = vadd.f32 %v539_v23, %v538_v43 }
 0x125   :  { %v585_v46 = vsel %vm519_vm1, %v563_v3, 0.0  ;;  %v541_v61 = vsel %vm519_vm1, %v2528_v24, 0.0  ;;  %v564_v60 = vmul.f32 %v2528_v24, %v2528_v24  ;;  %v1468_v6 = vpop.f32.mrb[24].mxu0 }
 0x126   :  { %v586_v7 = vadd.f32 %v585_v46, %v584_v10  ;;  %v542_v4 = vadd.f32 %v541_v61, %v540_v8  ;;  %v513_v18 = vpop.f32.mrb[24].mxu1  ;;  %v1469_v13 = vpop.f32.mrb[25].mxu0  ;;  %v611_v10 = vsub.s32 0, %v610_v62 }
 0x127   :  { %v587_v63 = vsel %vm519_vm1, %v564_v60, 0.0  ;;  %v1470_v54 = vadd.f32 %v1469_v13, %v1468_v6  ;;  %v1531_v21 = vpop.f32.mrb[25].mxu1  ;;  %v1471_v20 = vpop.f32.mrb[26].mxu0 }
 0x128   :  { %v588_v44 = vadd.f32 %v587_v63, %v586_v7  ;;  %v516_v59 = vpop.f32.mrb[26].mxu1  ;;  %v1472_v32 = vpop.f32.mrb[27].mxu0 }
 0x129   :  { %v514_v33 = vadd.f32 %v1470_v54, %v513_v18  ;;  %v1532_v39 = vpop.f32.mrb[27].mxu1 }
 0x12b   :  { %v544_v51 = vsel %vm543_vm4, %v514_v33, 0.0  ;;  %v565_v0 = vmul.f32 %v514_v33, %v514_v33 }
 0x12c   :  { %v545_v29 = vadd.f32 %v544_v51, %v542_v4 }
 0x12d   :  { %v589_v58 = vsel %vm543_vm4, %v565_v0, 0.0 }
 0x12e   :  { %v546_v31 = vrot.slane %v545_v29, 4  ;;  %v590_v38 = vadd.f32 %v589_v58, %v588_v44 }
 0x130   :  { %v547_v25 = vadd.f32 %v546_v31, %v545_v29  ;;  %v591_v17 = vrot.slane %v590_v38, 4 }
 0x132   :  { %v548_v1 = vrot.slane %v547_v25, 2  ;;  %v592_v40 = vadd.f32 %v591_v17, %v590_v38 }
 0x134   :  { %v549_v9 = vadd.f32 %v548_v1, %v547_v25  ;;  %v593_v57 = vrot.slane %v592_v40, 2 }
 0x136   :  { %v550_v26 = vrot.slane %v549_v9, 1  ;;  %v594_v53 = vadd.f32 %v593_v57, %v592_v40 }
 0x138   :  { %v551_v2 = vadd.f32 %v550_v26, %v549_v9  ;;  %v595_v14 = vrot.slane %v594_v53, 1 }
 0x13a   :  { %v552_v41 = vmul.f32 0.010204081, %v551_v2  ;;  %v596_v27 = vadd.f32 %v595_v14, %v594_v53 }
 0x13c   :  { %v597_v43 = vmul.f32 0.010204081, %v596_v27  ;;  %v598_v15 = vmul.f32 %v552_v41, %v552_v41 }
 0x13e   :  { %v599_v16 = vsub.f32 %v597_v43, %v598_v15 }
 0x140   :  { %v600_v28 = vmax.f32 %v599_v16, 0.0 }
 0x142   :  { %v602_v55 = vadd.f32 0.001, %v600_v28 }
 0x144   :  { %1673 = vrsqrt.f32 %v602_v55 }
 0x14e   :  { %v1674_v52 = vpop.eup %1673 }
 0x14f   :  { %v604_v42 = vmul.f32 %v1674_v52, %v601_v45 }
 0x151   :  { %v606_v11 = vmul.f32 %v604_v42, %v552_v41  ;;  %v612_v48 = vrot.slane %v604_v42, %v611_v10 }
 0x153   :  { %v607_v23 = vsub.f32 %v605_v36, %v606_v11  ;;  %v615_v3 = vmul.f32 %v612_v48, %v2346_v47  ;;  %v614_v8 = vmul.f32 %v612_v48, %v2335_v49  ;;  %v617_v46 = vmul.f32 %v612_v48, %v2382_v19 }
 0x154   :  { %v616_v61 = vmul.f32 %v612_v48, %v2371_v50  ;;  %v619_v60 = vmul.f32 %v612_v48, %v2424_v30  ;;  %v621_v6 = vmul.f32 %v612_v48, %v2464_v35  ;;  %v618_v4 = vmul.f32 %v612_v48, %v2414_v5 }
 0x155   :  { %v631_v7 = vrot.slane %v607_v23, %v611_v10  ;;  %v623_v18 = vmul.f32 %v612_v48, %v2501_v34  ;;  %v622_v13 = vmul.f32 %v612_v48, %v2490_v12  ;;  %v620_v63 = vmul.f32 %v612_v48, %v2448_v56 }
 0x156   :  { %v625_v47 = vmul.f32 %v612_v48, %v2528_v24  ;;  %v624_v49 = vmul.f32 %v612_v48, %v2518_v22  ;;  %v626_v19 = vmul.f32 %v612_v48, %v514_v33 }
 0x157   :  { %v634_v54 = vadd.f32 %v631_v7, %v615_v3  ;;  %v633_v50 = vadd.f32 %v631_v7, %v614_v8  ;;  %v636_v21 = vadd.f32 %v631_v7, %v617_v46  ;;  %v635_v30 = vadd.f32 %v631_v7, %v616_v61 }
 0x158   :  { %v638_v20 = vadd.f32 %v631_v7, %v619_v60  ;;  %v637_v35 = vadd.f32 %v631_v7, %v618_v4  ;;  %v640_v44 = vadd.f32 %v631_v7, %v621_v6  ;;  %v639_v59 = vadd.f32 %v631_v7, %v620_v63 }
 0x159   :  { %v647_v5 = vmax.f32 %v634_v54, 0.0  ;;  %v646_v32 = vmax.f32 %v633_v50, 0.0  ;;  %v649_v12 = vmax.f32 %v636_v21, 0.0  ;;  %v648_v51 = vmax.f32 %v635_v30, 0.0 }
 0x15a   :  { %v642_v56 = vadd.f32 %v631_v7, %v623_v18  ;;  %v641_v22 = vadd.f32 %v631_v7, %v622_v13  ;;  %v644_v24 = vadd.f32 %v631_v7, %v625_v47  ;;  %v643_v33 = vadd.f32 %v631_v7, %v624_v49 }
 0x15b   :  { %v1404_v34 = vpack.c.bf16 %v647_v5, %v647_v5  ;;  %v1403_v39 = vpack.c.bf16 %v646_v32, %v646_v32  ;;  %v645_v0 = vadd.f32 %v631_v7, %v626_v19  ;;  %v1406_v29 = vpack.c.bf16 %v649_v12, %v649_v12 }
 0x15c   :  { %v1405_v58 = vpack.c.bf16 %v648_v51, %v648_v51  ;;  %v651_v31 = vmax.f32 %v638_v20, 0.0  ;;  %v650_v38 = vmax.f32 %v637_v35, 0.0  ;;  %v653_v1 = vmax.f32 %v640_v44, 0.0 }
 0x15d   :  { %1263 = vrot.lane.b32.xlu1 %v1404_v34, %s1679_s5  ;;  %1261 = vrot.lane.b32.xlu0 %v1403_v39, %s1679_s5  ;;  %v652_v40 = vmax.f32 %v639_v59, 0.0  ;;  %v655_v26 = vmax.f32 %v642_v56, 0.0  ;;  %v654_v53 = vmax.f32 %v641_v22, 0.0  ;;  %v657_v41 = vmax.f32 %v644_v24, 0.0 }
 0x15e   :  { %v1408_v25 = vpack.c.bf16 %v651_v31, %v651_v31  ;;  %v1407_v17 = vpack.c.bf16 %v650_v38, %v650_v38  ;;  %v1410_v9 = vpack.c.bf16 %v653_v1, %v653_v1  ;;  %v656_v27 = vmax.f32 %v643_v33, 0.0 }
 0x15f   :  { %v1409_v57 = vpack.c.bf16 %v652_v40, %v652_v40  ;;  %v1412_v2 = vpack.c.bf16 %v655_v26, %v655_v26  ;;  %v1411_v14 = vpack.c.bf16 %v654_v53, %v654_v53  ;;  %v1414_v43 = vpack.c.bf16 %v657_v41, %v657_v41 }
 0x160   :  { %v1413_v15 = vpack.c.bf16 %v656_v27, %v656_v27  ;;  %v658_v16 = vmax.f32 %v645_v0, 0.0 }
 0x161   :  { %1267 = vrot.lane.b32.xlu1 %v1406_v29, %s1679_s5  ;;  %1265 = vrot.lane.b32.xlu0 %v1405_v58, %s1679_s5 }
 0x162   :  { %v1415_v28 = vpack.c.bf16 %v658_v16, %v658_v16 }
 0x165   :  { %1271 = vrot.lane.b32.xlu1 %v1408_v25, %s1679_s5  ;;  %1269 = vrot.lane.b32.xlu0 %v1407_v17, %s1679_s5 }
 0x169   :  { %1275 = vrot.lane.b32.xlu1 %v1410_v9, %s1679_s5  ;;  %1273 = vrot.lane.b32.xlu0 %v1409_v57, %s1679_s5 }
 0x16d   :  { %1279 = vrot.lane.b32.xlu1 %v1412_v2, %s1679_s5  ;;  %1277 = vrot.lane.b32.xlu0 %v1411_v14, %s1679_s5 }
 0x171   :  { %1283 = vrot.lane.b32.xlu1 %v1414_v43, %s1679_s5  ;;  %1281 = vrot.lane.b32.xlu0 %v1413_v15, %s1679_s5 }
 0x175   :  { %1285 = vrot.lane.b32.xlu0 %v1415_v28, %s1679_s5 }
 0x1cf   :  { %v1264_v55 = vpop.permute.xlu1 %1263  ;;  %v1262_v37 = vpop.permute.xlu0 %1261 }
 0x1d0   :  { %1302 = vst.msk [vmem:[%s2620_s4 + $0x4] sm:$0xf] %vm1300_vm5, %v1264_v55  ;;  %1301 = vst.msk [vmem:[%s2620_s4] sm:$0xf] %vm1300_vm5, %v1262_v37 }
 0x1d3   :  { %v1268_v62 = vpop.permute.xlu1 %1267  ;;  %v1266_v45 = vpop.permute.xlu0 %1265 }
 0x1d4   :  { %1304 = vst.msk [vmem:[%s2620_s4 + $0xc] sm:$0xf] %vm1300_vm5, %v1268_v62  ;;  %1303 = vst.msk [vmem:[%s2620_s4 + $0x8] sm:$0xf] %vm1300_vm5, %v1266_v45 }
 0x1d7   :  { %v1272_v10 = vpop.permute.xlu1 %1271  ;;  %v1270_v52 = vpop.permute.xlu0 %1269 }
 0x1d8   :  { %1306 = vst.msk [vmem:[%s2620_s4 + $0x14] sm:$0xf] %vm1300_vm5, %v1272_v10  ;;  %1305 = vst.msk [vmem:[%s2620_s4 + $0x10] sm:$0xf] %vm1300_vm5, %v1270_v52 }
 0x1db   :  { %v1276_v42 = vpop.permute.xlu1 %1275  ;;  %v1274_v36 = vpop.permute.xlu0 %1273 }
 0x1dc   :  { %1308 = vst.msk [vmem:[%s2620_s4 + $0x1c] sm:$0xf] %vm1300_vm5, %v1276_v42  ;;  %1307 = vst.msk [vmem:[%s2620_s4 + $0x18] sm:$0xf] %vm1300_vm5, %v1274_v36 }
 0x1df   :  { %v1280_v11 = vpop.permute.xlu1 %1279  ;;  %v1278_v48 = vpop.permute.xlu0 %1277 }
 0x1e0   :  { %1310 = vst.msk [vmem:[%s2620_s4 + $0x24] sm:$0xf] %vm1300_vm5, %v1280_v11  ;;  %1309 = vst.msk [vmem:[%s2620_s4 + $0x20] sm:$0xf] %vm1300_vm5, %v1278_v48 }
 0x1e3   :  { %v1284_v23 = vpop.permute.xlu1 %1283  ;;  %v1282_v3 = vpop.permute.xlu0 %1281 }
 0x1e4   :  { %1312 = vst.msk [vmem:[%s2620_s4 + $0x2c] sm:$0xf] %vm1300_vm5, %v1284_v23  ;;  %1311 = vst.msk [vmem:[%s2620_s4 + $0x28] sm:$0xf] %vm1300_vm5, %v1282_v3 }
 0x1e7   :  { %v1286_v8 = vpop.permute.xlu0 %1285 }
 0x1e8   :  { %1314 = vst.msk [vmem:[%s2620_s4 + $0x30] sm:$0x1] %vm1313_vm6, %v1286_v8 }

// kernel: inception_v4_stem_forward.13
= control target key start
LH: loop header
LB: loop body
LE: loop exit
PB: predicated region body
PF: predicated region fallthrough
CT: control target
= control target key end

     0   :  { %v570_v0 = vmov 0.0   ;;  %vm571_vm0 = vmmov 0   ;;  %vm223_vm1 = vcmask 523264   ;;  %vm247_vm2 = vcmask 517120   ;;  %s809_s1 = inlined_call_operand.vmem [shape: bf16[128,64], index: 1, kind: input, shape index: {}]   ;;  %s810_s0 = inlined_call_operand.vmem [shape: bf16[98,128], index: 0, kind: input, shape index: {}]   ;;  %s811_s2 = inlined_call_operand.vmem [shape: f32[1,64], index: 2, kind: input, shape index: {}]   ;;  %s812_s3 = inlined_call_operand.vmem [shape: f32[1,64], index: 3, kind: input, shape index: {}]   ;;  %s813_s4 = inlined_call_operand.vmem [shape: bf16[98,64], index: 4, kind: output, shape index: {}]  }
   0x1   :  { %491 = vmatprep.subr.bf16.mxu0 %v570_v0  ;;  %v553_v1 = vld [vmem:[%s809_s1] sm:$0xff]   ;;  %535 = vmatprep.subr.bf16.mxu1 %v570_v0  ;;  %v554_v2 = vld [vmem:[%s809_s1 + $0x8] sm:$0xff]   ;;  %v555_v3 = vld [vmem:[%s809_s1 + $0x10] sm:$0xff]   ;;  %vm416_vm3 = vcmask 519168   ;;  %vm429_vm4 = vcmask 516096  }
   0x2   :  { %507 = vmatprep.mubr.msk.bf16.mxu0 %vm571_vm0, %v570_v0  ;;  %523 = vmatprep.mubr.msk.bf16.mxu1 %vm571_vm0, %v570_v0  ;;  %v556_v4 = vld [vmem:[%s809_s1 + $0x18] sm:$0xff]   ;;  %v557_v5 = vld [vmem:[%s809_s1 + $0x20] sm:$0xff]   ;;  %v558_v6 = vld [vmem:[%s809_s1 + $0x28] sm:$0xff]  }
   0x3   :  { %492 = vmatpush3.bf16.msra.mxu0 %v553_v1  ;;  %543 = vmatpush3.bf16.msra.mxu1 %v553_v1  ;;  %v559_v7 = vld [vmem:[%s809_s1 + $0x30] sm:$0xff]   ;;  %v560_v8 = vld [vmem:[%s809_s1 + $0x38] sm:$0xff]   ;;  %v561_v9 = vld [vmem:[%s810_s0] sm:$0xff]  }
   0x4   :  { %493 = vmatprep.subr.bf16.mxu0 %v570_v0  ;;  %536 = vmatprep.subr.bf16.mxu1 %v570_v0  ;;  %v564_v10 = vld [vmem:[%s810_s0 + $0x20] sm:$0xff]   ;;  %v562_v11 = vld [vmem:[%s810_s0 + $0x8] sm:$0xff]   ;;  %v563_v13 = vld [vmem:[%s810_s0 + $0x10] sm:$0xff]  }
   0x5   :  { %v566_v12 = vld [vmem:[%s810_s0 + $0x28] sm:$0xff]   ;;  %v567_v14 = vld [vmem:[%s810_s0 + $0x30] ss:$0 sps:$4 sm:$0x11]   ;;  %v565_v15 = vld [vmem:[%s810_s0 + $0x18] sm:$0xff]  }
   0x7   :  { %494 = vmatpush3.bf16.msra.mxu0 %v554_v2  ;;  %544 = vmatpush3.bf16.msra.mxu1 %v554_v2 }
   0x8   :  { %495 = vmatprep.subr.bf16.mxu0 %v570_v0  ;;  %537 = vmatprep.subr.bf16.mxu1 %v570_v0 }
   0xb   :  { %496 = vmatpush3.bf16.msra.mxu0 %v555_v3  ;;  %545 = vmatpush3.bf16.msra.mxu1 %v555_v3 }
   0xc   :  { %497 = vmatprep.subr.bf16.mxu0 %v570_v0  ;;  %538 = vmatprep.subr.bf16.mxu1 %v570_v0 }
   0xf   :  { %498 = vmatpush3.bf16.msra.mxu0 %v556_v4  ;;  %546 = vmatpush3.bf16.msra.mxu1 %v556_v4 }
  0x10   :  { %499 = vmatprep.subr.bf16.mxu0 %v570_v0  ;;  %539 = vmatprep.subr.bf16.mxu1 %v570_v0 }
  0x13   :  { %500 = vmatpush3.bf16.msra.mxu0 %v557_v5  ;;  %547 = vmatpush3.bf16.msra.mxu1 %v557_v5 }
  0x14   :  { %501 = vmatprep.subr.bf16.mxu0 %v570_v0  ;;  %540 = vmatprep.subr.bf16.mxu1 %v570_v0 }
  0x17   :  { %502 = vmatpush3.bf16.msra.mxu0 %v558_v6  ;;  %548 = vmatpush3.bf16.msra.mxu1 %v558_v6 }
  0x18   :  { %503 = vmatprep.subr.bf16.mxu0 %v570_v0  ;;  %541 = vmatprep.subr.bf16.mxu1 %v570_v0 }
  0x1b   :  { %504 = vmatpush3.bf16.msra.mxu0 %v559_v7  ;;  %549 = vmatpush3.bf16.msra.mxu1 %v559_v7 }
  0x1c   :  { %505 = vmatprep.subr.bf16.mxu0 %v570_v0  ;;  %542 = vmatprep.subr.bf16.mxu1 %v570_v0 }
  0x1f   :  { %506 = vmatpush3.bf16.msra.mxu0 %v560_v8  ;;  %550 = vmatpush3.bf16.msra.mxu1 %v560_v8 }
  0x22   :  { %508 = vmatmul.mubr.bf16.vlgmr.msra.gmra.mrb[0].mxu0 %v561_v9  ;;  %524 = vmatmul.mubr.bf16.vlgmr.msra.gmra.mrb[0].mxu1 %v564_v10 }
  0x23   :  { %511 = vmatprep.mubr.msk.bf16.mxu0 %vm571_vm0, %v570_v0  ;;  %527 = vmatprep.mubr.msk.bf16.mxu1 %vm571_vm0, %v570_v0 }
  0x2a   :  { %512 = vmatmul.mubr.bf16.gmra.mrb[4].mxu0 %v562_v11  ;;  %528 = vmatmul.mubr.bf16.gmra.mrb[4].mxu1 %v566_v12 }
  0x2b   :  { %515 = vmatprep.mubr.msk.bf16.mxu0 %vm571_vm0, %v570_v0  ;;  %531 = vmatprep.mubr.msk.bf16.mxu1 %vm571_vm0, %v570_v0 }
  0x32   :  { %516 = vmatmul.mubr.bf16.gmra.mrb[8].mxu0 %v563_v13  ;;  %532 = vmatmul.mubr.bf16.gmra.mrb[8].mxu1 %v567_v14 }
  0x33   :  { %519 = vmatprep.mubr.msk.bf16.mxu0 %vm571_vm0, %v570_v0 }
  0x3a   :  { %520 = vmatmul.mubr.bf16.gmra.mrb[12].mxu0 %v565_v15 }
  0xf5   :  { %v649_v16 = vpop.f32.mrb[0].mxu0  ;;  %v651_v17 = vpop.f32.mrb[0].mxu1 }
  0xf6   :  { %v257_v18 = vmul.f32 %v649_v16, %v649_v16  ;;  %v509_v19 = vpop.f32.mrb[1].mxu0  ;;  %v525_v20 = vpop.f32.mrb[1].mxu1  ;;  %v224_v23 = vsel %vm223_vm1, %v649_v16, 0.0  ;;  %v265_v10 = vmul.f32 %v651_v17, %v651_v17 }
  0xf7   :  { %v655_v21 = vpop.f32.mrb[2].mxu0  ;;  %v657_v22 = vpop.f32.mrb[2].mxu1  ;;  %v239_v19 = vsel %vm223_vm1, %v651_v17, 0.0 }
  0xf8   :  { %v225_v24 = vsel %vm223_vm1, %v655_v21, 0.0  ;;  %v258_v25 = vmul.f32 %v655_v21, %v655_v21  ;;  %v510_v26 = vpop.f32.mrb[3].mxu0  ;;  %v526_v27 = vpop.f32.mrb[3].mxu1  ;;  %v270_v29 = vsel %vm223_vm1, %v257_v18, 0.0  ;;  %v266_v20 = vmul.f32 %v657_v22, %v657_v22 }
  0xf9   :  { %v226_v28 = vadd.f32 %v225_v24, %v224_v23  ;;  %v285_v26 = vsel %vm223_vm1, %v265_v10, 0.0  ;;  %v241_v27 = vsel %vm223_vm1, %v657_v22, 0.0  ;;  %v313_v10 = vlaneseq }
  0xfa   :  { %v271_v30 = vsel %vm223_vm1, %v258_v25, 0.0 }
  0xfb   :  { %v272_v31 = vadd.f32 %v271_v30, %v270_v29 }
  0xfd   :  { %v667_v32 = vpop.f32.mrb[4].mxu0  ;;  %v669_v33 = vpop.f32.mrb[4].mxu1 }
  0xfe   :  { %v227_v34 = vsel %vm223_vm1, %v667_v32, 0.0  ;;  %v259_v35 = vmul.f32 %v667_v32, %v667_v32  ;;  %v513_v36 = vpop.f32.mrb[5].mxu0  ;;  %v529_v37 = vpop.f32.mrb[5].mxu1 }
  0xff   :  { %v228_v38 = vadd.f32 %v227_v34, %v226_v28  ;;  %v675_v39 = vpop.f32.mrb[6].mxu0  ;;  %v677_v40 = vpop.f32.mrb[6].mxu1  ;;  %v267_v28 = vmul.f32 %v669_v33, %v669_v33  ;;  %v243_v34 = vsel %vm223_vm1, %v669_v33, 0.0 }
 0x100   :  { %v273_v41 = vsel %vm223_vm1, %v259_v35, 0.0  ;;  %v229_v42 = vsel %vm223_vm1, %v675_v39, 0.0  ;;  %v260_v43 = vmul.f32 %v675_v39, %v675_v39  ;;  %v514_v44 = vpop.f32.mrb[7].mxu0  ;;  %v530_v45 = vpop.f32.mrb[7].mxu1  ;;  %v268_v35 = vmul.f32 %v677_v40, %v677_v40 }
 0x101   :  { %v274_v46 = vadd.f32 %v273_v41, %v272_v31  ;;  %v230_v47 = vadd.f32 %v229_v42, %v228_v38  ;;  %v287_v31 = vsel %vm223_vm1, %v266_v20, 0.0  ;;  %v289_v41 = vsel %vm223_vm1, %v267_v28, 0.0 }
 0x102   :  { %v275_v48 = vsel %vm223_vm1, %v260_v43, 0.0  ;;  %v245_v42 = vsel %vm223_vm1, %v677_v40, 0.0 }
 0x103   :  { %v276_v49 = vadd.f32 %v275_v48, %v274_v46  ;;  %v291_v46 = vsel %vm223_vm1, %v268_v35, 0.0 }
 0x105   :  { %v685_v50 = vpop.f32.mrb[8].mxu0  ;;  %v687_v51 = vpop.f32.mrb[8].mxu1 }
 0x106   :  { %v231_v52 = vsel %vm223_vm1, %v685_v50, 0.0  ;;  %v261_v53 = vmul.f32 %v685_v50, %v685_v50  ;;  %v517_v54 = vpop.f32.mrb[9].mxu0  ;;  %v533_v55 = vpop.f32.mrb[9].mxu1  ;;  %v269_v36 = vmul.f32 %v687_v51, %v687_v51  ;;  %v248_v43 = vsel %vm247_vm2, %v687_v51, 0.0 }
 0x107   :  { %v232_v56 = vadd.f32 %v231_v52, %v230_v47  ;;  %v693_v57 = vpop.f32.mrb[10].mxu0  ;;  %v220_v58 = vpop.f32.mrb[10].mxu1 }
 0x108   :  { %v277_v59 = vsel %vm223_vm1, %v261_v53, 0.0  ;;  %v233_v60 = vsel %vm223_vm1, %v693_v57, 0.0  ;;  %v262_v61 = vmul.f32 %v693_v57, %v693_v57  ;;  %v518_v62 = vpop.f32.mrb[11].mxu0  ;;  %v534_v63 = vpop.f32.mrb[11].mxu1  ;;  %v293_v47 = vsel %vm247_vm2, %v269_v36, 0.0 }
 0x109   :  { %v278_v0 = vadd.f32 %v277_v59, %v276_v49  ;;  %v234_v1 = vadd.f32 %v233_v60, %v232_v56 }
 0x10a   :  { %v279_v2 = vsel %vm223_vm1, %v262_v61, 0.0 }
 0x10b   :  { %v280_v3 = vadd.f32 %v279_v2, %v278_v0 }
 0x10d   :  { %v701_v4 = vpop.f32.mrb[12].mxu0 }
 0x10e   :  { %v235_v5 = vsel %vm223_vm1, %v701_v4, 0.0  ;;  %v263_v6 = vmul.f32 %v701_v4, %v701_v4  ;;  %v521_v7 = vpop.f32.mrb[13].mxu0 }
 0x10f   :  { %v236_v8 = vadd.f32 %v235_v5, %v234_v1  ;;  %v707_v9 = vpop.f32.mrb[14].mxu0 }
 0x110   :  { %v281_v11 = vsel %vm223_vm1, %v263_v6, 0.0  ;;  %v237_v12 = vsel %vm223_vm1, %v707_v9, 0.0  ;;  %v264_v13 = vmul.f32 %v707_v9, %v707_v9  ;;  %v522_v14 = vpop.f32.mrb[15].mxu0 }
 0x111   :  { %v282_v15 = vadd.f32 %v281_v11, %v280_v3  ;;  %v238_v18 = vadd.f32 %v237_v12, %v236_v8  ;;  %v314_v11 = vshrl.u32 %v313_v10, 7  ;;  %v305_v12 = vld [vmem:[%s811_s2] sm:$0x1] }
 0x112   :  { %v283_v23 = vsel %vm223_vm1, %v264_v13, 0.0 }
 0x113   :  { %v240_v24 = vadd.f32 %v239_v19, %v238_v18  ;;  %v284_v25 = vadd.f32 %v283_v23, %v282_v15  ;;  %v315_v13 = vsub.s32 0, %v314_v11  ;;  %v309_v18 = vld [vmem:[%s812_s3] sm:$0x1] }
 0x115   :  { %v286_v29 = vadd.f32 %v285_v26, %v284_v25  ;;  %v242_v30 = vadd.f32 %v241_v27, %v240_v24 }
 0x117   :  { %v244_v37 = vadd.f32 %v243_v34, %v242_v30  ;;  %v288_v38 = vadd.f32 %v287_v31, %v286_v29 }
 0x119   :  { %v246_v44 = vadd.f32 %v245_v42, %v244_v37  ;;  %v290_v45 = vadd.f32 %v289_v41, %v288_v38 }
 0x11b   :  { %v292_v48 = vadd.f32 %v291_v46, %v290_v45  ;;  %v249_v49 = vadd.f32 %v248_v43, %v246_v44 }
 0x11d   :  { %v250_v52 = vrot.slane %v249_v49, 4  ;;  %v294_v53 = vadd.f32 %v293_v47, %v292_v48 }
 0x11f   :  { %v251_v54 = vadd.f32 %v250_v52, %v249_v49  ;;  %v295_v55 = vrot.slane %v294_v53, 4 }
 0x121   :  { %v252_v56 = vrot.slane %v251_v54, 2  ;;  %v296_v58 = vadd.f32 %v295_v55, %v294_v53 }
 0x123   :  { %v253_v59 = vadd.f32 %v252_v56, %v251_v54  ;;  %v297_v60 = vrot.slane %v296_v58, 2 }
 0x125   :  { %v254_v61 = vrot.slane %v253_v59, 1  ;;  %v298_v62 = vadd.f32 %v297_v60, %v296_v58 }
 0x127   :  { %v255_v63 = vadd.f32 %v254_v61, %v253_v59  ;;  %v299_v0 = vrot.slane %v298_v62, 1 }
 0x129   :  { %v256_v1 = vmul.f32 0.010204081, %v255_v63  ;;  %v300_v2 = vadd.f32 %v299_v0, %v298_v62 }
 0x12b   :  { %v301_v3 = vmul.f32 0.010204081, %v300_v2  ;;  %v302_v5 = vmul.f32 %v256_v1, %v256_v1 }
 0x12d   :  { %v303_v6 = vsub.f32 %v301_v3, %v302_v5 }
 0x12f   :  { %v304_v7 = vmax.f32 %v303_v6, 0.0 }
 0x131   :  { %v306_v8 = vadd.f32 0.001, %v304_v7 }
 0x133   :  { %568 = vrsqrt.f32 %v306_v8 }
 0x13d   :  { %v569_v14 = vpop.eup %568 }
 0x13e   :  { %v308_v15 = vmul.f32 %v569_v14, %v305_v12 }
 0x140   :  { %v310_v19 = vmul.f32 %v308_v15, %v256_v1  ;;  %v316_v20 = vrot.slane %v308_v15, %v315_v13 }
 0x142   :  { %v311_v23 = vsub.f32 %v309_v18, %v310_v19  ;;  %v318_v24 = vmul.f32 %v316_v20, %v649_v16  ;;  %v319_v25 = vmul.f32 %v316_v20, %v655_v21  ;;  %v320_v26 = vmul.f32 %v316_v20, %v667_v32 }
 0x143   :  { %v321_v27 = vmul.f32 %v316_v20, %v675_v39  ;;  %v322_v28 = vmul.f32 %v316_v20, %v685_v50  ;;  %v323_v29 = vmul.f32 %v316_v20, %v693_v57  ;;  %v324_v30 = vmul.f32 %v316_v20, %v701_v4 }
 0x144   :  { %v325_v31 = vmul.f32 %v316_v20, %v707_v9  ;;  %v326_v34 = vmul.f32 %v316_v20, %v651_v17  ;;  %v327_v35 = vmul.f32 %v316_v20, %v657_v22  ;;  %v328_v16 = vmul.f32 %v316_v20, %v669_v33 }
 0x145   :  { %v329_v21 = vmul.f32 %v316_v20, %v677_v40  ;;  %v330_v32 = vmul.f32 %v316_v20, %v687_v51  ;;  %v335_v36 = vrot.slane %v311_v23, %v315_v13 }
 0x147   :  { %v337_v39 = vadd.f32 %v335_v36, %v318_v24  ;;  %v338_v50 = vadd.f32 %v335_v36, %v319_v25  ;;  %v339_v37 = vadd.f32 %v335_v36, %v320_v26  ;;  %v340_v57 = vadd.f32 %v335_v36, %v321_v27 }
 0x148   :  { %v341_v4 = vadd.f32 %v335_v36, %v322_v28  ;;  %v342_v38 = vadd.f32 %v335_v36, %v323_v29  ;;  %v343_v9 = vadd.f32 %v335_v36, %v324_v30  ;;  %v344_v41 = vadd.f32 %v335_v36, %v325_v31 }
 0x149   :  { %v345_v17 = vadd.f32 %v335_v36, %v326_v34  ;;  %v346_v42 = vadd.f32 %v335_v36, %v327_v35  ;;  %v347_v22 = vadd.f32 %v335_v36, %v328_v16  ;;  %v348_v43 = vadd.f32 %v335_v36, %v329_v21 }
 0x14a   :  { %v349_v33 = vadd.f32 %v335_v36, %v330_v32  ;;  %v350_v44 = vmax.f32 %v337_v39, 0.0  ;;  %v351_v40 = vmax.f32 %v338_v50, 0.0  ;;  %v352_v45 = vmax.f32 %v339_v37, 0.0 }
 0x14b   :  { %v353_v51 = vmax.f32 %v340_v57, 0.0  ;;  %v354_v46 = vmax.f32 %v341_v4, 0.0  ;;  %v355_v47 = vmax.f32 %v342_v38, 0.0  ;;  %v356_v48 = vmax.f32 %v343_v9, 0.0 }
 0x14c   :  { %v357_v49 = vmax.f32 %v344_v41, 0.0  ;;  %v358_v52 = vmax.f32 %v345_v17, 0.0  ;;  %v359_v53 = vmax.f32 %v346_v42, 0.0  ;;  %v360_v54 = vmax.f32 %v347_v22, 0.0 }
 0x14d   :  { %v361_v55 = vmax.f32 %v348_v43, 0.0  ;;  %v362_v56 = vmax.f32 %v349_v33, 0.0  ;;  %v463_v58 = vpack.c.bf16 %v350_v44, %v350_v44  ;;  %v464_v59 = vpack.c.bf16 %v351_v40, %v351_v40 }
 0x14e   :  { %v465_v60 = vpack.c.bf16 %v352_v45, %v352_v45  ;;  %v466_v61 = vpack.c.bf16 %v353_v51, %v353_v51  ;;  %v467_v62 = vpack.c.bf16 %v354_v46, %v354_v46  ;;  %v468_v63 = vpack.c.bf16 %v355_v47, %v355_v47 }
 0x14f   :  { %v469_v0 = vpack.c.bf16 %v356_v48, %v356_v48  ;;  %v470_v1 = vpack.c.bf16 %v357_v49, %v357_v49  ;;  %v471_v2 = vpack.c.bf16 %v358_v52, %v358_v52  ;;  %v472_v3 = vpack.c.bf16 %v359_v53, %v359_v53  ;;  %417 = vst.msk [vmem:[%s813_s4] sm:$0xf] %vm416_vm3, %v463_v58 }
 0x150   :  { %418 = vst.msk [vmem:[%s813_s4 + $0x4] sm:$0xf] %vm416_vm3, %v464_v59  ;;  %v473_v5 = vpack.c.bf16 %v360_v54, %v360_v54  ;;  %v474_v6 = vpack.c.bf16 %v361_v55, %v361_v55  ;;  %v475_v7 = vpack.c.bf16 %v362_v56, %v362_v56  ;;  %419 = vst.msk [vmem:[%s813_s4 + $0x8] sm:$0xf] %vm416_vm3, %v465_v60 }
 0x151   :  { %420 = vst.msk [vmem:[%s813_s4 + $0xc] sm:$0xf] %vm416_vm3, %v466_v61  ;;  %421 = vst.msk [vmem:[%s813_s4 + $0x10] sm:$0xf] %vm416_vm3, %v467_v62 }
 0x152   :  { %422 = vst.msk [vmem:[%s813_s4 + $0x14] sm:$0xf] %vm416_vm3, %v468_v63  ;;  %423 = vst.msk [vmem:[%s813_s4 + $0x18] sm:$0xf] %vm416_vm3, %v469_v0 }
 0x153   :  { %424 = vst.msk [vmem:[%s813_s4 + $0x1c] sm:$0xf] %vm416_vm3, %v470_v1  ;;  %425 = vst.msk [vmem:[%s813_s4 + $0x20] sm:$0xf] %vm416_vm3, %v471_v2 }
 0x154   :  { %426 = vst.msk [vmem:[%s813_s4 + $0x24] sm:$0xf] %vm416_vm3, %v472_v3  ;;  %427 = vst.msk [vmem:[%s813_s4 + $0x28] sm:$0xf] %vm416_vm3, %v473_v5 }
 0x155   :  { %428 = vst.msk [vmem:[%s813_s4 + $0x2c] sm:$0xf] %vm416_vm3, %v474_v6 }
 0x156   :  { %430 = vst.msk [vmem:[%s813_s4 + $0x30] sm:$0x1] %vm429_vm4, %v475_v7 }

// kernel: inception_v4_stem_forward.14
= control target key start
LH: loop header
LB: loop body
LE: loop exit
PB: predicated region body
PF: predicated region fallthrough
CT: control target
= control target key end

     0   :  { %vm314_vm0 = vcmask 261120   ;;  %vm338_vm1 = vcmask 254976   ;;  %vm507_vm2 = vcmask 257024   ;;  %vm520_vm3 = vcmask 253952   ;;  %s966_s1 = inlined_call_operand.vmem [shape: bf16[256,32], index: 1, kind: input, shape index: {}]   ;;  %s967_s0 = inlined_call_operand.vmem [shape: bf16[98,256], index: 0, kind: input, shape index: {}]   ;;  %s968_s2 = inlined_call_operand.vmem [shape: f32[1,32], index: 2, kind: input, shape index: {}]   ;;  %s969_s3 = inlined_call_operand.vmem [shape: f32[1,32], index: 3, kind: input, shape index: {}]   ;;  %s970_s4 = inlined_call_operand.vmem [shape: bf16[98,32], index: 4, kind: output, shape index: {}]  }
   0x1   :  { %v656_v0 = vld [vmem:[%s966_s1 + $0x40] sm:$0xff]   ;;  %v658_v2 = vld [vmem:[%s966_s1 + $0x48] sm:$0xff]   ;;  %v660_v4 = vld [vmem:[%s966_s1 + $0x50] sm:$0xff]  }
   0x2   :  { %v657_v1 = vld [vmem:[%s966_s1] sm:$0xff]   ;;  %582 = vmatprep.subr.bf16.mxu0 %v656_v0  ;;  %640 = vmatprep.subr.bf16.mxu1 %v656_v0  ;;  %v659_v3 = vld [vmem:[%s966_s1 + $0x8] sm:$0xff]   ;;  %v661_v5 = vld [vmem:[%s966_s1 + $0x10] sm:$0xff]  }
   0x3   :  { %583 = vmatpush3.bf16.msra.mxu0 %v657_v1  ;;  %648 = vmatpush3.bf16.msra.mxu1 %v657_v1  ;;  %v662_v6 = vld [vmem:[%s966_s1 + $0x58] sm:$0xff]   ;;  %v664_v8 = vld [vmem:[%s966_s1 + $0x60] sm:$0xff]   ;;  %v666_v10 = vld [vmem:[%s966_s1 + $0x68] sm:$0xff]  }
   0x4   :  { %584 = vmatprep.subr.bf16.mxu0 %v658_v2  ;;  %641 = vmatprep.subr.bf16.mxu1 %v658_v2  ;;  %v663_v7 = vld [vmem:[%s966_s1 + $0x18] sm:$0xff]   ;;  %v665_v9 = vld [vmem:[%s966_s1 + $0x20] sm:$0xff]   ;;  %v667_v12 = vld [vmem:[%s966_s1 + $0x28] sm:$0xff]  }
   0x5   :  { %v674_v11 = vld [vmem:[%s967_s0 + $0x4] ss:$8 sps:$4 sm:$0xff]   ;;  %v668_v13 = vld [vmem:[%s966_s1 + $0x70] sm:$0xff]   ;;  %v670_v16 = vld [vmem:[%s966_s1 + $0x78] sm:$0xff]  }
   0x6   :  { %258 = vmatprep.mubr.bf16.mxu0 %v674_v11  ;;  %v683_v14 = vld [vmem:[%s967_s0 + $0x44] ss:$8 sps:$4 sm:$0xff]   ;;  %v669_v15 = vld [vmem:[%s966_s1 + $0x30] sm:$0xff]   ;;  %v671_v17 = vld [vmem:[%s966_s1 + $0x38] sm:$0xff]  }
   0x7   :  { %585 = vmatpush3.bf16.msra.mxu0 %v659_v3  ;;  %649 = vmatpush3.bf16.msra.mxu1 %v659_v3  ;;  %v672_v18 = vld [vmem:[%s967_s0] ss:$8 sps:$4 sm:$0xff]   ;;  %v675_v19 = vld [vmem:[%s967_s0 + $0x14] ss:$8 sps:$4 sm:$0xff]   ;;  %v677_v23 = vld [vmem:[%s967_s0 + $0x10] ss:$8 sps:$4 sm:$0xff]  }
   0x8   :  { %586 = vmatprep.subr.bf16.mxu0 %v660_v4  ;;  %642 = vmatprep.subr.bf16.mxu1 %v660_v4  ;;  %v681_v20 = vld [vmem:[%s967_s0 + $0x40] ss:$8 sps:$4 sm:$0xff]   ;;  %v687_v21 = vld [vmem:[%s967_s0 + $0x54] ss:$8 sps:$4 sm:$0xff]   ;;  %v678_v24 = vld [vmem:[%s967_s0 + $0x24] ss:$8 sps:$4 sm:$0xff]  }
   0x9   :  { %290 = vmatprep.mubr.bf16.mxu1 %v683_v14  ;;  %v30_v22 = vld [vmem:[%s967_s0 + $0x60] sm:$0x11]  ;;  %v689_v25 = vld [vmem:[%s967_s0 + $0x50] ss:$8 sps:$4 sm:$0xff]   ;;  %v684_v28 = vld [vmem:[%s967_s0 + $0x34] ss:$8 sps:$4 sm:$0xff]  }
   0xa   :  { %v539_v26 = vcombine.high %v30_v22, %v30_v22  ;;  %v680_v27 = vld [vmem:[%s967_s0 + $0x20] ss:$8 sps:$4 sm:$0xff]   ;;  %v538_v29 = vcombine.low %v30_v22, %v30_v22  ;;  %v686_v30 = vld [vmem:[%s967_s0 + $0x30] ss:$8 sps:$4 sm:$0xff]  }
   0xb   :  { %587 = vmatpush3.bf16.msra.mxu0 %v661_v5  ;;  %650 = vmatpush3.bf16.msra.mxu1 %v661_v5 }
   0xc   :  { %588 = vmatprep.subr.bf16.mxu0 %v662_v6  ;;  %643 = vmatprep.subr.bf16.mxu1 %v662_v6 }
   0xf   :  { %589 = vmatpush3.bf16.msra.mxu0 %v663_v7  ;;  %651 = vmatpush3.bf16.msra.mxu1 %v663_v7 }
  0x10   :  { %590 = vmatprep.subr.bf16.mxu0 %v664_v8  ;;  %644 = vmatprep.subr.bf16.mxu1 %v664_v8 }
  0x13   :  { %591 = vmatpush3.bf16.msra.mxu0 %v665_v9  ;;  %652 = vmatpush3.bf16.msra.mxu1 %v665_v9 }
  0x14   :  { %592 = vmatprep.subr.bf16.mxu0 %v666_v10  ;;  %645 = vmatprep.subr.bf16.mxu1 %v666_v10 }
  0x17   :  { %593 = vmatpush3.bf16.msra.mxu0 %v667_v12  ;;  %653 = vmatpush3.bf16.msra.mxu1 %v667_v12 }
  0x18   :  { %594 = vmatprep.subr.bf16.mxu0 %v668_v13  ;;  %646 = vmatprep.subr.bf16.mxu1 %v668_v13 }
  0x1b   :  { %595 = vmatpush3.bf16.msra.mxu0 %v669_v15  ;;  %654 = vmatpush3.bf16.msra.mxu1 %v669_v15 }
  0x1c   :  { %596 = vmatprep.subr.bf16.mxu0 %v670_v16  ;;  %647 = vmatprep.subr.bf16.mxu1 %v670_v16 }
  0x1f   :  { %597 = vmatpush3.bf16.msra.mxu0 %v671_v17  ;;  %655 = vmatpush3.bf16.msra.mxu1 %v671_v17 }
  0x22   :  { %259 = vmatmul.mubr.bf16.vlgmr.msra.gmra.mrb[0].mxu0 %v672_v18  ;;  %291 = vmatmul.mubr.bf16.vlgmr.msra.gmra.mrb[0].mxu1 %v681_v20 }
  0x23   :  { %266 = vmatprep.mubr.bf16.mxu0 %v675_v19  ;;  %298 = vmatprep.mubr.bf16.mxu1 %v687_v21 }
  0x2a   :  { %267 = vmatmul.mubr.bf16.gmra.mrb[4].mxu0 %v677_v23  ;;  %299 = vmatmul.mubr.bf16.gmra.mrb[4].mxu1 %v689_v25 }
  0x2b   :  { %274 = vmatprep.mubr.bf16.mxu0 %v678_v24  ;;  %306 = vmatprep.mubr.bf16.mxu1 %v539_v26 }
  0x32   :  { %275 = vmatmul.mubr.bf16.gmra.mrb[8].mxu0 %v680_v27  ;;  %307 = vmatmul.mubr.bf16.gmra.mrb[8].mxu1 %v538_v29 }
  0x33   :  { %282 = vmatprep.mubr.bf16.mxu0 %v684_v28 }
  0x3a   :  { %283 = vmatmul.mubr.bf16.gmra.mrb[12].mxu0 %v686_v30 }
  0xf5   :  { %v598_v31 = vpop.f32.mrb[0].mxu0  ;;  %v622_v33 = vpop.f32.mrb[0].mxu1 }
  0xf6   :  { %v599_v32 = vpop.f32.mrb[1].mxu0  ;;  %v623_v36 = vpop.f32.mrb[1].mxu1 }
  0xf7   :  { %v806_v34 = vadd.f32 %v599_v32, %v598_v31  ;;  %v601_v35 = vpop.f32.mrb[2].mxu0  ;;  %v808_v38 = vadd.f32 %v623_v36, %v622_v33  ;;  %v625_v39 = vpop.f32.mrb[2].mxu1 }
  0xf8   :  { %v602_v37 = vpop.f32.mrb[3].mxu0  ;;  %v626_v42 = vpop.f32.mrb[3].mxu1 }
  0xf9   :  { %v348_v40 = vmul.f32 %v806_v34, %v806_v34  ;;  %v812_v41 = vadd.f32 %v602_v37, %v601_v35  ;;  %v814_v43 = vadd.f32 %v626_v42, %v625_v39  ;;  %v315_v44 = vsel %vm314_vm0, %v806_v34, 0.0 }
  0xfa   :  { %v356_v42 = vmul.f32 %v808_v38, %v808_v38 }
  0xfb   :  { %v316_v45 = vsel %vm314_vm0, %v812_v41, 0.0  ;;  %v349_v46 = vmul.f32 %v812_v41, %v812_v41  ;;  %v361_v48 = vsel %vm314_vm0, %v348_v40, 0.0 }
  0xfc   :  { %v317_v47 = vadd.f32 %v316_v45, %v315_v44 }
  0xfd   :  { %v362_v49 = vsel %vm314_vm0, %v349_v46, 0.0  ;;  %v604_v50 = vpop.f32.mrb[4].mxu0  ;;  %v628_v53 = vpop.f32.mrb[4].mxu1 }
  0xfe   :  { %v363_v51 = vadd.f32 %v362_v49, %v361_v48  ;;  %v605_v52 = vpop.f32.mrb[5].mxu0  ;;  %v629_v56 = vpop.f32.mrb[5].mxu1  ;;  %v330_v49 = vsel %vm314_vm0, %v808_v38, 0.0 }
  0xff   :  { %v824_v54 = vadd.f32 %v605_v52, %v604_v50  ;;  %v607_v55 = vpop.f32.mrb[6].mxu0  ;;  %v826_v58 = vadd.f32 %v629_v56, %v628_v53  ;;  %v631_v59 = vpop.f32.mrb[6].mxu1  ;;  %v357_v50 = vmul.f32 %v814_v43, %v814_v43  ;;  %v332_v56 = vsel %vm314_vm0, %v814_v43, 0.0 }
 0x100   :  { %v608_v57 = vpop.f32.mrb[7].mxu0  ;;  %v632_v63 = vpop.f32.mrb[7].mxu1 }
 0x101   :  { %v318_v60 = vsel %vm314_vm0, %v824_v54, 0.0  ;;  %v350_v61 = vmul.f32 %v824_v54, %v824_v54  ;;  %v832_v62 = vadd.f32 %v608_v57, %v607_v55  ;;  %v834_v1 = vadd.f32 %v632_v63, %v631_v59 }
 0x102   :  { %v319_v0 = vadd.f32 %v318_v60, %v317_v47  ;;  %v376_v55 = vsel %vm314_vm0, %v356_v42, 0.0  ;;  %v358_v57 = vmul.f32 %v826_v58, %v826_v58  ;;  %v334_v63 = vsel %vm314_vm0, %v826_v58, 0.0 }
 0x103   :  { %v364_v2 = vsel %vm314_vm0, %v350_v61, 0.0  ;;  %v320_v3 = vsel %vm314_vm0, %v832_v62, 0.0  ;;  %v351_v4 = vmul.f32 %v832_v62, %v832_v62  ;;  %v378_v61 = vsel %vm314_vm0, %v357_v50, 0.0 }
 0x104   :  { %v365_v5 = vadd.f32 %v364_v2, %v363_v51  ;;  %v321_v6 = vadd.f32 %v320_v3, %v319_v0  ;;  %v359_v0 = vmul.f32 %v834_v1, %v834_v1 }
 0x105   :  { %v366_v7 = vsel %vm314_vm0, %v351_v4, 0.0  ;;  %v610_v8 = vpop.f32.mrb[8].mxu0  ;;  %v634_v11 = vpop.f32.mrb[8].mxu1 }
 0x106   :  { %v367_v9 = vadd.f32 %v366_v7, %v365_v5  ;;  %v611_v10 = vpop.f32.mrb[9].mxu0  ;;  %v635_v14 = vpop.f32.mrb[9].mxu1  ;;  %v380_v5 = vsel %vm314_vm0, %v358_v57, 0.0 }
 0x107   :  { %v842_v12 = vadd.f32 %v611_v10, %v610_v8  ;;  %v613_v13 = vpop.f32.mrb[10].mxu0  ;;  %v844_v16 = vadd.f32 %v635_v14, %v634_v11  ;;  %v637_v17 = vpop.f32.mrb[10].mxu1  ;;  %v382_v10 = vsel %vm314_vm0, %v359_v0, 0.0 }
 0x108   :  { %v614_v15 = vpop.f32.mrb[11].mxu0  ;;  %v638_v21 = vpop.f32.mrb[11].mxu1 }
 0x109   :  { %v322_v18 = vsel %vm314_vm0, %v842_v12, 0.0  ;;  %v352_v19 = vmul.f32 %v842_v12, %v842_v12  ;;  %v850_v20 = vadd.f32 %v614_v15, %v613_v13  ;;  %v360_v2 = vmul.f32 %v844_v16, %v844_v16 }
 0x10a   :  { %v323_v22 = vadd.f32 %v322_v18, %v321_v6  ;;  %v336_v6 = vsel %vm314_vm0, %v834_v1, 0.0  ;;  %v339_v7 = vsel %vm338_vm1, %v844_v16, 0.0 }
 0x10b   :  { %v368_v23 = vsel %vm314_vm0, %v352_v19, 0.0  ;;  %v324_v24 = vsel %vm314_vm0, %v850_v20, 0.0  ;;  %v353_v25 = vmul.f32 %v850_v20, %v850_v20  ;;  %v384_v11 = vsel %vm338_vm1, %v360_v2, 0.0 }
 0x10c   :  { %v369_v26 = vadd.f32 %v368_v23, %v367_v9  ;;  %v325_v27 = vadd.f32 %v324_v24, %v323_v22 }
 0x10d   :  { %v370_v28 = vsel %vm314_vm0, %v353_v25, 0.0  ;;  %v616_v29 = vpop.f32.mrb[12].mxu0 }
 0x10e   :  { %v371_v30 = vadd.f32 %v370_v28, %v369_v26  ;;  %v617_v31 = vpop.f32.mrb[13].mxu0 }
 0x10f   :  { %v858_v32 = vadd.f32 %v617_v31, %v616_v29  ;;  %v619_v33 = vpop.f32.mrb[14].mxu0 }
 0x110   :  { %v620_v35 = vpop.f32.mrb[15].mxu0 }
 0x111   :  { %v326_v36 = vsel %vm314_vm0, %v858_v32, 0.0  ;;  %v354_v37 = vmul.f32 %v858_v32, %v858_v32  ;;  %v864_v39 = vadd.f32 %v620_v35, %v619_v33 }
 0x112   :  { %v327_v40 = vadd.f32 %v326_v36, %v325_v27 }
 0x113   :  { %v372_v44 = vsel %vm314_vm0, %v354_v37, 0.0  ;;  %v328_v45 = vsel %vm314_vm0, %v864_v39, 0.0  ;;  %v355_v46 = vmul.f32 %v864_v39, %v864_v39 }
 0x114   :  { %v373_v47 = vadd.f32 %v372_v44, %v371_v30  ;;  %v329_v48 = vadd.f32 %v328_v45, %v327_v40  ;;  %v404_v40 = vlaneseq  ;;  %v396_v44 = vld [vmem:[%s968_s2] sm:$0x1] }
 0x115   :  { %v374_v51 = vsel %vm314_vm0, %v355_v46, 0.0 }
 0x116   :  { %v331_v52 = vadd.f32 %v330_v49, %v329_v48  ;;  %v375_v53 = vadd.f32 %v374_v51, %v373_v47  ;;  %v405_v42 = vshrl.u32 %v404_v40, 7  ;;  %v400_v48 = vld [vmem:[%s969_s3] sm:$0x1] }
 0x118   :  { %v377_v59 = vadd.f32 %v376_v55, %v375_v53  ;;  %v333_v60 = vadd.f32 %v332_v56, %v331_v52  ;;  %v406_v45 = vsub.s32 0, %v405_v42 }
 0x11a   :  { %v335_v3 = vadd.f32 %v334_v63, %v333_v60  ;;  %v379_v4 = vadd.f32 %v378_v61, %v377_v59 }
 0x11c   :  { %v337_v8 = vadd.f32 %v336_v6, %v335_v3  ;;  %v381_v9 = vadd.f32 %v380_v5, %v379_v4 }
 0x11e   :  { %v383_v13 = vadd.f32 %v382_v10, %v381_v9  ;;  %v340_v14 = vadd.f32 %v339_v7, %v337_v8 }
 0x120   :  { %v341_v15 = vrot.slane %v340_v14, 4  ;;  %v385_v17 = vadd.f32 %v384_v11, %v383_v13 }
 0x122   :  { %v342_v18 = vadd.f32 %v341_v15, %v340_v14  ;;  %v386_v19 = vrot.slane %v385_v17, 4 }
 0x124   :  { %v343_v21 = vrot.slane %v342_v18, 2  ;;  %v387_v22 = vadd.f32 %v386_v19, %v385_v17 }
 0x126   :  { %v344_v23 = vadd.f32 %v343_v21, %v342_v18  ;;  %v388_v24 = vrot.slane %v387_v22, 2 }
 0x128   :  { %v345_v25 = vrot.slane %v344_v23, 1  ;;  %v389_v26 = vadd.f32 %v388_v24, %v387_v22 }
 0x12a   :  { %v346_v27 = vadd.f32 %v345_v25, %v344_v23  ;;  %v390_v28 = vrot.slane %v389_v26, 1 }
 0x12c   :  { %v347_v29 = vmul.f32 0.010204081, %v346_v27  ;;  %v391_v30 = vadd.f32 %v390_v28, %v389_v26 }
 0x12e   :  { %v392_v31 = vmul.f32 0.010204081, %v391_v30  ;;  %v393_v33 = vmul.f32 %v347_v29, %v347_v29 }
 0x130   :  { %v394_v35 = vsub.f32 %v392_v31, %v393_v33 }
 0x132   :  { %v395_v36 = vmax.f32 %v394_v35, 0.0 }
 0x134   :  { %v397_v37 = vadd.f32 0.001, %v395_v36 }
 0x136   :  { %692 = vrsqrt.f32 %v397_v37 }
 0x140   :  { %v693_v46 = vpop.eup %692 }
 0x141   :  { %v399_v47 = vmul.f32 %v693_v46, %v396_v44 }
 0x143   :  { %v401_v49 = vmul.f32 %v399_v47, %v347_v29  ;;  %v407_v50 = vrot.slane %v399_v47, %v406_v45 }
 0x145   :  { %v402_v51 = vsub.f32 %v400_v48, %v401_v49  ;;  %v409_v52 = vmul.f32 %v806_v34, %v407_v50  ;;  %v410_v53 = vmul.f32 %v812_v41, %v407_v50  ;;  %v411_v55 = vmul.f32 %v824_v54, %v407_v50 }
 0x146   :  { %v412_v56 = vmul.f32 %v832_v62, %v407_v50  ;;  %v413_v57 = vmul.f32 %v842_v12, %v407_v50  ;;  %v414_v59 = vmul.f32 %v850_v20, %v407_v50  ;;  %v415_v60 = vmul.f32 %v858_v32, %v407_v50 }
 0x147   :  { %v416_v61 = vmul.f32 %v864_v39, %v407_v50  ;;  %v417_v63 = vmul.f32 %v808_v38, %v407_v50  ;;  %v418_v0 = vmul.f32 %v814_v43, %v407_v50  ;;  %v419_v34 = vmul.f32 %v826_v58, %v407_v50 }
 0x148   :  { %v420_v41 = vmul.f32 %v834_v1, %v407_v50  ;;  %v421_v54 = vmul.f32 %v844_v16, %v407_v50  ;;  %v426_v2 = vrot.slane %v402_v51, %v406_v45 }
 0x14a   :  { %v428_v62 = vadd.f32 %v426_v2, %v409_v52  ;;  %v429_v12 = vadd.f32 %v426_v2, %v410_v53  ;;  %v430_v3 = vadd.f32 %v426_v2, %v411_v55  ;;  %v431_v20 = vadd.f32 %v426_v2, %v412_v56 }
 0x14b   :  { %v432_v32 = vadd.f32 %v426_v2, %v413_v57  ;;  %v433_v4 = vadd.f32 %v426_v2, %v414_v59  ;;  %v434_v39 = vadd.f32 %v426_v2, %v415_v60  ;;  %v435_v5 = vadd.f32 %v426_v2, %v416_v61 }
 0x14c   :  { %v436_v38 = vadd.f32 %v426_v2, %v417_v63  ;;  %v437_v6 = vadd.f32 %v426_v2, %v418_v0  ;;  %v438_v43 = vadd.f32 %v426_v2, %v419_v34  ;;  %v439_v7 = vadd.f32 %v426_v2, %v420_v41 }
 0x14d   :  { %v440_v58 = vadd.f32 %v426_v2, %v421_v54  ;;  %v441_v8 = vmax.f32 %v428_v62, 0.0  ;;  %v442_v1 = vmax.f32 %v429_v12, 0.0  ;;  %v443_v9 = vmax.f32 %v430_v3, 0.0 }
 0x14e   :  { %v444_v16 = vmax.f32 %v431_v20, 0.0  ;;  %v445_v10 = vmax.f32 %v432_v32, 0.0  ;;  %v446_v11 = vmax.f32 %v433_v4, 0.0  ;;  %v447_v13 = vmax.f32 %v434_v39, 0.0 }
 0x14f   :  { %v448_v14 = vmax.f32 %v435_v5, 0.0  ;;  %v449_v15 = vmax.f32 %v436_v38, 0.0  ;;  %v450_v17 = vmax.f32 %v437_v6, 0.0  ;;  %v451_v18 = vmax.f32 %v438_v43, 0.0 }
 0x150   :  { %v452_v19 = vmax.f32 %v439_v7, 0.0  ;;  %v453_v21 = vmax.f32 %v440_v58, 0.0  ;;  %v569_v22 = vpack.c.bf16 %v441_v8, %v441_v8  ;;  %v570_v23 = vpack.c.bf16 %v442_v1, %v442_v1 }
 0x151   :  { %v571_v24 = vpack.c.bf16 %v443_v9, %v443_v9  ;;  %v572_v25 = vpack.c.bf16 %v444_v16, %v444_v16  ;;  %v573_v26 = vpack.c.bf16 %v445_v10, %v445_v10  ;;  %v574_v27 = vpack.c.bf16 %v446_v11, %v446_v11 }
 0x152   :  { %v575_v28 = vpack.c.bf16 %v447_v13, %v447_v13  ;;  %v576_v29 = vpack.c.bf16 %v448_v14, %v448_v14  ;;  %v577_v30 = vpack.c.bf16 %v449_v15, %v449_v15  ;;  %v578_v31 = vpack.c.bf16 %v450_v17, %v450_v17  ;;  %508 = vst.msk [vmem:[%s970_s4] sm:$0xf] %vm507_vm2, %v569_v22 }
 0x153   :  { %509 = vst.msk [vmem:[%s970_s4 + $0x4] sm:$0xf] %vm507_vm2, %v570_v23  ;;  %v579_v33 = vpack.c.bf16 %v451_v18, %v451_v18  ;;  %v580_v35 = vpack.c.bf16 %v452_v19, %v452_v19  ;;  %v581_v36 = vpack.c.bf16 %v453_v21, %v453_v21  ;;  %510 = vst.msk [vmem:[%s970_s4 + $0x8] sm:$0xf] %vm507_vm2, %v571_v24 }
 0x154   :  { %511 = vst.msk [vmem:[%s970_s4 + $0xc] sm:$0xf] %vm507_vm2, %v572_v25  ;;  %512 = vst.msk [vmem:[%s970_s4 + $0x10] sm:$0xf] %vm507_vm2, %v573_v26 }
 0x155   :  { %513 = vst.msk [vmem:[%s970_s4 + $0x14] sm:$0xf] %vm507_vm2, %v574_v27  ;;  %514 = vst.msk [vmem:[%s970_s4 + $0x18] sm:$0xf] %vm507_vm2, %v575_v28 }
 0x156   :  { %515 = vst.msk [vmem:[%s970_s4 + $0x1c] sm:$0xf] %vm507_vm2, %v576_v29  ;;  %516 = vst.msk [vmem:[%s970_s4 + $0x20] sm:$0xf] %vm507_vm2, %v577_v30 }
 0x157   :  { %517 = vst.msk [vmem:[%s970_s4 + $0x24] sm:$0xf] %vm507_vm2, %v578_v31  ;;  %518 = vst.msk [vmem:[%s970_s4 + $0x28] sm:$0xf] %vm507_vm2, %v579_v33 }
 0x158   :  { %519 = vst.msk [vmem:[%s970_s4 + $0x2c] sm:$0xf] %vm507_vm2, %v580_v35 }
 0x159   :  { %521 = vst.msk [vmem:[%s970_s4 + $0x30] sm:$0x1] %vm520_vm3, %v581_v36 }

// kernel: inception_v4_stem_forward.16
= control target key start
LH: loop header
LB: loop body
LE: loop exit
PB: predicated region body
PF: predicated region fallthrough
CT: control target
= control target key end

     0   :  { %vm647_vm0 = vcmask 785408   ;;  %vm659_vm1 = vcmask 779264   ;;  %vm768_vm2 = vcmask 781312   ;;  %vm775_vm3 = vcmask 778240   ;;  %s1341_s1 = inlined_call_operand.vmem [shape: bf16[640,96], index: 1, kind: input, shape index: {}]   ;;  %s1342_s0 = inlined_call_operand.vmem [shape: bf16[50,640], index: 0, kind: input, shape index: {}]   ;;  %s1343_s2 = inlined_call_operand.vmem [shape: f32[1,96], index: 2, kind: input, shape index: {}]   ;;  %s1344_s3 = inlined_call_operand.vmem [shape: f32[1,96], index: 3, kind: input, shape index: {}]   ;;  %s1345_s4 = inlined_call_operand.vmem [shape: bf16[50,96], index: 4, kind: output, shape index: {}]  }
   0x1   :  { %v987_v0 = vld [vmem:[%s1341_s1 + $0x40] sm:$0xff]   ;;  %v991_v4 = vld [vmem:[%s1341_s1 + $0x48] sm:$0xff]   ;;  %v995_v8 = vld [vmem:[%s1341_s1 + $0x50] sm:$0xff]  }
   0x2   :  { %v988_v1 = vld [vmem:[%s1341_s1 + $0xc0] sm:$0xff]   ;;  %855 = vmatprep.subr.bf16.mxu0 %v987_v0  ;;  %v992_v5 = vld [vmem:[%s1341_s1 + $0xc8] sm:$0xff]   ;;  %v996_v9 = vld [vmem:[%s1341_s1 + $0xd0] sm:$0xff]  }
   0x3   :  { %v989_v2 = vld [vmem:[%s1341_s1] sm:$0xff]   ;;  %895 = vmatprep.subr.bf16.mxu1 %v988_v1  ;;  %v993_v6 = vld [vmem:[%s1341_s1 + $0x8] sm:$0xff]   ;;  %v997_v10 = vld [vmem:[%s1341_s1 + $0x10] sm:$0xff]  }
   0x4   :  { %v990_v3 = vld [vmem:[%s1341_s1 + $0x80] sm:$0xff]   ;;  %856 = vmatpush3.bf16.msra.mxu0 %v989_v2  ;;  %v994_v7 = vld [vmem:[%s1341_s1 + $0x88] sm:$0xff]   ;;  %v998_v11 = vld [vmem:[%s1341_s1 + $0x90] sm:$0xff]  }
   0x5   :  { %896 = vmatpush3.bf16.msra.mxu1 %v990_v3  ;;  %857 = vmatprep.subr.bf16.mxu0 %v991_v4  ;;  %v999_v12 = vld [vmem:[%s1341_s1 + $0x58] sm:$0xff]   ;;  %v1003_v16 = vld [vmem:[%s1341_s1 + $0x60] sm:$0xff]   ;;  %v1007_v20 = vld [vmem:[%s1341_s1 + $0x68] sm:$0xff]  }
   0x6   :  { %897 = vmatprep.subr.bf16.mxu1 %v992_v5  ;;  %v1000_v13 = vld [vmem:[%s1341_s1 + $0xd8] sm:$0xff]   ;;  %v1004_v17 = vld [vmem:[%s1341_s1 + $0xe0] sm:$0xff]   ;;  %v1008_v21 = vld [vmem:[%s1341_s1 + $0xe8] sm:$0xff]  }
   0x7   :  { %v1001_v14 = vld [vmem:[%s1341_s1 + $0x18] sm:$0xff]   ;;  %v1005_v18 = vld [vmem:[%s1341_s1 + $0x20] sm:$0xff]   ;;  %v1009_v22 = vld [vmem:[%s1341_s1 + $0x28] sm:$0xff]  }
   0x8   :  { %858 = vmatpush3.bf16.msra.mxu0 %v993_v6  ;;  %v1002_v15 = vld [vmem:[%s1341_s1 + $0x98] sm:$0xff]   ;;  %v1006_v19 = vld [vmem:[%s1341_s1 + $0xa0] sm:$0xff]   ;;  %v1010_v23 = vld [vmem:[%s1341_s1 + $0xa8] sm:$0xff]  }
   0x9   :  { %898 = vmatpush3.bf16.msra.mxu1 %v994_v7  ;;  %859 = vmatprep.subr.bf16.mxu0 %v995_v8  ;;  %v1011_v24 = vld [vmem:[%s1341_s1 + $0x70] sm:$0xff]   ;;  %v1015_v28 = vld [vmem:[%s1341_s1 + $0x78] sm:$0xff]   ;;  %v1024_v35 = vld [vmem:[%s1342_s0 + $0xc] ss:$20 sps:$4 sm:$0xff]  }
   0xa   :  { %899 = vmatprep.subr.bf16.mxu1 %v996_v9  ;;  %v1012_v25 = vld [vmem:[%s1341_s1 + $0xf0] sm:$0xff]   ;;  %v1016_v29 = vld [vmem:[%s1341_s1 + $0xf8] sm:$0xff]   ;;  %v1025_v36 = vld [vmem:[%s1341_s1 + $0x100] sm:$0xff]   ;;  %551 = vmatprep.mubr.bf16.mxu1 %v1024_v35 }
   0xb   :  { %v1013_v26 = vld [vmem:[%s1341_s1 + $0x30] sm:$0xff]   ;;  %v1017_v30 = vld [vmem:[%s1341_s1 + $0x38] sm:$0xff]   ;;  %v1026_v37 = vld [vmem:[%s1341_s1 + $0x108] sm:$0xff]  }
   0xc   :  { %860 = vmatpush3.bf16.msra.mxu0 %v997_v10  ;;  %v1014_v27 = vld [vmem:[%s1341_s1 + $0xb0] sm:$0xff]   ;;  %v1018_v31 = vld [vmem:[%s1341_s1 + $0xb8] sm:$0xff]   ;;  %v1027_v38 = vld [vmem:[%s1342_s0 + $0x2c] ss:$20 sps:$4 sm:$0xff]  }
   0xd   :  { %900 = vmatpush3.bf16.msra.mxu1 %v998_v11  ;;  %861 = vmatprep.subr.bf16.mxu0 %v999_v12  ;;  %v1019_v32 = vld [vmem:[%s1342_s0] ss:$20 sps:$4 sm:$0xff]   ;;  %v1021_v33 = vld [vmem:[%s1342_s0 + $0x4] ss:$20 sps:$4 sm:$0xff]   ;;  %v1022_v34 = vld [vmem:[%s1342_s0 + $0x8] ss:$20 sps:$4 sm:$0xff]  }
   0xe   :  { %901 = vmatprep.subr.bf16.mxu1 %v1000_v13  ;;  %487 = vmatprep.mubr.bf16.mxu0 %v1021_v33  ;;  %v1029_v39 = vld [vmem:[%s1342_s0 + $0x34] ss:$20 sps:$4 sm:$0xff]   ;;  %v1032_v42 = vld [vmem:[%s1342_s0 + $0x30] ss:$20 sps:$4 sm:$0xff]   ;;  %v1034_v44 = vld [vmem:[%s1341_s1 + $0x118] sm:$0xff]  }
   0xf   :  { %v1031_v40 = vld [vmem:[%s1342_s0 + $0x28] ss:$20 sps:$4 sm:$0xff]   ;;  %v1033_v41 = vld [vmem:[%s1341_s1 + $0x110] sm:$0xff]   ;;  %v1041_v46 = vld [vmem:[%s1341_s1 + $0x120] sm:$0xff]  }
  0x10   :  { %862 = vmatpush3.bf16.msra.mxu0 %v1001_v14  ;;  %v1035_v43 = vld [vmem:[%s1342_s0 + $0x54] ss:$20 sps:$4 sm:$0xff]   ;;  %v1037_v45 = vld [vmem:[%s1342_s0 + $0x5c] ss:$20 sps:$4 sm:$0xff]   ;;  %v37_v48 = vld [vmem:[%s1342_s0 + $0x80] sm:$0x11] }
  0x11   :  { %902 = vmatpush3.bf16.msra.mxu1 %v1002_v15  ;;  %863 = vmatprep.subr.bf16.mxu0 %v1003_v16  ;;  %v36_v47 = vld [vmem:[%s1342_s0 + $0x78] sm:$0x11]  ;;  %v1039_v49 = vld [vmem:[%s1342_s0 + $0x50] ss:$20 sps:$4 sm:$0xff]   ;;  %v799_v52 = vcombine.high %v37_v48, %v37_v48  ;;  %v1042_v53 = vld [vmem:[%s1341_s1 + $0x128] sm:$0xff]   ;;  %v798_v56 = vcombine.low %v37_v48, %v37_v48 }
  0x12   :  { %903 = vmatprep.subr.bf16.mxu1 %v1004_v17  ;;  %v1040_v50 = vld [vmem:[%s1342_s0 + $0x58] ss:$20 sps:$4 sm:$0xff]   ;;  %v797_v51 = vcombine.high %v36_v47, %v36_v47  ;;  %v1047_v54 = vld [vmem:[%s1341_s1 + $0x130] sm:$0xff]   ;;  %v796_v55 = vcombine.low %v36_v47, %v36_v47  ;;  %v1052_v61 = vld [vmem:[%s1342_s0 + $0x88] ss:$0 sps:$4 sm:$0x11]  }
  0x13   :  { %v1049_v57 = vld [vmem:[%s1342_s0 + $0x10] ss:$20 sps:$4 sm:$0xff]   ;;  %v1050_v58 = vld [vmem:[%s1342_s0 + $0x60] ss:$20 sps:$4 sm:$0xff]   ;;  %v1048_v59 = vld [vmem:[%s1341_s1 + $0x138] sm:$0xff]  }
  0x14   :  { %864 = vmatpush3.bf16.msra.mxu0 %v1005_v18  ;;  %v1051_v60 = vld [vmem:[%s1342_s0 + $0x38] ss:$20 sps:$4 sm:$0xff]  }
  0x15   :  { %904 = vmatpush3.bf16.msra.mxu1 %v1006_v19  ;;  %865 = vmatprep.subr.bf16.mxu0 %v1007_v20 }
  0x16   :  { %905 = vmatprep.subr.bf16.mxu1 %v1008_v21 }
  0x18   :  { %866 = vmatpush3.bf16.msra.mxu0 %v1009_v22 }
  0x19   :  { %906 = vmatpush3.bf16.msra.mxu1 %v1010_v23  ;;  %867 = vmatprep.subr.bf16.mxu0 %v1011_v24 }
  0x1a   :  { %907 = vmatprep.subr.bf16.mxu1 %v1012_v25 }
  0x1c   :  { %868 = vmatpush3.bf16.msra.mxu0 %v1013_v26 }
  0x1d   :  { %908 = vmatpush3.bf16.msra.mxu1 %v1014_v27  ;;  %869 = vmatprep.subr.bf16.mxu0 %v1015_v28 }
  0x1e   :  { %909 = vmatprep.subr.bf16.mxu1 %v1016_v29 }
  0x20   :  { %870 = vmatpush3.bf16.msra.mxu0 %v1017_v30 }
  0x21   :  { %910 = vmatpush3.bf16.msra.mxu1 %v1018_v31  ;;  %947 = vmatprep.subr.bf16.mxu0 %v1025_v36 }
  0x22   :  { %971 = vmatprep.subr.bf16.mxu1 %v1025_v36 }
  0x23   :  { %488 = vmatmul.mubr.bf16.vlgmr.msra.gmra.mrb[0].mxu0 %v1019_v32 }
  0x24   :  { %552 = vmatmul.mubr.bf16.vlgmr.msra.gmra.mrb[0].mxu1 %v1022_v34  ;;  %948 = vmatpush3.bf16.msra.mxu0 %v1025_v36 }
  0x25   :  { %979 = vmatpush3.bf16.msra.mxu1 %v1025_v36  ;;  %949 = vmatprep.subr.bf16.mxu0 %v1026_v37 }
  0x26   :  { %972 = vmatprep.subr.bf16.mxu1 %v1026_v37  ;;  %495 = vmatprep.mubr.bf16.mxu0 %v1027_v38 }
  0x27   :  { %559 = vmatprep.mubr.bf16.mxu1 %v1029_v39 }
  0x28   :  { %950 = vmatpush3.bf16.msra.mxu0 %v1026_v37 }
  0x29   :  { %980 = vmatpush3.bf16.msra.mxu1 %v1026_v37  ;;  %951 = vmatprep.subr.bf16.mxu0 %v1033_v41 }
  0x2a   :  { %973 = vmatprep.subr.bf16.mxu1 %v1033_v41 }
  0x2b   :  { %496 = vmatmul.mubr.bf16.gmra.mrb[4].mxu0 %v1031_v40 }
  0x2c   :  { %560 = vmatmul.mubr.bf16.gmra.mrb[4].mxu1 %v1032_v42  ;;  %503 = vmatprep.mubr.bf16.mxu0 %v1035_v43 }
  0x2d   :  { %952 = vmatpush3.bf16.msra.mxu0 %v1033_v41  ;;  %567 = vmatprep.mubr.bf16.mxu1 %v1037_v45 }
  0x2e   :  { %981 = vmatpush3.bf16.msra.mxu1 %v1033_v41  ;;  %953 = vmatprep.subr.bf16.mxu0 %v1034_v44 }
  0x2f   :  { %974 = vmatprep.subr.bf16.mxu1 %v1034_v44 }
  0x31   :  { %954 = vmatpush3.bf16.msra.mxu0 %v1034_v44 }
  0x32   :  { %982 = vmatpush3.bf16.msra.mxu1 %v1034_v44  ;;  %955 = vmatprep.subr.bf16.mxu0 %v1041_v46 }
  0x33   :  { %504 = vmatmul.mubr.bf16.gmra.mrb[8].mxu0 %v1039_v49  ;;  %975 = vmatprep.subr.bf16.mxu1 %v1041_v46 }
  0x34   :  { %568 = vmatmul.mubr.bf16.gmra.mrb[8].mxu1 %v1040_v50  ;;  %511 = vmatprep.mubr.bf16.mxu0 %v797_v51 }
  0x35   :  { %956 = vmatpush3.bf16.msra.mxu0 %v1041_v46  ;;  %575 = vmatprep.mubr.bf16.mxu1 %v799_v52 }
  0x36   :  { %983 = vmatpush3.bf16.msra.mxu1 %v1041_v46  ;;  %957 = vmatprep.subr.bf16.mxu0 %v1042_v53 }
  0x37   :  { %976 = vmatprep.subr.bf16.mxu1 %v1042_v53 }
  0x39   :  { %958 = vmatpush3.bf16.msra.mxu0 %v1042_v53 }
  0x3a   :  { %984 = vmatpush3.bf16.msra.mxu1 %v1042_v53  ;;  %959 = vmatprep.subr.bf16.mxu0 %v1047_v54 }
  0x3b   :  { %512 = vmatmul.mubr.bf16.gmra.mrb[12].mxu0 %v796_v55  ;;  %977 = vmatprep.subr.bf16.mxu1 %v1047_v54 }
  0x3c   :  { %576 = vmatmul.mubr.bf16.gmra.mrb[12].mxu1 %v798_v56  ;;  %963 = vmatprep.mubr.bf16.mxu0 %v1049_v57 }
  0x3d   :  { %960 = vmatpush3.bf16.msra.mxu0 %v1047_v54  ;;  %967 = vmatprep.mubr.bf16.mxu1 %v1050_v58 }
  0x3e   :  { %985 = vmatpush3.bf16.msra.mxu1 %v1047_v54  ;;  %961 = vmatprep.subr.bf16.mxu0 %v1048_v59 }
  0x3f   :  { %978 = vmatprep.subr.bf16.mxu1 %v1048_v59 }
  0x41   :  { %962 = vmatpush3.bf16.msra.mxu0 %v1048_v59 }
  0x42   :  { %986 = vmatpush3.bf16.msra.mxu1 %v1048_v59 }
  0x44   :  { %964 = vmatmul.mubr.bf16.vlgmr.msra.gmra.mrb[16].mxu0 %v1051_v60 }
  0x45   :  { %968 = vmatmul.mubr.bf16.vlgmr.msra.gmra.mrb[16].mxu1 %v1052_v61 }
  0xf6   :  { %v871_v62 = vpop.f32.mrb[0].mxu0 }
  0xf7   :  { %v911_v63 = vpop.f32.mrb[0].mxu1  ;;  %v872_v0 = vpop.f32.mrb[1].mxu0 }
  0xf8   :  { %v873_v1 = vadd.f32 %v872_v0, %v871_v62  ;;  %v912_v2 = vpop.f32.mrb[1].mxu1  ;;  %v874_v3 = vpop.f32.mrb[2].mxu0 }
  0xf9   :  { %v913_v4 = vadd.f32 %v912_v2, %v911_v63  ;;  %v914_v5 = vpop.f32.mrb[2].mxu1  ;;  %v875_v6 = vpop.f32.mrb[3].mxu0 }
  0xfa   :  { %v876_v7 = vadd.f32 %v875_v6, %v874_v3  ;;  %v915_v8 = vpop.f32.mrb[3].mxu1 }
  0xfb   :  { %v916_v9 = vadd.f32 %v915_v8, %v914_v5  ;;  %v554_v10 = vadd.f32 %v913_v4, %v873_v1 }
  0xfd   :  { %v557_v11 = vadd.f32 %v916_v9, %v876_v7 }
  0xfe   :  { %v877_v12 = vpop.f32.mrb[4].mxu0 }
  0xff   :  { %v917_v13 = vpop.f32.mrb[4].mxu1  ;;  %v878_v14 = vpop.f32.mrb[5].mxu0 }
 0x100   :  { %v879_v15 = vadd.f32 %v878_v14, %v877_v12  ;;  %v918_v16 = vpop.f32.mrb[5].mxu1  ;;  %v880_v17 = vpop.f32.mrb[6].mxu0 }
 0x101   :  { %v919_v18 = vadd.f32 %v918_v16, %v917_v13  ;;  %v920_v19 = vpop.f32.mrb[6].mxu1  ;;  %v881_v20 = vpop.f32.mrb[7].mxu0 }
 0x102   :  { %v882_v21 = vadd.f32 %v881_v20, %v880_v17  ;;  %v921_v22 = vpop.f32.mrb[7].mxu1 }
 0x103   :  { %v922_v23 = vadd.f32 %v921_v22, %v920_v19  ;;  %v562_v24 = vadd.f32 %v919_v18, %v879_v15 }
 0x105   :  { %v565_v25 = vadd.f32 %v922_v23, %v882_v21 }
 0x106   :  { %v883_v26 = vpop.f32.mrb[8].mxu0 }
 0x107   :  { %v923_v27 = vpop.f32.mrb[8].mxu1  ;;  %v884_v28 = vpop.f32.mrb[9].mxu0 }
 0x108   :  { %v885_v29 = vadd.f32 %v884_v28, %v883_v26  ;;  %v924_v30 = vpop.f32.mrb[9].mxu1  ;;  %v886_v31 = vpop.f32.mrb[10].mxu0 }
 0x109   :  { %v925_v32 = vadd.f32 %v924_v30, %v923_v27  ;;  %v926_v33 = vpop.f32.mrb[10].mxu1  ;;  %v887_v34 = vpop.f32.mrb[11].mxu0 }
 0x10a   :  { %v888_v35 = vadd.f32 %v887_v34, %v886_v31  ;;  %v927_v36 = vpop.f32.mrb[11].mxu1 }
 0x10b   :  { %v928_v37 = vadd.f32 %v927_v36, %v926_v33  ;;  %v570_v38 = vadd.f32 %v925_v32, %v885_v29 }
 0x10d   :  { %v573_v39 = vadd.f32 %v928_v37, %v888_v35 }
 0x10e   :  { %v889_v40 = vpop.f32.mrb[12].mxu0 }
 0x10f   :  { %v929_v41 = vpop.f32.mrb[12].mxu1  ;;  %v890_v42 = vpop.f32.mrb[13].mxu0 }
 0x110   :  { %v891_v43 = vadd.f32 %v890_v42, %v889_v40  ;;  %v930_v44 = vpop.f32.mrb[13].mxu1  ;;  %v892_v45 = vpop.f32.mrb[14].mxu0 }
 0x111   :  { %v931_v46 = vadd.f32 %v930_v44, %v929_v41  ;;  %v893_v47 = vpop.f32.mrb[15].mxu0  ;;  %v932_v48 = vpop.f32.mrb[14].mxu1 }
 0x112   :  { %v933_v49 = vpop.f32.mrb[15].mxu1 }
 0x113   :  { %v578_v50 = vadd.f32 %v931_v46, %v891_v43 }
 0x117   :  { %v965_v51 = vpop.f32.mrb[16].mxu0 }
 0x118   :  { %v1254_v52 = vadd.f32 %v965_v51, %v562_v24  ;;  %v969_v53 = vpop.f32.mrb[16].mxu1  ;;  %v617_v54 = vpop.f32.mrb[17].mxu0 }
 0x119   :  { %v1256_v55 = vadd.f32 %v969_v53, %v578_v50  ;;  %v1258_v56 = vadd.f32 %v617_v54, %v554_v10  ;;  %v633_v57 = vpop.f32.mrb[17].mxu1  ;;  %v966_v58 = vpop.f32.mrb[18].mxu0  ;;  %v707_v54 = vlaneseq }
 0x11a   :  { %v1260_v59 = vadd.f32 %v633_v57, %v570_v38  ;;  %v1262_v60 = vadd.f32 %v966_v58, %v565_v25  ;;  %v970_v61 = vpop.f32.mrb[18].mxu1  ;;  %v620_v62 = vpop.f32.mrb[19].mxu0  ;;  %v671_v3 = vmul.f32 %v1254_v52, %v1254_v52  ;;  %v651_v8 = vsel %vm647_vm0, %v1254_v52, 0.0  ;;  %v699_v58 = vld [vmem:[%s1343_s2] sm:$0x1] }
 0x11b   :  { %v636_v63 = vpop.f32.mrb[19].mxu1  ;;  %v669_v0 = vmul.f32 %v1258_v56, %v1258_v56  ;;  %v1266_v1 = vadd.f32 %v620_v62, %v557_v11  ;;  %v648_v4 = vsel %vm647_vm0, %v1258_v56, 0.0  ;;  %v675_v24 = vmul.f32 %v1256_v55, %v1256_v55 }
 0x11c   :  { %v1268_v2 = vadd.f32 %v636_v63, %v573_v39  ;;  %v672_v10 = vmul.f32 %v1262_v60, %v1262_v60  ;;  %v679_v14 = vsel %vm647_vm0, %v671_v3, 0.0  ;;  %v673_v15 = vmul.f32 %v1260_v59, %v1260_v59 }
 0x11d   :  { %v649_v5 = vsel %vm647_vm0, %v1266_v1, 0.0  ;;  %v670_v6 = vmul.f32 %v1266_v1, %v1266_v1  ;;  %v676_v9 = vsel %vm647_vm0, %v669_v0, 0.0  ;;  %v653_v16 = vsel %vm647_vm0, %v1262_v60, 0.0  ;;  %v703_v0 = vld [vmem:[%s1344_s3] sm:$0x1] }
 0x11e   :  { %v650_v7 = vadd.f32 %v649_v5, %v648_v4  ;;  %v655_v19 = vsel %vm647_vm0, %v1260_v59, 0.0  ;;  %v681_v20 = vsel %vm647_vm0, %v672_v10, 0.0  ;;  %v674_v21 = vmul.f32 %v1268_v2, %v1268_v2 }
 0x11f   :  { %v677_v11 = vsel %vm647_vm0, %v670_v6, 0.0  ;;  %v683_v25 = vsel %vm647_vm0, %v673_v15, 0.0  ;;  %v657_v26 = vsel %vm647_vm0, %v1268_v2, 0.0  ;;  %v660_v29 = vsel %vm659_vm1, %v1256_v55, 0.0 }
 0x120   :  { %v652_v12 = vadd.f32 %v651_v8, %v650_v7  ;;  %v678_v13 = vadd.f32 %v677_v11, %v676_v9  ;;  %v685_v30 = vsel %vm647_vm0, %v674_v21, 0.0  ;;  %v687_v33 = vsel %vm659_vm1, %v675_v24, 0.0 }
 0x121   :  { %v708_v57 = vshrl.u32 %v707_v54, 7 }
 0x122   :  { %v680_v17 = vadd.f32 %v679_v14, %v678_v13  ;;  %v654_v18 = vadd.f32 %v653_v16, %v652_v12 }
 0x123   :  { %v709_v61 = vsub.s32 0, %v708_v57 }
 0x124   :  { %v656_v22 = vadd.f32 %v655_v19, %v654_v18  ;;  %v682_v23 = vadd.f32 %v681_v20, %v680_v17 }
 0x126   :  { %v658_v27 = vadd.f32 %v657_v26, %v656_v22  ;;  %v684_v28 = vadd.f32 %v683_v25, %v682_v23 }
 0x128   :  { %v661_v31 = vadd.f32 %v660_v29, %v658_v27  ;;  %v686_v32 = vadd.f32 %v685_v30, %v684_v28 }
 0x12a   :  { %v662_v34 = vrot.slane %v661_v31, 4  ;;  %v688_v35 = vadd.f32 %v687_v33, %v686_v32 }
 0x12c   :  { %v663_v36 = vadd.f32 %v662_v34, %v661_v31  ;;  %v689_v37 = vrot.slane %v688_v35, 4 }
 0x12e   :  { %v664_v38 = vrot.slane %v663_v36, 2  ;;  %v690_v39 = vadd.f32 %v689_v37, %v688_v35 }
 0x130   :  { %v665_v40 = vadd.f32 %v664_v38, %v663_v36  ;;  %v691_v41 = vrot.slane %v690_v39, 2 }
 0x132   :  { %v666_v42 = vrot.slane %v665_v40, 1  ;;  %v692_v43 = vadd.f32 %v691_v41, %v690_v39 }
 0x134   :  { %v667_v44 = vadd.f32 %v666_v42, %v665_v40  ;;  %v693_v45 = vrot.slane %v692_v43, 1 }
 0x136   :  { %v668_v46 = vmul.f32 0.02, %v667_v44  ;;  %v694_v47 = vadd.f32 %v693_v45, %v692_v43 }
 0x138   :  { %v695_v48 = vmul.f32 0.02, %v694_v47  ;;  %v696_v49 = vmul.f32 %v668_v46, %v668_v46 }
 0x13a   :  { %v697_v50 = vsub.f32 %v695_v48, %v696_v49 }
 0x13c   :  { %v698_v51 = vmax.f32 %v697_v50, 0.0 }
 0x13e   :  { %v700_v53 = vadd.f32 0.001, %v698_v51 }
 0x140   :  { %1053 = vrsqrt.f32 %v700_v53 }
 0x14a   :  { %v1054_v62 = vpop.eup %1053 }
 0x14b   :  { %v702_v63 = vmul.f32 %v1054_v62, %v699_v58 }
 0x14d   :  { %v704_v3 = vmul.f32 %v702_v63, %v668_v46  ;;  %v710_v4 = vrot.slane %v702_v63, %v709_v61 }
 0x14f   :  { %v705_v5 = vsub.f32 %v703_v0, %v704_v3  ;;  %v712_v6 = vmul.f32 %v710_v4, %v1258_v56  ;;  %v713_v7 = vmul.f32 %v710_v4, %v1266_v1  ;;  %v714_v8 = vmul.f32 %v710_v4, %v1254_v52 }
 0x150   :  { %v715_v9 = vmul.f32 %v710_v4, %v1262_v60  ;;  %v716_v10 = vmul.f32 %v710_v4, %v1260_v59  ;;  %v717_v11 = vmul.f32 %v710_v4, %v1268_v2  ;;  %v718_v12 = vmul.f32 %v710_v4, %v1256_v55 }
 0x151   :  { %v723_v13 = vrot.slane %v705_v5, %v709_v61 }
 0x153   :  { %v725_v14 = vadd.f32 %v723_v13, %v712_v6  ;;  %v726_v15 = vadd.f32 %v723_v13, %v713_v7  ;;  %v727_v16 = vadd.f32 %v723_v13, %v714_v8  ;;  %v728_v17 = vadd.f32 %v723_v13, %v715_v9 }
 0x154   :  { %v729_v18 = vadd.f32 %v723_v13, %v716_v10  ;;  %v730_v19 = vadd.f32 %v723_v13, %v717_v11  ;;  %v731_v56 = vadd.f32 %v723_v13, %v718_v12 }
 0x155   :  { %v732_v1 = vmax.f32 %v725_v14, 0.0  ;;  %v733_v20 = vmax.f32 %v726_v15, 0.0  ;;  %v734_v52 = vmax.f32 %v727_v16, 0.0  ;;  %v735_v21 = vmax.f32 %v728_v17, 0.0 }
 0x156   :  { %v736_v60 = vmax.f32 %v729_v18, 0.0  ;;  %v737_v22 = vmax.f32 %v730_v19, 0.0  ;;  %v738_v59 = vmax.f32 %v731_v56, 0.0 }
 0x157   :  { %v848_v2 = vpack.c.bf16 %v732_v1, %v732_v1  ;;  %v849_v23 = vpack.c.bf16 %v733_v20, %v733_v20  ;;  %v850_v55 = vpack.c.bf16 %v734_v52, %v734_v52  ;;  %v851_v24 = vpack.c.bf16 %v735_v21, %v735_v21 }
 0x158   :  { %v852_v25 = vpack.c.bf16 %v736_v60, %v736_v60  ;;  %v853_v26 = vpack.c.bf16 %v737_v22, %v737_v22  ;;  %v854_v27 = vpack.c.bf16 %v738_v59, %v738_v59 }
 0x159   :  { %769 = vst.msk [vmem:[%s1345_s4] sm:$0xf] %vm768_vm2, %v848_v2  ;;  %770 = vst.msk [vmem:[%s1345_s4 + $0x4] sm:$0xf] %vm768_vm2, %v849_v23 }
 0x15a   :  { %771 = vst.msk [vmem:[%s1345_s4 + $0x8] sm:$0xf] %vm768_vm2, %v850_v55  ;;  %772 = vst.msk [vmem:[%s1345_s4 + $0xc] sm:$0xf] %vm768_vm2, %v851_v24 }
 0x15b   :  { %773 = vst.msk [vmem:[%s1345_s4 + $0x10] sm:$0xf] %vm768_vm2, %v852_v25  ;;  %774 = vst.msk [vmem:[%s1345_s4 + $0x14] sm:$0xf] %vm768_vm2, %v853_v26 }
 0x15c   :  { %776 = vst.msk [vmem:[%s1345_s4 + $0x18] sm:$0x1] %vm775_vm3, %v854_v27 }

// kernel: inception_v4_stem_forward.17
= control target key start
LH: loop header
LB: loop body
LE: loop exit
PB: predicated region body
PF: predicated region fallthrough
CT: control target
= control target key end

     0   :  { %v1010_v40 = vmov 0.0   ;;  %s1011_s9 = smov 64   ;;  %vm1012_vm0 = vmmov 0   ;;  %s1013_s22 = smov 32   ;;  %vm715_vm1 = vcmask 523264   ;;  %vm706_vm2 = vcmask 261120   ;;  %s1282_s1 = inlined_call_operand.vmem [shape: bf16[896,96], index: 1, kind: input, shape index: {}]   ;;  %s1283_s0 = inlined_call_operand.vmem [shape: bf16[8,896], index: 0, kind: input, shape index: {}]   ;;  %s1284_s4 = inlined_call_operand.vmem [shape: f32[8,192], index: 4, kind: output, shape index: {}]   ;;  %s1285_s2 = inlined_call_operand.vmem [shape: f32[1,96], index: 2, kind: input, shape index: {}]   ;;  %s1286_s3 = inlined_call_operand.vmem [shape: f32[1,96], index: 3, kind: input, shape index: {}]  }
   0x1   :  { %v945_v0 = vld [vmem:[%s1282_s1 + $0x40] sm:$0xff]   ;;  %v949_v4 = vld [vmem:[%s1282_s1 + $0x48] sm:$0xff]   ;;  %v953_v8 = vld [vmem:[%s1282_s1 + $0x50] sm:$0xff]   ;;  %s1014_s29 = smov 96   ;;  %vm655_vm3 = vcmask 785408   ;;  %vm765_vm4 = vcmask 1048320  }
   0x2   :  { %v946_v1 = vld [vmem:[%s1282_s1 + $0xc0] sm:$0xff]   ;;  %835 = vmatprep.subr.bf16.mxu0 %v945_v0  ;;  %v950_v5 = vld [vmem:[%s1282_s1 + $0xc8] sm:$0xff]   ;;  %v954_v9 = vld [vmem:[%s1282_s1 + $0xd0] sm:$0xff]  }
   0x3   :  { %v947_v2 = vld [vmem:[%s1282_s1] sm:$0xff]   ;;  %857 = vmatprep.subr.bf16.mxu1 %v946_v1  ;;  %v951_v6 = vld [vmem:[%s1282_s1 + $0x8] sm:$0xff]   ;;  %v955_v10 = vld [vmem:[%s1282_s1 + $0x10] sm:$0xff]  }
   0x4   :  { %v948_v3 = vld [vmem:[%s1282_s1 + $0x80] sm:$0xff]   ;;  %836 = vmatpush3.bf16.msra.mxu0 %v947_v2  ;;  %v952_v7 = vld [vmem:[%s1282_s1 + $0x88] sm:$0xff]   ;;  %v956_v11 = vld [vmem:[%s1282_s1 + $0x90] sm:$0xff]  }
   0x5   :  { %858 = vmatpush3.bf16.msra.mxu1 %v948_v3  ;;  %837 = vmatprep.subr.bf16.mxu0 %v949_v4  ;;  %v957_v12 = vld [vmem:[%s1282_s1 + $0x58] sm:$0xff]   ;;  %v961_v16 = vld [vmem:[%s1282_s1 + $0x60] sm:$0xff]   ;;  %v965_v20 = vld [vmem:[%s1282_s1 + $0x68] sm:$0xff]  }
   0x6   :  { %859 = vmatprep.subr.bf16.mxu1 %v950_v5  ;;  %v958_v13 = vld [vmem:[%s1282_s1 + $0xd8] sm:$0xff]   ;;  %v962_v17 = vld [vmem:[%s1282_s1 + $0xe0] sm:$0xff]   ;;  %v966_v21 = vld [vmem:[%s1282_s1 + $0xe8] sm:$0xff]  }
   0x7   :  { %v959_v14 = vld [vmem:[%s1282_s1 + $0x18] sm:$0xff]   ;;  %v963_v18 = vld [vmem:[%s1282_s1 + $0x20] sm:$0xff]   ;;  %v967_v22 = vld [vmem:[%s1282_s1 + $0x28] sm:$0xff]  }
   0x8   :  { %838 = vmatpush3.bf16.msra.mxu0 %v951_v6  ;;  %v960_v15 = vld [vmem:[%s1282_s1 + $0x98] sm:$0xff]   ;;  %v964_v19 = vld [vmem:[%s1282_s1 + $0xa0] sm:$0xff]   ;;  %v968_v23 = vld [vmem:[%s1282_s1 + $0xa8] sm:$0xff]  }
   0x9   :  { %860 = vmatpush3.bf16.msra.mxu1 %v952_v7  ;;  %839 = vmatprep.subr.bf16.mxu0 %v953_v8  ;;  %v969_v24 = vld [vmem:[%s1282_s1 + $0x70] sm:$0xff]   ;;  %v973_v28 = vld [vmem:[%s1282_s1 + $0x78] sm:$0xff]   ;;  %v1139_v32 = vld [vmem:[%s1283_s0] sm:$0xff] }
   0xa   :  { %861 = vmatprep.subr.bf16.mxu1 %v954_v9  ;;  %v970_v25 = vld [vmem:[%s1282_s1 + $0xf0] sm:$0xff]   ;;  %v974_v29 = vld [vmem:[%s1282_s1 + $0xf8] sm:$0xff]   ;;  %v1144_v33 = vld [vmem:[%s1283_s0 + $0x8] sm:$0xff]  ;;  %v773_v34 = vcombine.high %v1139_v32, %v1139_v32  ;;  %v772_v36 = vcombine.low %v1139_v32, %v1139_v32  ;;  %710 = vrot.lane.b32.xlu0 %v1139_v32, %s1011_s9  ;;  %v698_v41 = vunpack.c.l.bf16 %v1139_v32  ;;  %v699_v42 = vunpack.c.h.bf16 %v1139_v32 }
   0xb   :  { %v971_v26 = vld [vmem:[%s1282_s1 + $0x30] sm:$0xff]   ;;  %v975_v30 = vld [vmem:[%s1282_s1 + $0x38] sm:$0xff]   ;;  %v775_v35 = vcombine.high %v1144_v33, %v1144_v33  ;;  %v774_v37 = vcombine.low %v1144_v33, %v1144_v33  ;;  %v981_v38 = vld [vmem:[%s1282_s1 + $0x140] sm:$0xff]   ;;  %712 = vrot.lane.b32.xlu1 %v1144_v33, %s1011_s9  ;;  %v720_v50 = vunpack.c.l.bf16 %v1144_v33 }
   0xc   :  { %840 = vmatpush3.bf16.msra.mxu0 %v955_v10  ;;  %v972_v27 = vld [vmem:[%s1282_s1 + $0xb0] sm:$0xff]   ;;  %v976_v31 = vld [vmem:[%s1282_s1 + $0xb8] sm:$0xff]   ;;  %v982_v39 = vld [vmem:[%s1282_s1 + $0x100] sm:$0xff]   ;;  %527 = vmatprep.mubr.bf16.mxu0 %v773_v34  ;;  %v935_v46 = vpack.i.bf16 %v699_v42, %v698_v41 }
   0xd   :  { %862 = vmatpush3.bf16.msra.mxu1 %v956_v11  ;;  %841 = vmatprep.subr.bf16.mxu0 %v957_v12  ;;  %v983_v43 = vld [vmem:[%s1282_s1 + $0x180] sm:$0xff]   ;;  %v984_v44 = vld [vmem:[%s1282_s1 + $0x148] sm:$0xff]   ;;  %v987_v48 = vld [vmem:[%s1282_s1 + $0x150] sm:$0xff]  }
   0xe   :  { %863 = vmatprep.subr.bf16.mxu1 %v958_v13  ;;  %567 = vmatprep.mubr.bf16.mxu1 %v775_v35  ;;  %v985_v45 = vld [vmem:[%s1282_s1 + $0x108] sm:$0xff]   ;;  %v989_v49 = vld [vmem:[%s1282_s1 + $0x190] sm:$0xff]   ;;  %v990_v52 = vld [vmem:[%s1282_s1 + $0x158] sm:$0xff]  }
   0xf   :  { %v986_v47 = vld [vmem:[%s1282_s1 + $0x188] sm:$0xff]   ;;  %936 = vrot.lane.b32.xlu0 %v935_v46, %s1013_s22  ;;  %v988_v51 = vld [vmem:[%s1282_s1 + $0x110] sm:$0xff]   ;;  %730 = vrot.lane.b32.xlu1 %v1144_v33, %s1013_s22 }
  0x10   :  { %842 = vmatpush3.bf16.msra.mxu0 %v959_v14  ;;  %v992_v53 = vld [vmem:[%s1282_s1 + $0x198] sm:$0xff]   ;;  %v993_v55 = vld [vmem:[%s1282_s1 + $0x160] sm:$0xff]   ;;  %v996_v58 = vld [vmem:[%s1282_s1 + $0x168] sm:$0xff]  }
  0x11   :  { %864 = vmatpush3.bf16.msra.mxu1 %v960_v15  ;;  %843 = vmatprep.subr.bf16.mxu0 %v961_v16  ;;  %v991_v54 = vld [vmem:[%s1282_s1 + $0x118] sm:$0xff]   ;;  %v995_v56 = vld [vmem:[%s1282_s1 + $0x1a0] sm:$0xff]   ;;  %v998_v59 = vld [vmem:[%s1282_s1 + $0x1a8] sm:$0xff]  }
  0x12   :  { %865 = vmatprep.subr.bf16.mxu1 %v962_v17  ;;  %v994_v57 = vld [vmem:[%s1282_s1 + $0x120] sm:$0xff]   ;;  %v997_v60 = vld [vmem:[%s1282_s1 + $0x128] sm:$0xff]   ;;  %v999_v61 = vld [vmem:[%s1282_s1 + $0x170] sm:$0xff]  }
  0x13   :  { %722 = vrot.lane.b32.xlu0 %v720_v50, %s1014_s29  ;;  %v20_v62 = vld [vmem:[%s1283_s0 + $0x10] sm:$0xff]  ;;  %v1002_v5 = vld [vmem:[%s1282_s1 + $0x178] sm:$0xff]  }
  0x14   :  { %844 = vmatpush3.bf16.msra.mxu0 %v963_v18  ;;  %v777_v63 = vcombine.high %v20_v62, %v20_v62  ;;  %732 = vrot.lane.b32.xlu1 %v20_v62, %s1013_s22  ;;  %v740_v0 = vunpack.c.l.bf16 %v20_v62  ;;  %v741_v1 = vunpack.c.h.bf16 %v20_v62  ;;  %v1001_v2 = vld [vmem:[%s1282_s1 + $0x1b0] sm:$0xff]   ;;  %v1005_v6 = vld [vmem:[%s1282_s1 + $0x1b8] sm:$0xff]   ;;  %v776_v10 = vcombine.low %v20_v62, %v20_v62 }
  0x15   :  { %866 = vmatpush3.bf16.msra.mxu1 %v964_v19  ;;  %845 = vmatprep.subr.bf16.mxu0 %v965_v20  ;;  %v1000_v3 = vld [vmem:[%s1282_s1 + $0x130] sm:$0xff]   ;;  %v21_v7 = vld [vmem:[%s1283_s0 + $0x18] sm:$0xf] }
  0x16   :  { %867 = vmatprep.subr.bf16.mxu1 %v966_v21  ;;  %v940_v4 = vpack.i.bf16 %v741_v1, %v740_v0  ;;  %v1003_v8 = vld [vmem:[%s1282_s1 + $0x138] sm:$0xff]   ;;  %v778_v9 = vcombine.low %v21_v7, %v21_v7  ;;  %v726_v21 = vrot.slane %v1144_v33, 4 }
  0x17   :  { %752 = vrot.lane.b32.xlu0 %v20_v62, %s1014_s29 }
  0x18   :  { %846 = vmatpush3.bf16.msra.mxu0 %v967_v22  ;;  %941 = vrot.lane.b32.xlu1 %v940_v4, %s1011_s9 }
  0x19   :  { %868 = vmatpush3.bf16.msra.mxu1 %v968_v23  ;;  %847 = vmatprep.subr.bf16.mxu0 %v969_v24 }
  0x1a   :  { %869 = vmatprep.subr.bf16.mxu1 %v970_v25  ;;  %v728_v25 = vunpack.c.l.bf16 %v726_v21 }
  0x1c   :  { %848 = vmatpush3.bf16.msra.mxu0 %v971_v26 }
  0x1d   :  { %870 = vmatpush3.bf16.msra.mxu1 %v972_v27  ;;  %849 = vmatprep.subr.bf16.mxu0 %v973_v28 }
  0x1e   :  { %871 = vmatprep.subr.bf16.mxu1 %v974_v29 }
  0x20   :  { %850 = vmatpush3.bf16.msra.mxu0 %v975_v30 }
  0x21   :  { %872 = vmatpush3.bf16.msra.mxu1 %v976_v31  ;;  %879 = vmatprep.subr.bf16.mxu0 %v981_v38 }
  0x22   :  { %910 = vmatprep.subr.bf16.mxu1 %v1010_v40 }
  0x23   :  { %528 = vmatmul.mubr.bf16.vlgmr.msra.gmra.mrb[0].mxu0 %v772_v36 }
  0x24   :  { %568 = vmatmul.mubr.bf16.vlgmr.msra.gmra.mrb[0].mxu1 %v774_v37  ;;  %880 = vmatpush3.bf16.msra.mxu0 %v982_v39 }
  0x25   :  { %911 = vmatpush3.bf16.msra.mxu1 %v983_v43  ;;  %881 = vmatprep.subr.bf16.mxu0 %v984_v44 }
  0x26   :  { %912 = vmatprep.subr.bf16.mxu1 %v1010_v40  ;;  %926 = vmatprep.mubr.msk.bf16.mxu1 %vm1012_vm0, %v1010_v40 }
  0x27   :  { %607 = vmatprep.mubr.bf16.mxu0 %v777_v63 }
  0x28   :  { %882 = vmatpush3.bf16.msra.mxu0 %v985_v45 }
  0x29   :  { %913 = vmatpush3.bf16.msra.mxu1 %v986_v47  ;;  %883 = vmatprep.subr.bf16.mxu0 %v987_v48 }
  0x2a   :  { %914 = vmatprep.subr.bf16.mxu1 %v1010_v40 }
  0x2c   :  { %884 = vmatpush3.bf16.msra.mxu0 %v988_v51 }
  0x2d   :  { %915 = vmatpush3.bf16.msra.mxu1 %v989_v49  ;;  %885 = vmatprep.subr.bf16.mxu0 %v990_v52 }
  0x2e   :  { %916 = vmatprep.subr.bf16.mxu1 %v1010_v40 }
  0x30   :  { %886 = vmatpush3.bf16.msra.mxu0 %v991_v54 }
  0x31   :  { %917 = vmatpush3.bf16.msra.mxu1 %v992_v53  ;;  %887 = vmatprep.subr.bf16.mxu0 %v993_v55 }
  0x32   :  { %918 = vmatprep.subr.bf16.mxu1 %v1010_v40 }
  0x34   :  { %888 = vmatpush3.bf16.msra.mxu0 %v994_v57 }
  0x35   :  { %919 = vmatpush3.bf16.msra.mxu1 %v995_v56  ;;  %889 = vmatprep.subr.bf16.mxu0 %v996_v58 }
  0x36   :  { %920 = vmatprep.subr.bf16.mxu1 %v1010_v40 }
  0x38   :  { %890 = vmatpush3.bf16.msra.mxu0 %v997_v60 }
  0x39   :  { %921 = vmatpush3.bf16.msra.mxu1 %v998_v59  ;;  %891 = vmatprep.subr.bf16.mxu0 %v999_v61 }
  0x3a   :  { %922 = vmatprep.subr.bf16.mxu1 %v1010_v40 }
  0x3c   :  { %892 = vmatpush3.bf16.msra.mxu0 %v1000_v3 }
  0x3d   :  { %923 = vmatpush3.bf16.msra.mxu1 %v1001_v2  ;;  %893 = vmatprep.subr.bf16.mxu0 %v1002_v5 }
  0x3e   :  { %924 = vmatprep.subr.bf16.mxu1 %v1010_v40 }
  0x40   :  { %894 = vmatpush3.bf16.msra.mxu0 %v1003_v8 }
  0x41   :  { %925 = vmatpush3.bf16.msra.mxu1 %v1005_v6 }
  0x43   :  { %608 = vmatmul.mubr.bf16.vlgmr.msra.gmra.mrb[4].mxu0 %v776_v10 }
  0x44   :  { %927 = vmatmul.mubr.bf16.vlgmr.msra.gmra.mrb[4].mxu1 %v778_v9 }
  0x7c   :  { %v711_v11 = vpop.permute.xlu0 %710 }
  0x7d   :  { %v714_v12 = vrot.slane %v711_v11, 4  ;;  %v713_v13 = vpop.permute.xlu1 %712 }
  0x7f   :  { %v716_v14 = vsel %vm715_vm1, %v714_v12, %v713_v13 }
  0x80   :  { %v718_v18 = vunpack.c.l.bf16 %v716_v14 }
  0x81   :  { %v937_v15 = vpop.permute.xlu0 %936  ;;  %v731_v24 = vpop.permute.xlu1 %730 }
  0x82   :  { %v939_v16 = vunpack.i.h.bf16 %v937_v15  ;;  %v938_v17 = vunpack.i.l.bf16 %v937_v15  ;;  %v734_v27 = vrot.slane %v731_v24, 4  ;;  %v684_v24 = vlaneseq }
  0x84   :  { %v707_v19 = vsel %vm706_vm2, %v938_v17, %v939_v16 }
  0x85   :  { %v709_v20 = vmax.f32 %v698_v41, %v707_v19  ;;  %v723_v23 = vpop.permute.xlu0 %722  ;;  %v758_v41 = vunpack.c.l.bf16 %v21_v7 }
  0x86   :  { %v733_v28 = vpop.permute.xlu1 %732 }
  0x87   :  { %v719_v22 = vmax.f32 %v709_v20, %v718_v18  ;;  %v736_v30 = vsel %vm706_vm2, %v734_v27, %v733_v28 }
  0x88   :  { %v738_v34 = vunpack.c.l.bf16 %v736_v30  ;;  %v680_v30 = vld [vmem:[%s1286_s3] sm:$0x1] }
  0x89   :  { %v725_v26 = vmax.f32 %v719_v22, %v723_v23  ;;  %v753_v31 = vpop.permute.xlu0 %752 }
  0x8a   :  { %v754_v35 = vrot.slane %v753_v31, 4  ;;  %v942_v37 = vpop.permute.xlu1 %941 }
  0x8b   :  { %v729_v29 = vmax.f32 %v725_v26, %v728_v25  ;;  %v944_v38 = vunpack.i.h.bf16 %v942_v37  ;;  %v943_v39 = vunpack.i.l.bf16 %v942_v37  ;;  %v685_v25 = vshrl.u32 %v684_v24, 7  ;;  %v676_v26 = vld [vmem:[%s1285_s2] sm:$0x1] }
  0x8c   :  { %v756_v32 = vunpack.c.l.bf16 %v754_v35 }
  0x8d   :  { %v739_v36 = vmax.f32 %v729_v29, %v738_v34  ;;  %v749_v40 = vsel %vm715_vm1, %v943_v39, %v944_v38  ;;  %v686_v27 = vsub.s32 0, %v685_v25 }
  0x8f   :  { %v751_v33 = vmax.f32 %v739_v36, %v749_v40 }
  0x91   :  { %v757_v42 = vmax.f32 %v751_v33, %v756_v32 }
  0x93   :  { %v759_v43 = vmax.f32 %v757_v42, %v758_v41 }
  0x95   :  { %762 = vrot.lane.b32.xlu0 %v759_v43, %s1014_s29 }
  0xf6   :  { %v851_v44 = vpop.f32.mrb[0].mxu0 }
  0xf7   :  { %v873_v45 = vpop.f32.mrb[0].mxu1  ;;  %v852_v46 = vpop.f32.mrb[1].mxu0 }
  0xf8   :  { %v874_v47 = vpop.f32.mrb[1].mxu1  ;;  %v853_v48 = vadd.f32 %v852_v46, %v851_v44  ;;  %v854_v50 = vpop.f32.mrb[2].mxu0 }
  0xf9   :  { %v875_v49 = vadd.f32 %v874_v47, %v873_v45  ;;  %v876_v51 = vpop.f32.mrb[2].mxu1  ;;  %v855_v52 = vpop.f32.mrb[3].mxu0 }
  0xfa   :  { %v877_v53 = vpop.f32.mrb[3].mxu1 }
  0xfb   :  { %v570_v54 = vadd.f32 %v875_v49, %v853_v48 }
 0x107   :  { %v763_v14 = vpop.permute.xlu0 %762 }
 0x108   :  { %767 = vst.msk [vmem:[%s1284_s4 + $0x8] sm:$0xff] %vm715_vm1, %v763_v14 }
 0x116   :  { %v895_v56 = vpop.f32.mrb[4].mxu0 }
 0x117   :  { %v649_v55 = vpop.f32.mrb[4].mxu1  ;;  %v896_v58 = vpop.f32.mrb[5].mxu0 }
 0x118   :  { %v928_v57 = vpop.f32.mrb[5].mxu1  ;;  %v897_v60 = vadd.f32 %v896_v58, %v895_v56  ;;  %v898_v61 = vpop.f32.mrb[6].mxu0 }
 0x119   :  { %v652_v59 = vpop.f32.mrb[6].mxu1  ;;  %v899_v63 = vpop.f32.mrb[7].mxu0 }
 0x11a   :  { %v929_v62 = vpop.f32.mrb[7].mxu1  ;;  %v610_v0 = vadd.f32 %v897_v60, %v570_v54 }
 0x11c   :  { %v650_v1 = vadd.f32 %v649_v55, %v610_v0 }
 0x11e   :  { %v656_v2 = vsel %vm655_vm3, %v650_v1, 0.0  ;;  %v664_v3 = vmul.f32 %v650_v1, %v650_v1 }
 0x11f   :  { %v657_v4 = vrot.slane %v656_v2, 4 }
 0x120   :  { %v665_v5 = vsel %vm655_vm3, %v664_v3, 0.0 }
 0x121   :  { %v658_v6 = vadd.f32 %v657_v4, %v656_v2  ;;  %v666_v7 = vrot.slane %v665_v5, 4 }
 0x123   :  { %v659_v8 = vrot.slane %v658_v6, 2  ;;  %v667_v9 = vadd.f32 %v666_v7, %v665_v5 }
 0x125   :  { %v660_v10 = vadd.f32 %v659_v8, %v658_v6  ;;  %v668_v11 = vrot.slane %v667_v9, 2 }
 0x127   :  { %v661_v12 = vrot.slane %v660_v10, 1  ;;  %v669_v13 = vadd.f32 %v668_v11, %v667_v9 }
 0x129   :  { %v662_v15 = vadd.f32 %v661_v12, %v660_v10  ;;  %v670_v16 = vrot.slane %v669_v13, 1 }
 0x12b   :  { %v663_v17 = vmul.f32 0.125, %v662_v15  ;;  %v671_v18 = vadd.f32 %v670_v16, %v669_v13 }
 0x12d   :  { %v672_v19 = vmul.f32 0.125, %v671_v18  ;;  %v673_v20 = vmul.f32 %v663_v17, %v663_v17 }
 0x12f   :  { %v674_v21 = vsub.f32 %v672_v19, %v673_v20 }
 0x131   :  { %v675_v22 = vmax.f32 %v674_v21, 0.0 }
 0x133   :  { %v677_v23 = vadd.f32 0.001, %v675_v22 }
 0x135   :  { %1008 = vrsqrt.f32 %v677_v23 }
 0x13f   :  { %v1009_v28 = vpop.eup %1008 }
 0x140   :  { %v679_v29 = vmul.f32 %v1009_v28, %v676_v26 }
 0x142   :  { %v681_v31 = vmul.f32 %v679_v29, %v663_v17  ;;  %v687_v34 = vrot.slane %v679_v29, %v686_v27 }
 0x144   :  { %v682_v35 = vsub.f32 %v680_v30, %v681_v31  ;;  %v689_v36 = vmul.f32 %v687_v34, %v650_v1 }
 0x146   :  { %v694_v37 = vrot.slane %v682_v35, %v686_v27 }
 0x148   :  { %v696_v38 = vadd.f32 %v694_v37, %v689_v36 }
 0x14a   :  { %v697_v39 = vmax.f32 %v696_v38, 0.0 }
 0x14c   :  { %760 = vst.msk [vmem:[%s1284_s4] sm:$0xff] %vm655_vm3, %v697_v39 }
 0x14d   :  { %766 = vst.msk [vmem:[%s1284_s4] sm:$0xff] %vm765_vm4, %v763_v14 }

</bundles_post_ra>
